<compile_context>
chip_gen: v6e
topology: v6e:2x2x1
jax: 0.10.0
libtpu: 0.0.40
codegen_flags: <defaults>
</compile_context>

<pallas_src>
import functools

import jax
import jax.numpy as jnp
from jax.experimental import pallas as pl
from jax.experimental.pallas import tpu as pltpu

VMEM_LIMIT = 32 * 1024 * 1024
FC2_PAD = 128


def _pick_tile(dim, prefer, align):
    """Largest multiple of `align` dividing `dim` that is <= `prefer`; else full `dim`."""
    if dim <= prefer:
        return dim
    t = (prefer // align) * align
    while t >= align:
        if dim % t == 0:
            return t
        t -= align
    return dim


# ----------------------------------------------------------------------------
# Kernel 1: tiled matmul with fused affine epilogue  (conv1 / fc1 / fc2)
# ----------------------------------------------------------------------------
def _mm_affine_kernel(x_ref, w_ref, s_ref, b_ref, o_ref, *, clip):
    acc = jnp.dot(x_ref[...], w_ref[...], preferred_element_type=jnp.float32)
    y = acc * s_ref[...] + b_ref[...]
    if clip:
        y = jnp.clip(y, -1.0, 1.0)                       # Hardtanh
    o_ref[...] = y.astype(o_ref.dtype)


def _mm_bias_kernel(x_ref, w_ref, b_ref, o_ref, *, clip):
    acc = jnp.dot(x_ref[...], w_ref[...], preferred_element_type=jnp.float32)
    y = acc + b_ref[...]
    if clip:
        y = jnp.clip(y, -1.0, 1.0)
    o_ref[...] = y.astype(o_ref.dtype)


def matmul_affine(x, w, bias, scale=None, *, clip=False):
    """(x @ w) [* scale] + bias, optionally clipped to [-1, 1].

    bf16 MXU operands, f32 accumulation + epilogue.  Tiled over M (mult of 16
    for bf16 sublane packing) and N (mult of 128 -> lane-dense stores).
    """
    M, K = x.shape
    K2, N = w.shape
    assert K == K2
    x = x.astype(jnp.bfloat16)
    w = w.astype(jnp.bfloat16)
    tm = _pick_tile(M, 512, 16)
    tn = _pick_tile(N, 512, 128)
    grid = (M // tm, N // tn)
    x_spec = pl.BlockSpec((tm, K), lambda i, j: (i, 0))
    w_spec = pl.BlockSpec((K, tn), lambda i, j: (0, j))
    v_spec = pl.BlockSpec((1, tn), lambda i, j: (0, j))
    o_spec = pl.BlockSpec((tm, tn), lambda i, j: (i, j))
    cparams = pltpu.CompilerParams(
        dimension_semantics=("parallel", "parallel"),
        vmem_limit_bytes=VMEM_LIMIT,
    )
    if scale is None:     # skip the epilogue multiply entirely (conv layers)
        kern = functools.partial(_mm_bias_kernel, clip=clip)
        in_specs = [x_spec, w_spec, v_spec]
        args = (x, w, bias.reshape(1, N).astype(jnp.float32))
    else:
        kern = functools.partial(_mm_affine_kernel, clip=clip)
        in_specs = [x_spec, w_spec, v_spec, v_spec]
        args = (x, w, scale.reshape(1, N).astype(jnp.float32),
                bias.reshape(1, N).astype(jnp.float32))
    return pl.pallas_call(
        kern,
        out_shape=jax.ShapeDtypeStruct((M, N), jnp.float32),
        grid=grid,
        in_specs=in_specs,
        out_specs=o_spec,
        compiler_params=cparams,
    )(*args)


# ----------------------------------------------------------------------------
# Kernel 2: fused 2x2 max-pool + folded BatchNorm + Hardtanh
# ----------------------------------------------------------------------------
def _pool_bn_htanh_kernel(x_ref, s_ref, t_ref, o_ref):
    ho, wo, c = o_ref.shape
    x = x_ref[...]                                 # (2*ho, wo, 2c) f32
    x = x.reshape(ho, 2, wo, 2 * c)                # leading-dim split (free)
    m = jnp.maximum(x[:, 0], x[:, 1])              # vertical max   (row pairs)
    m = jnp.maximum(m[:, :, :c], m[:, :, c:])      # horizontal max (lane halves)
    y = m * s_ref[...] + t_ref[...]                # folded BatchNorm (eval mode)
    o_ref[...] = jnp.clip(y, -1.0, 1.0)            # Hardtanh


def pool_bn_htanh(y_nhwc, scale, bias):
    """2x2 / stride-2 max pool + BN + Hardtanh; one image per grid step."""
    N, H, W, C = y_nhwc.shape
    Ho, Wo = H // 2, W // 2
    # Free reshape: horizontally adjacent pixels become lane halves of a 2C row.
    x2 = y_nhwc.reshape(N * H, Wo, 2 * C)
    out = pl.pallas_call(
        _pool_bn_htanh_kernel,
        out_shape=jax.ShapeDtypeStruct((N * Ho, Wo, C), jnp.float32),
        grid=(N,),
        in_specs=[
            pl.BlockSpec((H, Wo, 2 * C), lambda n: (n, 0, 0)),
            pl.BlockSpec((1, 1, C), lambda n: (0, 0, 0)),
            pl.BlockSpec((1, 1, C), lambda n: (0, 0, 0)),
        ],
        out_specs=pl.BlockSpec((Ho, Wo, C), lambda n: (n, 0, 0)),
        compiler_params=pltpu.CompilerParams(
            dimension_semantics=("parallel",), vmem_limit_bytes=VMEM_LIMIT),
    )(x2, scale.reshape(1, 1, C), bias.reshape(1, 1, C))
    return out.reshape(N, Ho, Wo, C)


# ----------------------------------------------------------------------------
# Kernel 3: fused 3x3 conv (conv2) — 9 shifted matmuls, no im2col in HBM
# ----------------------------------------------------------------------------
def _conv3x3_wide_kernel(x_ref, w_ref, b_ref, o_ref, *, wp):
    # x_ref: (1, (H+3)*wp, Cin) f32 flattened zero-padded image
    # w_ref: (9, Cin, Cout) bf16 ;  b_ref: (1, Cout) f32
    # o_ref: (1, H*wp, Cout) f32 "wide" output; columns >= W are junk
    L = o_ref.shape[1]
    acc = None
    for k in range(9):
        dh, dw = divmod(k, 3)
        win = x_ref[0, pl.ds(dh * wp + dw, L), :].astype(jnp.bfloat16)
        part = jnp.dot(win, w_ref[k], preferred_element_type=jnp.float32)
        acc = part if acc is None else acc + part
    o_ref[0] = acc + b_ref[...]


def conv3x3_fused(x_nhwc, w9, bias):
    """3x3 / pad 1 / stride 1 conv as 9 offset-window MXU matmuls per image.

    Returns a "wide" (N, H, W+2, Cout) map; the last two columns are junk and
    are discarded right after the following max-pool.
    """
    N, H, W, Cin = x_nhwc.shape
    Cout = w9.shape[-1]
    Wp = W + 2
    # one extra zero row at the bottom backs the (discarded) junk columns' reads
    xp = jnp.pad(x_nhwc, ((0, 0), (1, 2), (1, 1), (0, 0)))        # (N, H+3, W+2, Cin)
    xf = xp.reshape(N, (H + 3) * Wp, Cin)                         # free reshape
    out = pl.pallas_call(
        functools.partial(_conv3x3_wide_kernel, wp=Wp),
        out_shape=jax.ShapeDtypeStruct((N, H * Wp, Cout), jnp.float32),
        grid=(N,),
        in_specs=[
            pl.BlockSpec((1, (H + 3) * Wp, Cin), lambda n: (n, 0, 0)),
            pl.BlockSpec((9, Cin, Cout), lambda n: (0, 0, 0)),
            pl.BlockSpec((1, Cout), lambda n: (0, 0)),
        ],
        out_specs=pl.BlockSpec((1, H * Wp, Cout), lambda n: (n, 0, 0)),
        compiler_params=pltpu.CompilerParams(
            dimension_semantics=("parallel",), vmem_limit_bytes=VMEM_LIMIT),
    )(xf, w9, bias.reshape(1, Cout))
    return out.reshape(N, H, Wp, Cout)


# ----------------------------------------------------------------------------
# Glue: im2col (conv1 only), BN folding, parameters
# ----------------------------------------------------------------------------
def im2col_3x3(x):
    """(N,H,W,C) -> (N*H*W, 9*C) patches for 3x3 / pad 1 / stride 1 (C_in=1 only)."""
    N, H, W, C = x.shape
    xp = jnp.pad(x, ((0, 0), (1, 1), (1, 1), (0, 0)))
    cols = [xp[:, dh:dh + H, dw:dw + W, :] for dh in range(3) for dw in range(3)]
    patches = jnp.stack(cols, axis=3)                 # (N,H,W,9,C)
    return patches.reshape(N * H * W, 9 * C)


def fold_bn(gamma, beta, mean, var, eps=1e-5):
    s = gamma / jnp.sqrt(var + eps)
    return s, beta - mean * s


def init_params(key):
    """Random parameters in the PyTorch module's native layouts."""
    ks = jax.random.split(key, 11)

    def norm(k, shape, std):
        return std * jax.random.normal(k, shape, jnp.float32)

    def bn(k, c):
        k1, k2, k3, k4 = jax.random.split(k, 4)
        return dict(gamma=1.0 + 0.1 * jax.random.normal(k1, (c,), jnp.float32),
                    beta=0.1 * jax.random.normal(k2, (c,), jnp.float32),
                    mean=0.1 * jax.random.normal(k3, (c,), jnp.float32),
                    var=jax.random.uniform(k4, (c,), jnp.float32, 0.5, 1.5))

    return dict(
        conv1_w=norm(ks[0], (64, 1, 3, 3), 0.30), conv1_b=norm(ks[1], (64,), 0.10),
        conv2_w=norm(ks[2], (64, 64, 3, 3), 0.05), conv2_b=norm(ks[3], (64,), 0.10),
        fc1_w=norm(ks[4], (2048, 7 * 7 * 64), 0.02), fc1_b=norm(ks[5], (2048,), 0.10),
        fc2_w=norm(ks[6], (10, 2048), 0.02), fc2_b=norm(ks[7], (10,), 0.10),
        bn1=bn(ks[8], 64), bn2=bn(ks[9], 64), bn3=bn(ks[10], 2048),
        scale=jnp.float32(1e-3),                      # Scale() init value
    )


def prep_params(p):
    """One-time layout prep: bf16 MXU weights, kernel-friendly layouts,
    folded eval-mode BatchNorm, fc2 lane padding, fc1 row permutation."""
    q = {}
    # conv weights: (cout,cin,kh,kw) -> (kh,kw,cin,cout), matching im2col / tap order
    q['w1'] = jnp.transpose(p['conv1_w'], (2, 3, 1, 0)).reshape(9 * 1, 64).astype(jnp.bfloat16)
    q['b1'] = p['conv1_b']
    q['w2'] = jnp.transpose(p['conv2_w'], (2, 3, 1, 0)).reshape(9, 64, 64).astype(jnp.bfloat16)
    q['b2'] = p['conv2_b']
    # fc1: reorder input features from torch CHW-flatten order to HWC order so
    # the runtime NHWC reshape needs no transpose.
    wfc1 = p['fc1_w'].T.reshape(64, 7, 7, 2048).transpose(1, 2, 0, 3).reshape(7 * 7 * 64, 2048)
    q['wfc1'] = wfc1.astype(jnp.bfloat16)
    # fc2: pad 10 -> 128 output columns for lane-dense stores.
    q['wfc2'] = jnp.pad(p['fc2_w'].T, ((0, 0), (0, FC2_PAD - 10))).astype(jnp.bfloat16)
    # folded BatchNorms (eval mode)
    q['s1'], q['t1'] = fold_bn(**p['bn1'])
    q['s2'], q['t2'] = fold_bn(**p['bn2'])
    s3, t3 = fold_bn(**p['bn3'])
    q['s3'] = s3
    q['bfc1_eff'] = p['fc1_b'] * s3 + t3              # bn3 folded into fc1 epilogue
    # Scale() folded into fc2 epilogue
    q['scale_vec'] = jnp.full((FC2_PAD,), p['scale'], jnp.float32)
    q['bfc2_eff'] = jnp.pad(p['fc2_b'], (0, FC2_PAD - 10)) * p['scale']
    return q


# ----------------------------------------------------------------------------
# VGG3 forward
# ----------------------------------------------------------------------------
def vgg3_forward(q, x_nchw):
    N = x_nchw.shape[0]
    x = jnp.transpose(x_nchw, (0, 2, 3, 1)).astype(jnp.bfloat16)      # NCHW -> NHWC

    # conv1 -> max_pool2d(2) -> bn1 -> hardtanh -> qact1(identity)
    p1 = im2col_3x3(x)                                                # (N*784, 9) bf16
    c1 = matmul_affine(p1, q['w1'], q['b1'])                          # (N*784, 64) f32
    h1 = pool_bn_htanh(c1.reshape(N, 28, 28, 64), q['s1'], q['t1'])   # (N,14,14,64)

    # conv2 (fused 9-tap) -> max_pool2d(2) -> bn2 -> hardtanh -> qact2(identity)
    c2 = conv3x3_fused(h1, q['w2'], q['b2'])                          # (N,14,16,64) wide
    wo = h1.shape[2] // 2
    h2 = pool_bn_htanh(c2, q['s2'], q['t2'])[:, :, :wo, :]            # (N,7,7,64)

    # torch.flatten(x, 1): wfc1 rows were pre-permuted to NHWC feature order,
    # so a plain NHWC reshape is equivalent to the NCHW channel-major flatten.
    flat = h2.reshape(N, 7 * 7 * 64)

    # fc1 -> bn3 -> hardtanh (folded into the matmul epilogue, f32)
    z1 = matmul_affine(flat, q['wfc1'], q['bfc1_eff'], scale=q['s3'], clip=True)

    # fc2 -> Scale(); computed on 128 padded lanes, real 10 logits sliced after
    z2 = matmul_affine(z1, q['wfc2'], q['bfc2_eff'], scale=q['scale_vec'])
    return z2[:, :10]


if __name__ == "__main__":
    key = jax.random.PRNGKey(0)
    kp, kx = jax.random.split(key)
    params = prep_params(init_params(kp))
    # VGG3's fc1 (7*7*64) implies 1x28x28 inputs (MNIST); batch = 2.
    x = jax.random.normal(kx, (2, 1, 28, 28), jnp.float32)
    out = jax.jit(vgg3_forward)(params, x)
    jax.block_until_ready(out)
    assert out.shape == (2, 10) and out.dtype == jnp.float32
    print("KERNEL_OK")
</pallas_src>

<mosaic_0001>
module attributes {stable_mosaic.version = 11 : i64} {
  func.func @_mm_bias_kernel(%arg0: i32, %arg1: i32, %arg2: memref<224x9xbf16, #tpu.memory_space<vmem>>, %arg3: memref<9x64xbf16, #tpu.memory_space<vmem>>, %arg4: memref<1x64xf32, #tpu.memory_space<vmem>>, %arg5: memref<224x64xf32, #tpu.memory_space<vmem>>) attributes {dimension_semantics = [#tpu.dimension_semantics<parallel>, #tpu.dimension_semantics<parallel>], iteration_bounds = array<i64: 7, 1>, scalar_prefetch = 0 : i64, scratch_operands = 0 : i64, tpu.core_type = #tpu.core_type<tc>, window_params = [{transform_indices = @transform_0, window_bounds = array<i64: 224, 9>}, {transform_indices = @transform_1, window_bounds = array<i64: 9, 64>}, {transform_indices = @transform_2, window_bounds = array<i64: 1, 64>}, {transform_indices = @transform_3, window_bounds = array<i64: 224, 64>}]} {
    %c0 = arith.constant 0 : index
    %c0_0 = arith.constant 0 : index
    %0 = vector.load %arg2[%c0, %c0_0] : memref<224x9xbf16, #tpu.memory_space<vmem>>, vector<224x9xbf16>
    %c0_1 = arith.constant 0 : index
    %c0_2 = arith.constant 0 : index
    %1 = vector.load %arg3[%c0_1, %c0_2] : memref<9x64xbf16, #tpu.memory_space<vmem>>, vector<9x64xbf16>
    %cst = arith.constant dense<0.000000e+00> : vector<224x64xf32>
    %2 = tpu.matmul %0, %1, %cst {dimension_numbers = #tpu.dot_dimension_numbers<[1], [0], [0], [1], [0, 0, 1, 1], [], []>} : vector<224x9xbf16>, vector<9x64xbf16>, vector<224x64xf32> -> vector<224x64xf32>
    %c0_3 = arith.constant 0 : index
    %c0_4 = arith.constant 0 : index
    %3 = vector.load %arg4[%c0_3, %c0_4] : memref<1x64xf32, #tpu.memory_space<vmem>>, vector<1x64xf32>
    %4 = vector.broadcast %3 : vector<1x64xf32> to vector<224x64xf32>
    %5 = arith.addf %2, %4 : vector<224x64xf32>
    %c0_5 = arith.constant 0 : index
    %c0_6 = arith.constant 0 : index
    %6 = vector.load %arg5[%c0_5, %c0_6] : memref<224x64xf32, #tpu.memory_space<vmem>>, vector<224x64xf32>
    tpu.vector_store %arg5[%c0_5, %c0_6], %5 {strides = array<i32>} : memref<224x64xf32, #tpu.memory_space<vmem>>, vector<224x64xf32>,
    return
  }
  func.func @transform_0(%arg0: i32, %arg1: i32) -> (i32, i32) {
    %c0_i32 = arith.constant 0 : i32
    %c0_i32_0 = arith.constant 0 : i32
    return %arg0, %c0_i32 : i32, i32
  }
  func.func @transform_1(%arg0: i32, %arg1: i32) -> (i32, i32) {
    %c0_i32 = arith.constant 0 : i32
    %c0_i32_0 = arith.constant 0 : i32
    return %c0_i32, %arg1 : i32, i32
  }
  func.func @transform_2(%arg0: i32, %arg1: i32) -> (i32, i32) {
    %c0_i32 = arith.constant 0 : i32
    %c0_i32_0 = arith.constant 0 : i32
    return %c0_i32, %arg1 : i32, i32
  }
  func.func @transform_3(%arg0: i32, %arg1: i32) -> (i32, i32) {
    %c0_i32 = arith.constant 0 : i32
    return %arg0, %arg1 : i32, i32
  }
}

module attributes {stable_mosaic.version = 11 : i64} {
  func.func @_pool_bn_htanh_kernel(%arg0: i32, %arg1: memref<28x14x128xf32, #tpu.memory_space<vmem>>, %arg2: memref<1x1x64xf32, #tpu.memory_space<vmem>>, %arg3: memref<1x1x64xf32, #tpu.memory_space<vmem>>, %arg4: memref<14x14x64xf32, #tpu.memory_space<vmem>>) attributes {dimension_semantics = [#tpu.dimension_semantics<parallel>], iteration_bounds = array<i64: 2>, scalar_prefetch = 0 : i64, scratch_operands = 0 : i64, tpu.core_type = #tpu.core_type<tc>, window_params = [{transform_indices = @transform_0, window_bounds = array<i64: 28, 14, 128>}, {pipeline_mode = #tpu.pipeline_mode<synchronous>, transform_indices = @transform_1, window_bounds = array<i64: 1, 1, 64>}, {pipeline_mode = #tpu.pipeline_mode<synchronous>, transform_indices = @transform_2, window_bounds = array<i64: 1, 1, 64>}, {transform_indices = @transform_3, window_bounds = array<i64: 14, 14, 64>}]} {
    %c0 = arith.constant 0 : index
    %c0_0 = arith.constant 0 : index
    %c0_1 = arith.constant 0 : index
    %0 = vector.load %arg1[%c0, %c0_0, %c0_1] : memref<28x14x128xf32, #tpu.memory_space<vmem>>, vector<28x14x128xf32>
    %1 = vector.shape_cast %0 : vector<28x14x128xf32> to vector<14x2x14x128xf32>
    %2 = vector.extract_strided_slice %1 {offsets = [0, 0, 0, 0], sizes = [14, 1, 14, 128], strides = [1, 1, 1, 1]} : vector<14x2x14x128xf32> to vector<14x1x14x128xf32>
    %3 = vector.shape_cast %2 : vector<14x1x14x128xf32> to vector<14x14x128xf32>
    %4 = vector.extract_strided_slice %1 {offsets = [0, 1, 0, 0], sizes = [14, 1, 14, 128], strides = [1, 1, 1, 1]} : vector<14x2x14x128xf32> to vector<14x1x14x128xf32>
    %5 = vector.shape_cast %4 : vector<14x1x14x128xf32> to vector<14x14x128xf32>
    %6 = arith.maximumf %3, %5 : vector<14x14x128xf32>
    %7 = vector.extract_strided_slice %6 {offsets = [0, 0, 0], sizes = [14, 14, 64], strides = [1, 1, 1]} : vector<14x14x128xf32> to vector<14x14x64xf32>
    %8 = vector.extract_strided_slice %6 {offsets = [0, 0, 64], sizes = [14, 14, 64], strides = [1, 1, 1]} : vector<14x14x128xf32> to vector<14x14x64xf32>
    %9 = arith.maximumf %7, %8 : vector<14x14x64xf32>
    %c0_2 = arith.constant 0 : index
    %c0_3 = arith.constant 0 : index
    %c0_4 = arith.constant 0 : index
    %10 = vector.load %arg2[%c0_2, %c0_3, %c0_4] : memref<1x1x64xf32, #tpu.memory_space<vmem>>, vector<1x1x64xf32>
    %11 = vector.broadcast %10 : vector<1x1x64xf32> to vector<14x14x64xf32>
    %12 = arith.mulf %9, %11 : vector<14x14x64xf32>
    %c0_5 = arith.constant 0 : index
    %c0_6 = arith.constant 0 : index
    %c0_7 = arith.constant 0 : index
    %13 = vector.load %arg3[%c0_5, %c0_6, %c0_7] : memref<1x1x64xf32, #tpu.memory_space<vmem>>, vector<1x1x64xf32>
    %14 = vector.broadcast %13 : vector<1x1x64xf32> to vector<14x14x64xf32>
    %15 = arith.addf %12, %14 : vector<14x14x64xf32>
    %cst = arith.constant -1.000000e+00 : f32
    %cst_8 = arith.constant 1.000000e+00 : f32
    %16 = vector.broadcast %cst : f32 to vector<14x14x64xf32>
    %17 = arith.maximumf %16, %15 : vector<14x14x64xf32>
    %18 = vector.broadcast %cst_8 : f32 to vector<14x14x64xf32>
    %19 = arith.minimumf %18, %17 : vector<14x14x64xf32>
    %c0_9 = arith.constant 0 : index
    %c0_10 = arith.constant 0 : index
    %c0_11 = arith.constant 0 : index
    %20 = vector.load %arg4[%c0_9, %c0_10, %c0_11] : memref<14x14x64xf32, #tpu.memory_space<vmem>>, vector<14x14x64xf32>
    tpu.vector_store %arg4[%c0_9, %c0_10, %c0_11], %19 {strides = array<i32>} : memref<14x14x64xf32, #tpu.memory_space<vmem>>, vector<14x14x64xf32>,
    return
  }
  func.func @transform_0(%arg0: i32) -> (i32, i32, i32) {
    %c0_i32 = arith.constant 0 : i32
    %c0_i32_0 = arith.constant 0 : i32
    %c0_i32_1 = arith.constant 0 : i32
    return %arg0, %c0_i32, %c0_i32_0 : i32, i32, i32
  }
  func.func @transform_1(%arg0: i32) -> (i32, i32, i32) {
    %c0_i32 = arith.constant 0 : i32
    %c0_i32_0 = arith.constant 0 : i32
    %c0_i32_1 = arith.constant 0 : i32
    %c0_i32_2 = arith.constant 0 : i32
    return %c0_i32, %c0_i32_0, %c0_i32_1 : i32, i32, i32
  }
  func.func @transform_2(%arg0: i32) -> (i32, i32, i32) {
    %c0_i32 = arith.constant 0 : i32
    %c0_i32_0 = arith.constant 0 : i32
    %c0_i32_1 = arith.constant 0 : i32
    %c0_i32_2 = arith.constant 0 : i32
    return %c0_i32, %c0_i32_0, %c0_i32_1 : i32, i32, i32
  }
  func.func @transform_3(%arg0: i32) -> (i32, i32, i32) {
    %c0_i32 = arith.constant 0 : i32
    %c0_i32_0 = arith.constant 0 : i32
    %c0_i32_1 = arith.constant 0 : i32
    return %arg0, %c0_i32, %c0_i32_0 : i32, i32, i32
  }
}

module attributes {stable_mosaic.version = 11 : i64} {
  func.func @_conv3x3_wide_kernel(%arg0: i32, %arg1: memref<1x272x64xf32, #tpu.memory_space<vmem>>, %arg2: memref<9x64x64xbf16, #tpu.memory_space<vmem>>, %arg3: memref<1x64xf32, #tpu.memory_space<vmem>>, %arg4: memref<1x224x64xf32, #tpu.memory_space<vmem>>) attributes {dimension_semantics = [#tpu.dimension_semantics<parallel>], iteration_bounds = array<i64: 2>, scalar_prefetch = 0 : i64, scratch_operands = 0 : i64, tpu.core_type = #tpu.core_type<tc>, window_params = [{transform_indices = @transform_0, window_bounds = array<i64: 1, 272, 64>}, {pipeline_mode = #tpu.pipeline_mode<synchronous>, transform_indices = @transform_1, window_bounds = array<i64: 9, 64, 64>}, {pipeline_mode = #tpu.pipeline_mode<synchronous>, transform_indices = @transform_2, window_bounds = array<i64: 1, 64>}, {transform_indices = @transform_3, window_bounds = array<i64: 1, 224, 64>}]} {
    %c0 = arith.constant 0 : index
    %c0_0 = arith.constant 0 : index
    %c0_1 = arith.constant 0 : index
    %0 = vector.load %arg1[%c0, %c0_0, %c0_1] : memref<1x272x64xf32, #tpu.memory_space<vmem>>, vector<1x224x64xf32>
    %1 = vector.shape_cast %0 : vector<1x224x64xf32> to vector<224x64xf32>
    %2 = arith.truncf %1 : vector<224x64xf32> to vector<224x64xbf16>
    %c0_2 = arith.constant 0 : index
    %c0_3 = arith.constant 0 : index
    %c0_4 = arith.constant 0 : index
    %3 = vector.load %arg2[%c0_2, %c0_3, %c0_4] : memref<9x64x64xbf16, #tpu.memory_space<vmem>>, vector<1x64x64xbf16>
    %4 = vector.shape_cast %3 : vector<1x64x64xbf16> to vector<64x64xbf16>
    %cst = arith.constant dense<0.000000e+00> : vector<224x64xf32>
    %5 = tpu.matmul %2, %4, %cst {dimension_numbers = #tpu.dot_dimension_numbers<[1], [0], [0], [1], [0, 0, 1, 1], [], []>} : vector<224x64xbf16>, vector<64x64xbf16>, vector<224x64xf32> -> vector<224x64xf32>
    %c0_5 = arith.constant 0 : index
    %c1 = arith.constant 1 : index
    %c0_6 = arith.constant 0 : index
    %6 = vector.load %arg1[%c0_5, %c1, %c0_6] : memref<1x272x64xf32, #tpu.memory_space<vmem>>, vector<1x224x64xf32>
    %7 = vector.shape_cast %6 : vector<1x224x64xf32> to vector<224x64xf32>
    %8 = arith.truncf %7 : vector<224x64xf32> to vector<224x64xbf16>
    %c1_7 = arith.constant 1 : index
    %c0_8 = arith.constant 0 : index
    %c0_9 = arith.constant 0 : index
    %9 = vector.load %arg2[%c1_7, %c0_8, %c0_9] : memref<9x64x64xbf16, #tpu.memory_space<vmem>>, vector<1x64x64xbf16>
    %10 = vector.shape_cast %9 : vector<1x64x64xbf16> to vector<64x64xbf16>
    %cst_10 = arith.constant dense<0.000000e+00> : vector<224x64xf32>
    %11 = tpu.matmul %8, %10, %cst_10 {dimension_numbers = #tpu.dot_dimension_numbers<[1], [0], [0], [1], [0, 0, 1, 1], [], []>} : vector<224x64xbf16>, vector<64x64xbf16>, vector<224x64xf32> -> vector<224x64xf32>
    %12 = arith.addf %5, %11 : vector<224x64xf32>
    %c0_11 = arith.constant 0 : index
    %c2 = arith.constant 2 : index
    %c0_12 = arith.constant 0 : index
    %13 = vector.load %arg1[%c0_11, %c2, %c0_12] : memref<1x272x64xf32, #tpu.memory_space<vmem>>, vector<1x224x64xf32>
    %14 = vector.shape_cast %13 : vector<1x224x64xf32> to vector<224x64xf32>
    %15 = arith.truncf %14 : vector<224x64xf32> to vector<224x64xbf16>
    %c2_13 = arith.constant 2 : index
    %c0_14 = arith.constant 0 : index
    %c0_15 = arith.constant 0 : index
    %16 = vector.load %arg2[%c2_13, %c0_14, %c0_15] : memref<9x64x64xbf16, #tpu.memory_space<vmem>>, vector<1x64x64xbf16>
    %17 = vector.shape_cast %16 : vector<1x64x64xbf16> to vector<64x64xbf16>
    %cst_16 = arith.constant dense<0.000000e+00> : vector<224x64xf32>
    %18 = tpu.matmul %15, %17, %cst_16 {dimension_numbers = #tpu.dot_dimension_numbers<[1], [0], [0], [1], [0, 0, 1, 1], [], []>} : vector<224x64xbf16>, vector<64x64xbf16>, vector<224x64xf32> -> vector<224x64xf32>
    %19 = arith.addf %12, %18 : vector<224x64xf32>
    %c0_17 = arith.constant 0 : index
    %c16 = arith.constant 16 : index
    %c0_18 = arith.constant 0 : index
    %20 = vector.load %arg1[%c0_17, %c16, %c0_18] : memref<1x272x64xf32, #tpu.memory_space<vmem>>, vector<1x224x64xf32>
    %21 = vector.shape_cast %20 : vector<1x224x64xf32> to vector<224x64xf32>
    %22 = arith.truncf %21 : vector<224x64xf32> to vector<224x64xbf16>
    %c3 = arith.constant 3 : index
    %c0_19 = arith.constant 0 : index
    %c0_20 = arith.constant 0 : index
    %23 = vector.load %arg2[%c3, %c0_19, %c0_20] : memref<9x64x64xbf16, #tpu.memory_space<vmem>>, vector<1x64x64xbf16>
    %24 = vector.shape_cast %23 : vector<1x64x64xbf16> to vector<64x64xbf16>
    %cst_21 = arith.constant dense<0.000000e+00> : vector<224x64xf32>
    %25 = tpu.matmul %22, %24, %cst_21 {dimension_numbers = #tpu.dot_dimension_numbers<[1], [0], [0], [1], [0, 0, 1, 1], [], []>} : vector<224x64xbf16>, vector<64x64xbf16>, vector<224x64xf32> -> vector<224x64xf32>
    %26 = arith.addf %19, %25 : vector<224x64xf32>
    %c0_22 = arith.constant 0 : index
    %c17 = arith.constant 17 : index
    %c0_23 = arith.constant 0 : index
    %27 = vector.load %arg1[%c0_22, %c17, %c0_23] : memref<1x272x64xf32, #tpu.memory_space<vmem>>, vector<1x224x64xf32>
    %28 = vector.shape_cast %27 : vector<1x224x64xf32> to vector<224x64xf32>
    %29 = arith.truncf %28 : vector<224x64xf32> to vector<224x64xbf16>
    %c4 = arith.constant 4 : index
    %c0_24 = arith.constant 0 : index
    %c0_25 = arith.constant 0 : index
    %30 = vector.load %arg2[%c4, %c0_24, %c0_25] : memref<9x64x64xbf16, #tpu.memory_space<vmem>>, vector<1x64x64xbf16>
    %31 = vector.shape_cast %30 : vector<1x64x64xbf16> to vector<64x64xbf16>
    %cst_26 = arith.constant dense<0.000000e+00> : vector<224x64xf32>
    %32 = tpu.matmul %29, %31, %cst_26 {dimension_numbers = #tpu.dot_dimension_numbers<[1], [0], [0], [1], [0, 0, 1, 1], [], []>} : vector<224x64xbf16>, vector<64x64xbf16>, vector<224x64xf32> -> vector<224x64xf32>
    %33 = arith.addf %26, %32 : vector<224x64xf32>
    %c0_27 = arith.constant 0 : index
    %c18 = arith.constant 18 : index
    %c0_28 = arith.constant 0 : index
    %34 = vector.load %arg1[%c0_27, %c18, %c0_28] : memref<1x272x64xf32, #tpu.memory_space<vmem>>, vector<1x224x64xf32>
    %35 = vector.shape_cast %34 : vector<1x224x64xf32> to vector<224x64xf32>
    %36 = arith.truncf %35 : vector<224x64xf32> to vector<224x64xbf16>
    %c5 = arith.constant 5 : index
    %c0_29 = arith.constant 0 : index
    %c0_30 = arith.constant 0 : index
    %37 = vector.load %arg2[%c5, %c0_29, %c0_30] : memref<9x64x64xbf16, #tpu.memory_space<vmem>>, vector<1x64x64xbf16>
    %38 = vector.shape_cast %37 : vector<1x64x64xbf16> to vector<64x64xbf16>
    %cst_31 = arith.constant dense<0.000000e+00> : vector<224x64xf32>
    %39 = tpu.matmul %36, %38, %cst_31 {dimension_numbers = #tpu.dot_dimension_numbers<[1], [0], [0], [1], [0, 0, 1, 1], [], []>} : vector<224x64xbf16>, vector<64x64xbf16>, vector<224x64xf32> -> vector<224x64xf32>
    %40 = arith.addf %33, %39 : vector<224x64xf32>
    %c0_32 = arith.constant 0 : index
    %c32 = arith.constant 32 : index
    %c0_33 = arith.constant 0 : index
    %41 = vector.load %arg1[%c0_32, %c32, %c0_33] : memref<1x272x64xf32, #tpu.memory_space<vmem>>, vector<1x224x64xf32>
    %42 = vector.shape_cast %41 : vector<1x224x64xf32> to vector<224x64xf32>
    %43 = arith.truncf %42 : vector<224x64xf32> to vector<224x64xbf16>
    %c6 = arith.constant 6 : index
    %c0_34 = arith.constant 0 : index
    %c0_35 = arith.constant 0 : index
    %44 = vector.load %arg2[%c6, %c0_34, %c0_35] : memref<9x64x64xbf16, #tpu.memory_space<vmem>>, vector<1x64x64xbf16>
    %45 = vector.shape_cast %44 : vector<1x64x64xbf16> to vector<64x64xbf16>
    %cst_36 = arith.constant dense<0.000000e+00> : vector<224x64xf32>
    %46 = tpu.matmul %43, %45, %cst_36 {dimension_numbers = #tpu.dot_dimension_numbers<[1], [0], [0], [1], [0, 0, 1, 1], [], []>} : vector<224x64xbf16>, vector<64x64xbf16>, vector<224x64xf32> -> vector<224x64xf32>
    %47 = arith.addf %40, %46 : vector<224x64xf32>
    %c0_37 = arith.constant 0 : index
    %c33 = arith.constant 33 : index
    %c0_38 = arith.constant 0 : index
    %48 = vector.load %arg1[%c0_37, %c33, %c0_38] : memref<1x272x64xf32, #tpu.memory_space<vmem>>, vector<1x224x64xf32>
    %49 = vector.shape_cast %48 : vector<1x224x64xf32> to vector<224x64xf32>
    %50 = arith.truncf %49 : vector<224x64xf32> to vector<224x64xbf16>
    %c7 = arith.constant 7 : index
    %c0_39 = arith.constant 0 : index
    %c0_40 = arith.constant 0 : index
    %51 = vector.load %arg2[%c7, %c0_39, %c0_40] : memref<9x64x64xbf16, #tpu.memory_space<vmem>>, vector<1x64x64xbf16>
    %52 = vector.shape_cast %51 : vector<1x64x64xbf16> to vector<64x64xbf16>
    %cst_41 = arith.constant dense<0.000000e+00> : vector<224x64xf32>
    %53 = tpu.matmul %50, %52, %cst_41 {dimension_numbers = #tpu.dot_dimension_numbers<[1], [0], [0], [1], [0, 0, 1, 1], [], []>} : vector<224x64xbf16>, vector<64x64xbf16>, vector<224x64xf32> -> vector<224x64xf32>
    %54 = arith.addf %47, %53 : vector<224x64xf32>
    %c0_42 = arith.constant 0 : index
    %c34 = arith.constant 34 : index
    %c0_43 = arith.constant 0 : index
    %55 = vector.load %arg1[%c0_42, %c34, %c0_43] : memref<1x272x64xf32, #tpu.memory_space<vmem>>, vector<1x224x64xf32>
    %56 = vector.shape_cast %55 : vector<1x224x64xf32> to vector<224x64xf32>
    %57 = arith.truncf %56 : vector<224x64xf32> to vector<224x64xbf16>
    %c8 = arith.constant 8 : index
    %c0_44 = arith.constant 0 : index
    %c0_45 = arith.constant 0 : index
    %58 = vector.load %arg2[%c8, %c0_44, %c0_45] : memref<9x64x64xbf16, #tpu.memory_space<vmem>>, vector<1x64x64xbf16>
    %59 = vector.shape_cast %58 : vector<1x64x64xbf16> to vector<64x64xbf16>
    %cst_46 = arith.constant dense<0.000000e+00> : vector<224x64xf32>
    %60 = tpu.matmul %57, %59, %cst_46 {dimension_numbers = #tpu.dot_dimension_numbers<[1], [0], [0], [1], [0, 0, 1, 1], [], []>} : vector<224x64xbf16>, vector<64x64xbf16>, vector<224x64xf32> -> vector<224x64xf32>
    %61 = arith.addf %54, %60 : vector<224x64xf32>
    %c0_47 = arith.constant 0 : index
    %c0_48 = arith.constant 0 : index
    %62 = vector.load %arg3[%c0_47, %c0_48] : memref<1x64xf32, #tpu.memory_space<vmem>>, vector<1x64xf32>
    %63 = vector.broadcast %62 : vector<1x64xf32> to vector<224x64xf32>
    %64 = arith.addf %61, %63 : vector<224x64xf32>
    %c0_49 = arith.constant 0 : index
    %c0_50 = arith.constant 0 : index
    %c0_51 = arith.constant 0 : index
    %65 = vector.load %arg4[%c0_49, %c0_50, %c0_51] : memref<1x224x64xf32, #tpu.memory_space<vmem>>, vector<1x224x64xf32>
    %66 = vector.shape_cast %65 : vector<1x224x64xf32> to vector<224x64xf32>
    %67 = vector.shape_cast %64 : vector<224x64xf32> to vector<1x224x64xf32>
    tpu.vector_store %arg4[%c0_49, %c0_50, %c0_51], %67 {strides = array<i32>} : memref<1x224x64xf32, #tpu.memory_space<vmem>>, vector<1x224x64xf32>,
    return
  }
  func.func @transform_0(%arg0: i32) -> (i32, i32, i32) {
    %c0_i32 = arith.constant 0 : i32
    %c0_i32_0 = arith.constant 0 : i32
    %c0_i32_1 = arith.constant 0 : i32
    return %arg0, %c0_i32, %c0_i32_0 : i32, i32, i32
  }
  func.func @transform_1(%arg0: i32) -> (i32, i32, i32) {
    %c0_i32 = arith.constant 0 : i32
    %c0_i32_0 = arith.constant 0 : i32
    %c0_i32_1 = arith.constant 0 : i32
    %c0_i32_2 = arith.constant 0 : i32
    return %c0_i32, %c0_i32_0, %c0_i32_1 : i32, i32, i32
  }
  func.func @transform_2(%arg0: i32) -> (i32, i32) {
    %c0_i32 = arith.constant 0 : i32
    %c0_i32_0 = arith.constant 0 : i32
    %c0_i32_1 = arith.constant 0 : i32
    return %c0_i32, %c0_i32_0 : i32, i32
  }
  func.func @transform_3(%arg0: i32) -> (i32, i32, i32) {
    %c0_i32 = arith.constant 0 : i32
    %c0_i32_0 = arith.constant 0 : i32
    %c0_i32_1 = arith.constant 0 : i32
    return %arg0, %c0_i32, %c0_i32_0 : i32, i32, i32
  }
}

module attributes {stable_mosaic.version = 11 : i64} {
  func.func @_pool_bn_htanh_kernel(%arg0: i32, %arg1: memref<14x8x128xf32, #tpu.memory_space<vmem>>, %arg2: memref<1x1x64xf32, #tpu.memory_space<vmem>>, %arg3: memref<1x1x64xf32, #tpu.memory_space<vmem>>, %arg4: memref<7x8x64xf32, #tpu.memory_space<vmem>>) attributes {dimension_semantics = [#tpu.dimension_semantics<parallel>], iteration_bounds = array<i64: 2>, scalar_prefetch = 0 : i64, scratch_operands = 0 : i64, tpu.core_type = #tpu.core_type<tc>, window_params = [{transform_indices = @transform_0, window_bounds = array<i64: 14, 8, 128>}, {pipeline_mode = #tpu.pipeline_mode<synchronous>, transform_indices = @transform_1, window_bounds = array<i64: 1, 1, 64>}, {pipeline_mode = #tpu.pipeline_mode<synchronous>, transform_indices = @transform_2, window_bounds = array<i64: 1, 1, 64>}, {transform_indices = @transform_3, window_bounds = array<i64: 7, 8, 64>}]} {
    %c0 = arith.constant 0 : index
    %c0_0 = arith.constant 0 : index
    %c0_1 = arith.constant 0 : index
    %0 = vector.load %arg1[%c0, %c0_0, %c0_1] : memref<14x8x128xf32, #tpu.memory_space<vmem>>, vector<14x8x128xf32>
    %1 = vector.shape_cast %0 : vector<14x8x128xf32> to vector<7x2x8x128xf32>
    %2 = vector.extract_strided_slice %1 {offsets = [0, 0, 0, 0], sizes = [7, 1, 8, 128], strides = [1, 1, 1, 1]} : vector<7x2x8x128xf32> to vector<7x1x8x128xf32>
    %3 = vector.shape_cast %2 : vector<7x1x8x128xf32> to vector<7x8x128xf32>
    %4 = vector.extract_strided_slice %1 {offsets = [0, 1, 0, 0], sizes = [7, 1, 8, 128], strides = [1, 1, 1, 1]} : vector<7x2x8x128xf32> to vector<7x1x8x128xf32>
    %5 = vector.shape_cast %4 : vector<7x1x8x128xf32> to vector<7x8x128xf32>
    %6 = arith.maximumf %3, %5 : vector<7x8x128xf32>
    %7 = vector.extract_strided_slice %6 {offsets = [0, 0, 0], sizes = [7, 8, 64], strides = [1, 1, 1]} : vector<7x8x128xf32> to vector<7x8x64xf32>
    %8 = vector.extract_strided_slice %6 {offsets = [0, 0, 64], sizes = [7, 8, 64], strides = [1, 1, 1]} : vector<7x8x128xf32> to vector<7x8x64xf32>
    %9 = arith.maximumf %7, %8 : vector<7x8x64xf32>
    %c0_2 = arith.constant 0 : index
    %c0_3 = arith.constant 0 : index
    %c0_4 = arith.constant 0 : index
    %10 = vector.load %arg2[%c0_2, %c0_3, %c0_4] : memref<1x1x64xf32, #tpu.memory_space<vmem>>, vector<1x1x64xf32>
    %11 = vector.broadcast %10 : vector<1x1x64xf32> to vector<7x8x64xf32>
    %12 = arith.mulf %9, %11 : vector<7x8x64xf32>
    %c0_5 = arith.constant 0 : index
    %c0_6 = arith.constant 0 : index
    %c0_7 = arith.constant 0 : index
    %13 = vector.load %arg3[%c0_5, %c0_6, %c0_7] : memref<1x1x64xf32, #tpu.memory_space<vmem>>, vector<1x1x64xf32>
    %14 = vector.broadcast %13 : vector<1x1x64xf32> to vector<7x8x64xf32>
    %15 = arith.addf %12, %14 : vector<7x8x64xf32>
    %cst = arith.constant -1.000000e+00 : f32
    %cst_8 = arith.constant 1.000000e+00 : f32
    %16 = vector.broadcast %cst : f32 to vector<7x8x64xf32>
    %17 = arith.maximumf %16, %15 : vector<7x8x64xf32>
    %18 = vector.broadcast %cst_8 : f32 to vector<7x8x64xf32>
    %19 = arith.minimumf %18, %17 : vector<7x8x64xf32>
    %c0_9 = arith.constant 0 : index
    %c0_10 = arith.constant 0 : index
    %c0_11 = arith.constant 0 : index
    %20 = vector.load %arg4[%c0_9, %c0_10, %c0_11] : memref<7x8x64xf32, #tpu.memory_space<vmem>>, vector<7x8x64xf32>
    tpu.vector_store %arg4[%c0_9, %c0_10, %c0_11], %19 {strides = array<i32>} : memref<7x8x64xf32, #tpu.memory_space<vmem>>, vector<7x8x64xf32>,
    return
  }
  func.func @transform_0(%arg0: i32) -> (i32, i32, i32) {
    %c0_i32 = arith.constant 0 : i32
    %c0_i32_0 = arith.constant 0 : i32
    %c0_i32_1 = arith.constant 0 : i32
    return %arg0, %c0_i32, %c0_i32_0 : i32, i32, i32
  }
  func.func @transform_1(%arg0: i32) -> (i32, i32, i32) {
    %c0_i32 = arith.constant 0 : i32
    %c0_i32_0 = arith.constant 0 : i32
    %c0_i32_1 = arith.constant 0 : i32
    %c0_i32_2 = arith.constant 0 : i32
    return %c0_i32, %c0_i32_0, %c0_i32_1 : i32, i32, i32
  }
  func.func @transform_2(%arg0: i32) -> (i32, i32, i32) {
    %c0_i32 = arith.constant 0 : i32
    %c0_i32_0 = arith.constant 0 : i32
    %c0_i32_1 = arith.constant 0 : i32
    %c0_i32_2 = arith.constant 0 : i32
    return %c0_i32, %c0_i32_0, %c0_i32_1 : i32, i32, i32
  }
  func.func @transform_3(%arg0: i32) -> (i32, i32, i32) {
    %c0_i32 = arith.constant 0 : i32
    %c0_i32_0 = arith.constant 0 : i32
    %c0_i32_1 = arith.constant 0 : i32
    return %arg0, %c0_i32, %c0_i32_0 : i32, i32, i32
  }
}

module attributes {stable_mosaic.version = 11 : i64} {
  func.func @_mm_affine_kernel(%arg0: i32, %arg1: i32, %arg2: memref<2x2048xbf16, #tpu.memory_space<vmem>>, %arg3: memref<2048x128xbf16, #tpu.memory_space<vmem>>, %arg4: memref<1x128xf32, #tpu.memory_space<vmem>>, %arg5: memref<1x128xf32, #tpu.memory_space<vmem>>, %arg6: memref<2x128xf32, #tpu.memory_space<vmem>>) attributes {dimension_semantics = [#tpu.dimension_semantics<parallel>, #tpu.dimension_semantics<parallel>], iteration_bounds = array<i64: 1, 1>, scalar_prefetch = 0 : i64, scratch_operands = 0 : i64, tpu.core_type = #tpu.core_type<tc>, window_params = [{transform_indices = @transform_0, window_bounds = array<i64: 2, 2048>}, {transform_indices = @transform_1, window_bounds = array<i64: 2048, 128>}, {transform_indices = @transform_2, window_bounds = array<i64: 1, 128>}, {transform_indices = @transform_3, window_bounds = array<i64: 1, 128>}, {transform_indices = @transform_4, window_bounds = array<i64: 2, 128>}]} {
    %c0 = arith.constant 0 : index
    %c0_0 = arith.constant 0 : index
    %0 = vector.load %arg2[%c0, %c0_0] : memref<2x2048xbf16, #tpu.memory_space<vmem>>, vector<2x2048xbf16>
    %c0_1 = arith.constant 0 : index
    %c0_2 = arith.constant 0 : index
    %1 = vector.load %arg3[%c0_1, %c0_2] : memref<2048x128xbf16, #tpu.memory_space<vmem>>, vector<2048x128xbf16>
    %cst = arith.constant dense<0.000000e+00> : vector<2x128xf32>
    %2 = tpu.matmul %0, %1, %cst {dimension_numbers = #tpu.dot_dimension_numbers<[1], [0], [0], [1], [0, 0, 1, 1], [], []>} : vector<2x2048xbf16>, vector<2048x128xbf16>, vector<2x128xf32> -> vector<2x128xf32>
    %c0_3 = arith.constant 0 : index
    %c0_4 = arith.constant 0 : index
    %3 = vector.load %arg4[%c0_3, %c0_4] : memref<1x128xf32, #tpu.memory_space<vmem>>, vector<1x128xf32>
    %4 = vector.broadcast %3 : vector<1x128xf32> to vector<2x128xf32>
    %5 = arith.mulf %2, %4 : vector<2x128xf32>
    %c0_5 = arith.constant 0 : index
    %c0_6 = arith.constant 0 : index
    %6 = vector.load %arg5[%c0_5, %c0_6] : memref<1x128xf32, #tpu.memory_space<vmem>>, vector<1x128xf32>
    %7 = vector.broadcast %6 : vector<1x128xf32> to vector<2x128xf32>
    %8 = arith.addf %5, %7 : vector<2x128xf32>
    %c0_7 = arith.constant 0 : index
    %c0_8 = arith.constant 0 : index
    %9 = vector.load %arg6[%c0_7, %c0_8] : memref<2x128xf32, #tpu.memory_space<vmem>>, vector<2x128xf32>
    tpu.vector_store %arg6[%c0_7, %c0_8], %8 {strides = array<i32>} : memref<2x128xf32, #tpu.memory_space<vmem>>, vector<2x128xf32>,
    return
  }
  func.func @transform_0(%arg0: i32, %arg1: i32) -> (i32, i32) {
    %c0_i32 = arith.constant 0 : i32
    %c0_i32_0 = arith.constant 0 : i32
    return %arg0, %c0_i32 : i32, i32
  }
  func.func @transform_1(%arg0: i32, %arg1: i32) -> (i32, i32) {
    %c0_i32 = arith.constant 0 : i32
    %c0_i32_0 = arith.constant 0 : i32
    return %c0_i32, %arg1 : i32, i32
  }
  func.func @transform_2(%arg0: i32, %arg1: i32) -> (i32, i32) {
    %c0_i32 = arith.constant 0 : i32
    %c0_i32_0 = arith.constant 0 : i32
    return %c0_i32, %arg1 : i32, i32
  }
  func.func @transform_3(%arg0: i32, %arg1: i32) -> (i32, i32) {
    %c0_i32 = arith.constant 0 : i32
    %c0_i32_0 = arith.constant 0 : i32
    return %c0_i32, %arg1 : i32, i32
  }
  func.func @transform_4(%arg0: i32, %arg1: i32) -> (i32, i32) {
    %c0_i32 = arith.constant 0 : i32
    return %arg0, %arg1 : i32, i32
  }
}

module attributes {stable_mosaic.version = 11 : i64} {
  func.func @_mm_affine_kernel(%arg0: i32, %arg1: i32, %arg2: memref<2x3136xbf16, #tpu.memory_space<vmem>>, %arg3: memref<3136x512xbf16, #tpu.memory_space<vmem>>, %arg4: memref<1x512xf32, #tpu.memory_space<vmem>>, %arg5: memref<1x512xf32, #tpu.memory_space<vmem>>, %arg6: memref<2x512xf32, #tpu.memory_space<vmem>>) attributes {dimension_semantics = [#tpu.dimension_semantics<parallel>, #tpu.dimension_semantics<parallel>], iteration_bounds = array<i64: 1, 4>, scalar_prefetch = 0 : i64, scratch_operands = 0 : i64, tpu.core_type = #tpu.core_type<tc>, window_params = [{transform_indices = @transform_0, window_bounds = array<i64: 2, 3136>}, {transform_indices = @transform_1, window_bounds = array<i64: 3136, 512>}, {transform_indices = @transform_2, window_bounds = array<i64: 1, 512>}, {transform_indices = @transform_3, window_bounds = array<i64: 1, 512>}, {transform_indices = @transform_4, window_bounds = array<i64: 2, 512>}]} {
    %c0 = arith.constant 0 : index
    %c0_0 = arith.constant 0 : index
    %0 = vector.load %arg2[%c0, %c0_0] : memref<2x3136xbf16, #tpu.memory_space<vmem>>, vector<2x3136xbf16>
    %c0_1 = arith.constant 0 : index
    %c0_2 = arith.constant 0 : index
    %1 = vector.load %arg3[%c0_1, %c0_2] : memref<3136x512xbf16, #tpu.memory_space<vmem>>, vector<3136x512xbf16>
    %cst = arith.constant dense<0.000000e+00> : vector<2x512xf32>
    %2 = tpu.matmul %0, %1, %cst {dimension_numbers = #tpu.dot_dimension_numbers<[1], [0], [0], [1], [0, 0, 1, 1], [], []>} : vector<2x3136xbf16>, vector<3136x512xbf16>, vector<2x512xf32> -> vector<2x512xf32>
    %c0_3 = arith.constant 0 : index
    %c0_4 = arith.constant 0 : index
    %3 = vector.load %arg4[%c0_3, %c0_4] : memref<1x512xf32, #tpu.memory_space<vmem>>, vector<1x512xf32>
    %4 = vector.broadcast %3 : vector<1x512xf32> to vector<2x512xf32>
    %5 = arith.mulf %2, %4 : vector<2x512xf32>
    %c0_5 = arith.constant 0 : index
    %c0_6 = arith.constant 0 : index
    %6 = vector.load %arg5[%c0_5, %c0_6] : memref<1x512xf32, #tpu.memory_space<vmem>>, vector<1x512xf32>
    %7 = vector.broadcast %6 : vector<1x512xf32> to vector<2x512xf32>
    %8 = arith.addf %5, %7 : vector<2x512xf32>
    %cst_7 = arith.constant -1.000000e+00 : f32
    %cst_8 = arith.constant 1.000000e+00 : f32
    %9 = vector.broadcast %cst_7 : f32 to vector<2x512xf32>
    %10 = arith.maximumf %9, %8 : vector<2x512xf32>
    %11 = vector.broadcast %cst_8 : f32 to vector<2x512xf32>
    %12 = arith.minimumf %11, %10 : vector<2x512xf32>
    %c0_9 = arith.constant 0 : index
    %c0_10 = arith.constant 0 : index
    %13 = vector.load %arg6[%c0_9, %c0_10] : memref<2x512xf32, #tpu.memory_space<vmem>>, vector<2x512xf32>
    tpu.vector_store %arg6[%c0_9, %c0_10], %12 {strides = array<i32>} : memref<2x512xf32, #tpu.memory_space<vmem>>, vector<2x512xf32>,
    return
  }
  func.func @transform_0(%arg0: i32, %arg1: i32) -> (i32, i32) {
    %c0_i32 = arith.constant 0 : i32
    %c0_i32_0 = arith.constant 0 : i32
    return %arg0, %c0_i32 : i32, i32
  }
  func.func @transform_1(%arg0: i32, %arg1: i32) -> (i32, i32) {
    %c0_i32 = arith.constant 0 : i32
    %c0_i32_0 = arith.constant 0 : i32
    return %c0_i32, %arg1 : i32, i32
  }
  func.func @transform_2(%arg0: i32, %arg1: i32) -> (i32, i32) {
    %c0_i32 = arith.constant 0 : i32
    %c0_i32_0 = arith.constant 0 : i32
    return %c0_i32, %arg1 : i32, i32
  }
  func.func @transform_3(%arg0: i32, %arg1: i32) -> (i32, i32) {
    %c0_i32 = arith.constant 0 : i32
    %c0_i32_0 = arith.constant 0 : i32
    return %c0_i32, %arg1 : i32, i32
  }
  func.func @transform_4(%arg0: i32, %arg1: i32) -> (i32, i32) {
    %c0_i32 = arith.constant 0 : i32
    return %arg0, %arg1 : i32, i32
  }
}

</mosaic_0001>

<bundles_post_ra>
// kernel: vgg3_forward.6
= control target key start
LH: loop header
LB: loop body
LE: loop exit
PB: predicated region body
PF: predicated region fallthrough
CT: control target
= control target key end

     0   :  { %8 = vsyncpa [#allocation3], 0  ;;  %s1139_s0 = inlined_call_operand.vmem [shape: bf16[1568,9], index: 0, kind: input, shape index: {}]   ;;  %s1140_s1 = inlined_call_operand.hbm [shape: bf16[9,64], index: 1, kind: input, shape index: {}]   ;;  %s1141_s2 = inlined_call_operand.hbm [shape: f32[1,64], index: 2, kind: input, shape index: {}]   ;;  %s1142_s3 = inlined_call_operand.vmem [shape: f32[1568,64], index: 3, kind: output, shape index: {}]  }
   0x1   :  { %9 = vsyncpa [#allocation5], 0  ;;  %s936_s12 = smov 0   ;;  %s938_s13 = smov 0  }
   0x2   :  { %s940_s14 = smov 0  }
   0x3 LB: > { %s674_s15 = sadd.s32 4294967295, %s909_s14   ;;  %s27_s16 = sadd.s32 1, %s905_s13  ;;  %s909_s14 = sphi %s940_s14, %s15_s14   ;;  %s905_s13 = sphi %s938_s13, %s1147_s13   ;;  %s901_s12 = sphi %s936_s12, %s1146_s12  }
   0x4   : > { %p29_p0 = scmp.ge.s32.totalorder %s27_s16, 7  ;;  %p676_p1 = scmp.ge.s32.totalorder %s909_s14, 1 }
   0x5   : > { %p138_p2 = scmp.lt.s32.totalorder %s909_s14, 8  ;;  %p961_p4 = scmp.eq.s32.totalorder %s674_s15, 0 }
   0x6   : > { %s1149_s16 = smov (%p29_p0, %s27_s16), 0  ;;  %s911_s19 = smov [#allocation2]  }
   0x7   : > { %p957_p3 = pnand %p676_p1, %p138_p2  ;;  %s152_s20 = sshll.u32 %s911_s19, 4  ;;  %s153_s20 = int_to_ptr.vmem [resolvable:$true] %s152_s20 }
   0x8   : > { %s912_s22 = smov [#allocation4]   ;;  %s838_s24 = scalar_lea.vmem %s153_s20, 128 }
   0x9   : > { %p772_p5 = pneg %p957_p3  ;;  %s168_s23 = sshll.u32 %s912_s22, 4  ;;  %s169_s23 = int_to_ptr.vmem [resolvable:$true] %s168_s23 }
   0xa   : > { %p839_p8 = scmp.ne.s32.totalorder %s153_s20, %s838_s24  ;;  %p846_p11 = scmp.lt.s32.totalorder %s153_s20, %s153_s20 }
   0xb   : > { %p969_p6 = pnand %p961_p4, %p772_p5  ;;  %p847_p12 = scmp.lt.s32.totalorder %s838_s24, %s838_s24 }
   0xd   : > { %p829_p7 = pneg %p969_p6  ;;  %p848_p13 = por %p847_p12, %p846_p11 }
   0xf   : > { %p841_p9 = pnand %p839_p8, %p829_p7 }
  0x11   : > { %p842_p10 = pneg %p841_p9 }
  0x13   : > { %p849_p0 = pnand %p848_p13, %p842_p10 }
  0x15   : > { %852 = shalt.err (!%p849_p0)
}
  0x16   : > { %s913_s25 = smov 64   ;;  %s914_s26 = smov 4  }
  0x17   : > { %775 = dma.hbm_to_vmem [thread:$0]  (!%p969_p6), %s1140_s1, 128, %s153_s20, [#allocation3], %s913_s25, %s913_s25, %s914_s26  }
  0x18   : > { %s864_s29 = scalar_lea.vmem %s169_s23, 16  ;;  %s871_s30 = scalar_lea.vmem %s169_s23, 32 }
  0x19   : > { %p865_p1 = scmp.ne.s32.totalorder %s169_s23, %s864_s29  ;;  %p872_p8 = scmp.lt.s32.totalorder %s169_s23, %s169_s23 }
  0x1a   : > { %p873_p9 = scmp.lt.s32.totalorder %s871_s30, %s864_s29 }
  0x1b   : > { %p867_p2 = pnand %p865_p1, %p829_p7 }
  0x1c   : > { %p874_p10 = por %p873_p9, %p872_p8 }
  0x1d   : > { %p868_p5 = pneg %p867_p2 }
  0x1f   : > { %p875_p11 = pnand %p874_p10, %p868_p5 }
  0x21   : > { %878 = shalt.err (!%p875_p11)
}
  0x22   : > { %778 = dma.hbm_to_vmem [thread:$0]  (!%p969_p6), %s1141_s2, 16, %s169_s23, [#allocation5]  }
  0x23   : > { %190 = sbr.rel (%p957_p3) target bundleno = 278 (0x116), region = 32 }
  0x28   : > { %892 = dma.done.wait (%p961_p4), [#allocation3], 128  }
  0x29   : > { %894 = vsyncadd (%p961_p4), [#allocation3], 4294967168 }
  0x2a   : > { %896 = dma.done.wait (%p961_p4), [#allocation5], 16  }
  0x2b   : > { %898 = vsyncadd (%p961_p4), [#allocation5], 4294967280  ;;  %vm392_vm0 = vcmask 1043456   ;;  %s221_s6 = smul.u32 28, %s901_s12  ;;  %vm393_vm1 = vcmask 1044480   ;;  %v915_v0 = vmov 65535  }
  0x2c   : > { %v394_v1 = vsel %vm392_vm0, 4294967295, %v915_v0  ;;  %vm349_vm2 = vcmask 72704   ;;  %v812_v3 = vld [vmem:[#allocation2] sm:$0x1f]   ;;  %v1039_v19 = vld [vmem:[#allocation4] ss:$0 sm:$0xff] }
  0x2d   : > { %p222_p7 = scmp.lt.s32.totalorder %s221_s6, 195  ;;  %v395_v2 = vsel %vm393_vm1, %v394_v1, 0  ;;  %vm544_vm3 = vcmask 523264  }
  0x2e   : > { %v397_v5 = vand.u32 %v812_v3, %v395_v2 }
  0x2f   : > { %s1151_s6 = smov (!%p222_p7, %s221_s6), 195 }
  0x30   : > { %s683_s7 = sshll.u32 %s1151_s6, 2  ;;  %732 = vmatprep.subr.bf16.mxu0 %v397_v5  ;;  %762 = vmatprep.subr.bf16.mxu1 %v397_v5  ;;  %s684_s11 = sshll.u32 %s1151_s6, 3 }
  0x31   : > { %s1008_s10 = scalar_lea.vmem %s1139_s0, %s683_s7  ;;  %733 = vmatpush3.bf16.msra.mxu0 %v397_v5  ;;  %763 = vmatpush3.bf16.msra.mxu1 %v397_v5  ;;  %s1044_s17 = scalar_lea.vmem %s1142_s3, %s684_s11 }
  0x32   : > { %v813_v4 = vld [vmem:[%s1008_s10] sm:$0xff]   ;;  %v814_v6 = vld [vmem:[%s1008_s10 + $0x8] sm:$0xff]   ;;  %v817_v9 = vld [vmem:[%s1008_s10 + $0x10] sm:$0xff]  }
  0x33   : > { %734 = vmatprep.mubr.msk.bf16.mxu0 %vm349_vm2, %v813_v4  ;;  %v815_v7 = vld [vmem:[%s1008_s10 + $0x40] sm:$0xff]   ;;  %v816_v8 = vld [vmem:[%s1008_s10 + $0x48] sm:$0xff]   ;;  %v819_v10 = vld [vmem:[%s1008_s10 + $0x50] sm:$0xff]  }
  0x34   : > { %750 = vmatprep.mubr.msk.bf16.mxu1 %vm349_vm2, %v815_v7  ;;  %735 = vmatmul.mubr.msk.bf16.vlgmr.msra.gmra.mxu0 %vm349_vm2, %v814_v6  ;;  %v818_v11 = vld [vmem:[%s1008_s10 + $0x18] sm:$0xff]   ;;  %v821_v13 = vld [vmem:[%s1008_s10 + $0x20] sm:$0xff]   ;;  %v822_v15 = vld [vmem:[%s1008_s10 + $0x28] sm:$0xff]  }
  0x35   : > { %751 = vmatmul.mubr.msk.bf16.vlgmr.msra.gmra.mxu1 %vm349_vm2, %v816_v8  ;;  %738 = vmatprep.mubr.msk.bf16.mxu0 %vm349_vm2, %v817_v9  ;;  %v820_v12 = vld [vmem:[%s1008_s10 + $0x58] sm:$0xff]   ;;  %v823_v14 = vld [vmem:[%s1008_s10 + $0x60] sm:$0xff]   ;;  %v824_v16 = vld [vmem:[%s1008_s10 + $0x68] sm:$0xff]  }
  0x36   : > { %754 = vmatprep.mubr.msk.bf16.mxu1 %vm349_vm2, %v819_v10  ;;  %v825_v17 = vld [vmem:[%s1008_s10 + $0x30] sm:$0xff]   ;;  %v826_v18 = vld [vmem:[%s1008_s10 + $0x38] sm:$0xff]  }
  0x3c   : > { %739 = vmatmul.mubr.msk.bf16.gmra.mxu0 %vm349_vm2, %v818_v11 }
  0x3d   : > { %755 = vmatmul.mubr.msk.bf16.gmra.mxu1 %vm349_vm2, %v820_v12  ;;  %742 = vmatprep.mubr.msk.bf16.mxu0 %vm349_vm2, %v821_v13 }
  0x3e   : > { %758 = vmatprep.mubr.msk.bf16.mxu1 %vm349_vm2, %v823_v14 }
  0x44   : > { %743 = vmatmul.mubr.msk.bf16.gmra.mxu0 %vm349_vm2, %v822_v15 }
  0x45   : > { %759 = vmatmul.mubr.msk.bf16.gmra.mxu1 %vm349_vm2, %v824_v16  ;;  %746 = vmatprep.mubr.msk.bf16.mxu0 %vm349_vm2, %v825_v17 }
  0x4c   : > { %747 = vmatmul.mubr.msk.bf16.gmra.mxu0 %vm349_vm2, %v826_v18 }
  0xf4   : > { %v736_v20 = vpop.f32.mrf.mxu0 }
  0xf5   : > { %v752_v21 = vpop.f32.mrf.mxu1  ;;  %v442_v22 = vadd.f32 %v736_v20, %v1039_v19 }
  0xf6   : > { %v506_v23 = vadd.f32 %v752_v21, %v1039_v19  ;;  %v433_v24 = vpop.f32.mrf.mxu0 }
  0xf7   : > { %v497_v25 = vpop.f32.mrf.mxu1  ;;  %547 = vst.msk [vmem:[%s1044_s17 + $0x10] sm:$0xff] %vm544_vm3, %v442_v22  ;;  %v434_v26 = vadd.f32 %v1039_v19, %v433_v24 }
  0xf8   : > { %563 = vst.msk [vmem:[%s1044_s17 + $0x90] sm:$0xff] %vm544_vm3, %v506_v23  ;;  %v498_v27 = vadd.f32 %v1039_v19, %v497_v25  ;;  %v737_v28 = vpop.f32.mrf.mxu0 }
  0xf9   : > { %v753_v29 = vpop.f32.mrf.mxu1  ;;  %545 = vst.msk [vmem:[%s1044_s17] sm:$0xff] %vm544_vm3, %v434_v26  ;;  %v445_v30 = vadd.f32 %v737_v28, %v1039_v19 }
  0xfa   : > { %561 = vst.msk [vmem:[%s1044_s17 + $0x80] sm:$0xff] %vm544_vm3, %v498_v27  ;;  %v509_v31 = vadd.f32 %v753_v29, %v1039_v19  ;;  %v436_v32 = vpop.f32.mrf.mxu0 }
  0xfb   : > { %v500_v33 = vpop.f32.mrf.mxu1  ;;  %548 = vst.msk [vmem:[%s1044_s17 + $0x18] sm:$0xff] %vm544_vm3, %v445_v30  ;;  %v437_v34 = vadd.f32 %v1039_v19, %v436_v32 }
  0xfc   : > { %564 = vst.msk [vmem:[%s1044_s17 + $0x98] sm:$0xff] %vm544_vm3, %v509_v31  ;;  %v501_v35 = vadd.f32 %v1039_v19, %v500_v33  ;;  %v740_v36 = vpop.f32.mrf.mxu0 }
  0xfd   : > { %v756_v37 = vpop.f32.mrf.mxu1  ;;  %546 = vst.msk [vmem:[%s1044_s17 + $0x8] sm:$0xff] %vm544_vm3, %v437_v34  ;;  %v458_v38 = vadd.f32 %v740_v36, %v1039_v19 }
  0xfe   : > { %562 = vst.msk [vmem:[%s1044_s17 + $0x88] sm:$0xff] %vm544_vm3, %v501_v35  ;;  %v522_v39 = vadd.f32 %v756_v37, %v1039_v19  ;;  %v449_v40 = vpop.f32.mrf.mxu0 }
  0xff   : > { %v513_v41 = vpop.f32.mrf.mxu1  ;;  %551 = vst.msk [vmem:[%s1044_s17 + $0x30] sm:$0xff] %vm544_vm3, %v458_v38  ;;  %v450_v42 = vadd.f32 %v1039_v19, %v449_v40 }
 0x100   : > { %567 = vst.msk [vmem:[%s1044_s17 + $0xb0] sm:$0xff] %vm544_vm3, %v522_v39  ;;  %v514_v43 = vadd.f32 %v1039_v19, %v513_v41  ;;  %v741_v44 = vpop.f32.mrf.mxu0 }
 0x101   : > { %v757_v45 = vpop.f32.mrf.mxu1  ;;  %549 = vst.msk [vmem:[%s1044_s17 + $0x20] sm:$0xff] %vm544_vm3, %v450_v42  ;;  %v461_v46 = vadd.f32 %v741_v44, %v1039_v19 }
 0x102   : > { %565 = vst.msk [vmem:[%s1044_s17 + $0xa0] sm:$0xff] %vm544_vm3, %v514_v43  ;;  %v525_v47 = vadd.f32 %v757_v45, %v1039_v19  ;;  %v452_v48 = vpop.f32.mrf.mxu0 }
 0x103   : > { %v516_v49 = vpop.f32.mrf.mxu1  ;;  %552 = vst.msk [vmem:[%s1044_s17 + $0x38] sm:$0xff] %vm544_vm3, %v461_v46  ;;  %v453_v50 = vadd.f32 %v1039_v19, %v452_v48 }
 0x104   : > { %568 = vst.msk [vmem:[%s1044_s17 + $0xb8] sm:$0xff] %vm544_vm3, %v525_v47  ;;  %v517_v51 = vadd.f32 %v1039_v19, %v516_v49  ;;  %v744_v52 = vpop.f32.mrf.mxu0 }
 0x105   : > { %v760_v53 = vpop.f32.mrf.mxu1  ;;  %550 = vst.msk [vmem:[%s1044_s17 + $0x28] sm:$0xff] %vm544_vm3, %v453_v50  ;;  %v474_v54 = vadd.f32 %v744_v52, %v1039_v19 }
 0x106   : > { %566 = vst.msk [vmem:[%s1044_s17 + $0xa8] sm:$0xff] %vm544_vm3, %v517_v51  ;;  %v538_v55 = vadd.f32 %v760_v53, %v1039_v19  ;;  %v465_v56 = vpop.f32.mrf.mxu0 }
 0x107   : > { %v529_v57 = vpop.f32.mrf.mxu1  ;;  %555 = vst.msk [vmem:[%s1044_s17 + $0x50] sm:$0xff] %vm544_vm3, %v474_v54  ;;  %v466_v58 = vadd.f32 %v1039_v19, %v465_v56 }
 0x108   : > { %571 = vst.msk [vmem:[%s1044_s17 + $0xd0] sm:$0xff] %vm544_vm3, %v538_v55  ;;  %v530_v59 = vadd.f32 %v1039_v19, %v529_v57  ;;  %v745_v60 = vpop.f32.mrf.mxu0 }
 0x109   : > { %v761_v61 = vpop.f32.mrf.mxu1  ;;  %553 = vst.msk [vmem:[%s1044_s17 + $0x40] sm:$0xff] %vm544_vm3, %v466_v58  ;;  %v477_v62 = vadd.f32 %v745_v60, %v1039_v19 }
 0x10a   : > { %569 = vst.msk [vmem:[%s1044_s17 + $0xc0] sm:$0xff] %vm544_vm3, %v530_v59  ;;  %v541_v63 = vadd.f32 %v761_v61, %v1039_v19  ;;  %v468_v0 = vpop.f32.mrf.mxu0 }
 0x10b   : > { %v532_v1 = vpop.f32.mrf.mxu1  ;;  %556 = vst.msk [vmem:[%s1044_s17 + $0x58] sm:$0xff] %vm544_vm3, %v477_v62  ;;  %v469_v2 = vadd.f32 %v1039_v19, %v468_v0 }
 0x10c   : > { %572 = vst.msk [vmem:[%s1044_s17 + $0xd8] sm:$0xff] %vm544_vm3, %v541_v63  ;;  %v533_v3 = vadd.f32 %v1039_v19, %v532_v1  ;;  %v748_v4 = vpop.f32.mrf.mxu0 }
 0x10d   : > { %554 = vst.msk [vmem:[%s1044_s17 + $0x48] sm:$0xff] %vm544_vm3, %v469_v2  ;;  %v490_v5 = vadd.f32 %v748_v4, %v1039_v19 }
 0x10e   : > { %570 = vst.msk [vmem:[%s1044_s17 + $0xc8] sm:$0xff] %vm544_vm3, %v533_v3  ;;  %v481_v6 = vpop.f32.mrf.mxu0 }
 0x10f   : > { %559 = vst.msk [vmem:[%s1044_s17 + $0x70] sm:$0xff] %vm544_vm3, %v490_v5  ;;  %v482_v7 = vadd.f32 %v1039_v19, %v481_v6 }
 0x110   : > { %v749_v8 = vpop.f32.mrf.mxu0 }
 0x111   : > { %557 = vst.msk [vmem:[%s1044_s17 + $0x60] sm:$0xff] %vm544_vm3, %v482_v7  ;;  %v493_v9 = vadd.f32 %v749_v8, %v1039_v19 }
 0x112   : > { %v484_v10 = vpop.f32.mrf.mxu0 }
 0x113   : > { %560 = vst.msk [vmem:[%s1044_s17 + $0x78] sm:$0xff] %vm544_vm3, %v493_v9  ;;  %v485_v11 = vadd.f32 %v1039_v19, %v484_v10 }
 0x115   : > { %558 = vst.msk [vmem:[%s1044_s17 + $0x68] sm:$0xff] %vm544_vm3, %v485_v11 }
 0x116 PF: > { %s15_s14 = sadd.s32 1, %s909_s14   ;;  %s1146_s12 = smov %s905_s13 }
 0x117   : > { %p12_p3 = scmp.ge.s32.totalorder %s15_s14, 9   ;;  %s1147_s13 = smov %s1149_s16 }
 0x119   :  { %14 = sbr.rel (!%p12_p3) target bundleno = 3 (0x3), region = 73 }
 0x11e   :  { %601 = vsyncpa [#allocation3], 1 }
 0x11f   :  { %603 = vsyncpa [#allocation3 + $0x1], 1 }
 0x120   :  { %604 = vsyncpa [#allocation5], 1 }

// kernel: vgg3_forward.7
= control target key start
LH: loop header
LB: loop body
LE: loop exit
PB: predicated region body
PF: predicated region fallthrough
CT: control target
= control target key end

     0   :  { %8 = vsyncpa [#allocation3], 0  ;;  %s1211_s0 = inlined_call_operand.vmem [shape: f32[56,14,128], index: 0, kind: input, shape index: {}]   ;;  %s1212_s1 = inlined_call_operand.hbm [shape: f32[1,1,64], index: 1, kind: input, shape index: {}]   ;;  %s1213_s2 = inlined_call_operand.hbm [shape: f32[1,1,64], index: 2, kind: input, shape index: {}]   ;;  %s1214_s3 = inlined_call_operand.vmem [shape: f32[28,14,64], index: 3, kind: output, shape index: {}]  }
   0x1   :  { %9 = vsyncpa [#allocation5], 0  ;;  %s833_s12 = smov 0  }
   0x2 LB: > { %s839_s13 = sadd.s32 4294967295, %s808_s12   ;;  %p667_p0 = scmp.ge.s32.totalorder %s808_s12, 1  ;;  %s808_s12 = sphi %s833_s12, %s15_s12  }
   0x3   : > { %p114_p1 = scmp.lt.s32.totalorder %s808_s12, 3  ;;  %p1215_p2 = scmp.eq.s32.totalorder %s839_s13, 0 }
   0x4   : > { %s810_s15 = smov [#allocation2]   ;;  %s811_s17 = smov [#allocation4]  }
   0x5   : > { %p844_p3 = pnand %p667_p0, %p114_p1  ;;  %s127_s16 = sshll.u32 %s810_s15, 4  ;;  %s128_s16 = int_to_ptr.vmem [resolvable:$true] %s127_s16 }
   0x6   : > { %s138_s18 = sshll.u32 %s811_s17, 4  ;;  %s753_s20 = scalar_lea.vmem %s128_s16, 16  ;;  %s139_s18 = int_to_ptr.vmem [resolvable:$true] %s138_s18 }
   0x7   : > { %p720_p4 = pneg %p844_p3  ;;  %p754_p7 = scmp.ne.s32.totalorder %s128_s16, %s753_s20 }
   0x8   : > { %s760_s21 = scalar_lea.vmem %s128_s16, 32  ;;  %p761_p10 = scmp.lt.s32.totalorder %s128_s16, %s128_s16 }
   0x9   : > { %p852_p5 = pnand %p1215_p2, %p720_p4  ;;  %p762_p11 = scmp.lt.s32.totalorder %s760_s21, %s753_s20 }
   0xb   : > { %p744_p6 = pneg %p852_p5  ;;  %p763_p12 = por %p762_p11, %p761_p10 }
   0xd   : > { %p756_p8 = pnand %p754_p7, %p744_p6 }
   0xf   : > { %p757_p9 = pneg %p756_p8 }
  0x11   : > { %p764_p13 = pnand %p763_p12, %p757_p9 }
  0x13   : > { %767 = shalt.err (!%p764_p13)
}
  0x14   : > { %723 = dma.hbm_to_vmem [thread:$0]  (!%p852_p5), %s1212_s1, 16, %s128_s16, [#allocation3]  }
  0x15   : > { %s779_s24 = scalar_lea.vmem %s139_s18, 16  ;;  %s786_s25 = scalar_lea.vmem %s139_s18, 32 }
  0x16   : > { %p780_p0 = scmp.ne.s32.totalorder %s139_s18, %s779_s24  ;;  %p787_p7 = scmp.lt.s32.totalorder %s139_s18, %s139_s18 }
  0x17   : > { %p788_p8 = scmp.lt.s32.totalorder %s786_s25, %s779_s24 }
  0x18   : > { %p782_p1 = pnand %p780_p0, %p744_p6 }
  0x19   : > { %p789_p2 = por %p788_p8, %p787_p7 }
  0x1a   : > { %p783_p4 = pneg %p782_p1 }
  0x1c   : > { %p790_p10 = pnand %p789_p2, %p783_p4 }
  0x1e   : > { %793 = shalt.err (!%p790_p10)
}
  0x1f   : > { %726 = dma.hbm_to_vmem [thread:$0]  (!%p852_p5), %s1213_s2, 16, %s139_s18, [#allocation5]  }
  0x20   : > { %161 = sbr.rel (%p844_p3) target bundleno = 229 (0xe5), region = 32  ;;  %p1218_p9 = scmp.eq.s32.totalorder (!%p844_p3), %s839_s13, 0 }
  0x25   : > { %799 = dma.done.wait (%p1218_p9), [#allocation3], 16   ;;  %p1219_p6 = pmov %p1218_p9 }
  0x27   : > { %801 = vsyncadd (%p1219_p6), [#allocation3], 4294967280  ;;  %p1220_p11 = pmov %p1219_p6 }
  0x28   : > { %p1221_p2 = pmov %p1219_p6 }
  0x29   : > { %803 = dma.done.wait (%p1220_p11), [#allocation5], 16  }
  0x2a   : > { %805 = vsyncadd (%p1221_p2), [#allocation5], 4294967280  ;;  %s191_s28 = smul.u32 28, %s839_s13  ;;  %s812_s6 = smov 64   ;;  %vm555_vm0 = vcmask 523264   ;;  %vm557_vm1 = vcmask 521216  }
  0x2b   : > { %s198_s7 = smul.u32 14, %s839_s13 }
  0x2c   : > { %p192_p12 = scmp.lt.s32.totalorder %s191_s28, 55 }
  0x2d   : > { %p199_p3 = scmp.lt.s32.totalorder %s198_s7, 27 }
  0x2e   : > { %s1223_s28 = smov (!%p192_p12, %s191_s28), 55 }
  0x2f   : > { %s710_s29 = sshll.u32 %s1223_s28, 4  ;;  %s1225_s7 = smov (!%p199_p3, %s198_s7), 27 }
  0x30   : > { %s888_s5 = scalar_lea.vmem %s1211_s0, %s710_s29  ;;  %s711_s8 = sshll.u32 %s1225_s7, 4 }
  0x31   : > { %v209_v0 = vld [vmem:[%s888_s5 + $0x20] sm:$0xff]  ;;  %v211_v1 = vld [vmem:[%s888_s5 + $0x30] sm:$0xff]  ;;  %v210_v5 = vld [vmem:[%s888_s5 + $0x28] sm:$0x3f]  ;;  %s1072_s11 = scalar_lea.vmem %s1214_s3, %s711_s8 }
  0x32   : > { %v205_v2 = vld [vmem:[%s888_s5] sm:$0xff]  ;;  %v893_v3 = vmax.f32 %v209_v0, %v211_v1  ;;  %v207_v4 = vld [vmem:[%s888_s5 + $0x10] sm:$0xff]  ;;  %v212_v6 = vld [vmem:[%s888_s5 + $0x38] sm:$0x3f] }
  0x33   : > { %v898_v7 = vmax.f32 %v205_v2, %v207_v4  ;;  %v206_v8 = vld [vmem:[%s888_s5 + $0x8] sm:$0x3f]  ;;  %v208_v9 = vld [vmem:[%s888_s5 + $0x18] sm:$0x3f]  ;;  %v904_v10 = vmax.f32 %v210_v5, %v212_v6  ;;  %v213_v14 = vld [vmem:[%s888_s5 + $0x40] sm:$0xff] }
  0x34   : > { %321 = vrot.lane.b32.xlu1 %v893_v3, %s812_s6  ;;  %v908_v11 = vmax.f32 %v206_v8, %v208_v9  ;;  %v214_v12 = vld [vmem:[%s888_s5 + $0x48] sm:$0x3f]  ;;  %v216_v13 = vld [vmem:[%s888_s5 + $0x58] sm:$0x3f]  ;;  %v215_v15 = vld [vmem:[%s888_s5 + $0x50] sm:$0xff] }
  0x35   : > { %317 = vrot.lane.b32.xlu0 %v898_v7, %s812_s6  ;;  %v916_v16 = vmax.f32 %v214_v12, %v216_v13  ;;  %v920_v17 = vmax.f32 %v213_v14, %v215_v15  ;;  %v218_v18 = vld [vmem:[%s888_s5 + $0x68] sm:$0x3f]  ;;  %v220_v19 = vld [vmem:[%s888_s5 + $0x78] sm:$0x3f]  ;;  %v217_v20 = vld [vmem:[%s888_s5 + $0x60] sm:$0xff] }
  0x36   : > { %v219_v21 = vld [vmem:[%s888_s5 + $0x70] sm:$0xff]  ;;  %v928_v22 = vmax.f32 %v218_v18, %v220_v19  ;;  %v222_v24 = vld [vmem:[%s888_s5 + $0x88] sm:$0x3f]  ;;  %v224_v25 = vld [vmem:[%s888_s5 + $0x98] sm:$0x3f] }
  0x37   : > { %v932_v23 = vmax.f32 %v217_v20, %v219_v21  ;;  %v221_v26 = vld [vmem:[%s888_s5 + $0x80] sm:$0xff]  ;;  %v223_v27 = vld [vmem:[%s888_s5 + $0x90] sm:$0xff]  ;;  %v940_v28 = vmax.f32 %v222_v24, %v224_v25  ;;  %v226_v30 = vld [vmem:[%s888_s5 + $0xa8] sm:$0x3f] }
  0x38   : > { %323 = vrot.lane.b32.xlu1 %v904_v10, %s812_s6  ;;  %v944_v29 = vmax.f32 %v221_v26, %v223_v27  ;;  %v228_v31 = vld [vmem:[%s888_s5 + $0xb8] sm:$0x3f]  ;;  %v225_v32 = vld [vmem:[%s888_s5 + $0xa0] sm:$0xff]  ;;  %v227_v33 = vld [vmem:[%s888_s5 + $0xb0] sm:$0xff] }
  0x39   : > { %319 = vrot.lane.b32.xlu0 %v908_v11, %s812_s6  ;;  %v952_v34 = vmax.f32 %v226_v30, %v228_v31  ;;  %v956_v35 = vmax.f32 %v225_v32, %v227_v33  ;;  %v230_v36 = vld [vmem:[%s888_s5 + $0xc8] sm:$0x3f]  ;;  %v232_v37 = vld [vmem:[%s888_s5 + $0xd8] sm:$0x3f]  ;;  %v229_v38 = vld [vmem:[%s888_s5 + $0xc0] sm:$0xff] }
  0x3a   : > { %v231_v39 = vld [vmem:[%s888_s5 + $0xd0] sm:$0xff]  ;;  %v964_v40 = vmax.f32 %v230_v36, %v232_v37  ;;  %v234_v42 = vld [vmem:[%s888_s5 + $0xe8] sm:$0x3f]  ;;  %v236_v43 = vld [vmem:[%s888_s5 + $0xf8] sm:$0x3f] }
  0x3b   : > { %v968_v41 = vmax.f32 %v229_v38, %v231_v39  ;;  %v233_v44 = vld [vmem:[%s888_s5 + $0xe0] sm:$0xff]  ;;  %v235_v45 = vld [vmem:[%s888_s5 + $0xf0] sm:$0xff]  ;;  %v976_v46 = vmax.f32 %v234_v42, %v236_v43  ;;  %v238_v48 = vld [vmem:[%s888_s5 + $0x108] sm:$0x3f] }
  0x3c   : > { %327 = vrot.lane.b32.xlu1 %v916_v16, %s812_s6  ;;  %v980_v47 = vmax.f32 %v233_v44, %v235_v45  ;;  %v240_v49 = vld [vmem:[%s888_s5 + $0x118] sm:$0x3f]  ;;  %v237_v50 = vld [vmem:[%s888_s5 + $0x100] sm:$0xff]  ;;  %v239_v51 = vld [vmem:[%s888_s5 + $0x110] sm:$0xff] }
  0x3d   : > { %325 = vrot.lane.b32.xlu0 %v920_v17, %s812_s6  ;;  %v988_v52 = vmax.f32 %v238_v48, %v240_v49  ;;  %v992_v53 = vmax.f32 %v237_v50, %v239_v51  ;;  %v242_v54 = vld [vmem:[%s888_s5 + $0x128] sm:$0x3f]  ;;  %v244_v55 = vld [vmem:[%s888_s5 + $0x138] sm:$0x3f]  ;;  %v241_v56 = vld [vmem:[%s888_s5 + $0x120] sm:$0xff] }
  0x3e   : > { %v243_v57 = vld [vmem:[%s888_s5 + $0x130] sm:$0xff]  ;;  %v1000_v58 = vmax.f32 %v242_v54, %v244_v55  ;;  %v246_v60 = vld [vmem:[%s888_s5 + $0x148] sm:$0x3f]  ;;  %v248_v61 = vld [vmem:[%s888_s5 + $0x158] sm:$0x3f] }
  0x3f   : > { %v1004_v59 = vmax.f32 %v241_v56, %v243_v57  ;;  %v245_v62 = vld [vmem:[%s888_s5 + $0x140] sm:$0xff]  ;;  %v247_v63 = vld [vmem:[%s888_s5 + $0x150] sm:$0xff]  ;;  %v1012_v0 = vmax.f32 %v246_v60, %v248_v61  ;;  %v250_v2 = vld [vmem:[%s888_s5 + $0x168] sm:$0x3f] }
  0x40   : > { %331 = vrot.lane.b32.xlu1 %v928_v22, %s812_s6  ;;  %v1016_v1 = vmax.f32 %v245_v62, %v247_v63  ;;  %v252_v4 = vld [vmem:[%s888_s5 + $0x178] sm:$0x3f]  ;;  %v249_v5 = vld [vmem:[%s888_s5 + $0x160] sm:$0xff]  ;;  %v251_v6 = vld [vmem:[%s888_s5 + $0x170] sm:$0xff] }
  0x41   : > { %329 = vrot.lane.b32.xlu0 %v932_v23, %s812_s6  ;;  %v1024_v8 = vmax.f32 %v250_v2, %v252_v4  ;;  %v1028_v9 = vmax.f32 %v249_v5, %v251_v6  ;;  %v254_v12 = vld [vmem:[%s888_s5 + $0x188] sm:$0x3f]  ;;  %v256_v13 = vld [vmem:[%s888_s5 + $0x198] sm:$0x3f]  ;;  %v253_v14 = vld [vmem:[%s888_s5 + $0x180] sm:$0xff] }
  0x42   : > { %v255_v15 = vld [vmem:[%s888_s5 + $0x190] sm:$0xff]  ;;  %v1036_v18 = vmax.f32 %v254_v12, %v256_v13  ;;  %v258_v20 = vld [vmem:[%s888_s5 + $0x1a8] sm:$0x3f]  ;;  %v260_v21 = vld [vmem:[%s888_s5 + $0x1b8] sm:$0x3f] }
  0x43   : > { %v1040_v19 = vmax.f32 %v253_v14, %v255_v15  ;;  %v257_v24 = vld [vmem:[%s888_s5 + $0x1a0] sm:$0xff]  ;;  %v259_v25 = vld [vmem:[%s888_s5 + $0x1b0] sm:$0xff]  ;;  %v1048_v26 = vmax.f32 %v258_v20, %v260_v21 }
  0x44   : > { %335 = vrot.lane.b32.xlu1 %v940_v28, %s812_s6  ;;  %v1052_v27 = vmax.f32 %v257_v24, %v259_v25  ;;  %v1059_v30 = vld [vmem:[#allocation2] ss:$0 sm:$0xff]  ;;  %v1062_v36 = vld [vmem:[#allocation4] ss:$0 sm:$0xff] }
  0x45   : > { %333 = vrot.lane.b32.xlu0 %v944_v29, %s812_s6 }
  0x48   : > { %339 = vrot.lane.b32.xlu1 %v952_v34, %s812_s6 }
  0x49   : > { %337 = vrot.lane.b32.xlu0 %v956_v35, %s812_s6 }
  0x4c   : > { %343 = vrot.lane.b32.xlu1 %v964_v40, %s812_s6 }
  0x4d   : > { %341 = vrot.lane.b32.xlu0 %v968_v41, %s812_s6 }
  0x50   : > { %347 = vrot.lane.b32.xlu1 %v976_v46, %s812_s6 }
  0x51   : > { %345 = vrot.lane.b32.xlu0 %v980_v47, %s812_s6 }
  0x54   : > { %351 = vrot.lane.b32.xlu1 %v988_v52, %s812_s6 }
  0x55   : > { %349 = vrot.lane.b32.xlu0 %v992_v53, %s812_s6 }
  0x58   : > { %355 = vrot.lane.b32.xlu1 %v1000_v58, %s812_s6 }
  0x59   : > { %353 = vrot.lane.b32.xlu0 %v1004_v59, %s812_s6 }
  0x5c   : > { %359 = vrot.lane.b32.xlu1 %v1012_v0, %s812_s6 }
  0x5d   : > { %357 = vrot.lane.b32.xlu0 %v1016_v1, %s812_s6 }
  0x60   : > { %363 = vrot.lane.b32.xlu1 %v1024_v8, %s812_s6 }
  0x61   : > { %361 = vrot.lane.b32.xlu0 %v1028_v9, %s812_s6 }
  0x64   : > { %367 = vrot.lane.b32.xlu1 %v1036_v18, %s812_s6 }
  0x65   : > { %365 = vrot.lane.b32.xlu0 %v1040_v19, %s812_s6 }
  0x68   : > { %371 = vrot.lane.b32.xlu1 %v1048_v26, %s812_s6 }
  0x69   : > { %369 = vrot.lane.b32.xlu0 %v1052_v27, %s812_s6 }
  0xa6   : > { %v322_v31 = vpop.permute.xlu1 %321 }
  0xa7   : > { %v403_v32 = vmax.f32 %v893_v3, %v322_v31  ;;  %v318_v33 = vpop.permute.xlu0 %317 }
  0xa8   : > { %v401_v37 = vmax.f32 %v898_v7, %v318_v33 }
  0xa9   : > { %v438_v38 = vmul.f32 %v1059_v30, %v403_v32 }
  0xaa   : > { %v436_v39 = vmul.f32 %v1059_v30, %v401_v37  ;;  %v324_v42 = vpop.permute.xlu1 %323 }
  0xab   : > { %v473_v43 = vadd.f32 %v1062_v36, %v438_v38  ;;  %v404_v44 = vmax.f32 %v904_v10, %v324_v42  ;;  %v320_v45 = vpop.permute.xlu0 %319 }
  0xac   : > { %v471_v3 = vadd.f32 %v1062_v36, %v436_v39  ;;  %v402_v7 = vmax.f32 %v908_v11, %v320_v45 }
  0xad   : > { %v682_v48 = vclamps-f32 %v473_v43, 1.0  ;;  %v439_v49 = vmul.f32 %v1059_v30, %v404_v44 }
  0xae   : > { %v680_v50 = vclamps-f32 %v471_v3, 1.0  ;;  %v437_v10 = vmul.f32 %v1059_v30, %v402_v7  ;;  %v328_v51 = vpop.permute.xlu1 %327 }
  0xaf   : > { %559 = vst.msk [vmem:[%s1072_s11 + $0x10] sm:$0xff] %vm555_vm0, %v682_v48  ;;  %v474_v54 = vadd.f32 %v1062_v36, %v439_v49  ;;  %v406_v55 = vmax.f32 %v916_v16, %v328_v51  ;;  %v326_v56 = vpop.permute.xlu0 %325 }
  0xb0   : > { %556 = vst.msk [vmem:[%s1072_s11] sm:$0xff] %vm555_vm0, %v680_v50  ;;  %v472_v11 = vadd.f32 %v1062_v36, %v437_v10  ;;  %v405_v57 = vmax.f32 %v920_v17, %v326_v56 }
  0xb1   : > { %v683_v60 = vclamps-f32 %v474_v54, 1.0  ;;  %v441_v61 = vmul.f32 %v1059_v30, %v406_v55 }
  0xb2   : > { %v681_v62 = vclamps-f32 %v472_v11, 1.0  ;;  %v440_v63 = vmul.f32 %v1059_v30, %v405_v57  ;;  %v332_v2 = vpop.permute.xlu1 %331 }
  0xb3   : > { %560 = vst.msk [vmem:[%s1072_s11 + $0x18] sm:$0x3f] %vm557_vm1, %v683_v60  ;;  %v476_v16 = vadd.f32 %v1062_v36, %v441_v61  ;;  %v408_v4 = vmax.f32 %v928_v22, %v332_v2  ;;  %v330_v5 = vpop.permute.xlu0 %329 }
  0xb4   : > { %558 = vst.msk [vmem:[%s1072_s11 + $0x8] sm:$0x3f] %vm557_vm1, %v681_v62  ;;  %v475_v17 = vadd.f32 %v1062_v36, %v440_v63  ;;  %v407_v6 = vmax.f32 %v932_v23, %v330_v5 }
  0xb5   : > { %v685_v12 = vclamps-f32 %v476_v16, 1.0  ;;  %v443_v13 = vmul.f32 %v1059_v30, %v408_v4 }
  0xb6   : > { %v684_v14 = vclamps-f32 %v475_v17, 1.0  ;;  %v442_v15 = vmul.f32 %v1059_v30, %v407_v6  ;;  %v336_v20 = vpop.permute.xlu1 %335 }
  0xb7   : > { %562 = vst.msk [vmem:[%s1072_s11 + $0x28] sm:$0x3f] %vm557_vm1, %v685_v12  ;;  %v478_v22 = vadd.f32 %v1062_v36, %v443_v13  ;;  %v410_v21 = vmax.f32 %v940_v28, %v336_v20  ;;  %v334_v24 = vpop.permute.xlu0 %333 }
  0xb8   : > { %561 = vst.msk [vmem:[%s1072_s11 + $0x20] sm:$0xff] %vm555_vm0, %v684_v14  ;;  %v477_v23 = vadd.f32 %v1062_v36, %v442_v15  ;;  %v409_v25 = vmax.f32 %v944_v29, %v334_v24 }
  0xb9   : > { %v687_v31 = vclamps-f32 %v478_v22, 1.0  ;;  %v445_v32 = vmul.f32 %v1059_v30, %v410_v21 }
  0xba   : > { %v686_v33 = vclamps-f32 %v477_v23, 1.0  ;;  %v444_v37 = vmul.f32 %v1059_v30, %v409_v25  ;;  %v340_v38 = vpop.permute.xlu1 %339 }
  0xbb   : > { %564 = vst.msk [vmem:[%s1072_s11 + $0x38] sm:$0x3f] %vm557_vm1, %v687_v31  ;;  %v480_v28 = vadd.f32 %v1062_v36, %v445_v32  ;;  %v412_v39 = vmax.f32 %v952_v34, %v340_v38  ;;  %v338_v42 = vpop.permute.xlu0 %337 }
  0xbc   : > { %563 = vst.msk [vmem:[%s1072_s11 + $0x30] sm:$0xff] %vm555_vm0, %v686_v33  ;;  %v479_v29 = vadd.f32 %v1062_v36, %v444_v37  ;;  %v411_v43 = vmax.f32 %v956_v35, %v338_v42 }
  0xbd   : > { %v689_v44 = vclamps-f32 %v480_v28, 1.0  ;;  %v447_v45 = vmul.f32 %v1059_v30, %v412_v39 }
  0xbe   : > { %v688_v3 = vclamps-f32 %v479_v29, 1.0  ;;  %v446_v7 = vmul.f32 %v1059_v30, %v411_v43  ;;  %v344_v48 = vpop.permute.xlu1 %343 }
  0xbf   : > { %566 = vst.msk [vmem:[%s1072_s11 + $0x48] sm:$0x3f] %vm557_vm1, %v689_v44  ;;  %v482_v34 = vadd.f32 %v1062_v36, %v447_v45  ;;  %v414_v49 = vmax.f32 %v964_v40, %v344_v48  ;;  %v342_v50 = vpop.permute.xlu0 %341 }
  0xc0   : > { %565 = vst.msk [vmem:[%s1072_s11 + $0x40] sm:$0xff] %vm555_vm0, %v688_v3  ;;  %v481_v35 = vadd.f32 %v1062_v36, %v446_v7  ;;  %v413_v10 = vmax.f32 %v968_v41, %v342_v50 }
  0xc1   : > { %v691_v51 = vclamps-f32 %v482_v34, 1.0  ;;  %v449_v54 = vmul.f32 %v1059_v30, %v414_v49 }
  0xc2   : > { %v690_v55 = vclamps-f32 %v481_v35, 1.0  ;;  %v448_v56 = vmul.f32 %v1059_v30, %v413_v10  ;;  %v348_v11 = vpop.permute.xlu1 %347 }
  0xc3   : > { %568 = vst.msk [vmem:[%s1072_s11 + $0x58] sm:$0x3f] %vm557_vm1, %v691_v51  ;;  %v484_v40 = vadd.f32 %v1062_v36, %v449_v54  ;;  %v416_v57 = vmax.f32 %v976_v46, %v348_v11  ;;  %v346_v60 = vpop.permute.xlu0 %345 }
  0xc4   : > { %567 = vst.msk [vmem:[%s1072_s11 + $0x50] sm:$0xff] %vm555_vm0, %v690_v55  ;;  %v483_v41 = vadd.f32 %v1062_v36, %v448_v56  ;;  %v415_v61 = vmax.f32 %v980_v47, %v346_v60 }
  0xc5   : > { %v693_v62 = vclamps-f32 %v484_v40, 1.0  ;;  %v451_v63 = vmul.f32 %v1059_v30, %v416_v57 }
  0xc6   : > { %v692_v2 = vclamps-f32 %v483_v41, 1.0  ;;  %v450_v16 = vmul.f32 %v1059_v30, %v415_v61  ;;  %v352_v4 = vpop.permute.xlu1 %351 }
  0xc7   : > { %570 = vst.msk [vmem:[%s1072_s11 + $0x68] sm:$0x3f] %vm557_vm1, %v693_v62  ;;  %v486_v46 = vadd.f32 %v1062_v36, %v451_v63  ;;  %v418_v5 = vmax.f32 %v988_v52, %v352_v4  ;;  %v350_v17 = vpop.permute.xlu0 %349 }
  0xc8   : > { %569 = vst.msk [vmem:[%s1072_s11 + $0x60] sm:$0xff] %vm555_vm0, %v692_v2  ;;  %v485_v47 = vadd.f32 %v1062_v36, %v450_v16  ;;  %v417_v6 = vmax.f32 %v992_v53, %v350_v17 }
  0xc9   : > { %v695_v12 = vclamps-f32 %v486_v46, 1.0  ;;  %v453_v13 = vmul.f32 %v1059_v30, %v418_v5 }
  0xca   : > { %v694_v14 = vclamps-f32 %v485_v47, 1.0  ;;  %v452_v15 = vmul.f32 %v1059_v30, %v417_v6  ;;  %v356_v20 = vpop.permute.xlu1 %355 }
  0xcb   : > { %572 = vst.msk [vmem:[%s1072_s11 + $0x78] sm:$0x3f] %vm557_vm1, %v695_v12  ;;  %v488_v52 = vadd.f32 %v1062_v36, %v453_v13  ;;  %v420_v22 = vmax.f32 %v1000_v58, %v356_v20  ;;  %v354_v21 = vpop.permute.xlu0 %353 }
  0xcc   : > { %571 = vst.msk [vmem:[%s1072_s11 + $0x70] sm:$0xff] %vm555_vm0, %v694_v14  ;;  %v487_v53 = vadd.f32 %v1062_v36, %v452_v15  ;;  %v419_v24 = vmax.f32 %v1004_v59, %v354_v21 }
  0xcd   : > { %v697_v23 = vclamps-f32 %v488_v52, 1.0  ;;  %v455_v25 = vmul.f32 %v1059_v30, %v420_v22 }
  0xce   : > { %v696_v31 = vclamps-f32 %v487_v53, 1.0  ;;  %v454_v32 = vmul.f32 %v1059_v30, %v419_v24  ;;  %v360_v33 = vpop.permute.xlu1 %359 }
  0xcf   : > { %574 = vst.msk [vmem:[%s1072_s11 + $0x88] sm:$0x3f] %vm557_vm1, %v697_v23  ;;  %v490_v58 = vadd.f32 %v1062_v36, %v455_v25  ;;  %v422_v37 = vmax.f32 %v1012_v0, %v360_v33  ;;  %v358_v38 = vpop.permute.xlu0 %357 }
  0xd0   : > { %573 = vst.msk [vmem:[%s1072_s11 + $0x80] sm:$0xff] %vm555_vm0, %v696_v31  ;;  %v489_v59 = vadd.f32 %v1062_v36, %v454_v32  ;;  %v421_v28 = vmax.f32 %v1016_v1, %v358_v38 }
  0xd1   : > { %v699_v39 = vclamps-f32 %v490_v58, 1.0  ;;  %v457_v42 = vmul.f32 %v1059_v30, %v422_v37 }
  0xd2   : > { %v698_v29 = vclamps-f32 %v489_v59, 1.0  ;;  %v456_v43 = vmul.f32 %v1059_v30, %v421_v28  ;;  %v364_v44 = vpop.permute.xlu1 %363 }
  0xd3   : > { %576 = vst.msk [vmem:[%s1072_s11 + $0x98] sm:$0x3f] %vm557_vm1, %v699_v39  ;;  %v492_v0 = vadd.f32 %v1062_v36, %v457_v42  ;;  %v424_v45 = vmax.f32 %v1024_v8, %v364_v44  ;;  %v362_v3 = vpop.permute.xlu0 %361 }
  0xd4   : > { %575 = vst.msk [vmem:[%s1072_s11 + $0x90] sm:$0xff] %vm555_vm0, %v698_v29  ;;  %v491_v1 = vadd.f32 %v1062_v36, %v456_v43  ;;  %v423_v7 = vmax.f32 %v1028_v9, %v362_v3 }
  0xd5   : > { %v701_v48 = vclamps-f32 %v492_v0, 1.0  ;;  %v459_v34 = vmul.f32 %v1059_v30, %v424_v45 }
  0xd6   : > { %v700_v49 = vclamps-f32 %v491_v1, 1.0  ;;  %v458_v50 = vmul.f32 %v1059_v30, %v423_v7  ;;  %v368_v35 = vpop.permute.xlu1 %367 }
  0xd7   : > { %578 = vst.msk [vmem:[%s1072_s11 + $0xa8] sm:$0x3f] %vm557_vm1, %v701_v48  ;;  %v494_v8 = vadd.f32 %v1062_v36, %v459_v34  ;;  %v426_v10 = vmax.f32 %v1036_v18, %v368_v35  ;;  %v366_v51 = vpop.permute.xlu0 %365 }
  0xd8   : > { %577 = vst.msk [vmem:[%s1072_s11 + $0xa0] sm:$0xff] %vm555_vm0, %v700_v49  ;;  %v493_v9 = vadd.f32 %v1062_v36, %v458_v50  ;;  %v425_v54 = vmax.f32 %v1040_v19, %v366_v51 }
  0xd9   : > { %v703_v55 = vclamps-f32 %v494_v8, 1.0  ;;  %v461_v56 = vmul.f32 %v1059_v30, %v426_v10 }
  0xda   : > { %v702_v11 = vclamps-f32 %v493_v9, 1.0  ;;  %v460_v40 = vmul.f32 %v1059_v30, %v425_v54  ;;  %v372_v57 = vpop.permute.xlu1 %371 }
  0xdb   : > { %580 = vst.msk [vmem:[%s1072_s11 + $0xb8] sm:$0x3f] %vm557_vm1, %v703_v55  ;;  %v496_v18 = vadd.f32 %v1062_v36, %v461_v56  ;;  %v428_v60 = vmax.f32 %v1048_v26, %v372_v57  ;;  %v370_v41 = vpop.permute.xlu0 %369 }
  0xdc   : > { %579 = vst.msk [vmem:[%s1072_s11 + $0xb0] sm:$0xff] %vm555_vm0, %v702_v11  ;;  %v495_v19 = vadd.f32 %v1062_v36, %v460_v40  ;;  %v427_v61 = vmax.f32 %v1052_v27, %v370_v41 }
  0xdd   : > { %v705_v62 = vclamps-f32 %v496_v18, 1.0  ;;  %v463_v63 = vmul.f32 %v1059_v30, %v428_v60 }
  0xde   : > { %v704_v2 = vclamps-f32 %v495_v19, 1.0  ;;  %v462_v16 = vmul.f32 %v1059_v30, %v427_v61 }
  0xdf   : > { %582 = vst.msk [vmem:[%s1072_s11 + $0xc8] sm:$0x3f] %vm557_vm1, %v705_v62  ;;  %v498_v4 = vadd.f32 %v1062_v36, %v463_v63 }
  0xe0   : > { %581 = vst.msk [vmem:[%s1072_s11 + $0xc0] sm:$0xff] %vm555_vm0, %v704_v2  ;;  %v497_v26 = vadd.f32 %v1062_v36, %v462_v16 }
  0xe1   : > { %v707_v46 = vclamps-f32 %v498_v4, 1.0 }
  0xe2   : > { %v706_v5 = vclamps-f32 %v497_v26, 1.0 }
  0xe3   : > { %584 = vst.msk [vmem:[%s1072_s11 + $0xd8] sm:$0x3f] %vm557_vm1, %v707_v46 }
  0xe4   : > { %583 = vst.msk [vmem:[%s1072_s11 + $0xd0] sm:$0xff] %vm555_vm0, %v706_v5 }
  0xe5 PF: > { %s15_s12 = sadd.s32 1, %s808_s12  }
  0xe6   : > { %p12_p5 = scmp.ge.s32.totalorder %s15_s12, 4  }
  0xe8   :  { %14 = sbr.rel (!%p12_p5) target bundleno = 2 (0x2), region = 71 }
  0xed   :  { %609 = vsyncpa [#allocation3], 1 }
  0xee   :  { %611 = vsyncpa [#allocation3 + $0x1], 1 }
  0xef   :  { %612 = vsyncpa [#allocation5], 1 }

// kernel: vgg3_forward.9
= control target key start
LH: loop header
LB: loop body
LE: loop exit
PB: predicated region body
PF: predicated region fallthrough
CT: control target
= control target key end

     0   :  { %8 = vsyncpa [#allocation3], 0  ;;  %s605_s0 = inlined_call_operand.vmem [shape: f32[28,8,128], index: 0, kind: input, shape index: {}]   ;;  %s606_s1 = inlined_call_operand.hbm [shape: f32[1,1,64], index: 1, kind: input, shape index: {}]   ;;  %s607_s2 = inlined_call_operand.hbm [shape: f32[1,1,64], index: 2, kind: input, shape index: {}]   ;;  %s608_s3 = inlined_call_operand.vmem [shape: f32[14,8,64], index: 3, kind: output, shape index: {}]  }
   0x1   :  { %9 = vsyncpa [#allocation5], 0  ;;  %s527_s12 = smov 0  }
   0x2 LB: > { %s533_s13 = sadd.s32 4294967295, %s502_s12   ;;  %p386_p0 = scmp.ge.s32.totalorder %s502_s12, 1  ;;  %s502_s12 = sphi %s527_s12, %s15_s12  }
   0x3   : > { %p114_p1 = scmp.lt.s32.totalorder %s502_s12, 3  ;;  %p609_p2 = scmp.eq.s32.totalorder %s533_s13, 0 }
   0x4   : > { %s504_s15 = smov [#allocation2]   ;;  %s505_s17 = smov [#allocation4]  }
   0x5   : > { %p538_p3 = pnand %p386_p0, %p114_p1  ;;  %s127_s16 = sshll.u32 %s504_s15, 4  ;;  %s128_s16 = int_to_ptr.vmem [resolvable:$true] %s127_s16 }
   0x6   : > { %s138_s18 = sshll.u32 %s505_s17, 4  ;;  %s447_s20 = scalar_lea.vmem %s128_s16, 16  ;;  %s139_s18 = int_to_ptr.vmem [resolvable:$true] %s138_s18 }
   0x7   : > { %p414_p4 = pneg %p538_p3  ;;  %p448_p7 = scmp.ne.s32.totalorder %s128_s16, %s447_s20 }
   0x8   : > { %s454_s21 = scalar_lea.vmem %s128_s16, 32  ;;  %p455_p10 = scmp.lt.s32.totalorder %s128_s16, %s128_s16 }
   0x9   : > { %p546_p5 = pnand %p609_p2, %p414_p4  ;;  %p456_p11 = scmp.lt.s32.totalorder %s454_s21, %s447_s20 }
   0xb   : > { %p438_p6 = pneg %p546_p5  ;;  %p457_p12 = por %p456_p11, %p455_p10 }
   0xd   : > { %p450_p8 = pnand %p448_p7, %p438_p6 }
   0xf   : > { %p451_p9 = pneg %p450_p8 }
  0x11   : > { %p458_p13 = pnand %p457_p12, %p451_p9 }
  0x13   : > { %461 = shalt.err (!%p458_p13)
}
  0x14   : > { %417 = dma.hbm_to_vmem [thread:$0]  (!%p546_p5), %s606_s1, 16, %s128_s16, [#allocation3]  }
  0x15   : > { %s473_s24 = scalar_lea.vmem %s139_s18, 16  ;;  %s480_s25 = scalar_lea.vmem %s139_s18, 32 }
  0x16   : > { %p474_p0 = scmp.ne.s32.totalorder %s139_s18, %s473_s24  ;;  %p481_p7 = scmp.lt.s32.totalorder %s139_s18, %s139_s18 }
  0x17   : > { %p482_p8 = scmp.lt.s32.totalorder %s480_s25, %s473_s24 }
  0x18   : > { %p476_p1 = pnand %p474_p0, %p438_p6 }
  0x19   : > { %p483_p2 = por %p482_p8, %p481_p7 }
  0x1a   : > { %p477_p4 = pneg %p476_p1 }
  0x1c   : > { %p484_p10 = pnand %p483_p2, %p477_p4 }
  0x1e   : > { %487 = shalt.err (!%p484_p10)
}
  0x1f   : > { %420 = dma.hbm_to_vmem [thread:$0]  (!%p546_p5), %s607_s2, 16, %s139_s18, [#allocation5]  }
  0x20   : > { %160 = sbr.rel (%p538_p3) target bundleno = 188 (0xbc), region = 32  ;;  %p612_p9 = scmp.eq.s32.totalorder (!%p538_p3), %s533_s13, 0 }
  0x25   : > { %493 = dma.done.wait (%p612_p9), [#allocation3], 16   ;;  %p613_p6 = pmov %p612_p9 }
  0x27   : > { %495 = vsyncadd (%p613_p6), [#allocation3], 4294967280  ;;  %p614_p11 = pmov %p613_p6 }
  0x28   : > { %p615_p2 = pmov %p613_p6 }
  0x29   : > { %497 = dma.done.wait (%p614_p11), [#allocation5], 16  }
  0x2a   : > { %499 = vsyncadd (%p615_p2), [#allocation5], 4294967280  ;;  %s188_s28 = smul.u32 14, %s533_s13  ;;  %s506_s6 = smov 64   ;;  %v395_v21 = vld [vmem:[#allocation2] ss:$0 sm:$0xff] }
  0x2b   : > { %s194_s7 = smul.u32 7, %s533_s13  ;;  %v396_v25 = vld [vmem:[#allocation4] ss:$0 sm:$0xff]  ;;  %vm298_vm0 = vcmask 523264  }
  0x2c   : > { %p189_p12 = scmp.lt.s32.totalorder %s188_s28, 27 }
  0x2d   : > { %p195_p3 = scmp.lt.s32.totalorder %s194_s7, 13 }
  0x2e   : > { %s617_s28 = smov (!%p189_p12, %s188_s28), 27 }
  0x2f   : > { %s393_s29 = sshll.u32 %s617_s28, 3  ;;  %s619_s7 = smov (!%p195_p3, %s194_s7), 13 }
  0x30   : > { %s192_s5 = scalar_lea.vmem %s605_s0, %s393_s29  ;;  %s394_s8 = sshll.u32 %s619_s7, 3 }
  0x31   : > { %v200_v0 = vld [vmem:[%s192_s5] sm:$0xff]  ;;  %v201_v1 = vld [vmem:[%s192_s5 + $0x8] sm:$0xff]  ;;  %v202_v5 = vld [vmem:[%s192_s5 + $0x10] sm:$0xff]  ;;  %s586_s11 = scalar_lea.vmem %s608_s3, %s394_s8 }
  0x32   : > { %v204_v2 = vld [vmem:[%s192_s5 + $0x20] sm:$0xff]  ;;  %v214_v3 = vmax.f32 %v200_v0, %v201_v1  ;;  %v205_v4 = vld [vmem:[%s192_s5 + $0x28] sm:$0xff]  ;;  %v203_v6 = vld [vmem:[%s192_s5 + $0x18] sm:$0xff] }
  0x33   : > { %v216_v7 = vmax.f32 %v204_v2, %v205_v4  ;;  %v206_v8 = vld [vmem:[%s192_s5 + $0x30] sm:$0xff]  ;;  %v207_v9 = vld [vmem:[%s192_s5 + $0x38] sm:$0xff]  ;;  %v215_v10 = vmax.f32 %v202_v5, %v203_v6  ;;  %v208_v12 = vld [vmem:[%s192_s5 + $0x40] sm:$0xff] }
  0x34   : > { %228 = vrot.lane.b32.xlu0 %v214_v3, %s506_s6  ;;  %v217_v11 = vmax.f32 %v206_v8, %v207_v9  ;;  %v209_v13 = vld [vmem:[%s192_s5 + $0x48] sm:$0xff]  ;;  %v210_v14 = vld [vmem:[%s192_s5 + $0x50] sm:$0xff]  ;;  %v211_v15 = vld [vmem:[%s192_s5 + $0x58] sm:$0xff] }
  0x35   : > { %232 = vrot.lane.b32.xlu1 %v216_v7, %s506_s6  ;;  %v218_v16 = vmax.f32 %v208_v12, %v209_v13  ;;  %v219_v17 = vmax.f32 %v210_v14, %v211_v15  ;;  %v212_v18 = vld [vmem:[%s192_s5 + $0x60] sm:$0xff]  ;;  %v213_v19 = vld [vmem:[%s192_s5 + $0x68] sm:$0xff] }
  0x36   : > { %v220_v20 = vmax.f32 %v212_v18, %v213_v19 }
  0x38   : > { %230 = vrot.lane.b32.xlu0 %v215_v10, %s506_s6 }
  0x39   : > { %234 = vrot.lane.b32.xlu1 %v217_v11, %s506_s6 }
  0x3c   : > { %236 = vrot.lane.b32.xlu0 %v218_v16, %s506_s6 }
  0x3d   : > { %238 = vrot.lane.b32.xlu1 %v219_v17, %s506_s6 }
  0x40   : > { %240 = vrot.lane.b32.xlu0 %v220_v20, %s506_s6 }
  0xa6   : > { %v229_v22 = vpop.permute.xlu0 %228 }
  0xa7   : > { %v249_v23 = vmax.f32 %v214_v3, %v229_v22  ;;  %v233_v24 = vpop.permute.xlu1 %232 }
  0xa8   : > { %v251_v26 = vmax.f32 %v216_v7, %v233_v24 }
  0xa9   : > { %v263_v27 = vmul.f32 %v395_v21, %v249_v23 }
  0xaa   : > { %v265_v28 = vmul.f32 %v395_v21, %v251_v26  ;;  %v231_v29 = vpop.permute.xlu0 %230 }
  0xab   : > { %v277_v30 = vadd.f32 %v396_v25, %v263_v27  ;;  %v250_v31 = vmax.f32 %v215_v10, %v231_v29  ;;  %v235_v32 = vpop.permute.xlu1 %234 }
  0xac   : > { %v279_v33 = vadd.f32 %v396_v25, %v265_v28  ;;  %v252_v34 = vmax.f32 %v217_v11, %v235_v32 }
  0xad   : > { %v397_v35 = vclamps-f32 %v277_v30, 1.0  ;;  %v264_v36 = vmul.f32 %v395_v21, %v250_v31 }
  0xae   : > { %v399_v37 = vclamps-f32 %v279_v33, 1.0  ;;  %v266_v38 = vmul.f32 %v395_v21, %v252_v34  ;;  %v237_v39 = vpop.permute.xlu0 %236 }
  0xaf   : > { %299 = vst.msk [vmem:[%s586_s11] sm:$0xff] %vm298_vm0, %v397_v35  ;;  %v278_v40 = vadd.f32 %v396_v25, %v264_v36  ;;  %v253_v41 = vmax.f32 %v218_v16, %v237_v39  ;;  %v239_v42 = vpop.permute.xlu1 %238 }
  0xb0   : > { %301 = vst.msk [vmem:[%s586_s11 + $0x10] sm:$0xff] %vm298_vm0, %v399_v37  ;;  %v280_v43 = vadd.f32 %v396_v25, %v266_v38  ;;  %v254_v44 = vmax.f32 %v219_v17, %v239_v42 }
  0xb1   : > { %v398_v45 = vclamps-f32 %v278_v40, 1.0  ;;  %v267_v46 = vmul.f32 %v395_v21, %v253_v41 }
  0xb2   : > { %v400_v47 = vclamps-f32 %v280_v43, 1.0  ;;  %v268_v48 = vmul.f32 %v395_v21, %v254_v44  ;;  %v241_v49 = vpop.permute.xlu0 %240 }
  0xb3   : > { %300 = vst.msk [vmem:[%s586_s11 + $0x8] sm:$0xff] %vm298_vm0, %v398_v45  ;;  %v281_v50 = vadd.f32 %v396_v25, %v267_v46  ;;  %v255_v51 = vmax.f32 %v220_v20, %v241_v49 }
  0xb4   : > { %302 = vst.msk [vmem:[%s586_s11 + $0x18] sm:$0xff] %vm298_vm0, %v400_v47  ;;  %v282_v52 = vadd.f32 %v396_v25, %v268_v48 }
  0xb5   : > { %v401_v53 = vclamps-f32 %v281_v50, 1.0  ;;  %v269_v54 = vmul.f32 %v395_v21, %v255_v51 }
  0xb6   : > { %v402_v55 = vclamps-f32 %v282_v52, 1.0 }
  0xb7   : > { %303 = vst.msk [vmem:[%s586_s11 + $0x20] sm:$0xff] %vm298_vm0, %v401_v53  ;;  %v283_v56 = vadd.f32 %v396_v25, %v269_v54 }
  0xb8   : > { %304 = vst.msk [vmem:[%s586_s11 + $0x28] sm:$0xff] %vm298_vm0, %v402_v55 }
  0xb9   : > { %v403_v57 = vclamps-f32 %v283_v56, 1.0 }
  0xbb   : > { %305 = vst.msk [vmem:[%s586_s11 + $0x30] sm:$0xff] %vm298_vm0, %v403_v57 }
  0xbc PF: > { %s15_s12 = sadd.s32 1, %s502_s12  }
  0xbd   : > { %p12_p5 = scmp.ge.s32.totalorder %s15_s12, 4  }
  0xbf   :  { %14 = sbr.rel (!%p12_p5) target bundleno = 2 (0x2), region = 71 }
  0xc4   :  { %328 = vsyncpa [#allocation3], 1 }
  0xc5   :  { %330 = vsyncpa [#allocation3 + $0x1], 1 }
  0xc6   :  { %331 = vsyncpa [#allocation5], 1 }

// kernel: vgg3_forward.11
= control target key start
LH: loop header
LB: loop body
LE: loop exit
PB: predicated region body
PF: predicated region fallthrough
CT: control target
= control target key end

     0   :  { %v283_v28 = vlaneseq  ;;  %v1972_v36 = vmov 1966171168   ;;  %s2422_s0 = inlined_call_operand.vmem [shape: bf16[2,2048], index: 0, kind: input, shape index: {}]   ;;  %s2423_s1 = inlined_call_operand.vmem [shape: bf16[2048,128], index: 1, kind: input, shape index: {}]   ;;  %s2424_s2 = inlined_call_operand.vmem [shape: f32[1,128], index: 2, kind: input, shape index: {}]   ;;  %s2425_s3 = inlined_call_operand.vmem [shape: f32[1,128], index: 3, kind: input, shape index: {}]   ;;  %s2426_s4 = inlined_call_operand.hbm [shape: f32[2,128], index: 4, kind: output, shape index: {}]  }
   0x1   :  { %v1820_v0 = vld [vmem:[%s2423_s1 + $0x78] sm:$0xff]   ;;  %v1824_v4 = vld [vmem:[%s2423_s1 + $0x70] sm:$0xff]   ;;  %v1828_v8 = vld [vmem:[%s2423_s1 + $0x68] sm:$0xff]   ;;  %v281_v37 = vunpack.c.l.s4 %v1972_v36 }
   0x2   :  { %v1821_v1 = vld [vmem:[%s2423_s1 + $0xf8] sm:$0xff]   ;;  %1642 = vmatprep.subr.bf16.mxu0 %v1820_v0  ;;  %v1825_v5 = vld [vmem:[%s2423_s1 + $0xf0] sm:$0xff]   ;;  %v1829_v9 = vld [vmem:[%s2423_s1 + $0xe8] sm:$0xff]   ;;  %v284_v33 = vshrl.u32 %v283_v28, 7 }
   0x3   :  { %v1822_v2 = vld [vmem:[%s2423_s1 + $0x38] sm:$0xff]   ;;  %1664 = vmatprep.subr.bf16.mxu1 %v1821_v1  ;;  %v1826_v6 = vld [vmem:[%s2423_s1 + $0x30] sm:$0xff]   ;;  %v1830_v10 = vld [vmem:[%s2423_s1 + $0x28] sm:$0xff]   ;;  %v282_v40 = vunpack.c.0.s8 %v281_v37 }
   0x4   :  { %v1823_v3 = vld [vmem:[%s2423_s1 + $0xb8] sm:$0xff]   ;;  %1643 = vmatpush3.bf16.msra.mxu0 %v1822_v2  ;;  %v1827_v7 = vld [vmem:[%s2423_s1 + $0xb0] sm:$0xff]   ;;  %v1831_v11 = vld [vmem:[%s2423_s1 + $0xa8] sm:$0xff]  }
   0x5   :  { %1665 = vmatpush3.bf16.msra.mxu1 %v1823_v3  ;;  %1644 = vmatprep.subr.bf16.mxu0 %v1824_v4  ;;  %v1832_v12 = vld [vmem:[%s2423_s1 + $0x60] sm:$0xff]   ;;  %v1836_v16 = vld [vmem:[%s2423_s1 + $0x58] sm:$0xff]   ;;  %v1840_v20 = vld [vmem:[%s2423_s1 + $0x50] sm:$0xff]   ;;  %v2104_v41 = vsub.s32 %v282_v40, %v284_v33 }
   0x6   :  { %1666 = vmatprep.subr.bf16.mxu1 %v1825_v5  ;;  %v1833_v13 = vld [vmem:[%s2423_s1 + $0xe0] sm:$0xff]   ;;  %v1837_v17 = vld [vmem:[%s2423_s1 + $0xd8] sm:$0xff]   ;;  %v1841_v21 = vld [vmem:[%s2423_s1 + $0xd0] sm:$0xff]  }
   0x7   :  { %v1834_v14 = vld [vmem:[%s2423_s1 + $0x20] sm:$0xff]   ;;  %v1838_v18 = vld [vmem:[%s2423_s1 + $0x18] sm:$0xff]   ;;  %v1842_v22 = vld [vmem:[%s2423_s1 + $0x10] sm:$0xff]  }
   0x8   :  { %1645 = vmatpush3.bf16.msra.mxu0 %v1826_v6  ;;  %v1835_v15 = vld [vmem:[%s2423_s1 + $0xa0] sm:$0xff]   ;;  %v1839_v19 = vld [vmem:[%s2423_s1 + $0x98] sm:$0xff]   ;;  %v1843_v23 = vld [vmem:[%s2423_s1 + $0x90] sm:$0xff]  }
   0x9   :  { %1667 = vmatpush3.bf16.msra.mxu1 %v1827_v7  ;;  %1646 = vmatprep.subr.bf16.mxu0 %v1828_v8  ;;  %v1844_v24 = vld [vmem:[%s2423_s1 + $0x48] sm:$0xff]   ;;  %v1848_v29 = vld [vmem:[%s2423_s1 + $0x40] sm:$0xff]   ;;  %v1853_v35 = vld [vmem:[%s2423_s1 + $0x178] sm:$0xff]  }
   0xa   :  { %1668 = vmatprep.subr.bf16.mxu1 %v1829_v9  ;;  %v1845_v25 = vld [vmem:[%s2423_s1 + $0xc8] sm:$0xff]   ;;  %v1849_v30 = vld [vmem:[%s2423_s1 + $0xc0] sm:$0xff]   ;;  %v1854_v38 = vld [vmem:[%s2423_s1 + $0x1f8] sm:$0xff]  }
   0xb   :  { %v1846_v26 = vld [vmem:[%s2423_s1 + $0x8] sm:$0xff]   ;;  %v1850_v31 = vld [vmem:[%s2423_s1] sm:$0xff]   ;;  %v1855_v48 = vld [vmem:[%s2423_s1 + $0x138] sm:$0xff]  }
   0xc   :  { %1647 = vmatpush3.bf16.msra.mxu0 %v1830_v10  ;;  %v1847_v27 = vld [vmem:[%s2423_s1 + $0x88] sm:$0xff]   ;;  %v1851_v32 = vld [vmem:[%s2423_s1 + $0x80] sm:$0xff]   ;;  %v1857_v51 = vld [vmem:[%s2423_s1 + $0x170] sm:$0xff]  }
   0xd   :  { %1669 = vmatpush3.bf16.msra.mxu1 %v1831_v11  ;;  %1648 = vmatprep.subr.bf16.mxu0 %v1832_v12  ;;  %v19_v34 = vld [vmem:[%s2422_s0] sm:$0xff]  ;;  %v1856_v53 = vld [vmem:[%s2423_s1 + $0x1b8] sm:$0xff]   ;;  %v1858_v54 = vld [vmem:[%s2423_s1 + $0x1f0] sm:$0xff]  }
   0xe   :  { %1670 = vmatprep.subr.bf16.mxu1 %v1833_v13  ;;  %v279_v39 = vcombine.high %v19_v34, %v19_v34  ;;  %v286_v42 = vrot.slane %v19_v34, %v2104_v41  ;;  %v1859_v56 = vld [vmem:[%s2423_s1 + $0x130] sm:$0xff]   ;;  %v1861_v57 = vld [vmem:[%s2423_s1 + $0x168] sm:$0xff]   ;;  %v1865_v61 = vld [vmem:[%s2423_s1 + $0x160] sm:$0xff]  }
   0xf   :  { %v1860_v58 = vld [vmem:[%s2423_s1 + $0x1b0] sm:$0xff]   ;;  %v1862_v59 = vld [vmem:[%s2423_s1 + $0x1e8] sm:$0xff]   ;;  %v1866_v63 = vld [vmem:[%s2423_s1 + $0x1e0] sm:$0xff]  }
  0x10   :  { %1649 = vmatpush3.bf16.msra.mxu0 %v1834_v14  ;;  %v2108_v43 = vrot.slane %v279_v39, %v2104_v41  ;;  %v294_v44 = vcombine.high %v286_v42, %v286_v42  ;;  %v302_v45 = vrot.slane %v286_v42, %v2104_v41  ;;  %v1863_v60 = vld [vmem:[%s2423_s1 + $0x128] sm:$0xff]   ;;  %v1867_v0 = vld [vmem:[%s2423_s1 + $0x120] sm:$0xff]   ;;  %v1869_v1 = vld [vmem:[%s2423_s1 + $0x158] sm:$0xff]  }
  0x11   :  { %1671 = vmatpush3.bf16.msra.mxu1 %v1835_v15  ;;  %1650 = vmatprep.subr.bf16.mxu0 %v1836_v16  ;;  %v1864_v62 = vld [vmem:[%s2423_s1 + $0x1a8] sm:$0xff]   ;;  %v1868_v2 = vld [vmem:[%s2423_s1 + $0x1a0] sm:$0xff]   ;;  %v1870_v3 = vld [vmem:[%s2423_s1 + $0x1d8] sm:$0xff]  }
  0x12   :  { %1672 = vmatprep.subr.bf16.mxu1 %v1837_v17  ;;  %v295_v46 = vcombine.high %v2108_v43, %v2108_v43  ;;  %v316_v47 = vrot.slane %v294_v44, %v2104_v41  ;;  %v324_v50 = vcombine.high %v302_v45, %v302_v45  ;;  %v1871_v4 = vld [vmem:[%s2423_s1 + $0x118] sm:$0xff]   ;;  %v1873_v5 = vld [vmem:[%s2423_s1 + $0x150] sm:$0xff]   ;;  %v1877_v9 = vld [vmem:[%s2423_s1 + $0x148] sm:$0xff]   ;;  %v309_v17 = vrot.slane %v2108_v43, %v2104_v41 }
  0x13   :  { %v1872_v6 = vld [vmem:[%s2423_s1 + $0x198] sm:$0xff]   ;;  %v1874_v7 = vld [vmem:[%s2423_s1 + $0x1d0] sm:$0xff]   ;;  %v1878_v11 = vld [vmem:[%s2423_s1 + $0x1c8] sm:$0xff]  }
  0x14   :  { %1651 = vmatpush3.bf16.msra.mxu0 %v1838_v18  ;;  %v323_v49 = vrot.slane %v295_v46, %v2104_v41  ;;  %1193 = vmatprep.mubr.bf16.mxu0 %v316_v47  ;;  %v326_v52 = vcombine.high %v316_v47, %v316_v47  ;;  %v1875_v8 = vld [vmem:[%s2423_s1 + $0x110] sm:$0xff]   ;;  %v1879_v12 = vld [vmem:[%s2423_s1 + $0x108] sm:$0xff]   ;;  %v1881_v13 = vld [vmem:[%s2423_s1 + $0x140] sm:$0xff]  }
  0x15   :  { %1673 = vmatpush3.bf16.msra.mxu1 %v1839_v19  ;;  %1652 = vmatprep.subr.bf16.mxu0 %v1840_v20  ;;  %v1876_v10 = vld [vmem:[%s2423_s1 + $0x190] sm:$0xff]   ;;  %v1880_v14 = vld [vmem:[%s2423_s1 + $0x188] sm:$0xff]   ;;  %v1882_v15 = vld [vmem:[%s2423_s1 + $0x1c0] sm:$0xff]  }
  0x16   :  { %1674 = vmatprep.subr.bf16.mxu1 %v1841_v21  ;;  %v327_v55 = vcombine.high %v323_v49, %v323_v49  ;;  %1233 = vmatprep.mubr.bf16.mxu1 %v326_v52  ;;  %v1883_v16 = vld [vmem:[%s2423_s1 + $0x100] sm:$0xff]   ;;  %v1885_v18 = vld [vmem:[%s2423_s1 + $0x278] sm:$0xff]   ;;  %v1892_v28 = vld [vmem:[%s2423_s1 + $0x2b0] sm:$0xff]  }
  0x17   :  { %v1884_v19 = vld [vmem:[%s2423_s1 + $0x180] sm:$0xff]   ;;  %v1886_v20 = vld [vmem:[%s2423_s1 + $0x2f8] sm:$0xff]   ;;  %v1905_v39 = vld [vmem:[%s2423_s1 + $0x250] sm:$0xff]  }
  0x18   :  { %1653 = vmatpush3.bf16.msra.mxu0 %v1842_v22  ;;  %v1887_v21 = vld [vmem:[%s2423_s1 + $0x238] sm:$0xff]   ;;  %v325_v22 = vcombine.high %v309_v17, %v309_v17  ;;  %v1898_v33 = vld [vmem:[%s2423_s1 + $0x2e0] sm:$0xff]   ;;  %v1906_v42 = vld [vmem:[%s2423_s1 + $0x2d0] sm:$0xff]  }
  0x19   :  { %1675 = vmatpush3.bf16.msra.mxu1 %v1843_v23  ;;  %1654 = vmatprep.subr.bf16.mxu0 %v1844_v24  ;;  %v1889_v23 = vld [vmem:[%s2423_s1 + $0x270] sm:$0xff]   ;;  %v1888_v24 = vld [vmem:[%s2423_s1 + $0x2b8] sm:$0xff]   ;;  %v1899_v34 = vld [vmem:[%s2423_s1 + $0x220] sm:$0xff]  }
  0x1a   :  { %1676 = vmatprep.subr.bf16.mxu1 %v1845_v25  ;;  %v1890_v25 = vld [vmem:[%s2423_s1 + $0x2f0] sm:$0xff]   ;;  %v1900_v36 = vld [vmem:[%s2423_s1 + $0x2a0] sm:$0xff]   ;;  %v1902_v37 = vld [vmem:[%s2423_s1 + $0x2d8] sm:$0xff]  }
  0x1b   :  { %v1904_v40 = vld [vmem:[%s2423_s1 + $0x298] sm:$0xff]   ;;  %v1907_v43 = vld [vmem:[%s2423_s1 + $0x210] sm:$0xff]   ;;  %v1909_v44 = vld [vmem:[%s2423_s1 + $0x248] sm:$0xff]  }
  0x1c   :  { %1655 = vmatpush3.bf16.msra.mxu0 %v1846_v26  ;;  %v1891_v26 = vld [vmem:[%s2423_s1 + $0x230] sm:$0xff]  }
  0x1d   :  { %1677 = vmatpush3.bf16.msra.mxu1 %v1847_v27  ;;  %1656 = vmatprep.subr.bf16.mxu0 %v1848_v29  ;;  %v1893_v27 = vld [vmem:[%s2423_s1 + $0x268] sm:$0xff]   ;;  %v1908_v46 = vld [vmem:[%s2423_s1 + $0x290] sm:$0xff]  }
  0x1e   :  { %1678 = vmatprep.subr.bf16.mxu1 %v1849_v30  ;;  %v1894_v29 = vld [vmem:[%s2423_s1 + $0x2e8] sm:$0xff]  }
  0x1f   :  { %v1895_v30 = vld [vmem:[%s2423_s1 + $0x228] sm:$0xff]  }
  0x20   :  { %1657 = vmatpush3.bf16.msra.mxu0 %v1850_v31  ;;  %v1897_v31 = vld [vmem:[%s2423_s1 + $0x260] sm:$0xff]  }
  0x21   :  { %1679 = vmatpush3.bf16.msra.mxu1 %v1851_v32  ;;  %1686 = vmatprep.subr.bf16.mxu0 %v1853_v35  ;;  %v1896_v32 = vld [vmem:[%s2423_s1 + $0x2a8] sm:$0xff]   ;;  %v1901_v35 = vld [vmem:[%s2423_s1 + $0x258] sm:$0xff]  }
  0x22   :  { %1708 = vmatprep.subr.bf16.mxu1 %v1854_v38  ;;  %v1903_v38 = vld [vmem:[%s2423_s1 + $0x218] sm:$0xff]  }
  0x23   :  { %1194 = vmatmul.mubr.bf16.vlgmr.msra.gmra.mxu0 %v302_v45  ;;  %v20_v45 = vld [vmem:[%s2422_s0 + $0x8] sm:$0xff] }
  0x24   :  { %1687 = vmatpush3.bf16.msra.mxu0 %v1855_v48  ;;  %1234 = vmatmul.mubr.bf16.vlgmr.msra.gmra.mxu1 %v324_v50  ;;  %v335_v47 = vrot.slane %v20_v45, %v2104_v41  ;;  %v328_v48 = vcombine.high %v20_v45, %v20_v45  ;;  %v1911_v50 = vld [vmem:[%s2423_s1 + $0x208] sm:$0xff]  }
  0x25   :  { %1688 = vmatprep.subr.bf16.mxu0 %v1857_v51  ;;  %1709 = vmatpush3.bf16.msra.mxu1 %v1856_v53  ;;  %v1913_v53 = vld [vmem:[%s2423_s1 + $0x240] sm:$0xff]  }
  0x26   :  { %1273 = vmatprep.mubr.bf16.mxu0 %v323_v49  ;;  %1710 = vmatprep.subr.bf16.mxu1 %v1858_v54  ;;  %v1910_v49 = vld [vmem:[%s2423_s1 + $0x2c8] sm:$0xff]   ;;  %v343_v51 = vcombine.high %v335_v47, %v335_v47  ;;  %v2293_v52 = vrot.slane %v328_v48, %v2104_v41 }
  0x27   :  { %1313 = vmatprep.mubr.bf16.mxu1 %v327_v55  ;;  %v1912_v54 = vld [vmem:[%s2423_s1 + $0x288] sm:$0xff]  }
  0x28   :  { %1689 = vmatpush3.bf16.msra.mxu0 %v1859_v56  ;;  %v365_v55 = vrot.slane %v343_v51, %v2104_v41  ;;  %v344_v56 = vcombine.high %v2293_v52, %v2293_v52 }
  0x29   :  { %1690 = vmatprep.subr.bf16.mxu0 %v1861_v57  ;;  %1711 = vmatpush3.bf16.msra.mxu1 %v1860_v58  ;;  %v1914_v57 = vld [vmem:[%s2423_s1 + $0x2c0] sm:$0xff]  }
  0x2a   :  { %1712 = vmatprep.subr.bf16.mxu1 %v1862_v59  ;;  %v1915_v58 = vld [vmem:[%s2423_s1 + $0x200] sm:$0xff]   ;;  %v375_v59 = vcombine.high %v365_v55, %v365_v55 }
  0x2c   :  { %1691 = vmatpush3.bf16.msra.mxu0 %v1863_v60  ;;  %v351_v60 = vrot.slane %v335_v47, %v2104_v41 }
  0x2d   :  { %1692 = vmatprep.subr.bf16.mxu0 %v1865_v61  ;;  %1713 = vmatpush3.bf16.msra.mxu1 %v1864_v62  ;;  %v1917_v61 = vld [vmem:[%s2423_s1 + $0x378] sm:$0xff]   ;;  %v1916_v62 = vld [vmem:[%s2423_s1 + $0x280] sm:$0xff]  }
  0x2e   :  { %1714 = vmatprep.subr.bf16.mxu1 %v1866_v63  ;;  %v372_v63 = vrot.slane %v344_v56, %v2104_v41 }
  0x30   :  { %1693 = vmatpush3.bf16.msra.mxu0 %v1867_v0  ;;  %v1918_v0 = vld [vmem:[%s2423_s1 + $0x3f8] sm:$0xff]  }
  0x31   :  { %1694 = vmatprep.subr.bf16.mxu0 %v1869_v1  ;;  %1715 = vmatpush3.bf16.msra.mxu1 %v1868_v2  ;;  %v1919_v1 = vld [vmem:[%s2423_s1 + $0x338] sm:$0xff]   ;;  %v373_v2 = vcombine.high %v351_v60, %v351_v60 }
  0x32   :  { %1716 = vmatprep.subr.bf16.mxu1 %v1870_v3  ;;  %v1921_v3 = vld [vmem:[%s2423_s1 + $0x370] sm:$0xff]  }
  0x34   :  { %1695 = vmatpush3.bf16.msra.mxu0 %v1871_v4  ;;  %v1920_v4 = vld [vmem:[%s2423_s1 + $0x3b8] sm:$0xff]  }
  0x35   :  { %1696 = vmatprep.subr.bf16.mxu0 %v1873_v5  ;;  %1717 = vmatpush3.bf16.msra.mxu1 %v1872_v6  ;;  %v376_v5 = vcombine.high %v372_v63, %v372_v63  ;;  %v1922_v6 = vld [vmem:[%s2423_s1 + $0x3f0] sm:$0xff]  }
  0x36   :  { %1718 = vmatprep.subr.bf16.mxu1 %v1874_v7  ;;  %v1923_v7 = vld [vmem:[%s2423_s1 + $0x330] sm:$0xff]  }
  0x38   :  { %1697 = vmatpush3.bf16.msra.mxu0 %v1875_v8  ;;  %v1925_v8 = vld [vmem:[%s2423_s1 + $0x368] sm:$0xff]  }
  0x39   :  { %1698 = vmatprep.subr.bf16.mxu0 %v1877_v9  ;;  %1719 = vmatpush3.bf16.msra.mxu1 %v1876_v10  ;;  %v1924_v9 = vld [vmem:[%s2423_s1 + $0x3b0] sm:$0xff]   ;;  %v1926_v10 = vld [vmem:[%s2423_s1 + $0x3e8] sm:$0xff]  }
  0x3a   :  { %1720 = vmatprep.subr.bf16.mxu1 %v1878_v11  ;;  %v1927_v11 = vld [vmem:[%s2423_s1 + $0x328] sm:$0xff]  }
  0x3c   :  { %1699 = vmatpush3.bf16.msra.mxu0 %v1879_v12  ;;  %v1929_v12 = vld [vmem:[%s2423_s1 + $0x360] sm:$0xff]  }
  0x3d   :  { %1700 = vmatprep.subr.bf16.mxu0 %v1881_v13  ;;  %1721 = vmatpush3.bf16.msra.mxu1 %v1880_v14  ;;  %v1928_v13 = vld [vmem:[%s2423_s1 + $0x3a8] sm:$0xff]   ;;  %v1930_v14 = vld [vmem:[%s2423_s1 + $0x3e0] sm:$0xff]  }
  0x3e   :  { %1722 = vmatprep.subr.bf16.mxu1 %v1882_v15  ;;  %v1931_v15 = vld [vmem:[%s2423_s1 + $0x320] sm:$0xff]  }
  0x40   :  { %1701 = vmatpush3.bf16.msra.mxu0 %v1883_v16  ;;  %v1933_v16 = vld [vmem:[%s2423_s1 + $0x358] sm:$0xff]  }
  0x41   :  { %1730 = vmatprep.subr.bf16.mxu0 %v1885_v18  ;;  %1723 = vmatpush3.bf16.msra.mxu1 %v1884_v19  ;;  %v1934_v18 = vld [vmem:[%s2423_s1 + $0x3d8] sm:$0xff]  }
  0x42   :  { %1752 = vmatprep.subr.bf16.mxu1 %v1886_v20  ;;  %v1935_v19 = vld [vmem:[%s2423_s1 + $0x318] sm:$0xff]   ;;  %v1937_v20 = vld [vmem:[%s2423_s1 + $0x350] sm:$0xff]  }
  0x43   :  { %1274 = vmatmul.mubr.bf16.vlgmr.msra.gmra.mxu0 %v309_v17  ;;  %v1932_v17 = vld [vmem:[%s2423_s1 + $0x3a0] sm:$0xff]  }
  0x44   :  { %1731 = vmatpush3.bf16.msra.mxu0 %v1887_v21  ;;  %1314 = vmatmul.mubr.bf16.vlgmr.msra.gmra.mxu1 %v325_v22  ;;  %v1936_v21 = vld [vmem:[%s2423_s1 + $0x398] sm:$0xff]   ;;  %v1938_v22 = vld [vmem:[%s2423_s1 + $0x3d0] sm:$0xff]  }
  0x45   :  { %1732 = vmatprep.subr.bf16.mxu0 %v1889_v23  ;;  %1753 = vmatpush3.bf16.msra.mxu1 %v1888_v24  ;;  %v1939_v23 = vld [vmem:[%s2423_s1 + $0x310] sm:$0xff]   ;;  %v1941_v24 = vld [vmem:[%s2423_s1 + $0x348] sm:$0xff]  }
  0x46   :  { %1754 = vmatprep.subr.bf16.mxu1 %v1890_v25  ;;  %1353 = vmatprep.mubr.bf16.mxu0 %v365_v55 }
  0x47   :  { %1393 = vmatprep.mubr.bf16.mxu1 %v375_v59 }
  0x48   :  { %1733 = vmatpush3.bf16.msra.mxu0 %v1891_v26 }
  0x49   :  { %1734 = vmatprep.subr.bf16.mxu0 %v1893_v27  ;;  %1755 = vmatpush3.bf16.msra.mxu1 %v1892_v28 }
  0x4a   :  { %1756 = vmatprep.subr.bf16.mxu1 %v1894_v29 }
  0x4c   :  { %1735 = vmatpush3.bf16.msra.mxu0 %v1895_v30 }
  0x4d   :  { %1736 = vmatprep.subr.bf16.mxu0 %v1897_v31  ;;  %1757 = vmatpush3.bf16.msra.mxu1 %v1896_v32 }
  0x4e   :  { %1758 = vmatprep.subr.bf16.mxu1 %v1898_v33 }
  0x50   :  { %1737 = vmatpush3.bf16.msra.mxu0 %v1899_v34 }
  0x51   :  { %1738 = vmatprep.subr.bf16.mxu0 %v1901_v35  ;;  %1759 = vmatpush3.bf16.msra.mxu1 %v1900_v36 }
  0x52   :  { %1760 = vmatprep.subr.bf16.mxu1 %v1902_v37 }
  0x54   :  { %1739 = vmatpush3.bf16.msra.mxu0 %v1903_v38 }
  0x55   :  { %1740 = vmatprep.subr.bf16.mxu0 %v1905_v39  ;;  %1761 = vmatpush3.bf16.msra.mxu1 %v1904_v40 }
  0x56   :  { %1762 = vmatprep.subr.bf16.mxu1 %v1906_v42 }
  0x58   :  { %1741 = vmatpush3.bf16.msra.mxu0 %v1907_v43 }
  0x59   :  { %1742 = vmatprep.subr.bf16.mxu0 %v1909_v44  ;;  %1763 = vmatpush3.bf16.msra.mxu1 %v1908_v46 }
  0x5a   :  { %1764 = vmatprep.subr.bf16.mxu1 %v1910_v49 }
  0x5c   :  { %1743 = vmatpush3.bf16.msra.mxu0 %v1911_v50 }
  0x5d   :  { %1744 = vmatprep.subr.bf16.mxu0 %v1913_v53  ;;  %1765 = vmatpush3.bf16.msra.mxu1 %v1912_v54 }
  0x5e   :  { %1766 = vmatprep.subr.bf16.mxu1 %v1914_v57 }
  0x60   :  { %1745 = vmatpush3.bf16.msra.mxu0 %v1915_v58 }
  0x61   :  { %1774 = vmatprep.subr.bf16.mxu0 %v1917_v61  ;;  %1767 = vmatpush3.bf16.msra.mxu1 %v1916_v62 }
  0x62   :  { %1796 = vmatprep.subr.bf16.mxu1 %v1918_v0 }
  0x63   :  { %1354 = vmatmul.mubr.bf16.vlgmr.msra.gmra.mxu0 %v351_v60 }
  0x64   :  { %1775 = vmatpush3.bf16.msra.mxu0 %v1919_v1  ;;  %1433 = vmatprep.mubr.bf16.mxu0 %v372_v63 }
  0x65   :  { %1394 = vmatmul.mubr.bf16.vlgmr.msra.gmra.mxu1 %v373_v2  ;;  %1776 = vmatprep.subr.bf16.mxu0 %v1921_v3 }
  0x66   :  { %1797 = vmatpush3.bf16.msra.mxu1 %v1920_v4  ;;  %1473 = vmatprep.mubr.bf16.mxu1 %v376_v5 }
  0x67   :  { %1798 = vmatprep.subr.bf16.mxu1 %v1922_v6 }
  0x68   :  { %1777 = vmatpush3.bf16.msra.mxu0 %v1923_v7 }
  0x69   :  { %1778 = vmatprep.subr.bf16.mxu0 %v1925_v8 }
  0x6a   :  { %1799 = vmatpush3.bf16.msra.mxu1 %v1924_v9 }
  0x6b   :  { %1800 = vmatprep.subr.bf16.mxu1 %v1926_v10 }
  0x6c   :  { %1779 = vmatpush3.bf16.msra.mxu0 %v1927_v11 }
  0x6d   :  { %1780 = vmatprep.subr.bf16.mxu0 %v1929_v12 }
  0x6e   :  { %1801 = vmatpush3.bf16.msra.mxu1 %v1928_v13 }
  0x6f   :  { %1802 = vmatprep.subr.bf16.mxu1 %v1930_v14 }
  0x70   :  { %1781 = vmatpush3.bf16.msra.mxu0 %v1931_v15 }
  0x71   :  { %1782 = vmatprep.subr.bf16.mxu0 %v1933_v16 }
  0x72   :  { %1803 = vmatpush3.bf16.msra.mxu1 %v1932_v17 }
  0x73   :  { %1804 = vmatprep.subr.bf16.mxu1 %v1934_v18 }
  0x74   :  { %1783 = vmatpush3.bf16.msra.mxu0 %v1935_v19 }
  0x75   :  { %1784 = vmatprep.subr.bf16.mxu0 %v1937_v20 }
  0x76   :  { %9 = vsyncpa [#allocation3], 0  ;;  %1805 = vmatpush3.bf16.msra.mxu1 %v1936_v21  ;;  %v1940_v25 = vld [vmem:[%s2423_s1 + $0x390] sm:$0xff]   ;;  %v1942_v26 = vld [vmem:[%s2423_s1 + $0x3c8] sm:$0xff]   ;;  %v358_v32 = vrot.slane %v2293_v52, %v2104_v41  ;;  %s1973_s15 = smov [#allocation2]  }
  0x77   :  { %1806 = vmatprep.subr.bf16.mxu1 %v1938_v22  ;;  %v1943_v27 = vld [vmem:[%s2423_s1 + $0x308] sm:$0xff]   ;;  %v1945_v28 = vld [vmem:[%s2423_s1 + $0x340] sm:$0xff]   ;;  %s1504_s16 = sshll.u32 %s1973_s15, 4  ;;  %s1505_s16 = int_to_ptr.vmem [resolvable:$true] %s1504_s16 }
  0x78   :  { %1785 = vmatpush3.bf16.msra.mxu0 %v1939_v23  ;;  %v1944_v29 = vld [vmem:[%s2423_s1 + $0x388] sm:$0xff]   ;;  %v1946_v30 = vld [vmem:[%s2423_s1 + $0x3c0] sm:$0xff]   ;;  %v374_v34 = vcombine.high %v358_v32, %v358_v32  ;;  %s1950_s17 = scalar_lea.vmem %s1505_s16, 32  ;;  %p1955_p1 = scmp.lt.s32.totalorder %s1505_s16, %s1505_s16 }
  0x79   :  { %1786 = vmatprep.subr.bf16.mxu0 %v1941_v24  ;;  %v1947_v31 = vld [vmem:[%s2423_s1 + $0x300] sm:$0xff]   ;;  %p1951_p0 = scmp.ne.s32.totalorder %s1505_s16, %s1950_s17  ;;  %p1956_p2 = scmp.lt.s32.totalorder %s1950_s17, %s1950_s17 }
  0x7a   :  { %1807 = vmatpush3.bf16.msra.mxu1 %v1940_v25  ;;  %v1948_v33 = vld [vmem:[%s2423_s1 + $0x380] sm:$0xff]  }
  0x7b   :  { %1808 = vmatprep.subr.bf16.mxu1 %v1942_v26  ;;  %v1640_v16 = vld [vmem:[%s2424_s2] ss:$0 sm:$0xff]  ;;  %p1957_p3 = por %p1956_p2, %p1955_p1 }
  0x7c   :  { %1787 = vmatpush3.bf16.msra.mxu0 %v1943_v27  ;;  %v1641_v19 = vld [vmem:[%s2425_s3] ss:$0 sm:$0xff] }
  0x7d   :  { %1788 = vmatprep.subr.bf16.mxu0 %v1945_v28  ;;  %p1958_p4 = pnand %p1957_p3, %p1951_p0 }
  0x7e   :  { %1809 = vmatpush3.bf16.msra.mxu1 %v1944_v29 }
  0x7f   :  { %1810 = vmatprep.subr.bf16.mxu1 %v1946_v30 }
  0x80   :  { %1789 = vmatpush3.bf16.msra.mxu0 %v1947_v31 }
  0x82   :  { %1811 = vmatpush3.bf16.msra.mxu1 %v1948_v33 }
  0x83   :  { %1434 = vmatmul.mubr.bf16.vlgmr.msra.gmra.mxu0 %v358_v32 }
  0x85   :  { %1474 = vmatmul.mubr.bf16.vlgmr.msra.gmra.mxu1 %v374_v34 }
  0xe3   :  { %v1658_v35 = vpop.f32.mrf.mxu0 }
  0xe4   :  { %v1680_v36 = vpop.f32.mrf.mxu1 }
  0xe5   :  { %v1659_v37 = vpop.f32.mrf.mxu0 }
  0xe6   :  { %v1660_v38 = vadd.f32 %v1659_v37, %v1658_v35  ;;  %v1681_v39 = vpop.f32.mrf.mxu1 }
  0xe7   :  { %v1661_v40 = vpop.f32.mrf.mxu0  ;;  %v1682_v42 = vadd.f32 %v1681_v39, %v1680_v36 }
  0xe8   :  { %v1683_v43 = vpop.f32.mrf.mxu1 }
  0xe9   :  { %v1662_v41 = vpop.f32.mrf.mxu0  ;;  %v1236_v44 = vadd.f32 %v1682_v42, %v1660_v38 }
  0xea   :  { %v1684_v45 = vpop.f32.mrf.mxu1 }
 0x103   :  { %v1702_v46 = vpop.f32.mrf.mxu0 }
 0x104   :  { %v1724_v47 = vpop.f32.mrf.mxu1 }
 0x105   :  { %v1703_v48 = vpop.f32.mrf.mxu0 }
 0x106   :  { %v1725_v49 = vpop.f32.mrf.mxu1  ;;  %v1704_v62 = vadd.f32 %v1703_v48, %v1702_v46 }
 0x107   :  { %v1705_v50 = vpop.f32.mrf.mxu0  ;;  %v1726_v0 = vadd.f32 %v1725_v49, %v1724_v47 }
 0x108   :  { %v1727_v51 = vpop.f32.mrf.mxu1  ;;  %v1276_v63 = vadd.f32 %v1704_v62, %v1236_v44 }
 0x109   :  { %v1706_v52 = vpop.f32.mrf.mxu0 }
 0x10a   :  { %v1728_v53 = vpop.f32.mrf.mxu1  ;;  %v1316_v2 = vadd.f32 %v1726_v0, %v1276_v63 }
 0x123   :  { %v1746_v54 = vpop.f32.mrf.mxu0 }
 0x125   :  { %v1768_v55 = vpop.f32.mrf.mxu1  ;;  %v1747_v56 = vpop.f32.mrf.mxu0 }
 0x126   :  { %v1748_v1 = vadd.f32 %v1747_v56, %v1746_v54 }
 0x127   :  { %v1769_v57 = vpop.f32.mrf.mxu1  ;;  %v1749_v58 = vpop.f32.mrf.mxu0 }
 0x128   :  { %v1356_v3 = vadd.f32 %v1748_v1, %v1316_v2  ;;  %v1770_v4 = vadd.f32 %v1769_v57, %v1768_v55 }
 0x129   :  { %v1771_v59 = vpop.f32.mrf.mxu1  ;;  %v1750_v60 = vpop.f32.mrf.mxu0 }
 0x12a   :  { %v1396_v8 = vadd.f32 %v1770_v4, %v1356_v3 }
 0x12b   :  { %v1772_v61 = vpop.f32.mrf.mxu1 }
 0x143   :  { %v1790_v5 = vpop.f32.mrf.mxu0 }
 0x145   :  { %v1812_v6 = vpop.f32.mrf.mxu1  ;;  %v1791_v7 = vpop.f32.mrf.mxu0 }
 0x146   :  { %v1792_v9 = vadd.f32 %v1791_v7, %v1790_v5 }
 0x147   :  { %v1813_v10 = vpop.f32.mrf.mxu1  ;;  %v1793_v11 = vpop.f32.mrf.mxu0 }
 0x148   :  { %v1436_v12 = vadd.f32 %v1792_v9, %v1396_v8  ;;  %v1814_v13 = vadd.f32 %v1813_v10, %v1812_v6 }
 0x149   :  { %v1815_v14 = vpop.f32.mrf.mxu1  ;;  %v1794_v15 = vpop.f32.mrf.mxu0 }
 0x14a   :  { %v1476_v17 = vadd.f32 %v1814_v13, %v1436_v12 }
 0x14b   :  { %v1816_v18 = vpop.f32.mrf.mxu1 }
 0x14c   :  { %v1488_v20 = vmul.f32 %v1640_v16, %v1476_v17 }
 0x14e   :  { %v1496_v21 = vadd.f32 %v1641_v19, %v1488_v20 }
 0x150   :  { %1497 = vst [vmem:[#allocation2] sm:$0x3] %v1496_v21 }
 0x151   :  { %1961 = shalt.err (!%p1958_p4)
}
 0x152   :  { %1507 = dma.vmem_to_hbm [thread:$0]  %s1505_s16, 32, %s2426_s4, [#allocation3]  }
 0x153   :  { %1970 = dma.done.wait [#allocation3], 32  }
 0x154   :  { %1971 = vsyncadd [#allocation3], 4294967264 }
 0x155   :  { %1511 = vsyncpa [#allocation3], 1 }

// kernel: vgg3_forward.8
= control target key start
LH: loop header
LB: loop body
LE: loop exit
PB: predicated region body
PF: predicated region fallthrough
CT: control target
= control target key end

     0   :  { %8 = vsyncpa [#allocation3], 0  ;;  %s4711_s0 = inlined_call_operand.vmem [shape: f32[2,272,64], index: 0, kind: input, shape index: {}]   ;;  %s4712_s1 = inlined_call_operand.hbm [shape: bf16[9,64,64], index: 1, kind: input, shape index: {}]   ;;  %s4713_s2 = inlined_call_operand.hbm [shape: f32[1,64], index: 2, kind: input, shape index: {}]   ;;  %s4714_s3 = inlined_call_operand.vmem [shape: f32[2,224,64], index: 3, kind: output, shape index: {}]  }
   0x1   :  { %9 = vsyncpa [#allocation5], 0  ;;  %s3725_s12 = smov 0  }
   0x2 LB: > { %s3731_s13 = sadd.s32 4294967295, %s3699_s12   ;;  %p2896_p0 = scmp.ge.s32.totalorder %s3699_s12, 1  ;;  %s3699_s12 = sphi %s3725_s12, %s15_s12  }
   0x3   : > { %p114_p1 = scmp.lt.s32.totalorder %s3699_s12, 3  ;;  %s3701_s14 = smov [#allocation2]  }
   0x4   : > { %s126_s15 = sshll.u32 %s3701_s14, 4  ;;  %p3581_p3 = scmp.eq.s32.totalorder %s3731_s13, 0  ;;  %s127_s15 = int_to_ptr.vmem [resolvable:$true] %s126_s15 }
   0x5   : > { %p3735_p2 = pnand %p2896_p0, %p114_p1  ;;  %s3702_s17 = smov [#allocation4]  }
   0x6   : > { %s140_s18 = sshll.u32 %s3702_s17, 4  ;;  %s3644_s20 = scalar_lea.vmem %s127_s15, 4608  ;;  %s141_s18 = int_to_ptr.vmem [resolvable:$true] %s140_s18 }
   0x7   : > { %p3574_p4 = pneg %p3735_p2  ;;  %p3645_p7 = scmp.ne.s32.totalorder %s127_s15, %s3644_s20 }
   0x8   : > { %p3652_p10 = scmp.lt.s32.totalorder %s127_s15, %s127_s15  ;;  %p3653_p11 = scmp.lt.s32.totalorder %s3644_s20, %s3644_s20 }
   0x9   : > { %p3744_p5 = pnand %p3581_p3, %p3574_p4 }
   0xa   : > { %p3654_p12 = por %p3653_p11, %p3652_p10 }
   0xb   : > { %p3635_p6 = pneg %p3744_p5 }
   0xd   : > { %p3647_p8 = pnand %p3645_p7, %p3635_p6 }
   0xf   : > { %p3648_p9 = pneg %p3647_p8 }
  0x11   : > { %p3655_p13 = pnand %p3654_p12, %p3648_p9 }
  0x13   : > { %3658 = shalt.err (!%p3655_p13)
}
  0x14   : > { %s3703_s21 = smov 64   ;;  %s3704_s22 = smov 4  }
  0x15   : > { %3577 = dma.hbm_to_vmem [thread:$0]  (!%p3744_p5), %s4712_s1, 4608, %s127_s15, [#allocation3], %s3703_s21, %s3703_s21, %s3704_s22  }
  0x16   : > { %s3670_s25 = scalar_lea.vmem %s141_s18, 16  ;;  %s3677_s26 = scalar_lea.vmem %s141_s18, 32 }
  0x17   : > { %p3671_p0 = scmp.ne.s32.totalorder %s141_s18, %s3670_s25  ;;  %p3678_p7 = scmp.lt.s32.totalorder %s141_s18, %s141_s18 }
  0x18   : > { %p3679_p8 = scmp.lt.s32.totalorder %s3677_s26, %s3670_s25 }
  0x19   : > { %p3673_p1 = pnand %p3671_p0, %p3635_p6 }
  0x1a   : > { %p3680_p9 = por %p3679_p8, %p3678_p7 }
  0x1b   : > { %p3674_p4 = pneg %p3673_p1 }
  0x1d   : > { %p3681_p10 = pnand %p3680_p9, %p3674_p4 }
  0x1f   : > { %3684 = shalt.err (!%p3681_p10)
}
  0x20   : > { %3580 = dma.hbm_to_vmem [thread:$0]  (!%p3744_p5), %s4713_s2, 16, %s141_s18, [#allocation5]  }
  0x21   : > { %161 = sbr.rel (%p3735_p2) target bundleno = 510 (0x1fe), region = 32 }
  0x26   : > { %3690 = dma.done.wait (%p3581_p3), [#allocation3], 4608  }
  0x27   : > { %3692 = vsyncadd (%p3581_p3), [#allocation3], 4294962688 }
  0x28   : > { %3694 = dma.done.wait (%p3581_p3), [#allocation5], 16  }
  0x29   : > { %3696 = vsyncadd (%p3581_p3), [#allocation5], 4294967280  ;;  %p189_p6 = scmp.lt.s32.totalorder %s3731_s13, 1  ;;  %v3597_v0 = vld [vmem:[#allocation2 + $0x38] sm:$0xff]   ;;  %v3598_v1 = vld [vmem:[#allocation2 + $0x30] sm:$0xff]   ;;  %vm325_vm0 = vcmask 523264  }
  0x2a   : > { %3232 = vmatprep.subr.bf16.mxu0 %v3597_v0  ;;  %3556 = vmatprep.subr.bf16.mxu1 %v3597_v0  ;;  %v3599_v2 = vld [vmem:[#allocation2 + $0x28] sm:$0xff]   ;;  %v3600_v9 = vld [vmem:[#allocation2 + $0x20] sm:$0xff]   ;;  %v3601_v14 = vld [vmem:[#allocation2 + $0x58] sm:$0xff]  }
  0x2b   : > { %s4786_s13 = smov (!%p189_p6, %s3731_s13), 1  ;;  %3233 = vmatpush3.bf16.msra.mxu0 %v3597_v0  ;;  %3560 = vmatpush3.bf16.msra.mxu1 %v3597_v0  ;;  %v3602_v15 = vld [vmem:[#allocation2 + $0x18] sm:$0xff]   ;;  %v3603_v24 = vld [vmem:[#allocation2 + $0x50] sm:$0xff]   ;;  %v3606_v34 = vld [vmem:[#allocation2 + $0x48] sm:$0xff]  }
  0x2c   : > { %s3564_s29 = smul.u32 272, %s4786_s13  ;;  %3234 = vmatprep.subr.bf16.mxu0 %v3598_v1  ;;  %3557 = vmatprep.subr.bf16.mxu1 %v3598_v1  ;;  %v3604_v27 = vld [vmem:[#allocation2 + $0x10] sm:$0xff]   ;;  %v3605_v35 = vld [vmem:[#allocation2 + $0x8] sm:$0xff]   ;;  %v3607_v41 = vld [vmem:[#allocation2] sm:$0xff]  }
  0x2d   : > { %v3608_v42 = vld [vmem:[#allocation2 + $0x40] sm:$0xff]   ;;  %v3609_v50 = vld [vmem:[#allocation2 + $0x78] sm:$0xff]   ;;  %s3565_s6 = smul.u32 224, %s4786_s13 }
  0x2e   : > { %s3784_s5 = scalar_lea.vmem %s4711_s0, %s3564_s29  ;;  %v3610_v51 = vld [vmem:[#allocation2 + $0x98] sm:$0xff]  }
  0x2f   : > { %v250_v3 = vld [vmem:[%s3784_s5 + $0x1] sm:$0xff]  ;;  %v251_v4 = vld [vmem:[%s3784_s5 + $0x9] sm:$0xff]  ;;  %3235 = vmatpush3.bf16.msra.mxu0 %v3598_v1  ;;  %3561 = vmatpush3.bf16.msra.mxu1 %v3598_v1  ;;  %v252_v10 = vld [vmem:[%s3784_s5 + $0x11] sm:$0xff]  ;;  %s4551_s9 = scalar_lea.vmem %s4714_s3, %s3565_s6 }
  0x30   : > { %v266_v5 = vld [vmem:[%s3784_s5 + $0x81] sm:$0xff]  ;;  %v278_v6 = vpack.c.bf16 %v251_v4, %v250_v3  ;;  %v267_v7 = vld [vmem:[%s3784_s5 + $0x89] sm:$0xff]  ;;  %3236 = vmatprep.subr.bf16.mxu0 %v3599_v2  ;;  %3558 = vmatprep.subr.bf16.mxu1 %v3599_v2  ;;  %v253_v11 = vld [vmem:[%s3784_s5 + $0x19] sm:$0xff] }
  0x31   : > { %v3790_v8 = vpack.c.bf16 %v267_v7, %v266_v5  ;;  %v268_v12 = vld [vmem:[%s3784_s5 + $0x91] sm:$0xff]  ;;  %v269_v13 = vld [vmem:[%s3784_s5 + $0x99] sm:$0xff]  ;;  %v254_v16 = vld [vmem:[%s3784_s5 + $0x21] sm:$0xff]  ;;  %v3803_v20 = vpack.c.bf16 %v253_v11, %v252_v10 }
  0x32   : > { %3240 = vmatprep.mubr.msk.bf16.mxu0 %vm325_vm0, %v278_v6  ;;  %v255_v17 = vld [vmem:[%s3784_s5 + $0x29] sm:$0xff]  ;;  %v270_v18 = vld [vmem:[%s3784_s5 + $0xa1] sm:$0xff]  ;;  %v3805_v21 = vpack.c.bf16 %v269_v13, %v268_v12  ;;  %v256_v25 = vld [vmem:[%s3784_s5 + $0x31] sm:$0xff] }
  0x33   : > { %3256 = vmatprep.mubr.msk.bf16.mxu1 %vm325_vm0, %v3790_v8  ;;  %3237 = vmatpush3.bf16.msra.mxu0 %v3599_v2  ;;  %v271_v19 = vld [vmem:[%s3784_s5 + $0xa9] sm:$0xff]  ;;  %v3807_v22 = vpack.c.bf16 %v255_v17, %v254_v16  ;;  %v257_v26 = vld [vmem:[%s3784_s5 + $0x39] sm:$0xff]  ;;  %v272_v28 = vld [vmem:[%s3784_s5 + $0xb1] sm:$0xff] }
  0x34   : > { %3562 = vmatpush3.bf16.msra.mxu1 %v3599_v2  ;;  %3238 = vmatprep.subr.bf16.mxu0 %v3600_v9  ;;  %v3809_v23 = vpack.c.bf16 %v271_v19, %v270_v18  ;;  %v273_v29 = vld [vmem:[%s3784_s5 + $0xb9] sm:$0xff]  ;;  %v258_v30 = vld [vmem:[%s3784_s5 + $0x41] sm:$0xff]  ;;  %v259_v31 = vld [vmem:[%s3784_s5 + $0x49] sm:$0xff]  ;;  %v3827_v36 = vpack.c.bf16 %v257_v26, %v256_v25 }
  0x35   : > { %3559 = vmatprep.subr.bf16.mxu1 %v3600_v9  ;;  %v274_v32 = vld [vmem:[%s3784_s5 + $0xc1] sm:$0xff]  ;;  %v275_v33 = vld [vmem:[%s3784_s5 + $0xc9] sm:$0xff]  ;;  %v3829_v37 = vpack.c.bf16 %v273_v29, %v272_v28  ;;  %v3831_v38 = vpack.c.bf16 %v259_v31, %v258_v30  ;;  %v260_v40 = vld [vmem:[%s3784_s5 + $0x51] sm:$0xff] }
  0x36   : > { %v3833_v39 = vpack.c.bf16 %v275_v33, %v274_v32  ;;  %v261_v43 = vld [vmem:[%s3784_s5 + $0x59] sm:$0xff]  ;;  %v276_v44 = vld [vmem:[%s3784_s5 + $0xd1] sm:$0xff]  ;;  %v262_v46 = vld [vmem:[%s3784_s5 + $0x61] sm:$0xff] }
  0x37   : > { %3239 = vmatpush3.bf16.msra.mxu0 %v3600_v9  ;;  %v277_v45 = vld [vmem:[%s3784_s5 + $0xd9] sm:$0xff]  ;;  %v263_v47 = vld [vmem:[%s3784_s5 + $0x69] sm:$0xff]  ;;  %v3851_v52 = vpack.c.bf16 %v261_v43, %v260_v40  ;;  %v264_v56 = vld [vmem:[%s3784_s5 + $0x71] sm:$0xff] }
  0x38   : > { %3563 = vmatpush3.bf16.msra.mxu1 %v3600_v9  ;;  %3304 = vmatprep.subr.bf16.mxu0 %v3601_v14  ;;  %v200_v48 = vld [vmem:[%s3784_s5] sm:$0xff]  ;;  %v201_v49 = vld [vmem:[%s3784_s5 + $0x8] sm:$0xff]  ;;  %v3853_v53 = vpack.c.bf16 %v277_v45, %v276_v44  ;;  %v3855_v54 = vpack.c.bf16 %v263_v47, %v262_v46  ;;  %v202_v58 = vld [vmem:[%s3784_s5 + $0x10] sm:$0xff] }
  0x39   : > { %3268 = vmatprep.subr.bf16.mxu1 %v3602_v15  ;;  %v228_v55 = vpack.c.bf16 %v201_v49, %v200_v48  ;;  %v265_v57 = vld [vmem:[%s3784_s5 + $0x79] sm:$0xff]  ;;  %v205_v61 = vld [vmem:[%s3784_s5 + $0x28] sm:$0xff]  ;;  %v3611_v4 = vld [vmem:[#allocation2 + $0x70] sm:$0xff]  }
  0x3a   : > { %3241 = vmatmul.mubr.msk.bf16.vlgmr.msra.gmra.mxu0 %vm325_vm0, %v3803_v20  ;;  %v203_v59 = vld [vmem:[%s3784_s5 + $0x18] sm:$0xff]  ;;  %v204_v60 = vld [vmem:[%s3784_s5 + $0x20] sm:$0xff]  ;;  %v725_v63 = vld [vmem:[%s3784_s5 + $0xa] sm:$0xff]  ;;  %v3872_v0 = vpack.c.bf16 %v265_v57, %v264_v56 }
  0x3b   : > { %3257 = vmatmul.mubr.msk.bf16.vlgmr.msra.gmra.mxu1 %vm325_vm0, %v3805_v21  ;;  %3305 = vmatpush3.bf16.msra.mxu0 %v3601_v14  ;;  %v724_v62 = vld [vmem:[%s3784_s5 + $0x2] sm:$0xff]  ;;  %v3874_v1 = vpack.c.bf16 %v203_v59, %v202_v58  ;;  %v3876_v2 = vpack.c.bf16 %v205_v61, %v204_v60  ;;  %v206_v5 = vld [vmem:[%s3784_s5 + $0x30] sm:$0xff]  ;;  %v207_v6 = vld [vmem:[%s3784_s5 + $0x38] sm:$0xff] }
  0x3c   : > { %3244 = vmatprep.mubr.msk.bf16.mxu0 %vm325_vm0, %v3807_v22  ;;  %3260 = vmatprep.mubr.msk.bf16.mxu1 %vm325_vm0, %v3809_v23  ;;  %v752_v3 = vpack.c.bf16 %v725_v63, %v724_v62  ;;  %v726_v7 = vld [vmem:[%s3784_s5 + $0x12] sm:$0xff]  ;;  %v727_v9 = vld [vmem:[%s3784_s5 + $0x1a] sm:$0xff]  ;;  %v209_v11 = vld [vmem:[%s3784_s5 + $0x48] sm:$0xff] }
  0x3d   : > { %3269 = vmatpush3.bf16.msra.mxu1 %v3602_v15  ;;  %3306 = vmatprep.subr.bf16.mxu0 %v3603_v24  ;;  %v208_v10 = vld [vmem:[%s3784_s5 + $0x40] sm:$0xff]  ;;  %v729_v13 = vld [vmem:[%s3784_s5 + $0x2a] sm:$0xff]  ;;  %v3893_v15 = vpack.c.bf16 %v207_v6, %v206_v5  ;;  %v3895_v16 = vpack.c.bf16 %v727_v9, %v726_v7  ;;  %v211_v25 = vld [vmem:[%s3784_s5 + $0x58] sm:$0xff] }
  0x3e   : > { %3270 = vmatprep.subr.bf16.mxu1 %v3604_v27  ;;  %v728_v12 = vld [vmem:[%s3784_s5 + $0x22] sm:$0xff]  ;;  %v3897_v17 = vpack.c.bf16 %v209_v11, %v208_v10  ;;  %v3612_v19 = vld [vmem:[#allocation2 + $0x90] sm:$0xff]   ;;  %v215_v44 = vld [vmem:[%s3784_s5 + $0x78] sm:$0xff] }
  0x3f   : > { %3307 = vmatpush3.bf16.msra.mxu0 %v3603_v24  ;;  %v3613_v14 = vld [vmem:[#allocation2 + $0x68] sm:$0xff]   ;;  %v3899_v18 = vpack.c.bf16 %v729_v13, %v728_v12  ;;  %v210_v24 = vld [vmem:[%s3784_s5 + $0x50] sm:$0xff]  ;;  %v212_v28 = vld [vmem:[%s3784_s5 + $0x60] sm:$0xff] }
  0x40   : > { %3308 = vmatprep.subr.bf16.mxu0 %v3606_v34  ;;  %v730_v26 = vld [vmem:[%s3784_s5 + $0x32] sm:$0xff]  ;;  %v213_v29 = vld [vmem:[%s3784_s5 + $0x68] sm:$0xff]  ;;  %v3615_v31 = vld [vmem:[#allocation2 + $0x60] sm:$0xff]  }
  0x41   : > { %3271 = vmatpush3.bf16.msra.mxu1 %v3604_v27  ;;  %v731_v27 = vld [vmem:[%s3784_s5 + $0x3a] sm:$0xff]  ;;  %v732_v30 = vld [vmem:[%s3784_s5 + $0x42] sm:$0xff]  ;;  %v733_v32 = vld [vmem:[%s3784_s5 + $0x4a] sm:$0xff]  ;;  %v3921_v40 = vpack.c.bf16 %v213_v29, %v212_v28 }
  0x42   : > { %3272 = vmatprep.subr.bf16.mxu1 %v3605_v35  ;;  %3245 = vmatmul.mubr.msk.bf16.gmra.mxu0 %vm325_vm0, %v3827_v36  ;;  %v3614_v33 = vld [vmem:[#allocation2 + $0x88] sm:$0xff]   ;;  %v214_v43 = vld [vmem:[%s3784_s5 + $0x70] sm:$0xff]  ;;  %v735_v46 = vld [vmem:[%s3784_s5 + $0x5a] sm:$0xff] }
  0x43   : > { %3261 = vmatmul.mubr.msk.bf16.gmra.mxu1 %vm325_vm0, %v3829_v37  ;;  %3248 = vmatprep.mubr.msk.bf16.mxu0 %vm325_vm0, %v3831_v38  ;;  %v734_v45 = vld [vmem:[%s3784_s5 + $0x52] sm:$0xff]  ;;  %v3616_v47 = vld [vmem:[#allocation2 + $0x80] sm:$0xff]   ;;  %v217_v49 = vld [vmem:[%s3784_s5 + $0x88] sm:$0xff]  ;;  %v3946_v56 = vpack.c.bf16 %v215_v44, %v214_v43 }
  0x44   : > { %3264 = vmatprep.mubr.msk.bf16.mxu1 %vm325_vm0, %v3833_v39  ;;  %3309 = vmatpush3.bf16.msra.mxu0 %v3606_v34  ;;  %v3917_v34 = vpack.c.bf16 %v211_v25, %v210_v24  ;;  %v216_v48 = vld [vmem:[%s3784_s5 + $0x80] sm:$0xff]  ;;  %v3948_v57 = vpack.c.bf16 %v735_v46, %v734_v45  ;;  %v218_v60 = vld [vmem:[%s3784_s5 + $0x90] sm:$0xff]  ;;  %v219_v61 = vld [vmem:[%s3784_s5 + $0x98] sm:$0xff] }
  0x45   : > { %3273 = vmatpush3.bf16.msra.mxu1 %v3605_v35  ;;  %3310 = vmatprep.subr.bf16.mxu0 %v3608_v42  ;;  %v3919_v35 = vpack.c.bf16 %v731_v27, %v730_v26  ;;  %v3950_v58 = vpack.c.bf16 %v217_v49, %v216_v48  ;;  %v738_v62 = vld [vmem:[%s3784_s5 + $0x72] sm:$0xff]  ;;  %v739_v63 = vld [vmem:[%s3784_s5 + $0x7a] sm:$0xff]  ;;  %v740_v5 = vld [vmem:[%s3784_s5 + $0x82] sm:$0xff]  ;;  %v3971_v7 = vpack.c.bf16 %v219_v61, %v218_v60 }
  0x46   : > { %3274 = vmatprep.subr.bf16.mxu1 %v3607_v41  ;;  %v741_v6 = vld [vmem:[%s3784_s5 + $0x8a] sm:$0xff]  ;;  %v3973_v9 = vpack.c.bf16 %v739_v63, %v738_v62  ;;  %v223_v13 = vld [vmem:[%s3784_s5 + $0xb8] sm:$0xff]  ;;  %v224_v24 = vld [vmem:[%s3784_s5 + $0xc0] sm:$0xff] }
  0x47   : > { %v3977_v11 = vpack.c.bf16 %v741_v6, %v740_v5  ;;  %v222_v12 = vld [vmem:[%s3784_s5 + $0xb0] sm:$0xff]  ;;  %v225_v25 = vld [vmem:[%s3784_s5 + $0xc8] sm:$0xff]  ;;  %v747_v44 = vld [vmem:[%s3784_s5 + $0xba] sm:$0xff] }
  0x48   : > { %3311 = vmatpush3.bf16.msra.mxu0 %v3608_v42  ;;  %v3925_v42 = vld [vmem:[#allocation2 + $0xb8] sm:$0xff]   ;;  %v744_v26 = vld [vmem:[%s3784_s5 + $0xa2] sm:$0xff]  ;;  %v745_v27 = vld [vmem:[%s3784_s5 + $0xaa] sm:$0xff]  ;;  %v3995_v28 = vpack.c.bf16 %v223_v13, %v222_v12 }
  0x49   : > { %3275 = vmatpush3.bf16.msra.mxu1 %v3607_v41  ;;  %3376 = vmatprep.subr.bf16.mxu0 %v3610_v51  ;;  %v3923_v41 = vpack.c.bf16 %v733_v32, %v732_v30  ;;  %v3999_v30 = vpack.c.bf16 %v225_v25, %v224_v24  ;;  %v226_v32 = vld [vmem:[%s3784_s5 + $0xd0] sm:$0xff]  ;;  %v748_v45 = vld [vmem:[%s3784_s5 + $0xc2] sm:$0xff]  ;;  %v1911_v5 = vld [vmem:[%s3784_s5 + $0xf8] sm:$0xff] }
  0x4a   : > { %3340 = vmatprep.subr.bf16.mxu1 %v3609_v50  ;;  %3249 = vmatmul.mubr.msk.bf16.gmra.mxu0 %vm325_vm0, %v3851_v52  ;;  %v746_v43 = vld [vmem:[%s3784_s5 + $0xb2] sm:$0xff]  ;;  %v749_v46 = vld [vmem:[%s3784_s5 + $0xca] sm:$0xff]  ;;  %v3623_v63 = vld [vmem:[#allocation2 + $0xa0] sm:$0xff]  }
  0x4b   : > { %3265 = vmatmul.mubr.msk.bf16.gmra.mxu1 %vm325_vm0, %v3853_v53  ;;  %3252 = vmatprep.mubr.msk.bf16.mxu0 %vm325_vm0, %v3855_v54  ;;  %v4019_v48 = vpack.c.bf16 %v747_v44, %v746_v43  ;;  %v4021_v49 = vpack.c.bf16 %v749_v46, %v748_v45  ;;  %v3619_v61 = vld [vmem:[#allocation2 + $0xb0] sm:$0xff]  }
  0x4c   : > { %3276 = vmatprep.mubr.msk.bf16.mxu1 %vm325_vm0, %v228_v55  ;;  %v3944_v55 = vld [vmem:[#allocation2 + $0xd8] sm:$0xff]   ;;  %v3620_v62 = vld [vmem:[#allocation2 + $0xd0] sm:$0xff]  }
  0x4d   : > { %v2176_v6 = vld [vmem:[%s3784_s5 + $0x31] sm:$0xff]  ;;  %v2179_v12 = vld [vmem:[%s3784_s5 + $0x49] sm:$0xff] }
  0x52   : > { %3253 = vmatmul.mubr.msk.bf16.gmra.mxu0 %vm325_vm0, %v3872_v0 }
  0x53   : > { %3277 = vmatmul.mubr.msk.bf16.vlgmr.msra.gmra.mxu1 %vm325_vm0, %v3874_v1  ;;  %3312 = vmatprep.mubr.msk.bf16.mxu0 %vm325_vm0, %v752_v3  ;;  %v220_v3 = vld [vmem:[%s3784_s5 + $0xa0] sm:$0xff] }
  0x54   : > { %3280 = vmatprep.mubr.msk.bf16.mxu1 %vm325_vm0, %v3876_v2  ;;  %3341 = vmatpush3.bf16.msra.mxu1 %v3609_v50  ;;  %v736_v50 = vld [vmem:[%s3784_s5 + $0x62] sm:$0xff] }
  0x55   : > { %3342 = vmatprep.subr.bf16.mxu1 %v3611_v4 }
  0x58   : > { %3343 = vmatpush3.bf16.msra.mxu1 %v3611_v4  ;;  %v221_v4 = vld [vmem:[%s3784_s5 + $0xa8] sm:$0xff] }
  0x59   : > { %3344 = vmatprep.subr.bf16.mxu1 %v3613_v14  ;;  %v3975_v10 = vpack.c.bf16 %v221_v4, %v220_v3  ;;  %v3624_v3 = vld [vmem:[#allocation2 + $0xc0] sm:$0xff]   ;;  %v1910_v4 = vld [vmem:[%s3784_s5 + $0xf0] sm:$0xff] }
  0x5a   : > { %3313 = vmatmul.mubr.msk.bf16.vlgmr.msra.gmra.mxu0 %vm325_vm0, %v3895_v16  ;;  %v1925_v13 = vpack.c.bf16 %v1911_v5, %v1910_v4 }
  0x5b   : > { %3281 = vmatmul.mubr.msk.bf16.gmra.mxu1 %vm325_vm0, %v3893_v15  ;;  %3377 = vmatpush3.bf16.msra.mxu0 %v3610_v51  ;;  %v737_v51 = vld [vmem:[%s3784_s5 + $0x6a] sm:$0xff] }
  0x5c   : > { %3284 = vmatprep.mubr.msk.bf16.mxu1 %vm325_vm0, %v3897_v17  ;;  %3316 = vmatprep.mubr.msk.bf16.mxu0 %vm325_vm0, %v3899_v18  ;;  %v3952_v59 = vpack.c.bf16 %v737_v51, %v736_v50  ;;  %v750_v50 = vld [vmem:[%s3784_s5 + $0xd2] sm:$0xff]  ;;  %v751_v51 = vld [vmem:[%s3784_s5 + $0xda] sm:$0xff] }
  0x5d   : > { %3378 = vmatprep.subr.bf16.mxu0 %v3612_v19  ;;  %3345 = vmatpush3.bf16.msra.mxu1 %v3613_v14  ;;  %v742_v14 = vld [vmem:[%s3784_s5 + $0x92] sm:$0xff]  ;;  %v4033_v60 = vpack.c.bf16 %v751_v51, %v750_v50  ;;  %v2186_v51 = vld [vmem:[%s3784_s5 + $0x81] sm:$0xff] }
  0x5e   : > { %3346 = vmatprep.subr.bf16.mxu1 %v3615_v31 }
  0x5f   : > { %3379 = vmatpush3.bf16.msra.mxu0 %v3612_v19  ;;  %v743_v19 = vld [vmem:[%s3784_s5 + $0x9a] sm:$0xff] }
  0x60   : > { %3380 = vmatprep.subr.bf16.mxu0 %v3614_v33  ;;  %v3997_v29 = vpack.c.bf16 %v743_v19, %v742_v14 }
  0x61   : > { %3347 = vmatpush3.bf16.msra.mxu1 %v3615_v31  ;;  %v4001_v31 = vpack.c.bf16 %v745_v27, %v744_v26  ;;  %v2180_v26 = vld [vmem:[%s3784_s5 + $0x51] sm:$0xff]  ;;  %v2181_v27 = vld [vmem:[%s3784_s5 + $0x59] sm:$0xff] }
  0x62   : > { %3317 = vmatmul.mubr.msk.bf16.gmra.mxu0 %vm325_vm0, %v3919_v35  ;;  %3412 = vmatprep.subr.bf16.mxu1 %v3925_v42  ;;  %v2205_v43 = vpack.c.bf16 %v2181_v27, %v2180_v26  ;;  %v2196_v26 = vld [vmem:[%s3784_s5 + $0xd1] sm:$0xff]  ;;  %v2197_v27 = vld [vmem:[%s3784_s5 + $0xd9] sm:$0xff] }
  0x63   : > { %3285 = vmatmul.mubr.msk.bf16.gmra.mxu1 %vm325_vm0, %v3917_v34  ;;  %3320 = vmatprep.mubr.msk.bf16.mxu0 %vm325_vm0, %v3923_v41 }
  0x64   : > { %3288 = vmatprep.mubr.msk.bf16.mxu1 %vm325_vm0, %v3921_v40  ;;  %3381 = vmatpush3.bf16.msra.mxu0 %v3614_v33  ;;  %v227_v33 = vld [vmem:[%s3784_s5 + $0xd8] sm:$0xff] }
  0x65   : > { %3382 = vmatprep.subr.bf16.mxu0 %v3616_v47 }
  0x68   : > { %3383 = vmatpush3.bf16.msra.mxu0 %v3616_v47  ;;  %v4017_v47 = vpack.c.bf16 %v227_v33, %v226_v32 }
  0x69   : > { %3448 = vmatprep.subr.bf16.mxu0 %v3944_v55 }
  0x6a   : > { %3321 = vmatmul.mubr.msk.bf16.gmra.mxu0 %vm325_vm0, %v3948_v57 }
  0x6b   : > { %3289 = vmatmul.mubr.msk.bf16.gmra.mxu1 %vm325_vm0, %v3946_v56  ;;  %3324 = vmatprep.mubr.msk.bf16.mxu0 %vm325_vm0, %v3952_v59 }
  0x6c   : > { %3292 = vmatprep.mubr.msk.bf16.mxu1 %vm325_vm0, %v3950_v58 }
  0x72   : > { %3325 = vmatmul.mubr.msk.bf16.gmra.mxu0 %vm325_vm0, %v3973_v9 }
  0x73   : > { %3293 = vmatmul.mubr.msk.bf16.gmra.mxu1 %vm325_vm0, %v3971_v7  ;;  %3328 = vmatprep.mubr.msk.bf16.mxu0 %vm325_vm0, %v3977_v11 }
  0x74   : > { %3296 = vmatprep.mubr.msk.bf16.mxu1 %vm325_vm0, %v3975_v10 }
  0x7a   : > { %3329 = vmatmul.mubr.msk.bf16.gmra.mxu0 %vm325_vm0, %v3997_v29 }
  0x7b   : > { %3297 = vmatmul.mubr.msk.bf16.gmra.mxu1 %vm325_vm0, %v3995_v28  ;;  %3332 = vmatprep.mubr.msk.bf16.mxu0 %vm325_vm0, %v4001_v31 }
  0x7c   : > { %3300 = vmatprep.mubr.msk.bf16.mxu1 %vm325_vm0, %v3999_v30 }
  0x82   : > { %3333 = vmatmul.mubr.msk.bf16.gmra.mxu0 %vm325_vm0, %v4019_v48 }
  0x83   : > { %3301 = vmatmul.mubr.msk.bf16.gmra.mxu1 %vm325_vm0, %v4017_v47  ;;  %3336 = vmatprep.mubr.msk.bf16.mxu0 %vm325_vm0, %v4021_v49 }
  0x84   : > { %3348 = vmatprep.mubr.msk.bf16.mxu1 %vm325_vm0, %v3874_v1  ;;  %v3621_v1 = vld [vmem:[#allocation2 + $0xa8] sm:$0xff]  }
  0x8a   : > { %3337 = vmatmul.mubr.msk.bf16.gmra.mxu0 %vm325_vm0, %v4033_v60 }
  0x8b   : > { %3349 = vmatmul.mubr.msk.bf16.vlgmr.msra.gmra.mxu1 %vm325_vm0, %v3876_v2  ;;  %3384 = vmatprep.mubr.msk.bf16.mxu0 %vm325_vm0, %v3803_v20  ;;  %v3622_v20 = vld [vmem:[#allocation2 + $0xc8] sm:$0xff]  }
  0x8c   : > { %3352 = vmatprep.mubr.msk.bf16.mxu1 %vm325_vm0, %v3893_v15  ;;  %3413 = vmatpush3.bf16.msra.mxu1 %v3925_v42  ;;  %v3625_v42 = vld [vmem:[#allocation2 + $0xf8] sm:$0xff]  }
  0x8d   : > { %3414 = vmatprep.subr.bf16.mxu1 %v3619_v61 }
  0x90   : > { %3415 = vmatpush3.bf16.msra.mxu1 %v3619_v61  ;;  %v2187_v61 = vld [vmem:[%s3784_s5 + $0x89] sm:$0xff] }
  0x91   : > { %3416 = vmatprep.subr.bf16.mxu1 %v3621_v1 }
  0x92   : > { %3385 = vmatmul.mubr.msk.bf16.vlgmr.msra.gmra.mxu0 %vm325_vm0, %v3807_v22  ;;  %v3626_v22 = vld [vmem:[#allocation2 + $0x118] sm:$0xff]  }
  0x93   : > { %3353 = vmatmul.mubr.msk.bf16.gmra.mxu1 %vm325_vm0, %v3897_v17  ;;  %3449 = vmatpush3.bf16.msra.mxu0 %v3944_v55  ;;  %v3627_v55 = vld [vmem:[#allocation2 + $0xf0] sm:$0xff]  }
  0x94   : > { %3356 = vmatprep.mubr.msk.bf16.mxu1 %vm325_vm0, %v3917_v34  ;;  %3388 = vmatprep.mubr.msk.bf16.mxu0 %vm325_vm0, %v3827_v36  ;;  %v1040_v36 = vld [vmem:[%s3784_s5 + $0xe0] sm:$0xff] }
  0x95   : > { %3450 = vmatprep.subr.bf16.mxu0 %v3620_v62  ;;  %3417 = vmatpush3.bf16.msra.mxu1 %v3621_v1 }
  0x96   : > { %3418 = vmatprep.subr.bf16.mxu1 %v3623_v63 }
  0x97   : > { %3451 = vmatpush3.bf16.msra.mxu0 %v3620_v62 }
  0x98   : > { %3452 = vmatprep.subr.bf16.mxu0 %v3622_v20 }
  0x99   : > { %3419 = vmatpush3.bf16.msra.mxu1 %v3623_v63  ;;  %v2208_v63 = vpack.c.bf16 %v2187_v61, %v2186_v51 }
  0x9a   : > { %3389 = vmatmul.mubr.msk.bf16.gmra.mxu0 %vm325_vm0, %v3831_v38  ;;  %3484 = vmatprep.subr.bf16.mxu1 %v3625_v42 }
  0x9b   : > { %3357 = vmatmul.mubr.msk.bf16.gmra.mxu1 %vm325_vm0, %v3921_v40  ;;  %3392 = vmatprep.mubr.msk.bf16.mxu0 %vm325_vm0, %v3851_v52 }
  0x9c   : > { %3360 = vmatprep.mubr.msk.bf16.mxu1 %vm325_vm0, %v3946_v56  ;;  %3453 = vmatpush3.bf16.msra.mxu0 %v3622_v20 }
  0x9d   : > { %3454 = vmatprep.subr.bf16.mxu0 %v3624_v3 }
  0xa0   : > { %3455 = vmatpush3.bf16.msra.mxu0 %v3624_v3  ;;  %v2189_v3 = vld [vmem:[%s3784_s5 + $0x99] sm:$0xff] }
  0xa1   : > { %3520 = vmatprep.subr.bf16.mxu0 %v3626_v22 }
  0xa2   : > { %3393 = vmatmul.mubr.msk.bf16.gmra.mxu0 %vm325_vm0, %v3855_v54 }
  0xa3   : > { %3361 = vmatmul.mubr.msk.bf16.gmra.mxu1 %vm325_vm0, %v3950_v58  ;;  %3396 = vmatprep.mubr.msk.bf16.mxu0 %vm325_vm0, %v3872_v0 }
  0xa4   : > { %3364 = vmatprep.mubr.msk.bf16.mxu1 %vm325_vm0, %v3971_v7 }
  0xaa   : > { %3397 = vmatmul.mubr.msk.bf16.gmra.mxu0 %vm325_vm0, %v3790_v8  ;;  %v1041_v8 = vld [vmem:[%s3784_s5 + $0xe8] sm:$0xff] }
  0xab   : > { %3365 = vmatmul.mubr.msk.bf16.gmra.mxu1 %vm325_vm0, %v3975_v10  ;;  %3400 = vmatprep.mubr.msk.bf16.mxu0 %vm325_vm0, %v3805_v21  ;;  %v1055_v38 = vpack.c.bf16 %v1041_v8, %v1040_v36  ;;  %v1330_v21 = vld [vmem:[%s3784_s5 + $0xe1] sm:$0xff] }
  0xac   : > { %3368 = vmatprep.mubr.msk.bf16.mxu1 %vm325_vm0, %v3995_v28  ;;  %v2190_v8 = vld [vmem:[%s3784_s5 + $0xa1] sm:$0xff] }
  0xb2   : > { %3401 = vmatmul.mubr.msk.bf16.gmra.mxu0 %vm325_vm0, %v3809_v23  ;;  %v1331_v23 = vld [vmem:[%s3784_s5 + $0xe9] sm:$0xff] }
  0xb3   : > { %3369 = vmatmul.mubr.msk.bf16.gmra.mxu1 %vm325_vm0, %v3999_v30  ;;  %3404 = vmatprep.mubr.msk.bf16.mxu0 %vm325_vm0, %v3829_v37  ;;  %v4096_v52 = vpack.c.bf16 %v1331_v23, %v1330_v21  ;;  %v3629_v37 = vld [vmem:[#allocation2 + $0xe8] sm:$0xff]  }
  0xb4   : > { %3372 = vmatprep.mubr.msk.bf16.mxu1 %vm325_vm0, %v4017_v47 }
  0xba   : > { %3405 = vmatmul.mubr.msk.bf16.gmra.mxu0 %vm325_vm0, %v3833_v39  ;;  %v3628_v39 = vld [vmem:[#allocation2 + $0x110] sm:$0xff]  }
  0xbb   : > { %3373 = vmatmul.mubr.msk.bf16.gmra.mxu1 %vm325_vm0, %v1055_v38  ;;  %3408 = vmatprep.mubr.msk.bf16.mxu0 %vm325_vm0, %v3853_v53  ;;  %v3631_v53 = vld [vmem:[#allocation2 + $0xe0] sm:$0xff]  }
  0xbc   : > { %3420 = vmatprep.mubr.msk.bf16.mxu1 %vm325_vm0, %v3895_v16  ;;  %v3632_v16 = vld [vmem:[#allocation2 + $0x100] sm:$0xff]  }
  0xc2   : > { %3409 = vmatmul.mubr.msk.bf16.gmra.mxu0 %vm325_vm0, %v4096_v52 }
  0xc3   : > { %3421 = vmatmul.mubr.msk.bf16.vlgmr.msra.gmra.mxu1 %vm325_vm0, %v3899_v18  ;;  %3456 = vmatprep.mubr.msk.bf16.mxu0 %vm325_vm0, %v3876_v2  ;;  %v3630_v2 = vld [vmem:[#allocation2 + $0x108] sm:$0xff]  }
  0xc4   : > { %3424 = vmatprep.mubr.msk.bf16.mxu1 %vm325_vm0, %v3919_v35  ;;  %3485 = vmatpush3.bf16.msra.mxu1 %v3625_v42  ;;  %v2188_v42 = vld [vmem:[%s3784_s5 + $0x91] sm:$0xff] }
  0xc5   : > { %3486 = vmatprep.subr.bf16.mxu1 %v3627_v55 }
  0xc8   : > { %3487 = vmatpush3.bf16.msra.mxu1 %v3627_v55 }
  0xc9   : > { %3488 = vmatprep.subr.bf16.mxu1 %v3629_v37 }
  0xca   : > { %3457 = vmatmul.mubr.msk.bf16.vlgmr.msra.gmra.mxu0 %vm325_vm0, %v3893_v15  ;;  %v1620_v15 = vld [vmem:[%s3784_s5 + $0xe2] sm:$0xff] }
  0xcb   : > { %3425 = vmatmul.mubr.msk.bf16.gmra.mxu1 %vm325_vm0, %v3923_v41  ;;  %3521 = vmatpush3.bf16.msra.mxu0 %v3626_v22 }
  0xcc   : > { %3428 = vmatprep.mubr.msk.bf16.mxu1 %vm325_vm0, %v3948_v57  ;;  %3460 = vmatprep.mubr.msk.bf16.mxu0 %vm325_vm0, %v3897_v17  ;;  %v1621_v17 = vld [vmem:[%s3784_s5 + $0xea] sm:$0xff] }
  0xcd   : > { %3522 = vmatprep.subr.bf16.mxu0 %v3628_v39  ;;  %3489 = vmatpush3.bf16.msra.mxu1 %v3629_v37 }
  0xce   : > { %3490 = vmatprep.subr.bf16.mxu1 %v3631_v53 }
  0xcf   : > { %3523 = vmatpush3.bf16.msra.mxu0 %v3628_v39 }
  0xd0   : > { %3524 = vmatprep.subr.bf16.mxu0 %v3630_v2 }
  0xd1   : > { %3491 = vmatpush3.bf16.msra.mxu1 %v3631_v53 }
  0xd2   : > { %3461 = vmatmul.mubr.msk.bf16.gmra.mxu0 %vm325_vm0, %v3917_v34  ;;  %v2174_v34 = vld [vmem:[%s3784_s5 + $0x21] sm:$0xff] }
  0xd3   : > { %3429 = vmatmul.mubr.msk.bf16.gmra.mxu1 %vm325_vm0, %v3952_v59  ;;  %3464 = vmatprep.mubr.msk.bf16.mxu0 %vm325_vm0, %v3921_v40  ;;  %v2175_v40 = vld [vmem:[%s3784_s5 + $0x29] sm:$0xff] }
  0xd4   : > { %3432 = vmatprep.mubr.msk.bf16.mxu1 %vm325_vm0, %v3973_v9  ;;  %3525 = vmatpush3.bf16.msra.mxu0 %v3630_v2  ;;  %v2192_v2 = vld [vmem:[%s3784_s5 + $0xb1] sm:$0xff] }
  0xd5   : > { %3526 = vmatprep.subr.bf16.mxu0 %v3632_v16 }
  0xd8   : > { %3527 = vmatpush3.bf16.msra.mxu0 %v3632_v16  ;;  %v2193_v16 = vld [vmem:[%s3784_s5 + $0xb9] sm:$0xff] }
  0xda   : > { %3465 = vmatmul.mubr.msk.bf16.gmra.mxu0 %vm325_vm0, %v3946_v56  ;;  %v4150_v56 = vpack.c.bf16 %v1621_v17, %v1620_v15 }
  0xdb   : > { %3433 = vmatmul.mubr.msk.bf16.gmra.mxu1 %vm325_vm0, %v3977_v11  ;;  %3468 = vmatprep.mubr.msk.bf16.mxu0 %vm325_vm0, %v3950_v58  ;;  %v2202_v58 = vpack.c.bf16 %v2175_v40, %v2174_v34  ;;  %v2194_v34 = vld [vmem:[%s3784_s5 + $0xc1] sm:$0xff]  ;;  %v2195_v40 = vld [vmem:[%s3784_s5 + $0xc9] sm:$0xff] }
  0xdc   : > { %3436 = vmatprep.mubr.msk.bf16.mxu1 %vm325_vm0, %v3997_v29 }
  0xe2   : > { %3469 = vmatmul.mubr.msk.bf16.gmra.mxu0 %vm325_vm0, %v3971_v7  ;;  %v2177_v7 = vld [vmem:[%s3784_s5 + $0x39] sm:$0xff] }
  0xe3   : > { %3437 = vmatmul.mubr.msk.bf16.gmra.mxu1 %vm325_vm0, %v4001_v31  ;;  %3472 = vmatprep.mubr.msk.bf16.mxu0 %vm325_vm0, %v3975_v10  ;;  %v2178_v10 = vld [vmem:[%s3784_s5 + $0x41] sm:$0xff]  ;;  %v2203_v14 = vpack.c.bf16 %v2177_v7, %v2176_v6  ;;  %v2212_v7 = vpack.c.bf16 %v2195_v40, %v2194_v34 }
  0xe4   : > { %3440 = vmatprep.mubr.msk.bf16.mxu1 %vm325_vm0, %v4019_v48  ;;  %v2204_v19 = vpack.c.bf16 %v2179_v12, %v2178_v10 }
  0xea   : > { %3473 = vmatmul.mubr.msk.bf16.gmra.mxu0 %vm325_vm0, %v3995_v28 }
  0xeb   : > { %3441 = vmatmul.mubr.msk.bf16.gmra.mxu1 %vm325_vm0, %v4021_v49  ;;  %3476 = vmatprep.mubr.msk.bf16.mxu0 %vm325_vm0, %v3999_v30 }
  0xec   : > { %3444 = vmatprep.mubr.msk.bf16.mxu1 %vm325_vm0, %v4033_v60 }
  0xf2   : > { %3477 = vmatmul.mubr.msk.bf16.gmra.mxu0 %vm325_vm0, %v4017_v47 }
  0xf3   : > { %3445 = vmatmul.mubr.msk.bf16.gmra.mxu1 %vm325_vm0, %v4150_v56  ;;  %3480 = vmatprep.mubr.msk.bf16.mxu0 %vm325_vm0, %v1055_v38  ;;  %v2191_v38 = vld [vmem:[%s3784_s5 + $0xa9] sm:$0xff] }
  0xf4   : > { %3492 = vmatprep.mubr.msk.bf16.mxu1 %vm325_vm0, %v2202_v58  ;;  %v2210_v23 = vpack.c.bf16 %v2191_v38, %v2190_v8 }
  0xfa   : > { %v3242_v24 = vpop.f32.mrf.mxu0  ;;  %3481 = vmatmul.mubr.msk.bf16.gmra.mxu0 %vm325_vm0, %v1925_v13 }
  0xfb   : > { %v4164_v25 = vpop.f32.mrf.mxu1  ;;  %3493 = vmatmul.mubr.msk.bf16.vlgmr.msra.gmra.mxu1 %vm325_vm0, %v2203_v14  ;;  %3528 = vmatprep.mubr.msk.bf16.mxu0 %vm325_vm0, %v3899_v18 }
  0xfc   : > { %3496 = vmatprep.mubr.msk.bf16.mxu1 %vm325_vm0, %v2204_v19  ;;  %v402_v28 = vpop.f32.mrf.mxu0 }
  0xfd   : > { %v4173_v30 = vpop.f32.mrf.mxu1 }
  0xfe   : > { %v3243_v32 = vpop.f32.mrf.mxu0 }
  0xff   : > { %v4175_v33 = vpop.f32.mrf.mxu1 }
 0x100   : > { %v405_v44 = vpop.f32.mrf.mxu0 }
 0x101   : > { %v4177_v45 = vpop.f32.mrf.mxu1 }
 0x102   : > { %v3246_v46 = vpop.f32.mrf.mxu0  ;;  %3529 = vmatmul.mubr.msk.bf16.vlgmr.msra.gmra.mxu0 %vm325_vm0, %v3919_v35 }
 0x103   : > { %v4179_v47 = vpop.f32.mrf.mxu1  ;;  %3497 = vmatmul.mubr.msk.bf16.gmra.mxu1 %vm325_vm0, %v2205_v43  ;;  %3532 = vmatprep.mubr.msk.bf16.mxu0 %vm325_vm0, %v3923_v41 }
 0x104   : > { %3500 = vmatprep.mubr.msk.bf16.mxu1 %vm325_vm0, %v3855_v54  ;;  %v418_v18 = vpop.f32.mrf.mxu0 }
 0x105   : > { %v4188_v50 = vpop.f32.mrf.mxu1 }
 0x106   : > { %v3247_v1 = vpop.f32.mrf.mxu0 }
 0x107   : > { %v4192_v62 = vpop.f32.mrf.mxu1 }
 0x108   : > { %v4194_v35 = vpop.f32.mrf.mxu0 }
 0x109   : > { %v4196_v20 = vpop.f32.mrf.mxu1 }
 0x10a   : > { %v4198_v54 = vpop.f32.mrf.mxu0  ;;  %3533 = vmatmul.mubr.msk.bf16.gmra.mxu0 %vm325_vm0, %v3948_v57  ;;  %v2209_v57 = vpack.c.bf16 %v2189_v3, %v2188_v42 }
 0x10b   : > { %v4200_v41 = vpop.f32.mrf.mxu1  ;;  %3501 = vmatmul.mubr.msk.bf16.gmra.mxu1 %vm325_vm0, %v3872_v0  ;;  %3536 = vmatprep.mubr.msk.bf16.mxu0 %vm325_vm0, %v3952_v59 }
 0x10c   : > { %3504 = vmatprep.mubr.msk.bf16.mxu1 %vm325_vm0, %v2208_v63  ;;  %v4211_v22 = vpop.f32.mrf.mxu0  ;;  %v2213_v63 = vpack.c.bf16 %v2197_v27, %v2196_v26 }
 0x10d   : > { %v4213_v36 = vpop.f32.mrf.mxu1 }
 0x10e   : > { %v4217_v21 = vpop.f32.mrf.mxu0 }
 0x10f   : > { %v4219_v0 = vpop.f32.mrf.mxu1 }
 0x110   : > { %v4221_v55 = vpop.f32.mrf.mxu0 }
 0x111   : > { %v4223_v59 = vpop.f32.mrf.mxu1 }
 0x112   : > { %v4225_v37 = vpop.f32.mrf.mxu0  ;;  %3537 = vmatmul.mubr.msk.bf16.gmra.mxu0 %vm325_vm0, %v3973_v9  ;;  %v2211_v9 = vpack.c.bf16 %v2193_v16, %v2192_v2 }
 0x113   : > { %v3278_v39 = vpop.f32.mrf.mxu1  ;;  %3505 = vmatmul.mubr.msk.bf16.gmra.mxu1 %vm325_vm0, %v2209_v57  ;;  %3540 = vmatprep.mubr.msk.bf16.mxu0 %vm325_vm0, %v3977_v11 }
 0x114   : > { %v622_v53 = vadd.f32 %v3278_v39, %v3242_v24  ;;  %3508 = vmatprep.mubr.msk.bf16.mxu1 %vm325_vm0, %v2210_v23  ;;  %v4235_v15 = vpop.f32.mrf.mxu0 }
 0x115   : > { %v613_v17 = vpop.f32.mrf.mxu1 }
 0x116   : > { %v614_v58 = vadd.f32 %v613_v17, %v402_v28  ;;  %v4239_v4 = vpop.f32.mrf.mxu0 }
 0x117   : > { %v3279_v5 = vpop.f32.mrf.mxu1 }
 0x118   : > { %v625_v6 = vadd.f32 %v3279_v5, %v3243_v32  ;;  %v4241_v10 = vpop.f32.mrf.mxu0 }
 0x119   : > { %v616_v12 = vpop.f32.mrf.mxu1 }
 0x11a   : > { %v617_v11 = vadd.f32 %v616_v12, %v405_v44  ;;  %v3314_v14 = vpop.f32.mrf.mxu0  ;;  %3541 = vmatmul.mubr.msk.bf16.gmra.mxu0 %vm325_vm0, %v3997_v29  ;;  %v2491_v12 = vld [vmem:[%s3784_s5 + $0xfa] sm:$0xff] }
 0x11b   : > { %v3282_v13 = vpop.f32.mrf.mxu1  ;;  %3509 = vmatmul.mubr.msk.bf16.gmra.mxu1 %vm325_vm0, %v2211_v9  ;;  %v4246_v24 = vadd.f32 %v3314_v14, %v622_v53  ;;  %3544 = vmatprep.mubr.msk.bf16.mxu0 %vm325_vm0, %v4001_v31 }
 0x11c   : > { %v638_v19 = vadd.f32 %v3282_v13, %v3246_v46  ;;  %3512 = vmatprep.mubr.msk.bf16.mxu1 %vm325_vm0, %v2212_v7  ;;  %v875_v32 = vpop.f32.mrf.mxu0 }
 0x11d   : > { %v629_v28 = vpop.f32.mrf.mxu1  ;;  %v4253_v44 = vadd.f32 %v875_v32, %v614_v58 }
 0x11e   : > { %v630_v43 = vadd.f32 %v629_v28, %v418_v18  ;;  %v3315_v61 = vpop.f32.mrf.mxu0 }
 0x11f   : > { %v3283_v51 = vpop.f32.mrf.mxu1  ;;  %v4255_v46 = vadd.f32 %v3315_v61, %v625_v6 }
 0x120   : > { %v641_v29 = vadd.f32 %v3283_v51, %v3247_v1  ;;  %v878_v3 = vpop.f32.mrf.mxu0  ;;  %v2200_v1 = vld [vmem:[%s3784_s5 + $0xf1] sm:$0xff] }
 0x121   : > { %v632_v42 = vpop.f32.mrf.mxu1  ;;  %v4258_v31 = vadd.f32 %v878_v3, %v617_v11 }
 0x122   : > { %v633_v8 = vadd.f32 %v632_v42, %v4194_v35  ;;  %v3318_v57 = vpop.f32.mrf.mxu0  ;;  %3545 = vmatmul.mubr.msk.bf16.gmra.mxu0 %vm325_vm0, %v4019_v48  ;;  %v2201_v35 = vld [vmem:[%s3784_s5 + $0xf9] sm:$0xff] }
 0x123   : > { %v3286_v38 = vpop.f32.mrf.mxu1  ;;  %3513 = vmatmul.mubr.msk.bf16.gmra.mxu1 %vm325_vm0, %v2213_v63  ;;  %v4264_v23 = vadd.f32 %v3318_v57, %v638_v19  ;;  %3548 = vmatprep.mubr.msk.bf16.mxu0 %vm325_vm0, %v4021_v49 }
 0x124   : > { %v654_v18 = vadd.f32 %v3286_v38, %v4198_v54  ;;  %3516 = vmatprep.mubr.msk.bf16.mxu1 %vm325_vm0, %v4096_v52  ;;  %v891_v53 = vpop.f32.mrf.mxu0  ;;  %v2215_v54 = vpack.c.bf16 %v2201_v35, %v2200_v1 }
 0x125   : > { %v645_v39 = vpop.f32.mrf.mxu1  ;;  %v4273_v16 = vadd.f32 %v891_v53, %v630_v43 }
 0x126   : > { %v646_v2 = vadd.f32 %v645_v39, %v4211_v22  ;;  %v3319_v48 = vpop.f32.mrf.mxu0 }
 0x127   : > { %v3287_v17 = vpop.f32.mrf.mxu1  ;;  %v4276_v40 = vadd.f32 %v3319_v48, %v641_v29 }
 0x128   : > { %v657_v34 = vadd.f32 %v3287_v17, %v4217_v21  ;;  %v894_v58 = vpop.f32.mrf.mxu0  ;;  %v2490_v21 = vld [vmem:[%s3784_s5 + $0xf2] sm:$0xff] }
 0x129   : > { %v648_v52 = vpop.f32.mrf.mxu1  ;;  %v4279_v5 = vadd.f32 %v894_v58, %v633_v8  ;;  %v2505_v27 = vpack.c.bf16 %v2491_v12, %v2490_v21 }
 0x12a   : > { %v649_v49 = vadd.f32 %v648_v52, %v4221_v55  ;;  %v3322_v6 = vpop.f32.mrf.mxu0  ;;  %3549 = vmatmul.mubr.msk.bf16.gmra.mxu0 %vm325_vm0, %v4033_v60 }
 0x12b   : > { %v3290_v9 = vpop.f32.mrf.mxu1  ;;  %3517 = vmatmul.mubr.msk.bf16.gmra.mxu1 %vm325_vm0, %v2215_v54  ;;  %v4285_v7 = vadd.f32 %v3322_v6, %v654_v18  ;;  %3552 = vmatprep.mubr.msk.bf16.mxu0 %vm325_vm0, %v4150_v56 }
 0x12c   : > { %v670_v22 = vadd.f32 %v3290_v9, %v4225_v37  ;;  %v907_v55 = vpop.f32.mrf.mxu0 }
 0x12d   : > { %v661_v11 = vpop.f32.mrf.mxu1  ;;  %v4292_v14 = vadd.f32 %v907_v55, %v646_v2 }
 0x12e   : > { %v662_v13 = vadd.f32 %v661_v11, %v4235_v15  ;;  %v3323_v26 = vpop.f32.mrf.mxu0 }
 0x12f   : > { %v3291_v19 = vpop.f32.mrf.mxu1  ;;  %v4295_v28 = vadd.f32 %v3323_v26, %v657_v34 }
 0x130   : > { %v673_v60 = vadd.f32 %v3291_v19, %v4239_v4  ;;  %v910_v32 = vpop.f32.mrf.mxu0 }
 0x131   : > { %v664_v37 = vpop.f32.mrf.mxu1  ;;  %v4298_v56 = vadd.f32 %v910_v32, %v649_v49 }
 0x132   : > { %v665_v43 = vadd.f32 %v664_v37, %v4241_v10  ;;  %v3326_v61 = vpop.f32.mrf.mxu0  ;;  %3553 = vmatmul.mubr.msk.bf16.gmra.mxu0 %vm325_vm0, %v2505_v27 }
 0x133   : > { %v3294_v51 = vpop.f32.mrf.mxu1  ;;  %v4302_v63 = vadd.f32 %v3326_v61, %v670_v22 }
 0x134   : > { %v686_v15 = vadd.f32 %v3294_v51, %v4164_v25  ;;  %v923_v42 = vpop.f32.mrf.mxu0 }
 0x135   : > { %v677_v29 = vpop.f32.mrf.mxu1  ;;  %v4305_v3 = vadd.f32 %v923_v42, %v662_v13 }
 0x136   : > { %v678_v4 = vadd.f32 %v677_v29, %v4173_v30  ;;  %v3327_v38 = vpop.f32.mrf.mxu0 }
 0x137   : > { %v3295_v8 = vpop.f32.mrf.mxu1  ;;  %v4308_v57 = vadd.f32 %v3327_v38, %v673_v60 }
 0x138   : > { %v689_v10 = vadd.f32 %v3295_v8, %v4175_v33  ;;  %v926_v1 = vpop.f32.mrf.mxu0 }
 0x139   : > { %v680_v18 = vpop.f32.mrf.mxu1  ;;  %v4311_v39 = vadd.f32 %v926_v1, %v665_v43 }
 0x13a   : > { %v681_v35 = vadd.f32 %v680_v18, %v4177_v45  ;;  %v3330_v53 = vpop.f32.mrf.mxu0 }
 0x13b   : > { %v3298_v25 = vpop.f32.mrf.mxu1  ;;  %v4314_v17 = vadd.f32 %v3330_v53, %v686_v15 }
 0x13c   : > { %v702_v2 = vadd.f32 %v3298_v25, %v4179_v47  ;;  %v939_v48 = vpop.f32.mrf.mxu0 }
 0x13d   : > { %v693_v30 = vpop.f32.mrf.mxu1  ;;  %v4317_v34 = vadd.f32 %v939_v48, %v678_v4 }
 0x13e   : > { %v694_v54 = vadd.f32 %v693_v30, %v4188_v50  ;;  %v3331_v52 = vpop.f32.mrf.mxu0 }
 0x13f   : > { %v3299_v33 = vpop.f32.mrf.mxu1  ;;  %v4320_v49 = vadd.f32 %v3331_v52, %v689_v10 }
 0x140   : > { %v705_v58 = vadd.f32 %v3299_v33, %v4192_v62  ;;  %v942_v9 = vpop.f32.mrf.mxu0 }
 0x141   : > { %v696_v45 = vpop.f32.mrf.mxu1  ;;  %v4323_v22 = vadd.f32 %v942_v9, %v681_v35 }
 0x142   : > { %v697_v6 = vadd.f32 %v696_v45, %v4196_v20  ;;  %v3334_v21 = vpop.f32.mrf.mxu0 }
 0x143   : > { %v3302_v47 = vpop.f32.mrf.mxu1  ;;  %v4326_v11 = vadd.f32 %v3334_v21, %v702_v2 }
 0x144   : > { %v718_v12 = vadd.f32 %v3302_v47, %v4200_v41  ;;  %v955_v55 = vpop.f32.mrf.mxu0 }
 0x145   : > { %v709_v50 = vpop.f32.mrf.mxu1  ;;  %v4329_v19 = vadd.f32 %v955_v55, %v694_v54 }
 0x146   : > { %v710_v13 = vadd.f32 %v709_v50, %v4213_v36  ;;  %v3335_v26 = vpop.f32.mrf.mxu0 }
 0x147   : > { %v3303_v62 = vpop.f32.mrf.mxu1  ;;  %v4332_v60 = vadd.f32 %v3335_v26, %v705_v58 }
 0x148   : > { %v721_v27 = vadd.f32 %v3303_v62, %v4219_v0  ;;  %v958_v37 = vpop.f32.mrf.mxu0 }
 0x149   : > { %v712_v20 = vpop.f32.mrf.mxu1  ;;  %v4335_v43 = vadd.f32 %v958_v37, %v697_v6 }
 0x14a   : > { %v713_v32 = vadd.f32 %v712_v20, %v4223_v59  ;;  %v3338_v41 = vpop.f32.mrf.mxu0 }
 0x14b   : > { %v3350_v51 = vpop.f32.mrf.mxu1  ;;  %v4337_v61 = vadd.f32 %v3338_v41, %v718_v12 }
 0x14c   : > { %v1278_v36 = vadd.f32 %v3350_v51, %v4246_v24  ;;  %v971_v15 = vpop.f32.mrf.mxu0 }
 0x14d   : > { %v1165_v29 = vpop.f32.mrf.mxu1  ;;  %v4340_v42 = vadd.f32 %v971_v15, %v710_v13 }
 0x14e   : > { %v1276_v0 = vadd.f32 %v1165_v29, %v4253_v44  ;;  %v3339_v4 = vpop.f32.mrf.mxu0 }
 0x14f   : > { %v3351_v8 = vpop.f32.mrf.mxu1  ;;  %v4343_v38 = vadd.f32 %v3339_v4, %v721_v27 }
 0x150   : > { %v1279_v59 = vadd.f32 %v3351_v8, %v4255_v46  ;;  %v974_v10 = vpop.f32.mrf.mxu0 }
 0x151   : > { %v1168_v18 = vpop.f32.mrf.mxu1  ;;  %v4346_v1 = vadd.f32 %v974_v10, %v713_v32 }
 0x152   : > { %v1277_v35 = vadd.f32 %v1168_v18, %v4258_v31  ;;  %v3386_v24 = vpop.f32.mrf.mxu0 }
 0x153   : > { %v3354_v25 = vpop.f32.mrf.mxu1  ;;  %v4350_v2 = vadd.f32 %v3386_v24, %v1278_v36 }
 0x154   : > { %v1282_v53 = vadd.f32 %v3354_v25, %v4264_v23  ;;  %v1455_v44 = vpop.f32.mrf.mxu0 }
 0x155   : > { %v1181_v30 = vpop.f32.mrf.mxu1  ;;  %v4353_v54 = vadd.f32 %v1455_v44, %v1276_v0 }
 0x156   : > { %v1280_v48 = vadd.f32 %v1181_v30, %v4273_v16  ;;  %v3387_v46 = vpop.f32.mrf.mxu0 }
 0x157   : > { %v3355_v33 = vpop.f32.mrf.mxu1  ;;  %v4356_v58 = vadd.f32 %v3387_v46, %v1279_v59 }
 0x158   : > { %v1283_v52 = vadd.f32 %v3355_v33, %v4276_v40  ;;  %v1458_v31 = vpop.f32.mrf.mxu0 }
 0x159   : > { %v1184_v45 = vpop.f32.mrf.mxu1  ;;  %v4359_v6 = vadd.f32 %v1458_v31, %v1277_v35 }
 0x15a   : > { %v1281_v9 = vadd.f32 %v1184_v45, %v4279_v5  ;;  %v3390_v47 = vpop.f32.mrf.mxu0 }
 0x15b   : > { %v3358_v23 = vpop.f32.mrf.mxu1  ;;  %v4362_v12 = vadd.f32 %v3390_v47, %v1282_v53 }
 0x15c   : > { %v1286_v21 = vadd.f32 %v3358_v23, %v4285_v7  ;;  %v1471_v50 = vpop.f32.mrf.mxu0 }
 0x15d   : > { %v1197_v16 = vpop.f32.mrf.mxu1  ;;  %v4365_v13 = vadd.f32 %v1471_v50, %v1280_v48 }
 0x15e   : > { %v1284_v55 = vadd.f32 %v1197_v16, %v4292_v14  ;;  %v3391_v62 = vpop.f32.mrf.mxu0 }
 0x15f   : > { %v3359_v40 = vpop.f32.mrf.mxu1  ;;  %v4368_v27 = vadd.f32 %v3391_v62, %v1283_v52 }
 0x160   : > { %v1287_v26 = vadd.f32 %v3359_v40, %v4295_v28  ;;  %v1474_v20 = vpop.f32.mrf.mxu0 }
 0x161   : > { %v1200_v5 = vpop.f32.mrf.mxu1  ;;  %v4371_v32 = vadd.f32 %v1474_v20, %v1281_v9 }
 0x162   : > { %v1285_v37 = vadd.f32 %v1200_v5, %v4298_v56  ;;  %v3394_v41 = vpop.f32.mrf.mxu0 }
 0x163   : > { %v3362_v7 = vpop.f32.mrf.mxu1  ;;  %v4374_v36 = vadd.f32 %v3394_v41, %v1286_v21 }
 0x164   : > { %v1290_v51 = vadd.f32 %v3362_v7, %v4302_v63  ;;  %v1487_v15 = vpop.f32.mrf.mxu0 }
 0x165   : > { %v1213_v14 = vpop.f32.mrf.mxu1  ;;  %v4377_v0 = vadd.f32 %v1487_v15, %v1284_v55 }
 0x166   : > { %v1288_v29 = vadd.f32 %v1213_v14, %v4305_v3  ;;  %v3395_v4 = vpop.f32.mrf.mxu0 }
 0x167   : > { %v3363_v28 = vpop.f32.mrf.mxu1  ;;  %v4380_v59 = vadd.f32 %v3395_v4, %v1287_v26 }
 0x168   : > { %v1291_v8 = vadd.f32 %v3363_v28, %v4308_v57  ;;  %v1490_v10 = vpop.f32.mrf.mxu0 }
 0x169   : > { %v1216_v56 = vpop.f32.mrf.mxu1  ;;  %v4383_v35 = vadd.f32 %v1490_v10, %v1285_v37 }
 0x16a   : > { %v1289_v18 = vadd.f32 %v1216_v56, %v4311_v39  ;;  %v3398_v25 = vpop.f32.mrf.mxu0 }
 0x16b   : > { %v3366_v63 = vpop.f32.mrf.mxu1  ;;  %v4386_v53 = vadd.f32 %v3398_v25, %v1290_v51 }
 0x16c   : > { %v1294_v24 = vadd.f32 %v3366_v63, %v4314_v17  ;;  %v1503_v30 = vpop.f32.mrf.mxu0 }
 0x16d   : > { %v1229_v3 = vpop.f32.mrf.mxu1  ;;  %v4389_v48 = vadd.f32 %v1503_v30, %v1288_v29 }
 0x16e   : > { %v1292_v44 = vadd.f32 %v1229_v3, %v4317_v34  ;;  %v3399_v33 = vpop.f32.mrf.mxu0 }
 0x16f   : > { %v3367_v57 = vpop.f32.mrf.mxu1  ;;  %v4392_v52 = vadd.f32 %v3399_v33, %v1291_v8 }
 0x170   : > { %v1295_v46 = vadd.f32 %v3367_v57, %v4320_v49  ;;  %v1506_v45 = vpop.f32.mrf.mxu0 }
 0x171   : > { %v1232_v39 = vpop.f32.mrf.mxu1  ;;  %v4395_v9 = vadd.f32 %v1506_v45, %v1289_v18 }
 0x172   : > { %v1293_v31 = vadd.f32 %v1232_v39, %v4323_v22  ;;  %v3402_v23 = vpop.f32.mrf.mxu0 }
 0x173   : > { %v3370_v17 = vpop.f32.mrf.mxu1  ;;  %v4398_v21 = vadd.f32 %v3402_v23, %v1294_v24 }
 0x174   : > { %v1298_v47 = vadd.f32 %v3370_v17, %v4326_v11  ;;  %v1519_v16 = vpop.f32.mrf.mxu0 }
 0x175   : > { %v1245_v34 = vpop.f32.mrf.mxu1  ;;  %v4401_v55 = vadd.f32 %v1519_v16, %v1292_v44 }
 0x176   : > { %v1296_v50 = vadd.f32 %v1245_v34, %v4329_v19  ;;  %v3403_v40 = vpop.f32.mrf.mxu0 }
 0x177   : > { %4717 = vst [vmem:[#allocation8_spill] sm:$0xff] %v4401_v55  ;;  %v3371_v49 = vpop.f32.mrf.mxu1  ;;  %v4404_v26 = vadd.f32 %v3403_v40, %v1295_v46 }
 0x178   : > { %v1299_v62 = vadd.f32 %v3371_v49, %v4332_v60  ;;  %v1522_v5 = vpop.f32.mrf.mxu0 }
 0x179   : > { %4718 = vst [vmem:[#allocation9_spill] sm:$0xff] %v4404_v26  ;;  %v1248_v22 = vpop.f32.mrf.mxu1  ;;  %v4407_v37 = vadd.f32 %v1522_v5, %v1293_v31 }
 0x17a   : > { %v1297_v20 = vadd.f32 %v1248_v22, %v4335_v43  ;;  %v3406_v7 = vpop.f32.mrf.mxu0 }
 0x17b   : > { %4719 = vst [vmem:[#allocation10_spill] sm:$0xff] %v4407_v37  ;;  %v3374_v11 = vpop.f32.mrf.mxu1  ;;  %v4410_v51 = vadd.f32 %v3406_v7, %v1298_v47 }
 0x17c   : > { %v1302_v41 = vadd.f32 %v3374_v11, %v4337_v61  ;;  %v1535_v14 = vpop.f32.mrf.mxu0 }
 0x17d   : > { %4720 = vst [vmem:[#allocation11_spill] sm:$0xff] %v4410_v51  ;;  %v1261_v19 = vpop.f32.mrf.mxu1  ;;  %v4413_v29 = vadd.f32 %v1535_v14, %v1296_v50 }
 0x17e   : > { %v1300_v15 = vadd.f32 %v1261_v19, %v4340_v42  ;;  %v3407_v28 = vpop.f32.mrf.mxu0 }
 0x17f   : > { %4721 = vst [vmem:[#allocation12_spill] sm:$0xff] %v4413_v29  ;;  %v3375_v60 = vpop.f32.mrf.mxu1  ;;  %v4416_v8 = vadd.f32 %v3407_v28, %v1299_v62 }
 0x180   : > { %v1303_v4 = vadd.f32 %v3375_v60, %v4343_v38  ;;  %v1538_v56 = vpop.f32.mrf.mxu0 }
 0x181   : > { %4722 = vst [vmem:[#allocation13_spill] sm:$0xff] %v4416_v8  ;;  %v1264_v43 = vpop.f32.mrf.mxu1  ;;  %v4419_v18 = vadd.f32 %v1538_v56, %v1297_v20 }
 0x182   : > { %v1301_v10 = vadd.f32 %v1264_v43, %v4346_v1  ;;  %v3410_v61 = vpop.f32.mrf.mxu0 }
 0x183   : > { %4723 = vst [vmem:[#allocation14_spill] sm:$0xff] %v4419_v18  ;;  %v4421_v63 = vpop.f32.mrf.mxu1  ;;  %v4423_v25 = vadd.f32 %v3410_v61, %v1302_v41 }
 0x184   : > { %v1551_v42 = vpop.f32.mrf.mxu0 }
 0x185   : > { %4724 = vst [vmem:[#allocation15_spill] sm:$0xff] %v4423_v25  ;;  %v4425_v24 = vpop.f32.mrf.mxu1  ;;  %v4427_v3 = vadd.f32 %v1551_v42, %v1300_v15 }
 0x186   : > { %v3411_v30 = vpop.f32.mrf.mxu0 }
 0x187   : > { %4725 = vst [vmem:[#allocation16_spill] sm:$0xff] %v4427_v3  ;;  %v4429_v38 = vpop.f32.mrf.mxu1  ;;  %v4431_v44 = vadd.f32 %v3411_v30, %v1303_v4 }
 0x188   : > { %v1554_v57 = vpop.f32.mrf.mxu0 }
 0x189   : > { %4726 = vst [vmem:[#allocation17_spill] sm:$0xff] %v4431_v44  ;;  %v4433_v33 = vpop.f32.mrf.mxu1  ;;  %v4435_v1 = vadd.f32 %v1554_v57, %v1301_v10 }
 0x18a   : > { %v3458_v39 = vpop.f32.mrf.mxu0 }
 0x18b   : > { %4727 = vst [vmem:[#allocation18_spill] sm:$0xff] %v4435_v1  ;;  %v4437_v46 = vpop.f32.mrf.mxu1 }
 0x18c   : > { %v2035_v31 = vpop.f32.mrf.mxu0 }
 0x18d   : > { %v4439_v45 = vpop.f32.mrf.mxu1 }
 0x18e   : > { %v3459_v23 = vpop.f32.mrf.mxu0 }
 0x18f   : > { %v4441_v17 = vpop.f32.mrf.mxu1 }
 0x190   : > { %v4445_v34 = vpop.f32.mrf.mxu0 }
 0x191   : > { %v4443_v47 = vpop.f32.mrf.mxu1 }
 0x192   : > { %v4449_v50 = vpop.f32.mrf.mxu0 }
 0x193   : > { %v4447_v16 = vpop.f32.mrf.mxu1 }
 0x194   : > { %v4453_v40 = vpop.f32.mrf.mxu0 }
 0x195   : > { %v4451_v49 = vpop.f32.mrf.mxu1 }
 0x196   : > { %v4457_v22 = vpop.f32.mrf.mxu0 }
 0x197   : > { %v4455_v62 = vpop.f32.mrf.mxu1 }
 0x198   : > { %v4461_v20 = vpop.f32.mrf.mxu0 }
 0x199   : > { %v4459_v5 = vpop.f32.mrf.mxu1 }
 0x19a   : > { %v4465_v7 = vpop.f32.mrf.mxu0 }
 0x19b   : > { %v4463_v11 = vpop.f32.mrf.mxu1 }
 0x19c   : > { %v4469_v19 = vpop.f32.mrf.mxu0 }
 0x19d   : > { %v4467_v41 = vpop.f32.mrf.mxu1 }
 0x19e   : > { %v4473_v15 = vpop.f32.mrf.mxu0 }
 0x19f   : > { %v4471_v14 = vpop.f32.mrf.mxu1 }
 0x1a0   : > { %v4477_v28 = vpop.f32.mrf.mxu0 }
 0x1a1   : > { %v4475_v60 = vpop.f32.mrf.mxu1 }
 0x1a2   : > { %v4481_v43 = vpop.f32.mrf.mxu0 }
 0x1a3   : > { %v4479_v4 = vpop.f32.mrf.mxu1 }
 0x1a4   : > { %v4485_v10 = vpop.f32.mrf.mxu0 }
 0x1a5   : > { %v4483_v56 = vpop.f32.mrf.mxu1 }
 0x1a6   : > { %4728 = vst [vmem:[#allocation19_spill] sm:$0xff] %v4483_v56  ;;  %v4489_v42 = vpop.f32.mrf.mxu0 }
 0x1a7   : > { %v4487_v61 = vpop.f32.mrf.mxu1 }
 0x1a8   : > { %4729 = vst [vmem:[#allocation20_spill] sm:$0xff] %v4487_v61  ;;  %v4493_v57 = vpop.f32.mrf.mxu0 }
 0x1a9   : > { %v4491_v30 = vpop.f32.mrf.mxu1  ;;  %4731 = vst [vmem:[#allocation22_spill] sm:$0xff] %v4493_v57  ;;  %v4542_v57 = vld [vmem:[#allocation4] ss:$0 sm:$0xff] }
 0x1aa   : > { %4730 = vst [vmem:[#allocation21_spill] sm:$0xff] %v4491_v30  ;;  %v4497_v44 = vpop.f32.mrf.mxu0 }
 0x1ab   : > { %v4495_v1 = vpop.f32.mrf.mxu1  ;;  %4733 = vst [vmem:[#allocation24_spill] sm:$0xff] %v4497_v44 }
 0x1ac   : > { %4732 = vst [vmem:[#allocation23_spill] sm:$0xff] %v4495_v1  ;;  %v4501_v25 = vpop.f32.mrf.mxu0 }
 0x1ad   : > { %v4499_v3 = vpop.f32.mrf.mxu1  ;;  %4735 = vst [vmem:[#allocation26_spill] sm:$0xff] %v4501_v25 }
 0x1ae   : > { %4734 = vst [vmem:[#allocation25_spill] sm:$0xff] %v4499_v3  ;;  %v4505_v8 = vpop.f32.mrf.mxu0 }
 0x1af   : > { %v4503_v18 = vpop.f32.mrf.mxu1  ;;  %4737 = vst [vmem:[#allocation28_spill] sm:$0xff] %v4505_v8 }
 0x1b0   : > { %4736 = vst [vmem:[#allocation27_spill] sm:$0xff] %v4503_v18  ;;  %v4509_v51 = vpop.f32.mrf.mxu0 }
 0x1b1   : > { %v4507_v29 = vpop.f32.mrf.mxu1  ;;  %4739 = vst [vmem:[#allocation30_spill] sm:$0xff] %v4509_v51 }
 0x1b2   : > { %4738 = vst [vmem:[#allocation29_spill] sm:$0xff] %v4507_v29  ;;  %v4513_v30 = vpop.f32.mrf.mxu0 }
 0x1b3   : > { %v4511_v37 = vpop.f32.mrf.mxu1  ;;  %4741 = vst [vmem:[#allocation32_spill] sm:$0xff] %v4513_v30 }
 0x1b4   : > { %4740 = vst [vmem:[#allocation31_spill] sm:$0xff] %v4511_v37  ;;  %v4517_v1 = vpop.f32.mrf.mxu0 }
 0x1b5   : > { %v4515_v61 = vpop.f32.mrf.mxu1  ;;  %4743 = vst [vmem:[#allocation34_spill] sm:$0xff] %v4517_v1 }
 0x1b6   : > { %4742 = vst [vmem:[#allocation33_spill] sm:$0xff] %v4515_v61  ;;  %v4521_v25 = vpop.f32.mrf.mxu0  ;;  %v1858_v61 = vadd.f32 %v4421_v63, %v4350_v2  ;;  %v1857_v2 = vadd.f32 %v4433_v33, %v4359_v6 }
 0x1b7   : > { %v4519_v3 = vpop.f32.mrf.mxu1  ;;  %4745 = vst [vmem:[#allocation36_spill] sm:$0xff] %v4521_v25 }
 0x1b8   : > { %4744 = vst [vmem:[#allocation35_spill] sm:$0xff] %v4519_v3  ;;  %v4525_v8 = vpop.f32.mrf.mxu0  ;;  %v1856_v3 = vadd.f32 %v4425_v24, %v4353_v54  ;;  %v2148_v25 = vadd.f32 %v3458_v39, %v1858_v61  ;;  %v1862_v24 = vadd.f32 %v4437_v46, %v4362_v12 }
 0x1b9   : > { %v4523_v18 = vpop.f32.mrf.mxu1  ;;  %4747 = vst [vmem:[#allocation38_spill] sm:$0xff] %v4525_v8 }
 0x1ba   : > { %4746 = vst [vmem:[#allocation37_spill] sm:$0xff] %v4523_v18  ;;  %v4527_v29 = vpop.f32.mrf.mxu0  ;;  %v2146_v8 = vadd.f32 %v2035_v31, %v1856_v3 }
 0x1bb   : > { %4748 = vst [vmem:[#allocation39_spill] sm:$0xff] %v4527_v29  ;;  %v3494_v51 = vpop.f32.mrf.mxu1  ;;  %v1859_v29 = vadd.f32 %v4429_v38, %v4356_v58 }
 0x1bc   : > { %v4529_v26 = vpop.f32.mrf.mxu0 }
 0x1bd   : > { %4749 = vst [vmem:[#allocation40_spill] sm:$0xff] %v4529_v26  ;;  %v2325_v37 = vpop.f32.mrf.mxu1  ;;  %v2438_v26 = vadd.f32 %v3494_v51, %v2148_v25  ;;  %v2149_v63 = vadd.f32 %v3459_v23, %v1859_v29  ;;  %v2147_v25 = vadd.f32 %v4445_v34, %v1857_v2 }
 0x1be   : > { %v4533_v30 = vpop.f32.mrf.mxu0 }
 0x1bf   : > { %4750 = vst [vmem:[#allocation41_spill] sm:$0xff] %v4533_v30  ;;  %v3495_v1 = vpop.f32.mrf.mxu1  ;;  %v2436_v30 = vadd.f32 %v2325_v37, %v2146_v8  ;;  %v2152_v37 = vadd.f32 %v4449_v50, %v1862_v24 }
 0x1c0   : > { %v4537_v44 = vpop.f32.mrf.mxu0  ;;  %v2439_v3 = vadd.f32 %v3495_v1, %v2149_v63  ;;  %v1863_v1 = vadd.f32 %v4441_v17, %v4368_v27 }
 0x1c1   : > { %v2328_v18 = vpop.f32.mrf.mxu1 }
 0x1c2   : > { %v3530_v55 = vpop.f32.mrf.mxu0  ;;  %v2437_v8 = vadd.f32 %v2328_v18, %v2147_v25  ;;  %v2153_v61 = vadd.f32 %v4457_v22, %v1863_v1  ;;  %v1864_v22 = vadd.f32 %v4451_v49, %v4377_v0 }
 0x1c3   : > { %v3498_v56 = vpop.f32.mrf.mxu1  ;;  %v2728_v54 = vadd.f32 %v3530_v55, %v2438_v26  ;;  %v1860_v55 = vadd.f32 %v4439_v45, %v4365_v13  ;;  %v1861_v45 = vadd.f32 %v4443_v47, %v4371_v32 }
 0x1c4   : > { %v2615_v51 = vpop.f32.mrf.mxu0  ;;  %v2442_v23 = vadd.f32 %v3498_v56, %v2152_v37 }
 0x1c5   : > { %v2341_v58 = vpop.f32.mrf.mxu1  ;;  %v2763_v6 = vadd.f32 %v4542_v57, %v2728_v54  ;;  %v2726_v29 = vadd.f32 %v2615_v51, %v2436_v30  ;;  %v2150_v31 = vadd.f32 %v4453_v40, %v1860_v55  ;;  %v1866_v40 = vadd.f32 %v4447_v16, %v4374_v36 }
 0x1c6   : > { %v3531_v12 = vpop.f32.mrf.mxu0  ;;  %v2151_v63 = vadd.f32 %v4461_v20, %v1861_v45  ;;  %v1867_v20 = vadd.f32 %v4455_v62, %v4380_v59 }
 0x1c7   : > { %v3499_v26 = vpop.f32.mrf.mxu1  ;;  %2791 = vst.msk [vmem:[%s4551_s9 + $0x10] sm:$0xff] %vm325_vm0, %v2763_v6  ;;  %v2761_v38 = vadd.f32 %v4542_v57, %v2726_v29  ;;  %v2729_v33 = vadd.f32 %v3531_v12, %v2439_v3  ;;  %v2440_v30 = vadd.f32 %v2341_v58, %v2150_v31  ;;  %v2156_v51 = vadd.f32 %v4465_v7, %v1866_v40 }
 0x1c8   : > { %v2618_v39 = vpop.f32.mrf.mxu0  ;;  %v2443_v54 = vadd.f32 %v3499_v26, %v2153_v61  ;;  %v2154_v29 = vadd.f32 %v4469_v19, %v1864_v22  ;;  %v1865_v7 = vadd.f32 %v4459_v5, %v4383_v35  ;;  %v2157_v37 = vadd.f32 %v4473_v15, %v1867_v20 }
 0x1c9   : > { %v2344_v46 = vpop.f32.mrf.mxu1  ;;  %2789 = vst.msk [vmem:[%s4551_s9] sm:$0xff] %vm325_vm0, %v2761_v38  ;;  %v2764_v13 = vadd.f32 %v4542_v57, %v2729_v33  ;;  %v2727_v18 = vadd.f32 %v2618_v39, %v2437_v8  ;;  %v1870_v19 = vadd.f32 %v4463_v11, %v4386_v53  ;;  %v1868_v15 = vadd.f32 %v4467_v41, %v4389_v48 }
 0x1ca   : > { %v3534_v50 = vpop.f32.mrf.mxu0  ;;  %v2441_v25 = vadd.f32 %v2344_v46, %v2151_v63  ;;  %v2155_v1 = vadd.f32 %v4477_v28, %v1865_v7  ;;  %v1871_v28 = vadd.f32 %v4471_v14, %v4392_v52 }
 0x1cb   : > { %v3502_v34 = vpop.f32.mrf.mxu1  ;;  %2792 = vst.msk [vmem:[%s4551_s9 + $0x18] sm:$0xff] %vm325_vm0, %v2764_v13  ;;  %v2762_v27 = vadd.f32 %v4542_v57, %v2727_v18  ;;  %v2732_v17 = vadd.f32 %v3534_v50, %v2442_v23  ;;  %v2160_v23 = vadd.f32 %v4481_v43, %v1870_v19  ;;  %v1869_v43 = vadd.f32 %v4475_v60, %v4395_v9 }
 0x1cc   : > { %v2631_v2 = vpop.f32.mrf.mxu0  ;;  %v2446_v55 = vadd.f32 %v3502_v34, %v2156_v51  ;;  %v2158_v34 = vadd.f32 %v4485_v10, %v1868_v15  ;;  %v1874_v10 = vadd.f32 %v4479_v4, %v4398_v21 }
 0x1cd   : > { %v2357_v56 = vpop.f32.mrf.mxu1  ;;  %2790 = vst.msk [vmem:[%s4551_s9 + $0x8] sm:$0xff] %vm325_vm0, %v2762_v27  ;;  %v2767_v32 = vadd.f32 %v4542_v57, %v2732_v17  ;;  %v2730_v47 = vadd.f32 %v2631_v2, %v2440_v30  ;;  %v2161_v27 = vadd.f32 %v4489_v42, %v1871_v28  ;;  %v4751_v2 = vld [vmem:[#allocation22_spill] sm:$0xff]  ;;  %v4752_v42 = vld [vmem:[#allocation8_spill] sm:$0xff] }
 0x1ce   : > { %v3535_v58 = vpop.f32.mrf.mxu0  ;;  %v2444_v8 = vadd.f32 %v2357_v56, %v2154_v29  ;;  %v2159_v63 = vadd.f32 %v4751_v2, %v1869_v43  ;;  %v4757_v29 = vld [vmem:[#allocation26_spill] sm:$0xff]  ;;  %v4764_v28 = vld [vmem:[#allocation12_spill] sm:$0xff] }
 0x1cf   : > { %v3503_v24 = vpop.f32.mrf.mxu1  ;;  %2795 = vst.msk [vmem:[%s4551_s9 + $0x30] sm:$0xff] %vm325_vm0, %v2767_v32  ;;  %v2765_v36 = vadd.f32 %v4542_v57, %v2730_v47  ;;  %v2733_v16 = vadd.f32 %v3535_v58, %v2443_v54  ;;  %v4753_v32 = vld [vmem:[#allocation19_spill] sm:$0xff]  ;;  %v4754_v58 = vld [vmem:[#allocation24_spill] sm:$0xff] }
 0x1d0   : > { %v2634_v6 = vpop.f32.mrf.mxu0  ;;  %v2447_v46 = vadd.f32 %v3503_v24, %v2157_v37  ;;  %v1872_v47 = vadd.f32 %v4753_v32, %v4752_v42  ;;  %v2164_v51 = vadd.f32 %v4754_v58, %v1874_v10 }
 0x1d1   : > { %v2360_v3 = vpop.f32.mrf.mxu1  ;;  %2793 = vst.msk [vmem:[%s4551_s9 + $0x20] sm:$0xff] %vm325_vm0, %v2765_v36  ;;  %v2768_v0 = vadd.f32 %v4542_v57, %v2733_v16  ;;  %v2731_v49 = vadd.f32 %v2634_v6, %v2441_v25  ;;  %v4755_v36 = vld [vmem:[#allocation9_spill] sm:$0xff]  ;;  %v4756_v16 = vld [vmem:[#allocation20_spill] sm:$0xff] }
 0x1d2   : > { %v3538_v12 = vpop.f32.mrf.mxu0  ;;  %v2445_v13 = vadd.f32 %v2360_v3, %v2155_v1  ;;  %v1875_v20 = vadd.f32 %v4756_v16, %v4755_v36 }
 0x1d3   : > { %v3506_v26 = vpop.f32.mrf.mxu1  ;;  %2796 = vst.msk [vmem:[%s4551_s9 + $0x38] sm:$0xff] %vm325_vm0, %v2768_v0  ;;  %v2766_v59 = vadd.f32 %v4542_v57, %v2731_v49  ;;  %v2736_v62 = vadd.f32 %v3538_v12, %v2446_v55  ;;  %v2162_v55 = vadd.f32 %v4757_v29, %v1872_v47  ;;  %v4759_v12 = vld [vmem:[#allocation21_spill] sm:$0xff] }
 0x1d4   : > { %v2647_v33 = vpop.f32.mrf.mxu0  ;;  %v2450_v50 = vadd.f32 %v3506_v26, %v2160_v23  ;;  %v4758_v26 = vld [vmem:[#allocation10_spill] sm:$0xff] }
 0x1d5   : > { %v2373_v38 = vpop.f32.mrf.mxu1  ;;  %2794 = vst.msk [vmem:[%s4551_s9 + $0x28] sm:$0xff] %vm325_vm0, %v2766_v59  ;;  %v2771_v35 = vadd.f32 %v4542_v57, %v2736_v62  ;;  %v2734_v5 = vadd.f32 %v2647_v33, %v2444_v8  ;;  %v1873_v37 = vadd.f32 %v4759_v12, %v4758_v26  ;;  %v4760_v62 = vld [vmem:[#allocation28_spill] sm:$0xff] }
 0x1d6   : > { %v3539_v31 = vpop.f32.mrf.mxu0  ;;  %v2448_v17 = vadd.f32 %v2373_v38, %v2158_v34  ;;  %v2165_v19 = vadd.f32 %v4760_v62, %v1875_v20 }
 0x1d7   : > { %v3507_v39 = vpop.f32.mrf.mxu1  ;;  %2799 = vst.msk [vmem:[%s4551_s9 + $0x50] sm:$0xff] %vm325_vm0, %v2771_v35  ;;  %v2769_v53 = vadd.f32 %v4542_v57, %v2734_v5  ;;  %v2737_v11 = vadd.f32 %v3539_v31, %v2447_v46  ;;  %v4761_v46 = vld [vmem:[#allocation11_spill] sm:$0xff]  ;;  %v4763_v31 = vld [vmem:[#allocation30_spill] sm:$0xff] }
 0x1d8   : > { %v2650_v45 = vpop.f32.mrf.mxu0  ;;  %v2451_v54 = vadd.f32 %v3507_v39, %v2161_v27  ;;  %v4762_v35 = vld [vmem:[#allocation23_spill] sm:$0xff]  ;;  %v2163_v23 = vadd.f32 %v4763_v31, %v1873_v37  ;;  %v4767_v27 = vld [vmem:[#allocation13_spill] sm:$0xff] }
 0x1d9   : > { %v2376_v18 = vpop.f32.mrf.mxu1  ;;  %2797 = vst.msk [vmem:[%s4551_s9 + $0x40] sm:$0xff] %vm325_vm0, %v2769_v53  ;;  %v2772_v48 = vadd.f32 %v4542_v57, %v2737_v11  ;;  %v2735_v41 = vadd.f32 %v2650_v45, %v2445_v13  ;;  %v1878_v5 = vadd.f32 %v4762_v35, %v4761_v46  ;;  %v4778_v37 = vld [vmem:[#allocation39_spill] sm:$0xff] }
 0x1da   : > { %v3542_v30 = vpop.f32.mrf.mxu0  ;;  %v2449_v25 = vadd.f32 %v2376_v18, %v2159_v63  ;;  %v4765_v18 = vld [vmem:[#allocation25_spill] sm:$0xff] }
 0x1db   : > { %v3510_v61 = vpop.f32.mrf.mxu1  ;;  %2800 = vst.msk [vmem:[%s4551_s9 + $0x58] sm:$0xff] %vm325_vm0, %v2772_v48  ;;  %v2770_v52 = vadd.f32 %v4542_v57, %v2735_v41  ;;  %v2740_v14 = vadd.f32 %v3542_v30, %v2450_v50  ;;  %v1876_v45 = vadd.f32 %v4765_v18, %v4764_v28  ;;  %v4766_v48 = vld [vmem:[#allocation32_spill] sm:$0xff]  ;;  %v4784_v18 = vld [vmem:[#allocation41_spill] sm:$0xff] }
 0x1dc   : > { %v2663_v56 = vpop.f32.mrf.mxu0  ;;  %v2454_v0 = vadd.f32 %v3510_v61, %v2164_v51  ;;  %v2168_v41 = vadd.f32 %v4766_v48, %v1878_v5  ;;  %v4781_v5 = vld [vmem:[#allocation40_spill] sm:$0xff] }
 0x1dd   : > { %v2389_v40 = vpop.f32.mrf.mxu1  ;;  %2798 = vst.msk [vmem:[%s4551_s9 + $0x48] sm:$0xff] %vm325_vm0, %v2770_v52  ;;  %v2775_v9 = vadd.f32 %v4542_v57, %v2740_v14  ;;  %v2738_v60 = vadd.f32 %v2663_v56, %v2448_v17  ;;  %v4768_v17 = vld [vmem:[#allocation27_spill] sm:$0xff] }
 0x1de   : > { %v3543_v24 = vpop.f32.mrf.mxu0  ;;  %v2452_v38 = vadd.f32 %v2389_v40, %v2162_v55  ;;  %v1879_v52 = vadd.f32 %v4768_v17, %v4767_v27  ;;  %v4769_v40 = vld [vmem:[#allocation34_spill] sm:$0xff] }
 0x1df   : > { %v3511_v22 = vpop.f32.mrf.mxu1  ;;  %2803 = vst.msk [vmem:[%s4551_s9 + $0x70] sm:$0xff] %vm325_vm0, %v2775_v9  ;;  %v2773_v21 = vadd.f32 %v4542_v57, %v2738_v60  ;;  %v2741_v4 = vadd.f32 %v3543_v24, %v2451_v54  ;;  %v2166_v56 = vadd.f32 %v4769_v40, %v1876_v45  ;;  %v4770_v9 = vld [vmem:[#allocation14_spill] sm:$0xff]  ;;  %v4771_v60 = vld [vmem:[#allocation29_spill] sm:$0xff] }
 0x1e0   : > { %v2666_v6 = vpop.f32.mrf.mxu0  ;;  %v2455_v13 = vadd.f32 %v3511_v22, %v2165_v19  ;;  %v1877_v42 = vadd.f32 %v4771_v60, %v4770_v9  ;;  %v4772_v22 = vld [vmem:[#allocation36_spill] sm:$0xff] }
 0x1e1   : > { %v2392_v3 = vpop.f32.mrf.mxu1  ;;  %2801 = vst.msk [vmem:[%s4551_s9 + $0x60] sm:$0xff] %vm325_vm0, %v2773_v21  ;;  %v2776_v49 = vadd.f32 %v4542_v57, %v2741_v4  ;;  %v2739_v7 = vadd.f32 %v2666_v6, %v2449_v25  ;;  %v2169_v24 = vadd.f32 %v4772_v22, %v1879_v52  ;;  %v4773_v21 = vld [vmem:[#allocation15_spill] sm:$0xff] }
 0x1e2   : > { %v3546_v59 = vpop.f32.mrf.mxu0  ;;  %v2453_v43 = vadd.f32 %v2392_v3, %v2163_v23  ;;  %v4774_v4 = vld [vmem:[#allocation31_spill] sm:$0xff]  ;;  %v4775_v3 = vld [vmem:[#allocation38_spill] sm:$0xff] }
 0x1e3   : > { %v3514_v8 = vpop.f32.mrf.mxu1  ;;  %2804 = vst.msk [vmem:[%s4551_s9 + $0x78] sm:$0xff] %vm325_vm0, %v2776_v49  ;;  %v2774_v33 = vadd.f32 %v4542_v57, %v2739_v7  ;;  %v2744_v1 = vadd.f32 %v3546_v59, %v2454_v0  ;;  %v1882_v36 = vadd.f32 %v4774_v4, %v4773_v21  ;;  %v2167_v6 = vadd.f32 %v4775_v3, %v1877_v42  ;;  %v4776_v49 = vld [vmem:[#allocation16_spill] sm:$0xff]  ;;  %v4777_v7 = vld [vmem:[#allocation33_spill] sm:$0xff] }
 0x1e4   : > { %v2679_v39 = vpop.f32.mrf.mxu0  ;;  %v2458_v2 = vadd.f32 %v3514_v8, %v2168_v41  ;;  %v1880_v26 = vadd.f32 %v4777_v7, %v4776_v49 }
 0x1e5   : > { %v2405_v15 = vpop.f32.mrf.mxu1  ;;  %2802 = vst.msk [vmem:[%s4551_s9 + $0x68] sm:$0xff] %vm325_vm0, %v2774_v33  ;;  %v2779_v53 = vadd.f32 %v4542_v57, %v2744_v1  ;;  %v2742_v11 = vadd.f32 %v2679_v39, %v2452_v38  ;;  %v2172_v8 = vadd.f32 %v4778_v37, %v1882_v36  ;;  %v4779_v38 = vld [vmem:[#allocation17_spill] sm:$0xff]  ;;  %v4780_v33 = vld [vmem:[#allocation35_spill] sm:$0xff] }
 0x1e6   : > { %v3547_v50 = vpop.f32.mrf.mxu0  ;;  %v2456_v58 = vadd.f32 %v2405_v15, %v2166_v56  ;;  %v1883_v1 = vadd.f32 %v4780_v33, %v4779_v38  ;;  %v2170_v15 = vadd.f32 %v4781_v5, %v1880_v26 }
 0x1e7   : > { %v3515_v34 = vpop.f32.mrf.mxu1  ;;  %2807 = vst.msk [vmem:[%s4551_s9 + $0x90] sm:$0xff] %vm325_vm0, %v2779_v53  ;;  %v2777_v61 = vadd.f32 %v4542_v57, %v2742_v11  ;;  %v2745_v30 = vadd.f32 %v3547_v50, %v2455_v13  ;;  %v4782_v13 = vld [vmem:[#allocation18_spill] sm:$0xff]  ;;  %v4783_v53 = vld [vmem:[#allocation37_spill] sm:$0xff] }
 0x1e8   : > { %v2682_v10 = vpop.f32.mrf.mxu0  ;;  %v2459_v29 = vadd.f32 %v3515_v34, %v2169_v24  ;;  %v1881_v11 = vadd.f32 %v4783_v53, %v4782_v13  ;;  %v2173_v45 = vadd.f32 %v4784_v18, %v1883_v1 }
 0x1e9   : > { %v2408_v14 = vpop.f32.mrf.mxu1  ;;  %2805 = vst.msk [vmem:[%s4551_s9 + $0x80] sm:$0xff] %vm325_vm0, %v2777_v61  ;;  %v2780_v63 = vadd.f32 %v4542_v57, %v2745_v30  ;;  %v2743_v54 = vadd.f32 %v2682_v10, %v2453_v43 }
 0x1ea   : > { %v3550_v47 = vpop.f32.mrf.mxu0  ;;  %v2457_v59 = vadd.f32 %v2408_v14, %v2167_v6  ;;  %v2171_v61 = vadd.f32 %v4537_v44, %v1881_v11 }
 0x1eb   : > { %v3518_v32 = vpop.f32.mrf.mxu1  ;;  %2808 = vst.msk [vmem:[%s4551_s9 + $0x98] sm:$0xff] %vm325_vm0, %v2780_v63  ;;  %v2778_v51 = vadd.f32 %v4542_v57, %v2743_v54  ;;  %v2748_v25 = vadd.f32 %v3550_v47, %v2458_v2 }
 0x1ec   : > { %v2695_v20 = vpop.f32.mrf.mxu0  ;;  %v2462_v39 = vadd.f32 %v3518_v32, %v2172_v8 }
 0x1ed   : > { %v2421_v16 = vpop.f32.mrf.mxu1  ;;  %2806 = vst.msk [vmem:[%s4551_s9 + $0x88] sm:$0xff] %vm325_vm0, %v2778_v51  ;;  %v2783_v55 = vadd.f32 %v4542_v57, %v2748_v25  ;;  %v2746_v0 = vadd.f32 %v2695_v20, %v2456_v58 }
 0x1ee   : > { %v3551_v12 = vpop.f32.mrf.mxu0  ;;  %v2460_v34 = vadd.f32 %v2421_v16, %v2170_v15 }
 0x1ef   : > { %2811 = vst.msk [vmem:[%s4551_s9 + $0xb0] sm:$0xff] %vm325_vm0, %v2783_v55  ;;  %v2781_v62 = vadd.f32 %v4542_v57, %v2746_v0  ;;  %v2749_v19 = vadd.f32 %v3551_v12, %v2459_v29  ;;  %v3519_v46 = vpop.f32.mrf.mxu1 }
 0x1f0   : > { %v2698_v35 = vpop.f32.mrf.mxu0  ;;  %v2463_v30 = vadd.f32 %v3519_v46, %v2173_v45 }
 0x1f1   : > { %2809 = vst.msk [vmem:[%s4551_s9 + $0xa0] sm:$0xff] %vm325_vm0, %v2781_v62  ;;  %v2784_v31 = vadd.f32 %v4542_v57, %v2749_v19  ;;  %v2747_v23 = vadd.f32 %v2698_v35, %v2457_v59  ;;  %v2424_v41 = vpop.f32.mrf.mxu1 }
 0x1f2   : > { %v3554_v28 = vpop.f32.mrf.mxu0  ;;  %v2461_v14 = vadd.f32 %v2424_v41, %v2171_v61 }
 0x1f3   : > { %2812 = vst.msk [vmem:[%s4551_s9 + $0xb8] sm:$0xff] %vm325_vm0, %v2784_v31  ;;  %v2782_v50 = vadd.f32 %v4542_v57, %v2747_v23  ;;  %v2752_v48 = vadd.f32 %v3554_v28, %v2462_v39 }
 0x1f4   : > { %v2711_v43 = vpop.f32.mrf.mxu0 }
 0x1f5   : > { %2810 = vst.msk [vmem:[%s4551_s9 + $0xa8] sm:$0xff] %vm325_vm0, %v2782_v50  ;;  %v2787_v27 = vadd.f32 %v4542_v57, %v2752_v48  ;;  %v2750_v17 = vadd.f32 %v2711_v43, %v2460_v34 }
 0x1f6   : > { %v3555_v52 = vpop.f32.mrf.mxu0 }
 0x1f7   : > { %2815 = vst.msk [vmem:[%s4551_s9 + $0xd0] sm:$0xff] %vm325_vm0, %v2787_v27  ;;  %v2785_v10 = vadd.f32 %v4542_v57, %v2750_v17  ;;  %v2753_v40 = vadd.f32 %v3555_v52, %v2463_v30 }
 0x1f8   : > { %v2714_v56 = vpop.f32.mrf.mxu0 }
 0x1f9   : > { %2813 = vst.msk [vmem:[%s4551_s9 + $0xc0] sm:$0xff] %vm325_vm0, %v2785_v10  ;;  %v2788_v2 = vadd.f32 %v4542_v57, %v2753_v40  ;;  %v2751_v44 = vadd.f32 %v2714_v56, %v2461_v14 }
 0x1fb   : > { %2816 = vst.msk [vmem:[%s4551_s9 + $0xd8] sm:$0xff] %vm325_vm0, %v2788_v2  ;;  %v2786_v63 = vadd.f32 %v4542_v57, %v2751_v44 }
 0x1fd   : > { %2814 = vst.msk [vmem:[%s4551_s9 + $0xc8] sm:$0xff] %vm325_vm0, %v2786_v63 }
 0x1fe PF: > { %s15_s12 = sadd.s32 1, %s3699_s12  }
 0x1ff   : > { %p12_p2 = scmp.ge.s32.totalorder %s15_s12, 4  }
 0x201   :  { %14 = sbr.rel (!%p12_p2) target bundleno = 2 (0x2), region = 79 }
 0x206   :  { %2838 = vsyncpa [#allocation3], 1 }
 0x207   :  { %2840 = vsyncpa [#allocation3 + $0x1], 1 }
 0x208   :  { %2841 = vsyncpa [#allocation5], 1 }

// kernel: vgg3_forward.10
= control target key start
LH: loop header
LB: loop body
LE: loop exit
PB: predicated region body
PF: predicated region fallthrough
CT: control target
= control target key end

     0   :  { %9 = vsyncpa [#allocation3], 0  ;;  %s9980_s0 = inlined_call_operand.vmem [shape: bf16[2,3136], index: 0, kind: input, shape index: {}]   ;;  %s9981_s1 = inlined_call_operand.hbm [shape: bf16[3136,2048], index: 1, kind: input, shape index: {}]   ;;  %s9982_s2 = inlined_call_operand.hbm [shape: f32[1,2048], index: 2, kind: input, shape index: {}]   ;;  %s9983_s3 = inlined_call_operand.hbm [shape: f32[1,2048], index: 3, kind: input, shape index: {}]   ;;  %s9984_s4 = inlined_call_operand.vmem [shape: f32[2,2048], index: 4, kind: output, shape index: {}]  }
   0x1   :  { %11 = vsyncpa [#allocation3 + $0x1], 0 }
   0x2   :  { %12 = vsyncpa [#allocation5], 0 }
   0x3   :  { %14 = vsyncpa [#allocation5 + $0x1], 0  ;;  %s8775_s15 = smov 0   ;;  %s8777_s16 = smov 0  }
   0x4   :  { %s8779_s17 = smov 0   ;;  %s8781_s18 = smov 0  }
   0x5   :  { %s8783_s19 = smov 0   ;;  %s8785_s20 = smov 0  }
   0x6 LB: > { %s9985_s21 = sadd.s32 4294967295, %s8739_s20   ;;  %s29_s22 = sadd.s32 1, %s8735_s19  ;;  %s8739_s20 = sphi %s8785_s20, %s20_s20   ;;  %s8735_s19 = sphi %s8783_s19, %s9994_s19   ;;  %s8731_s18 = sphi %s8781_s18, %s9993_s18   ;;  %s8727_s17 = sphi %s8779_s17, %s9992_s17   ;;  %s8723_s16 = sphi %s8777_s16, %s9991_s16   ;;  %s8719_s15 = sphi %s8775_s15, %s9990_s15  }
   0x7   : > { %p30_p0 = scmp.ge.s32.totalorder %s29_s22, 4  ;;  %s65_s23 = sadd.s32 1, %s8727_s17 }
   0x8   : > { %p72_p1 = scmp.ne.s32.totalorder %s8727_s17, %s8723_s16  ;;  %p73_p2 = scmp.eq.s32.totalorder %s8739_s20, 0 }
   0x9   : > { %s9996_s22 = smov (%p30_p0, %s29_s22), 0  ;;  %p78_p4 = scmp.ne.s32.totalorder %s8723_s16, %s8719_s15 }
   0xa   : > { %p74_p3 = por %p73_p2, %p72_p1  ;;  %s62_s24 = ssub.s32 %s8735_s19, %s9996_s22 }
   0xb   : > { %p79_p5 = scmp.eq.s32.totalorder %s9985_s21, 0  ;;  %p63_p6 = scmp.eq.s32.totalorder %s62_s24, 0 }
   0xc   : > { %p7367_p8 = scmp.lt.s32.totalorder %s8739_s20, 4  ;;  %s8825_s27 = sand.u32 1, %s8727_s17  }
   0xd   : > { %p8816_p7 = por %p79_p5, %p78_p4  ;;  %s7349_s29 = smul.u32 6272, %s8825_s27 }
   0xe   : > { %s8822_s26 = scalar_select %p63_p6, %s8727_s17, %s65_s23  }
   0xf   : > { %p8827_p9 = pnand %p7367_p8, %p74_p3  ;;  %s210_s30 = sand.u32 1, %s8739_s20  }
  0x10   : > { %s193_s5 = scalar_lea.vmem [#allocation2], %s7349_s29  ;;  %s6542_s7 = sshll.u32 %s8825_s27, 2 }
  0x11   : > { %s200_s6 = sshll.u32 %s193_s5, 4  ;;  %s7347_s8 = sshll.u32 %s8735_s19, 6  ;;  %s8834_s6 = int_to_ptr.vmem [resolvable:$true] %s200_s6 }
  0x12   : > { %s214_s9 = scalar_lea.vmem [#allocation4], %s6542_s7  ;;  %s220_s13 = scalar_lea.hbm %s9982_s2, %s7347_s8 }
  0x13   : > { %s222_s10 = sshll.u32 %s214_s9, 4  ;;  %s8842_s14 = scalar_lea.sflag [#allocation5], %s210_s30  ;;  %s223_s10 = int_to_ptr.vmem [resolvable:$true] %s222_s10 }
  0x14   : > { %p8603_p10 = pneg %p8827_p9  ;;  %s8614_s15 = scalar_lea.vmem %s223_s10, 64 }
  0x15   : > { %p8615_p11 = scmp.ne.s32.totalorder %s223_s10, %s8614_s15  ;;  %s8741_s23 = smov [#allocation4]  }
  0x16   : > { %s8619_s24 = sshll.u32 %s8741_s23, 4  ;;  %s8620_s24 = int_to_ptr.vmem [resolvable:$false] %s8619_s24 }
  0x17   : > { %p8617_p12 = pnand %p8615_p11, %p8603_p10  ;;  %s8621_s29 = scalar_lea.vmem %s8620_s24, 128 }
  0x18   : > { %p8622_p0 = scmp.lt.s32.totalorder %s223_s10, %s8620_s24  ;;  %p8623_p1 = scmp.lt.s32.totalorder %s8621_s29, %s8614_s15 }
  0x19   : > { %p8618_p13 = pneg %p8617_p12 }
  0x1a   : > { %p8624_p2 = por %p8623_p1, %p8622_p0 }
  0x1c   : > { %p8625_p3 = pnand %p8624_p2, %p8618_p13 }
  0x1e   : > { %8628 = shalt.err (!%p8625_p3)
}
  0x1f   : > { %7363 = dma.hbm_to_vmem [thread:$0]  (!%p8827_p9), %s220_s13, 64, %s223_s10, %s8842_s14  }
  0x20   : > { %s8855_s9 = scalar_lea.hbm %s9983_s3, %s7347_s8  ;;  %p6548_p4 = scmp.ge.s32.totalorder %s8739_s20, 1 }
  0x21   : > { %p246_p5 = scmp.lt.s32.totalorder %s8739_s20, 5  ;;  %s7346_s11 = sshll.u32 %s8735_s19, 8 }
  0x22   : > { %s199_s24 = scalar_lea.hbm %s9981_s1, %s7346_s11  ;;  %s190_s29 = scalar_lea.sflag [#allocation3], %s8825_s27 }
  0x23   : > { %p8860_p6 = pnand %p6548_p4, %p246_p5  ;;  %s8642_s21 = scalar_lea.vmem %s8834_s6, 100352 }
  0x24   : > { %p8643_p8 = scmp.ne.s32.totalorder %s8834_s6, %s8642_s21  ;;  %s8742_s8 = smov [#allocation2]  }
  0x25   : > { %s8647_s10 = sshll.u32 %s8742_s8, 4  ;;  %s8648_s10 = int_to_ptr.vmem [resolvable:$false] %s8647_s10 }
  0x26   : > { %p8645_p11 = pnand %p8643_p8, %p8603_p10  ;;  %s8649_s13 = scalar_lea.vmem %s8648_s10, 200704 }
  0x27   : > { %p8650_p13 = scmp.lt.s32.totalorder %s8834_s6, %s8648_s10  ;;  %p8651_p0 = scmp.lt.s32.totalorder %s8649_s13, %s8642_s21 }
  0x28   : > { %p8646_p12 = pneg %p8645_p11 }
  0x29   : > { %p8652_p1 = por %p8651_p0, %p8650_p13 }
  0x2b   : > { %p8653_p2 = pnand %p8652_p1, %p8646_p12 }
  0x2d   : > { %8656 = shalt.err (!%p8653_p2)
}
  0x2e   : > { %s8743_s30 = smov 1024   ;;  %s8744_s5 = smov 256  }
  0x2f   : > { %s8745_s11 = smov 16   ;;  %s233_s15 = scalar_lea.vmem [#allocation6], %s6542_s7 }
  0x30   : > { %7360 = dma.hbm_to_vmem [thread:$0]  (!%p8827_p9), %s199_s24, 100352, %s8834_s6, %s190_s29, %s8743_s30, %s8744_s5, %s8745_s11  }
  0x31   : > { %s241_s23 = sshll.u32 %s233_s15, 4  ;;  %s8746_s21 = smov [#allocation6]   ;;  %s242_s23 = int_to_ptr.vmem [resolvable:$true] %s241_s23 }
  0x32   : > { %s8670_s8 = scalar_lea.vmem %s242_s23, 64  ;;  %s8675_s10 = sshll.u32 %s8746_s21, 4  ;;  %s8676_s10 = int_to_ptr.vmem [resolvable:$false] %s8675_s10 }
  0x33   : > { %p8671_p3 = scmp.ne.s32.totalorder %s242_s23, %s8670_s8  ;;  %s8677_s13 = scalar_lea.vmem %s8676_s10, 128 }
  0x34   : > { %p8678_p8 = scmp.lt.s32.totalorder %s242_s23, %s8676_s10  ;;  %p8679_p11 = scmp.lt.s32.totalorder %s8677_s13, %s8670_s8 }
  0x35   : > { %p8673_p4 = pnand %p8671_p3, %p8603_p10 }
  0x36   : > { %p8680_p12 = por %p8679_p11, %p8678_p8 }
  0x37   : > { %p8674_p5 = pneg %p8673_p4 }
  0x39   : > { %p8681_p13 = pnand %p8680_p12, %p8674_p5 }
  0x3b   : > { %8684 = shalt.err (!%p8681_p13)
}
  0x3c   : > { %7366 = dma.hbm_to_vmem [thread:$0]  (!%p8827_p9), %s8855_s9, 64, %s242_s23, %s8842_s14  }
  0x3d   : > { %250 = sbr.rel (%p8860_p6) target bundleno = 1068 (0x42c), region = 36  ;;  %s8889_s27 = sand.u32 (!%p8860_p6), 1, %s8723_s16  }
  0x3e   : > { %s7350_s6 = smul.u32 (!%p8860_p6), 6272, %s8889_s27  ;;  %s253_s7 = scalar_lea.sflag (!%p8860_p6), [#allocation3], %s8889_s27 }
  0x40   : > { %s8893_s24 = scalar_lea.vmem (!%p8860_p6), [#allocation2], %s7350_s6 }
  0x42   : > { %8710 = dma.done.wait (%p8816_p7), %s253_s7, 100352  }
  0x43   : > { %8712 = vsyncadd (%p8816_p7), %s253_s7, 4294866944  ;;  %s9989_s28 = sadd.s32 4294967295, %s8739_s20   ;;  %s6549_s9 = sshll.u32 %s8889_s27, 2 }
  0x44   : > { %s261_s14 = sand.u32 1, %s9989_s28   ;;  %s8904_s29 = scalar_lea.vmem [#allocation4], %s6549_s9 }
  0x45   : > { %s262_s12 = scalar_lea.sflag [#allocation5], %s261_s14 }
  0x46   : > { %8714 = dma.done.wait (%p8816_p7), %s262_s12, 128  }
  0x47   : > { %8716 = vsyncadd (%p8816_p7), %s262_s12, 4294967168  ;;  %v7422_v0 = vld [vmem:[%s8893_s24 + $0xe4] ss:$16 sps:$4 sm:$0xff]   ;;  %v7426_v2 = vld [vmem:[%s8893_s24 + $0xe0] ss:$16 sps:$4 sm:$0xff]   ;;  %v1131_v38 = vlaneseq  ;;  %vm5232_vm0 = vcmask 523264  }
  0x48   : > { %v7424_v1 = vld [vmem:[%s8893_s24 + $0x2e4] ss:$16 sps:$4 sm:$0xff]   ;;  %5236 = vmatprep.subr.bf16.mxu0 %v7422_v0  ;;  %v7427_v3 = vld [vmem:[%s8893_s24 + $0x2e0] ss:$16 sps:$4 sm:$0xff]   ;;  %v8747_v36 = vmov 1966171168  }
  0x49   : > { %5277 = vmatprep.subr.bf16.mxu1 %v7424_v1  ;;  %v7428_v4 = vld [vmem:[%s8893_s24 + $0xc4] ss:$16 sps:$4 sm:$0xff]   ;;  %5237 = vmatpush1.bf16.msra.mxu0 %v7426_v2  ;;  %v7432_v6 = vld [vmem:[%s8893_s24 + $0xc0] ss:$16 sps:$4 sm:$0xff]   ;;  %v1129_v37 = vunpack.c.l.s4 %v8747_v36  ;;  %v8949_v43 = vshrl.u32 %v1131_v38, 7  ;;  %s274_s10 = scalar_lea.vmem [#allocation6], %s6549_s9 }
  0x4a   : > { %5278 = vmatpush1.bf16.msra.mxu1 %v7427_v3  ;;  %v7430_v5 = vld [vmem:[%s8893_s24 + $0x2c4] ss:$16 sps:$4 sm:$0xff]   ;;  %5238 = vmatprep.subr.bf16.mxu0 %v7428_v4  ;;  %v7433_v7 = vld [vmem:[%s8893_s24 + $0x2c0] ss:$16 sps:$4 sm:$0xff]   ;;  %s6551_s13 = sshll.u32 %s8731_s18, 2 }
  0x4b   : > { %5279 = vmatprep.subr.bf16.mxu1 %v7430_v5  ;;  %v7434_v8 = vld [vmem:[%s8893_s24 + $0xa4] ss:$16 sps:$4 sm:$0xff]   ;;  %v7438_v10 = vld [vmem:[%s8893_s24 + $0xa0] ss:$16 sps:$4 sm:$0xff]   ;;  %v1130_v42 = vunpack.c.0.s8 %v1129_v37  ;;  %p327_p7 = scmp.lt.s32.totalorder %s6551_s13, 15 }
  0x4c   : > { %v7436_v9 = vld [vmem:[%s8893_s24 + $0x2a4] ss:$16 sps:$4 sm:$0xff]   ;;  %v7439_v11 = vld [vmem:[%s8893_s24 + $0x2a0] ss:$16 sps:$4 sm:$0xff]  }
  0x4d   : > { %5239 = vmatpush1.bf16.msra.mxu0 %v7432_v6  ;;  %v7440_v12 = vld [vmem:[%s8893_s24 + $0x84] ss:$16 sps:$4 sm:$0xff]   ;;  %v7444_v14 = vld [vmem:[%s8893_s24 + $0x80] ss:$16 sps:$4 sm:$0xff]   ;;  %v8957_v49 = vsub.s32 %v1130_v42, %v8949_v43  ;;  %s9998_s13 = smov (!%p327_p7, %s6551_s13), 15 }
  0x4e   : > { %5280 = vmatpush1.bf16.msra.mxu1 %v7433_v7  ;;  %5240 = vmatprep.subr.bf16.mxu0 %v7434_v8  ;;  %v7442_v13 = vld [vmem:[%s8893_s24 + $0x284] ss:$16 sps:$4 sm:$0xff]   ;;  %v7445_v15 = vld [vmem:[%s8893_s24 + $0x280] ss:$16 sps:$4 sm:$0xff]   ;;  %s6552_s18 = sshll.u32 %s9998_s13, 1 }
  0x4f   : > { %5281 = vmatprep.subr.bf16.mxu1 %v7436_v9  ;;  %v7446_v16 = vld [vmem:[%s8893_s24 + $0x64] ss:$16 sps:$4 sm:$0xff]   ;;  %v7450_v18 = vld [vmem:[%s8893_s24 + $0x60] ss:$16 sps:$4 sm:$0xff]   ;;  %s332_s7 = scalar_lea.vmem %s9984_s4, %s6552_s18 }
  0x50   : > { %v7448_v17 = vld [vmem:[%s8893_s24 + $0x264] ss:$16 sps:$4 sm:$0xff]   ;;  %v7451_v19 = vld [vmem:[%s8893_s24 + $0x260] ss:$16 sps:$4 sm:$0xff]  }
  0x51   : > { %5241 = vmatpush1.bf16.msra.mxu0 %v7438_v10  ;;  %v7452_v20 = vld [vmem:[%s8893_s24 + $0x44] ss:$16 sps:$4 sm:$0xff]   ;;  %v7456_v22 = vld [vmem:[%s8893_s24 + $0x40] ss:$16 sps:$4 sm:$0xff]  }
  0x52   : > { %5282 = vmatpush1.bf16.msra.mxu1 %v7439_v11  ;;  %5242 = vmatprep.subr.bf16.mxu0 %v7440_v12  ;;  %v7454_v21 = vld [vmem:[%s8893_s24 + $0x244] ss:$16 sps:$4 sm:$0xff]   ;;  %v7457_v23 = vld [vmem:[%s8893_s24 + $0x240] ss:$16 sps:$4 sm:$0xff]  }
  0x53   : > { %5283 = vmatprep.subr.bf16.mxu1 %v7442_v13  ;;  %v7458_v24 = vld [vmem:[%s8893_s24 + $0x24] ss:$16 sps:$4 sm:$0xff]   ;;  %v7462_v26 = vld [vmem:[%s8893_s24 + $0x20] ss:$16 sps:$4 sm:$0xff]  }
  0x54   : > { %v7460_v25 = vld [vmem:[%s8893_s24 + $0x224] ss:$16 sps:$4 sm:$0xff]   ;;  %v7463_v27 = vld [vmem:[%s8893_s24 + $0x220] ss:$16 sps:$4 sm:$0xff]  }
  0x55   : > { %5243 = vmatpush1.bf16.msra.mxu0 %v7444_v14  ;;  %v7464_v28 = vld [vmem:[%s8893_s24 + $0x4] ss:$16 sps:$4 sm:$0xff]   ;;  %v7468_v30 = vld [vmem:[%s8893_s24] ss:$16 sps:$4 sm:$0xff]  }
  0x56   : > { %5284 = vmatpush1.bf16.msra.mxu1 %v7445_v15  ;;  %5244 = vmatprep.subr.bf16.mxu0 %v7446_v16  ;;  %v7466_v29 = vld [vmem:[%s8893_s24 + $0x204] ss:$16 sps:$4 sm:$0xff]   ;;  %v7469_v31 = vld [vmem:[%s8893_s24 + $0x200] ss:$16 sps:$4 sm:$0xff]  }
  0x57   : > { %5285 = vmatprep.subr.bf16.mxu1 %v7448_v17  ;;  %v7470_v32 = vld [vmem:[%s8893_s24 + $0x1e4] ss:$16 sps:$4 sm:$0xff]   ;;  %v7474_v34 = vld [vmem:[%s8893_s24 + $0x1e0] ss:$16 sps:$4 sm:$0xff]  }
  0x58   : > { %v7472_v33 = vld [vmem:[%s8893_s24 + $0x3e4] ss:$16 sps:$4 sm:$0xff]   ;;  %v7475_v35 = vld [vmem:[%s8893_s24 + $0x3e0] ss:$16 sps:$4 sm:$0xff]  }
  0x59   : > { %5245 = vmatpush1.bf16.msra.mxu0 %v7450_v18  ;;  %v7476_v39 = vld [vmem:[%s8893_s24 + $0x1c4] ss:$16 sps:$4 sm:$0xff]   ;;  %v7480_v41 = vld [vmem:[%s8893_s24 + $0x1c0] ss:$16 sps:$4 sm:$0xff]  }
  0x5a   : > { %5286 = vmatpush1.bf16.msra.mxu1 %v7451_v19  ;;  %5246 = vmatprep.subr.bf16.mxu0 %v7452_v20  ;;  %v7478_v40 = vld [vmem:[%s8893_s24 + $0x3c4] ss:$16 sps:$4 sm:$0xff]   ;;  %v7481_v44 = vld [vmem:[%s8893_s24 + $0x3c0] ss:$16 sps:$4 sm:$0xff]  }
  0x5b   : > { %5287 = vmatprep.subr.bf16.mxu1 %v7454_v21  ;;  %v7482_v45 = vld [vmem:[%s8893_s24 + $0x1a4] ss:$16 sps:$4 sm:$0xff]   ;;  %v7486_v47 = vld [vmem:[%s8893_s24 + $0x1a0] ss:$16 sps:$4 sm:$0xff]  }
  0x5c   : > { %v7484_v46 = vld [vmem:[%s8893_s24 + $0x3a4] ss:$16 sps:$4 sm:$0xff]   ;;  %v7487_v48 = vld [vmem:[%s8893_s24 + $0x3a0] ss:$16 sps:$4 sm:$0xff]  }
  0x5d   : > { %5247 = vmatpush1.bf16.msra.mxu0 %v7456_v22  ;;  %v7488_v50 = vld [vmem:[%s8893_s24 + $0x184] ss:$16 sps:$4 sm:$0xff]   ;;  %v7492_v53 = vld [vmem:[%s8893_s24 + $0x180] ss:$16 sps:$4 sm:$0xff]  }
  0x5e   : > { %5288 = vmatpush1.bf16.msra.mxu1 %v7457_v23  ;;  %5248 = vmatprep.subr.bf16.mxu0 %v7458_v24  ;;  %v7490_v51 = vld [vmem:[%s8893_s24 + $0x384] ss:$16 sps:$4 sm:$0xff]   ;;  %v7493_v55 = vld [vmem:[%s8893_s24 + $0x380] ss:$16 sps:$4 sm:$0xff]  }
  0x5f   : > { %5289 = vmatprep.subr.bf16.mxu1 %v7460_v25  ;;  %v335_v52 = vld [vmem:[%s9980_s0] sm:$0xff] }
  0x60   : > { %v1134_v54 = vrot.slane %v335_v52, %v8957_v49  ;;  %v7494_v56 = vld [vmem:[%s8893_s24 + $0x164] ss:$16 sps:$4 sm:$0xff]   ;;  %v7498_v59 = vld [vmem:[%s8893_s24 + $0x160] ss:$16 sps:$4 sm:$0xff]   ;;  %v1127_v1 = vcombine.high %v335_v52, %v335_v52 }
  0x61   : > { %5249 = vmatpush1.bf16.msra.mxu0 %v7462_v26  ;;  %v7496_v57 = vld [vmem:[%s8893_s24 + $0x364] ss:$16 sps:$4 sm:$0xff]   ;;  %v7499_v61 = vld [vmem:[%s8893_s24 + $0x360] ss:$16 sps:$4 sm:$0xff]  }
  0x62   : > { %5290 = vmatpush1.bf16.msra.mxu1 %v7463_v27  ;;  %5250 = vmatprep.subr.bf16.mxu0 %v7464_v28  ;;  %v1142_v58 = vcombine.high %v1134_v54, %v1134_v54  ;;  %v7500_v62 = vld [vmem:[%s8893_s24 + $0x144] ss:$16 sps:$4 sm:$0xff]   ;;  %v7504_v2 = vld [vmem:[%s8893_s24 + $0x140] ss:$16 sps:$4 sm:$0xff]   ;;  %v8987_v6 = vrot.slane %v1127_v1, %v8957_v49  ;;  %v8997_v13 = vrot.slane %v1134_v54, %v8957_v49 }
  0x63   : > { %5291 = vmatprep.subr.bf16.mxu1 %v7466_v29  ;;  %v7502_v63 = vld [vmem:[%s8893_s24 + $0x344] ss:$16 sps:$4 sm:$0xff]   ;;  %v7505_v3 = vld [vmem:[%s8893_s24 + $0x340] ss:$16 sps:$4 sm:$0xff]  }
  0x64   : > { %v8971_v60 = vrot.slane %v1142_v58, %v8957_v49  ;;  %v7506_v4 = vld [vmem:[%s8893_s24 + $0x124] ss:$16 sps:$4 sm:$0xff]   ;;  %v7510_v7 = vld [vmem:[%s8893_s24 + $0x120] ss:$16 sps:$4 sm:$0xff]   ;;  %v1143_v11 = vcombine.high %v8987_v6, %v8987_v6  ;;  %v9007_v18 = vcombine.high %v8997_v13, %v8997_v13 }
  0x65   : > { %5251 = vmatpush1.bf16.msra.mxu0 %v7468_v30  ;;  %v7508_v5 = vld [vmem:[%s8893_s24 + $0x324] ss:$16 sps:$4 sm:$0xff]   ;;  %v7511_v8 = vld [vmem:[%s8893_s24 + $0x320] ss:$16 sps:$4 sm:$0xff]  }
  0x66   : > { %5292 = vmatpush1.bf16.msra.mxu1 %v7469_v31  ;;  %5252 = vmatprep.subr.bf16.mxu0 %v7470_v32  ;;  %v8978_v0 = vcombine.high %v8971_v60, %v8971_v60  ;;  %v7512_v9 = vld [vmem:[%s8893_s24 + $0x104] ss:$16 sps:$4 sm:$0xff]   ;;  %v7516_v12 = vld [vmem:[%s8893_s24 + $0x100] ss:$16 sps:$4 sm:$0xff]   ;;  %v9003_v17 = vrot.slane %v1143_v11, %v8957_v49 }
  0x67   : > { %5293 = vmatprep.subr.bf16.mxu1 %v7472_v33  ;;  %5268 = vmatprep.mubr.bf16.mxu0 %v8971_v60  ;;  %v7514_v10 = vld [vmem:[%s8893_s24 + $0x304] ss:$16 sps:$4 sm:$0xff]   ;;  %v7517_v14 = vld [vmem:[%s8893_s24 + $0x300] ss:$16 sps:$4 sm:$0xff]  }
  0x68   : > { %5309 = vmatprep.mubr.bf16.mxu1 %v8978_v0  ;;  %v7520_v15 = vld [vmem:[%s8893_s24 + $0x4e4] ss:$16 sps:$4 sm:$0xff]   ;;  %v7518_v19 = vld [vmem:[%s8893_s24 + $0x4e0] ss:$16 sps:$4 sm:$0xff]   ;;  %v9015_v23 = vcombine.high %v9003_v17, %v9003_v17 }
  0x69   : > { %5253 = vmatpush2.bf16.msra.mxu0 %v7474_v34  ;;  %v7523_v16 = vld [vmem:[%s8893_s24 + $0x6e4] ss:$16 sps:$4 sm:$0xff]   ;;  %v7521_v20 = vld [vmem:[%s8893_s24 + $0x6e0] ss:$16 sps:$4 sm:$0xff]  }
  0x6a   : > { %5294 = vmatpush2.bf16.msra.mxu1 %v7475_v35  ;;  %5254 = vmatprep.subr.bf16.mxu0 %v7476_v39  ;;  %v7526_v21 = vld [vmem:[%s8893_s24 + $0x4c4] ss:$16 sps:$4 sm:$0xff]   ;;  %v7524_v24 = vld [vmem:[%s8893_s24 + $0x4c0] ss:$16 sps:$4 sm:$0xff]  }
  0x6b   : > { %5295 = vmatprep.subr.bf16.mxu1 %v7478_v40  ;;  %v7529_v22 = vld [vmem:[%s8893_s24 + $0x6c4] ss:$16 sps:$4 sm:$0xff]   ;;  %v7527_v25 = vld [vmem:[%s8893_s24 + $0x6c0] ss:$16 sps:$4 sm:$0xff]  }
  0x6c   : > { %v7532_v26 = vld [vmem:[%s8893_s24 + $0x4a4] ss:$16 sps:$4 sm:$0xff]   ;;  %v7530_v28 = vld [vmem:[%s8893_s24 + $0x4a0] ss:$16 sps:$4 sm:$0xff]  }
  0x6d   : > { %5255 = vmatpush2.bf16.msra.mxu0 %v7480_v41  ;;  %v7535_v27 = vld [vmem:[%s8893_s24 + $0x6a4] ss:$16 sps:$4 sm:$0xff]   ;;  %v7533_v29 = vld [vmem:[%s8893_s24 + $0x6a0] ss:$16 sps:$4 sm:$0xff]  }
  0x6e   : > { %5296 = vmatpush2.bf16.msra.mxu1 %v7481_v44  ;;  %5256 = vmatprep.subr.bf16.mxu0 %v7482_v45  ;;  %v7538_v30 = vld [vmem:[%s8893_s24 + $0x484] ss:$16 sps:$4 sm:$0xff]   ;;  %v7536_v32 = vld [vmem:[%s8893_s24 + $0x480] ss:$16 sps:$4 sm:$0xff]  }
  0x6f   : > { %5297 = vmatprep.subr.bf16.mxu1 %v7484_v46  ;;  %v7541_v31 = vld [vmem:[%s8893_s24 + $0x684] ss:$16 sps:$4 sm:$0xff]   ;;  %v7539_v33 = vld [vmem:[%s8893_s24 + $0x680] ss:$16 sps:$4 sm:$0xff]  }
  0x70   : > { %v7544_v34 = vld [vmem:[%s8893_s24 + $0x464] ss:$16 sps:$4 sm:$0xff]   ;;  %v7542_v36 = vld [vmem:[%s8893_s24 + $0x460] ss:$16 sps:$4 sm:$0xff]  }
  0x71   : > { %5257 = vmatpush2.bf16.msra.mxu0 %v7486_v47  ;;  %v7547_v35 = vld [vmem:[%s8893_s24 + $0x664] ss:$16 sps:$4 sm:$0xff]   ;;  %v7545_v37 = vld [vmem:[%s8893_s24 + $0x660] ss:$16 sps:$4 sm:$0xff]  }
  0x72   : > { %5298 = vmatpush2.bf16.msra.mxu1 %v7487_v48  ;;  %5258 = vmatprep.subr.bf16.mxu0 %v7488_v50  ;;  %v7550_v38 = vld [vmem:[%s8893_s24 + $0x444] ss:$16 sps:$4 sm:$0xff]   ;;  %v7548_v40 = vld [vmem:[%s8893_s24 + $0x440] ss:$16 sps:$4 sm:$0xff]  }
  0x73   : > { %5299 = vmatprep.subr.bf16.mxu1 %v7490_v51  ;;  %v7553_v39 = vld [vmem:[%s8893_s24 + $0x644] ss:$16 sps:$4 sm:$0xff]   ;;  %v7551_v41 = vld [vmem:[%s8893_s24 + $0x640] ss:$16 sps:$4 sm:$0xff]  }
  0x74   : > { %v7556_v42 = vld [vmem:[%s8893_s24 + $0x424] ss:$16 sps:$4 sm:$0xff]   ;;  %v7554_v45 = vld [vmem:[%s8893_s24 + $0x420] ss:$16 sps:$4 sm:$0xff]  }
  0x75   : > { %5259 = vmatpush2.bf16.msra.mxu0 %v7492_v53  ;;  %v7559_v44 = vld [vmem:[%s8893_s24 + $0x624] ss:$16 sps:$4 sm:$0xff]   ;;  %v7557_v46 = vld [vmem:[%s8893_s24 + $0x620] ss:$16 sps:$4 sm:$0xff]  }
  0x76   : > { %5300 = vmatpush2.bf16.msra.mxu1 %v7493_v55  ;;  %5260 = vmatprep.subr.bf16.mxu0 %v7494_v56  ;;  %v7562_v47 = vld [vmem:[%s8893_s24 + $0x404] ss:$16 sps:$4 sm:$0xff]   ;;  %v7560_v50 = vld [vmem:[%s8893_s24 + $0x400] ss:$16 sps:$4 sm:$0xff]  }
  0x77   : > { %5301 = vmatprep.subr.bf16.mxu1 %v7496_v57  ;;  %v7565_v48 = vld [vmem:[%s8893_s24 + $0x604] ss:$16 sps:$4 sm:$0xff]   ;;  %v7563_v51 = vld [vmem:[%s8893_s24 + $0x600] ss:$16 sps:$4 sm:$0xff]  }
  0x78   : > { %v7568_v52 = vld [vmem:[%s8893_s24 + $0x5e4] ss:$16 sps:$4 sm:$0xff]   ;;  %v7566_v54 = vld [vmem:[%s8893_s24 + $0x5e0] ss:$16 sps:$4 sm:$0xff]  }
  0x79   : > { %5261 = vmatpush2.bf16.msra.mxu0 %v7498_v59  ;;  %v7571_v53 = vld [vmem:[%s8893_s24 + $0x7e4] ss:$16 sps:$4 sm:$0xff]   ;;  %v7569_v55 = vld [vmem:[%s8893_s24 + $0x7e0] ss:$16 sps:$4 sm:$0xff]  }
  0x7a   : > { %5302 = vmatpush2.bf16.msra.mxu1 %v7499_v61  ;;  %5262 = vmatprep.subr.bf16.mxu0 %v7500_v62  ;;  %v7574_v56 = vld [vmem:[%s8893_s24 + $0x5c4] ss:$16 sps:$4 sm:$0xff]   ;;  %v7572_v58 = vld [vmem:[%s8893_s24 + $0x5c0] ss:$16 sps:$4 sm:$0xff]  }
  0x7b   : > { %5303 = vmatprep.subr.bf16.mxu1 %v7502_v63  ;;  %v7577_v57 = vld [vmem:[%s8893_s24 + $0x7c4] ss:$16 sps:$4 sm:$0xff]   ;;  %v7575_v59 = vld [vmem:[%s8893_s24 + $0x7c0] ss:$16 sps:$4 sm:$0xff]  }
  0x7c   : > { %v7580_v61 = vld [vmem:[%s8893_s24 + $0x5a4] ss:$16 sps:$4 sm:$0xff]   ;;  %v7578_v63 = vld [vmem:[%s8893_s24 + $0x5a0] ss:$16 sps:$4 sm:$0xff]  }
  0x7d   : > { %5263 = vmatpush2.bf16.msra.mxu0 %v7504_v2  ;;  %v7583_v62 = vld [vmem:[%s8893_s24 + $0x7a4] ss:$16 sps:$4 sm:$0xff]   ;;  %v7581_v1 = vld [vmem:[%s8893_s24 + $0x7a0] ss:$16 sps:$4 sm:$0xff]  }
  0x7e   : > { %5304 = vmatpush2.bf16.msra.mxu1 %v7505_v3  ;;  %5264 = vmatprep.subr.bf16.mxu0 %v7506_v4  ;;  %v7586_v2 = vld [vmem:[%s8893_s24 + $0x584] ss:$16 sps:$4 sm:$0xff]   ;;  %v7584_v4 = vld [vmem:[%s8893_s24 + $0x580] ss:$16 sps:$4 sm:$0xff]  }
  0x7f   : > { %5305 = vmatprep.subr.bf16.mxu1 %v7508_v5  ;;  %v7589_v3 = vld [vmem:[%s8893_s24 + $0x784] ss:$16 sps:$4 sm:$0xff]   ;;  %v7587_v5 = vld [vmem:[%s8893_s24 + $0x780] ss:$16 sps:$4 sm:$0xff]  }
  0x80   : > { %v7598_v11 = vld [vmem:[%s8893_s24 + $0x544] ss:$16 sps:$4 sm:$0xff]  }
  0x81   : > { %5265 = vmatpush2.bf16.msra.mxu0 %v7510_v7  ;;  %v7592_v7 = vld [vmem:[%s8893_s24 + $0x564] ss:$16 sps:$4 sm:$0xff]  }
  0x82   : > { %5306 = vmatpush2.bf16.msra.mxu1 %v7511_v8  ;;  %5266 = vmatprep.subr.bf16.mxu0 %v7512_v9  ;;  %v7595_v8 = vld [vmem:[%s8893_s24 + $0x764] ss:$16 sps:$4 sm:$0xff]   ;;  %v7590_v9 = vld [vmem:[%s8893_s24 + $0x560] ss:$16 sps:$4 sm:$0xff]  }
  0x83   : > { %5307 = vmatprep.subr.bf16.mxu1 %v7514_v10  ;;  %v7593_v10 = vld [vmem:[%s8893_s24 + $0x760] ss:$16 sps:$4 sm:$0xff]  }
  0x85   : > { %5267 = vmatpush2.bf16.msra.mxu0 %v7516_v12  ;;  %v7601_v12 = vld [vmem:[%s8893_s24 + $0x744] ss:$16 sps:$4 sm:$0xff]  }
  0x86   : > { %5308 = vmatpush2.bf16.msra.mxu1 %v7517_v14  ;;  %5318 = vmatprep.subr.bf16.mxu0 %v7520_v15  ;;  %v7596_v14 = vld [vmem:[%s8893_s24 + $0x540] ss:$16 sps:$4 sm:$0xff]  }
  0x87   : > { %5359 = vmatprep.subr.bf16.mxu1 %v7523_v16  ;;  %v7599_v15 = vld [vmem:[%s8893_s24 + $0x740] ss:$16 sps:$4 sm:$0xff]   ;;  %v7604_v16 = vld [vmem:[%s8893_s24 + $0x524] ss:$16 sps:$4 sm:$0xff]  }
  0x88   : > { %5269 = vmatmul.mubr.bf16.vlgmr.msra.gmra.mxu0 %v8997_v13 }
  0x89   : > { %5310 = vmatmul.mubr.bf16.vlgmr.msra.gmra.mxu1 %v9007_v18  ;;  %5319 = vmatpush1.bf16.msra.mxu0 %v7518_v19  ;;  %v7607_v19 = vld [vmem:[%s8893_s24 + $0x724] ss:$16 sps:$4 sm:$0xff]  }
  0x8a   : > { %5360 = vmatpush1.bf16.msra.mxu1 %v7521_v20  ;;  %5320 = vmatprep.subr.bf16.mxu0 %v7526_v21  ;;  %v7602_v20 = vld [vmem:[%s8893_s24 + $0x520] ss:$16 sps:$4 sm:$0xff]  }
  0x8b   : > { %5361 = vmatprep.subr.bf16.mxu1 %v7529_v22  ;;  %5350 = vmatprep.mubr.bf16.mxu0 %v9003_v17  ;;  %v7605_v21 = vld [vmem:[%s8893_s24 + $0x720] ss:$16 sps:$4 sm:$0xff]   ;;  %v7610_v22 = vld [vmem:[%s8893_s24 + $0x504] ss:$16 sps:$4 sm:$0xff]  }
  0x8c   : > { %5391 = vmatprep.mubr.bf16.mxu1 %v9015_v23 }
  0x8d   : > { %5321 = vmatpush1.bf16.msra.mxu0 %v7524_v24  ;;  %v7613_v24 = vld [vmem:[%s8893_s24 + $0x704] ss:$16 sps:$4 sm:$0xff]  }
  0x8e   : > { %5362 = vmatpush1.bf16.msra.mxu1 %v7527_v25  ;;  %5322 = vmatprep.subr.bf16.mxu0 %v7532_v26  ;;  %v7608_v25 = vld [vmem:[%s8893_s24 + $0x500] ss:$16 sps:$4 sm:$0xff]   ;;  %v9080_v26 = vrot.slane %v8987_v6, %v8957_v49 }
  0x8f   : > { %5363 = vmatprep.subr.bf16.mxu1 %v7535_v27  ;;  %v7611_v27 = vld [vmem:[%s8893_s24 + $0x700] ss:$16 sps:$4 sm:$0xff]  }
  0x90   : > { %v7618_v6 = vld [vmem:[%s8893_s24 + $0xae0] ss:$16 sps:$4 sm:$0xff]  }
  0x91   : > { %5323 = vmatpush1.bf16.msra.mxu0 %v7530_v28  ;;  %v7617_v28 = vld [vmem:[%s8893_s24 + $0x8e4] ss:$16 sps:$4 sm:$0xff]  }
  0x92   : > { %5364 = vmatpush1.bf16.msra.mxu1 %v7533_v29  ;;  %5324 = vmatprep.subr.bf16.mxu0 %v7538_v30  ;;  %v7620_v29 = vld [vmem:[%s8893_s24 + $0xae4] ss:$16 sps:$4 sm:$0xff]   ;;  %v9087_v30 = vcombine.high %v9080_v26, %v9080_v26 }
  0x93   : > { %5365 = vmatprep.subr.bf16.mxu1 %v7541_v31  ;;  %v7615_v31 = vld [vmem:[%s8893_s24 + $0x8e0] ss:$16 sps:$4 sm:$0xff]  }
  0x95   : > { %5325 = vmatpush1.bf16.msra.mxu0 %v7536_v32  ;;  %v9094_v32 = vld [vmem:[%s9980_s0 + $0x8] sm:$0xff] }
  0x96   : > { %5366 = vmatpush1.bf16.msra.mxu1 %v7539_v33  ;;  %5326 = vmatprep.subr.bf16.mxu0 %v7544_v34  ;;  %v7623_v33 = vld [vmem:[%s8893_s24 + $0x8c4] ss:$16 sps:$4 sm:$0xff]  }
  0x97   : > { %5367 = vmatprep.subr.bf16.mxu1 %v7547_v35  ;;  %v7626_v34 = vld [vmem:[%s8893_s24 + $0xac4] ss:$16 sps:$4 sm:$0xff]   ;;  %v9100_v35 = vrot.slane %v9094_v32, %v8957_v49 }
  0x99   : > { %5327 = vmatpush1.bf16.msra.mxu0 %v7542_v36  ;;  %v1191_v36 = vcombine.high %v9100_v35, %v9100_v35 }
  0x9a   : > { %5368 = vmatpush1.bf16.msra.mxu1 %v7545_v37  ;;  %5328 = vmatprep.subr.bf16.mxu0 %v7550_v38  ;;  %v7621_v37 = vld [vmem:[%s8893_s24 + $0x8c0] ss:$16 sps:$4 sm:$0xff]  }
  0x9b   : > { %5369 = vmatprep.subr.bf16.mxu1 %v7553_v39  ;;  %v7624_v38 = vld [vmem:[%s8893_s24 + $0xac0] ss:$16 sps:$4 sm:$0xff]   ;;  %v7629_v39 = vld [vmem:[%s8893_s24 + $0x8a4] ss:$16 sps:$4 sm:$0xff]  }
  0x9d   : > { %5329 = vmatpush1.bf16.msra.mxu0 %v7548_v40  ;;  %v7632_v40 = vld [vmem:[%s8893_s24 + $0xaa4] ss:$16 sps:$4 sm:$0xff]  }
  0x9e   : > { %5370 = vmatpush1.bf16.msra.mxu1 %v7551_v41  ;;  %5330 = vmatprep.subr.bf16.mxu0 %v7556_v42  ;;  %v9111_v41 = vrot.slane %v1191_v36, %v8957_v49  ;;  %v7693_v36 = vld [vmem:[%s8893_s24 + $0x940] ss:$16 sps:$4 sm:$0xff]  }
  0x9f   : > { %5371 = vmatprep.subr.bf16.mxu1 %v7559_v44  ;;  %v7627_v44 = vld [vmem:[%s8893_s24 + $0x8a0] ss:$16 sps:$4 sm:$0xff]  }
  0xa0   : > { %v9116_v42 = vcombine.high %v9111_v41, %v9111_v41 }
  0xa1   : > { %5331 = vmatpush1.bf16.msra.mxu0 %v7554_v45  ;;  %v7630_v45 = vld [vmem:[%s8893_s24 + $0xaa0] ss:$16 sps:$4 sm:$0xff]  }
  0xa2   : > { %5372 = vmatpush1.bf16.msra.mxu1 %v7557_v46  ;;  %5332 = vmatprep.subr.bf16.mxu0 %v7562_v47  ;;  %v7635_v46 = vld [vmem:[%s8893_s24 + $0x884] ss:$16 sps:$4 sm:$0xff]  }
  0xa3   : > { %5373 = vmatprep.subr.bf16.mxu1 %v7565_v48  ;;  %v7638_v47 = vld [vmem:[%s8893_s24 + $0xa84] ss:$16 sps:$4 sm:$0xff]   ;;  %v7633_v48 = vld [vmem:[%s8893_s24 + $0x880] ss:$16 sps:$4 sm:$0xff]  }
  0xa5   : > { %5333 = vmatpush1.bf16.msra.mxu0 %v7560_v50  ;;  %v7636_v50 = vld [vmem:[%s8893_s24 + $0xa80] ss:$16 sps:$4 sm:$0xff]  }
  0xa6   : > { %5374 = vmatpush1.bf16.msra.mxu1 %v7563_v51  ;;  %5334 = vmatprep.subr.bf16.mxu0 %v7568_v52  ;;  %v7641_v51 = vld [vmem:[%s8893_s24 + $0x864] ss:$16 sps:$4 sm:$0xff]  }
  0xa7   : > { %5375 = vmatprep.subr.bf16.mxu1 %v7571_v53  ;;  %v7644_v52 = vld [vmem:[%s8893_s24 + $0xa64] ss:$16 sps:$4 sm:$0xff]   ;;  %v7639_v53 = vld [vmem:[%s8893_s24 + $0x860] ss:$16 sps:$4 sm:$0xff]  }
  0xa9   : > { %5335 = vmatpush2.bf16.msra.mxu0 %v7566_v54  ;;  %v7642_v54 = vld [vmem:[%s8893_s24 + $0xa60] ss:$16 sps:$4 sm:$0xff]  }
  0xaa   : > { %5376 = vmatpush2.bf16.msra.mxu1 %v7569_v55  ;;  %5336 = vmatprep.subr.bf16.mxu0 %v7574_v56  ;;  %v7647_v55 = vld [vmem:[%s8893_s24 + $0x844] ss:$16 sps:$4 sm:$0xff]  }
  0xab   : > { %5377 = vmatprep.subr.bf16.mxu1 %v7577_v57  ;;  %v7650_v56 = vld [vmem:[%s8893_s24 + $0xa44] ss:$16 sps:$4 sm:$0xff]   ;;  %v7645_v57 = vld [vmem:[%s8893_s24 + $0x840] ss:$16 sps:$4 sm:$0xff]  }
  0xad   : > { %5337 = vmatpush2.bf16.msra.mxu0 %v7572_v58  ;;  %v7648_v58 = vld [vmem:[%s8893_s24 + $0xa40] ss:$16 sps:$4 sm:$0xff]  }
  0xae   : > { %5378 = vmatpush2.bf16.msra.mxu1 %v7575_v59  ;;  %5338 = vmatprep.subr.bf16.mxu0 %v7580_v61  ;;  %v7653_v59 = vld [vmem:[%s8893_s24 + $0x824] ss:$16 sps:$4 sm:$0xff]  }
  0xaf   : > { %5379 = vmatprep.subr.bf16.mxu1 %v7583_v62  ;;  %v7656_v61 = vld [vmem:[%s8893_s24 + $0xa24] ss:$16 sps:$4 sm:$0xff]   ;;  %v7651_v62 = vld [vmem:[%s8893_s24 + $0x820] ss:$16 sps:$4 sm:$0xff]  }
  0xb1   : > { %5339 = vmatpush2.bf16.msra.mxu0 %v7578_v63  ;;  %v7654_v63 = vld [vmem:[%s8893_s24 + $0xa20] ss:$16 sps:$4 sm:$0xff]  }
  0xb2   : > { %5380 = vmatpush2.bf16.msra.mxu1 %v7581_v1  ;;  %5340 = vmatprep.subr.bf16.mxu0 %v7586_v2  ;;  %v7659_v1 = vld [vmem:[%s8893_s24 + $0x804] ss:$16 sps:$4 sm:$0xff]  }
  0xb3   : > { %5381 = vmatprep.subr.bf16.mxu1 %v7589_v3  ;;  %v7662_v2 = vld [vmem:[%s8893_s24 + $0xa04] ss:$16 sps:$4 sm:$0xff]   ;;  %v7657_v3 = vld [vmem:[%s8893_s24 + $0x800] ss:$16 sps:$4 sm:$0xff]  }
  0xb5   : > { %5341 = vmatpush2.bf16.msra.mxu0 %v7584_v4  ;;  %v7660_v4 = vld [vmem:[%s8893_s24 + $0xa00] ss:$16 sps:$4 sm:$0xff]  }
  0xb6   : > { %5382 = vmatpush2.bf16.msra.mxu1 %v7587_v5  ;;  %5342 = vmatprep.subr.bf16.mxu0 %v7592_v7  ;;  %v7665_v5 = vld [vmem:[%s8893_s24 + $0x9e4] ss:$16 sps:$4 sm:$0xff]  }
  0xb7   : > { %5383 = vmatprep.subr.bf16.mxu1 %v7595_v8  ;;  %v7668_v7 = vld [vmem:[%s8893_s24 + $0xbe4] ss:$16 sps:$4 sm:$0xff]   ;;  %v7663_v8 = vld [vmem:[%s8893_s24 + $0x9e0] ss:$16 sps:$4 sm:$0xff]  }
  0xb9   : > { %5343 = vmatpush2.bf16.msra.mxu0 %v7590_v9  ;;  %v7666_v9 = vld [vmem:[%s8893_s24 + $0xbe0] ss:$16 sps:$4 sm:$0xff]  }
  0xba   : > { %5384 = vmatpush2.bf16.msra.mxu1 %v7593_v10  ;;  %5344 = vmatprep.subr.bf16.mxu0 %v7598_v11  ;;  %v7671_v10 = vld [vmem:[%s8893_s24 + $0x9c4] ss:$16 sps:$4 sm:$0xff]  }
  0xbb   : > { %5385 = vmatprep.subr.bf16.mxu1 %v7601_v12  ;;  %v7674_v11 = vld [vmem:[%s8893_s24 + $0xbc4] ss:$16 sps:$4 sm:$0xff]   ;;  %v7669_v12 = vld [vmem:[%s8893_s24 + $0x9c0] ss:$16 sps:$4 sm:$0xff]  }
  0xbd   : > { %5345 = vmatpush2.bf16.msra.mxu0 %v7596_v14  ;;  %v7672_v14 = vld [vmem:[%s8893_s24 + $0xbc0] ss:$16 sps:$4 sm:$0xff]  }
  0xbe   : > { %5386 = vmatpush2.bf16.msra.mxu1 %v7599_v15  ;;  %5346 = vmatprep.subr.bf16.mxu0 %v7604_v16  ;;  %v7677_v15 = vld [vmem:[%s8893_s24 + $0x9a4] ss:$16 sps:$4 sm:$0xff]  }
  0xbf   : > { %5387 = vmatprep.subr.bf16.mxu1 %v7607_v19  ;;  %v7680_v16 = vld [vmem:[%s8893_s24 + $0xba4] ss:$16 sps:$4 sm:$0xff]   ;;  %v7675_v19 = vld [vmem:[%s8893_s24 + $0x9a0] ss:$16 sps:$4 sm:$0xff]  }
  0xc1   : > { %5347 = vmatpush2.bf16.msra.mxu0 %v7602_v20  ;;  %v7678_v20 = vld [vmem:[%s8893_s24 + $0xba0] ss:$16 sps:$4 sm:$0xff]  }
  0xc2   : > { %5388 = vmatpush2.bf16.msra.mxu1 %v7605_v21  ;;  %5348 = vmatprep.subr.bf16.mxu0 %v7610_v22  ;;  %v7683_v21 = vld [vmem:[%s8893_s24 + $0x984] ss:$16 sps:$4 sm:$0xff]  }
  0xc3   : > { %5389 = vmatprep.subr.bf16.mxu1 %v7613_v24  ;;  %v7686_v22 = vld [vmem:[%s8893_s24 + $0xb84] ss:$16 sps:$4 sm:$0xff]   ;;  %v7681_v24 = vld [vmem:[%s8893_s24 + $0x980] ss:$16 sps:$4 sm:$0xff]  }
  0xc5   : > { %5349 = vmatpush2.bf16.msra.mxu0 %v7608_v25  ;;  %v7684_v25 = vld [vmem:[%s8893_s24 + $0xb80] ss:$16 sps:$4 sm:$0xff]  }
  0xc6   : > { %5390 = vmatpush2.bf16.msra.mxu1 %v7611_v27  ;;  %5400 = vmatprep.subr.bf16.mxu0 %v7617_v28  ;;  %v7689_v27 = vld [vmem:[%s8893_s24 + $0x964] ss:$16 sps:$4 sm:$0xff]  }
  0xc7   : > { %5441 = vmatprep.subr.bf16.mxu1 %v7620_v29  ;;  %v7692_v28 = vld [vmem:[%s8893_s24 + $0xb64] ss:$16 sps:$4 sm:$0xff]   ;;  %v7687_v29 = vld [vmem:[%s8893_s24 + $0x960] ss:$16 sps:$4 sm:$0xff]  }
  0xc8   : > { %5351 = vmatmul.mubr.bf16.vlgmr.msra.gmra.mxu0 %v9080_v26 }
  0xc9   : > { %5392 = vmatmul.mubr.bf16.vlgmr.msra.gmra.mxu1 %v9087_v30  ;;  %5401 = vmatpush1.bf16.msra.mxu0 %v7615_v31  ;;  %v7690_v31 = vld [vmem:[%s8893_s24 + $0xb60] ss:$16 sps:$4 sm:$0xff]  }
  0xca   : > { %5442 = vmatpush1.bf16.msra.mxu1 %v7618_v6  ;;  %5402 = vmatprep.subr.bf16.mxu0 %v7623_v33  ;;  %v7695_v6 = vld [vmem:[%s8893_s24 + $0x944] ss:$16 sps:$4 sm:$0xff]  }
  0xcb   : > { %5443 = vmatprep.subr.bf16.mxu1 %v7626_v34  ;;  %5432 = vmatprep.mubr.bf16.mxu0 %v9111_v41  ;;  %v7698_v33 = vld [vmem:[%s8893_s24 + $0xb44] ss:$16 sps:$4 sm:$0xff]   ;;  %v1176_v34 = vcombine.high %v9094_v32, %v9094_v32  ;;  %v7699_v32 = vld [vmem:[%s8893_s24 + $0x920] ss:$16 sps:$4 sm:$0xff]  }
  0xcc   : > { %5473 = vmatprep.mubr.bf16.mxu1 %v9116_v42 }
  0xcd   : > { %5403 = vmatpush1.bf16.msra.mxu0 %v7621_v37  ;;  %v7696_v37 = vld [vmem:[%s8893_s24 + $0xb40] ss:$16 sps:$4 sm:$0xff]  }
  0xce   : > { %5444 = vmatpush1.bf16.msra.mxu1 %v7624_v38  ;;  %5404 = vmatprep.subr.bf16.mxu0 %v7629_v39  ;;  %v7701_v38 = vld [vmem:[%s8893_s24 + $0x924] ss:$16 sps:$4 sm:$0xff]  }
  0xcf   : > { %5445 = vmatprep.subr.bf16.mxu1 %v7632_v40  ;;  %v7704_v39 = vld [vmem:[%s8893_s24 + $0xb24] ss:$16 sps:$4 sm:$0xff]   ;;  %v9170_v40 = vrot.slane %v1176_v34, %v8957_v49  ;;  %v7762_v34 = vld [vmem:[%s8893_s24 + $0xfe0] ss:$16 sps:$4 sm:$0xff]  }
  0xd1   : > { %5405 = vmatpush1.bf16.msra.mxu0 %v7627_v44  ;;  %v7702_v44 = vld [vmem:[%s8893_s24 + $0xb20] ss:$16 sps:$4 sm:$0xff]  }
  0xd2   : > { %5446 = vmatpush1.bf16.msra.mxu1 %v7630_v45  ;;  %5406 = vmatprep.subr.bf16.mxu0 %v7635_v46  ;;  %v7707_v45 = vld [vmem:[%s8893_s24 + $0x904] ss:$16 sps:$4 sm:$0xff]  }
  0xd3   : > { %5447 = vmatprep.subr.bf16.mxu1 %v7638_v47  ;;  %v7710_v46 = vld [vmem:[%s8893_s24 + $0xb04] ss:$16 sps:$4 sm:$0xff]   ;;  %v1192_v47 = vcombine.high %v9170_v40, %v9170_v40 }
  0xd5   : > { %5407 = vmatpush1.bf16.msra.mxu0 %v7633_v48  ;;  %v9180_v48 = vrot.slane %v9100_v35, %v8957_v49  ;;  %v7711_v35 = vld [vmem:[%s8893_s24 + $0xce0] ss:$16 sps:$4 sm:$0xff]  }
  0xd6   : > { %5448 = vmatpush1.bf16.msra.mxu1 %v7636_v50  ;;  %5408 = vmatprep.subr.bf16.mxu0 %v7641_v51  ;;  %v7705_v50 = vld [vmem:[%s8893_s24 + $0x900] ss:$16 sps:$4 sm:$0xff]  }
  0xd7   : > { %5449 = vmatprep.subr.bf16.mxu1 %v7644_v52  ;;  %v7708_v51 = vld [vmem:[%s8893_s24 + $0xb00] ss:$16 sps:$4 sm:$0xff]   ;;  %v7713_v52 = vld [vmem:[%s8893_s24 + $0xce4] ss:$16 sps:$4 sm:$0xff]  }
  0xd9   : > { %5409 = vmatpush1.bf16.msra.mxu0 %v7639_v53  ;;  %v7716_v53 = vld [vmem:[%s8893_s24 + $0xee4] ss:$16 sps:$4 sm:$0xff]  }
  0xda   : > { %5450 = vmatpush1.bf16.msra.mxu1 %v7642_v54  ;;  %5410 = vmatprep.subr.bf16.mxu0 %v7647_v55  ;;  %v9187_v54 = vrot.slane %v1192_v47, %v8957_v49  ;;  %v9191_v55 = vcombine.high %v9180_v48, %v9180_v48  ;;  %v7779_v47 = vld [vmem:[%s8893_s24 + $0xd84] ss:$16 sps:$4 sm:$0xff]  }
  0xdb   : > { %5451 = vmatprep.subr.bf16.mxu1 %v7650_v56  ;;  %v7714_v56 = vld [vmem:[%s8893_s24 + $0xee0] ss:$16 sps:$4 sm:$0xff]  }
  0xdd   : > { %5411 = vmatpush1.bf16.msra.mxu0 %v7645_v57  ;;  %v7719_v57 = vld [vmem:[%s8893_s24 + $0xcc4] ss:$16 sps:$4 sm:$0xff]  }
  0xde   : > { %5452 = vmatpush1.bf16.msra.mxu1 %v7648_v58  ;;  %5412 = vmatprep.subr.bf16.mxu0 %v7653_v59  ;;  %v7722_v58 = vld [vmem:[%s8893_s24 + $0xec4] ss:$16 sps:$4 sm:$0xff]   ;;  %v9199_v59 = vcombine.high %v9187_v54, %v9187_v54 }
  0xdf   : > { %5453 = vmatprep.subr.bf16.mxu1 %v7656_v61  ;;  %v7717_v61 = vld [vmem:[%s8893_s24 + $0xcc0] ss:$16 sps:$4 sm:$0xff]  }
  0xe1   : > { %5413 = vmatpush1.bf16.msra.mxu0 %v7651_v62  ;;  %v7720_v62 = vld [vmem:[%s8893_s24 + $0xec0] ss:$16 sps:$4 sm:$0xff]  }
  0xe2   : > { %5454 = vmatpush1.bf16.msra.mxu1 %v7654_v63  ;;  %5414 = vmatprep.subr.bf16.mxu0 %v7659_v1  ;;  %v7725_v63 = vld [vmem:[%s8893_s24 + $0xca4] ss:$16 sps:$4 sm:$0xff]  }
  0xe3   : > { %5455 = vmatprep.subr.bf16.mxu1 %v7662_v2  ;;  %v7728_v1 = vld [vmem:[%s8893_s24 + $0xea4] ss:$16 sps:$4 sm:$0xff]   ;;  %v7723_v2 = vld [vmem:[%s8893_s24 + $0xca0] ss:$16 sps:$4 sm:$0xff]  }
  0xe5   : > { %5415 = vmatpush1.bf16.msra.mxu0 %v7657_v3  ;;  %v7726_v3 = vld [vmem:[%s8893_s24 + $0xea0] ss:$16 sps:$4 sm:$0xff]  }
  0xe6   : > { %5456 = vmatpush1.bf16.msra.mxu1 %v7660_v4  ;;  %5416 = vmatprep.subr.bf16.mxu0 %v7665_v5  ;;  %v7731_v4 = vld [vmem:[%s8893_s24 + $0xc84] ss:$16 sps:$4 sm:$0xff]  }
  0xe7   : > { %5457 = vmatprep.subr.bf16.mxu1 %v7668_v7  ;;  %v7734_v5 = vld [vmem:[%s8893_s24 + $0xe84] ss:$16 sps:$4 sm:$0xff]   ;;  %v7729_v7 = vld [vmem:[%s8893_s24 + $0xc80] ss:$16 sps:$4 sm:$0xff]  }
  0xe9   : > { %5417 = vmatpush2.bf16.msra.mxu0 %v7663_v8  ;;  %v7732_v8 = vld [vmem:[%s8893_s24 + $0xe80] ss:$16 sps:$4 sm:$0xff]  }
  0xea   : > { %5458 = vmatpush2.bf16.msra.mxu1 %v7666_v9  ;;  %5418 = vmatprep.subr.bf16.mxu0 %v7671_v10  ;;  %v7737_v9 = vld [vmem:[%s8893_s24 + $0xc64] ss:$16 sps:$4 sm:$0xff]  }
  0xeb   : > { %5459 = vmatprep.subr.bf16.mxu1 %v7674_v11  ;;  %v7740_v10 = vld [vmem:[%s8893_s24 + $0xe64] ss:$16 sps:$4 sm:$0xff]   ;;  %v7735_v11 = vld [vmem:[%s8893_s24 + $0xc60] ss:$16 sps:$4 sm:$0xff]  }
  0xed   : > { %5419 = vmatpush2.bf16.msra.mxu0 %v7669_v12  ;;  %v7738_v12 = vld [vmem:[%s8893_s24 + $0xe60] ss:$16 sps:$4 sm:$0xff]  }
  0xee   : > { %5460 = vmatpush2.bf16.msra.mxu1 %v7672_v14  ;;  %5420 = vmatprep.subr.bf16.mxu0 %v7677_v15  ;;  %v7743_v14 = vld [vmem:[%s8893_s24 + $0xc44] ss:$16 sps:$4 sm:$0xff]  }
  0xef   : > { %5461 = vmatprep.subr.bf16.mxu1 %v7680_v16  ;;  %v7746_v15 = vld [vmem:[%s8893_s24 + $0xe44] ss:$16 sps:$4 sm:$0xff]   ;;  %v7741_v16 = vld [vmem:[%s8893_s24 + $0xc40] ss:$16 sps:$4 sm:$0xff]  }
  0xf1   : > { %5421 = vmatpush2.bf16.msra.mxu0 %v7675_v19  ;;  %v7744_v19 = vld [vmem:[%s8893_s24 + $0xe40] ss:$16 sps:$4 sm:$0xff]  }
  0xf2   : > { %5462 = vmatpush2.bf16.msra.mxu1 %v7678_v20  ;;  %5422 = vmatprep.subr.bf16.mxu0 %v7683_v21  ;;  %v7749_v20 = vld [vmem:[%s8893_s24 + $0xc24] ss:$16 sps:$4 sm:$0xff]  }
  0xf3   : > { %5463 = vmatprep.subr.bf16.mxu1 %v7686_v22  ;;  %v7752_v21 = vld [vmem:[%s8893_s24 + $0xe24] ss:$16 sps:$4 sm:$0xff]   ;;  %v7747_v22 = vld [vmem:[%s8893_s24 + $0xc20] ss:$16 sps:$4 sm:$0xff]  }
  0xf5   : > { %5423 = vmatpush2.bf16.msra.mxu0 %v7681_v24  ;;  %v7750_v24 = vld [vmem:[%s8893_s24 + $0xe20] ss:$16 sps:$4 sm:$0xff]  }
  0xf6   : > { %5464 = vmatpush2.bf16.msra.mxu1 %v7684_v25  ;;  %5424 = vmatprep.subr.bf16.mxu0 %v7689_v27  ;;  %v7755_v25 = vld [vmem:[%s8893_s24 + $0xc04] ss:$16 sps:$4 sm:$0xff]  }
  0xf7   : > { %5465 = vmatprep.subr.bf16.mxu1 %v7692_v28  ;;  %v7758_v27 = vld [vmem:[%s8893_s24 + $0xe04] ss:$16 sps:$4 sm:$0xff]   ;;  %v7753_v28 = vld [vmem:[%s8893_s24 + $0xc00] ss:$16 sps:$4 sm:$0xff]  }
  0xf9   : > { %5425 = vmatpush2.bf16.msra.mxu0 %v7687_v29  ;;  %v7756_v29 = vld [vmem:[%s8893_s24 + $0xe00] ss:$16 sps:$4 sm:$0xff]  }
  0xfa   : > { %5466 = vmatpush2.bf16.msra.mxu1 %v7690_v31  ;;  %5426 = vmatprep.subr.bf16.mxu0 %v7695_v6  ;;  %v7761_v31 = vld [vmem:[%s8893_s24 + $0xde4] ss:$16 sps:$4 sm:$0xff]  }
  0xfb   : > { %5467 = vmatprep.subr.bf16.mxu1 %v7698_v33  ;;  %v7764_v6 = vld [vmem:[%s8893_s24 + $0xfe4] ss:$16 sps:$4 sm:$0xff]   ;;  %v7759_v33 = vld [vmem:[%s8893_s24 + $0xde0] ss:$16 sps:$4 sm:$0xff]  }
  0xfd   : > { %5427 = vmatpush2.bf16.msra.mxu0 %v7693_v36  ;;  %v7767_v36 = vld [vmem:[%s8893_s24 + $0xdc4] ss:$16 sps:$4 sm:$0xff]  }
  0xfe   : > { %5468 = vmatpush2.bf16.msra.mxu1 %v7696_v37  ;;  %5428 = vmatprep.subr.bf16.mxu0 %v7701_v38  ;;  %v7770_v37 = vld [vmem:[%s8893_s24 + $0xfc4] ss:$16 sps:$4 sm:$0xff]   ;;  %v7765_v38 = vld [vmem:[%s8893_s24 + $0xdc0] ss:$16 sps:$4 sm:$0xff]  }
  0xff   : > { %5469 = vmatprep.subr.bf16.mxu1 %v7704_v39  ;;  %v7768_v39 = vld [vmem:[%s8893_s24 + $0xfc0] ss:$16 sps:$4 sm:$0xff]  }
 0x101   : > { %5429 = vmatpush2.bf16.msra.mxu0 %v7699_v32  ;;  %v7773_v32 = vld [vmem:[%s8893_s24 + $0xda4] ss:$16 sps:$4 sm:$0xff]  }
 0x102   : > { %5470 = vmatpush2.bf16.msra.mxu1 %v7702_v44  ;;  %5430 = vmatprep.subr.bf16.mxu0 %v7707_v45  ;;  %v7776_v44 = vld [vmem:[%s8893_s24 + $0xfa4] ss:$16 sps:$4 sm:$0xff]   ;;  %v7771_v45 = vld [vmem:[%s8893_s24 + $0xda0] ss:$16 sps:$4 sm:$0xff]  }
 0x103   : > { %5471 = vmatprep.subr.bf16.mxu1 %v7710_v46  ;;  %v7774_v46 = vld [vmem:[%s8893_s24 + $0xfa0] ss:$16 sps:$4 sm:$0xff]  }
 0x105   : > { %5431 = vmatpush2.bf16.msra.mxu0 %v7705_v50  ;;  %v7782_v50 = vld [vmem:[%s8893_s24 + $0xf84] ss:$16 sps:$4 sm:$0xff]  }
 0x106   : > { %5472 = vmatpush2.bf16.msra.mxu1 %v7708_v51  ;;  %5482 = vmatprep.subr.bf16.mxu0 %v7713_v52  ;;  %v7777_v51 = vld [vmem:[%s8893_s24 + $0xd80] ss:$16 sps:$4 sm:$0xff]  }
 0x107   : > { %5523 = vmatprep.subr.bf16.mxu1 %v7716_v53  ;;  %v7780_v52 = vld [vmem:[%s8893_s24 + $0xf80] ss:$16 sps:$4 sm:$0xff]   ;;  %v7785_v53 = vld [vmem:[%s8893_s24 + $0xd64] ss:$16 sps:$4 sm:$0xff]  }
 0x108   : > { %5433 = vmatmul.mubr.bf16.vlgmr.msra.gmra.mxu0 %v9180_v48 }
 0x109   : > { %5474 = vmatmul.mubr.bf16.vlgmr.msra.gmra.mxu1 %v9191_v55  ;;  %5483 = vmatpush1.bf16.msra.mxu0 %v7711_v35  ;;  %v7788_v35 = vld [vmem:[%s8893_s24 + $0xf64] ss:$16 sps:$4 sm:$0xff]  }
 0x10a   : > { %5524 = vmatpush1.bf16.msra.mxu1 %v7714_v56  ;;  %5484 = vmatprep.subr.bf16.mxu0 %v7719_v57  ;;  %v7783_v56 = vld [vmem:[%s8893_s24 + $0xd60] ss:$16 sps:$4 sm:$0xff]  }
 0x10b   : > { %5525 = vmatprep.subr.bf16.mxu1 %v7722_v58  ;;  %5514 = vmatprep.mubr.bf16.mxu0 %v9187_v54  ;;  %v7786_v57 = vld [vmem:[%s8893_s24 + $0xf60] ss:$16 sps:$4 sm:$0xff]   ;;  %v7791_v58 = vld [vmem:[%s8893_s24 + $0xd44] ss:$16 sps:$4 sm:$0xff]  }
 0x10c   : > { %5555 = vmatprep.mubr.bf16.mxu1 %v9199_v59 }
 0x10d   : > { %5485 = vmatpush1.bf16.msra.mxu0 %v7717_v61  ;;  %v7794_v61 = vld [vmem:[%s8893_s24 + $0xf44] ss:$16 sps:$4 sm:$0xff]  }
 0x10e   : > { %5526 = vmatpush1.bf16.msra.mxu1 %v7720_v62  ;;  %5486 = vmatprep.subr.bf16.mxu0 %v7725_v63  ;;  %v7789_v62 = vld [vmem:[%s8893_s24 + $0xd40] ss:$16 sps:$4 sm:$0xff]  }
 0x10f   : > { %5527 = vmatprep.subr.bf16.mxu1 %v7728_v1  ;;  %v9257_v63 = vld [vmem:[%s9980_s0 + $0x10] sm:$0xff] }
 0x110   : > { %v7792_v1 = vld [vmem:[%s8893_s24 + $0xf40] ss:$16 sps:$4 sm:$0xff]  }
 0x111   : > { %5487 = vmatpush1.bf16.msra.mxu0 %v7723_v2  ;;  %v7797_v2 = vld [vmem:[%s8893_s24 + $0xd24] ss:$16 sps:$4 sm:$0xff]  }
 0x112   : > { %5528 = vmatpush1.bf16.msra.mxu1 %v7726_v3  ;;  %5488 = vmatprep.subr.bf16.mxu0 %v7731_v4  ;;  %v7800_v3 = vld [vmem:[%s8893_s24 + $0xf24] ss:$16 sps:$4 sm:$0xff]   ;;  %v9264_v4 = vrot.slane %v9257_v63, %v8957_v49 }
 0x113   : > { %5529 = vmatprep.subr.bf16.mxu1 %v7734_v5  ;;  %v7795_v5 = vld [vmem:[%s8893_s24 + $0xd20] ss:$16 sps:$4 sm:$0xff]  }
 0x115   : > { %5489 = vmatpush1.bf16.msra.mxu0 %v7729_v7  ;;  %v7798_v7 = vld [vmem:[%s8893_s24 + $0xf20] ss:$16 sps:$4 sm:$0xff]  }
 0x116   : > { %5530 = vmatpush1.bf16.msra.mxu1 %v7732_v8  ;;  %5490 = vmatprep.subr.bf16.mxu0 %v7737_v9  ;;  %v7803_v8 = vld [vmem:[%s8893_s24 + $0xd04] ss:$16 sps:$4 sm:$0xff]  }
 0x117   : > { %5531 = vmatprep.subr.bf16.mxu1 %v7740_v10  ;;  %v7806_v9 = vld [vmem:[%s8893_s24 + $0xf04] ss:$16 sps:$4 sm:$0xff]   ;;  %v1240_v10 = vcombine.high %v9264_v4, %v9264_v4 }
 0x119   : > { %5491 = vmatpush1.bf16.msra.mxu0 %v7735_v11  ;;  %v7801_v11 = vld [vmem:[%s8893_s24 + $0xd00] ss:$16 sps:$4 sm:$0xff]  }
 0x11a   : > { %5532 = vmatpush1.bf16.msra.mxu1 %v7738_v12  ;;  %5492 = vmatprep.subr.bf16.mxu0 %v7743_v14  ;;  %v9275_v12 = vrot.slane %v9170_v40, %v8957_v49  ;;  %v7804_v14 = vld [vmem:[%s8893_s24 + $0xf00] ss:$16 sps:$4 sm:$0xff]  }
 0x11b   : > { %5533 = vmatprep.subr.bf16.mxu1 %v7746_v15  ;;  %v7810_v15 = vld [vmem:[%s8893_s24 + $0x10e4] ss:$16 sps:$4 sm:$0xff]   ;;  %v7811_v40 = vld [vmem:[%s8893_s24 + $0x12e0] ss:$16 sps:$4 sm:$0xff]  }
 0x11d   : > { %5493 = vmatpush1.bf16.msra.mxu0 %v7741_v16  ;;  %v7813_v16 = vld [vmem:[%s8893_s24 + $0x12e4] ss:$16 sps:$4 sm:$0xff]  }
 0x11e   : > { %5534 = vmatpush1.bf16.msra.mxu1 %v7744_v19  ;;  %5494 = vmatprep.subr.bf16.mxu0 %v7749_v20  ;;  %v9281_v19 = vrot.slane %v1240_v10, %v8957_v49  ;;  %v9285_v20 = vcombine.high %v9275_v12, %v9275_v12  ;;  %v7855_v10 = vld [vmem:[%s8893_s24 + $0x1204] ss:$16 sps:$4 sm:$0xff]  }
 0x11f   : > { %5535 = vmatprep.subr.bf16.mxu1 %v7752_v21  ;;  %v7808_v21 = vld [vmem:[%s8893_s24 + $0x10e0] ss:$16 sps:$4 sm:$0xff]  }
 0x121   : > { %5495 = vmatpush1.bf16.msra.mxu0 %v7747_v22  ;;  %v7816_v22 = vld [vmem:[%s8893_s24 + $0x10c4] ss:$16 sps:$4 sm:$0xff]  }
 0x122   : > { %5536 = vmatpush1.bf16.msra.mxu1 %v7750_v24  ;;  %5496 = vmatprep.subr.bf16.mxu0 %v7755_v25  ;;  %v7819_v24 = vld [vmem:[%s8893_s24 + $0x12c4] ss:$16 sps:$4 sm:$0xff]   ;;  %v9293_v25 = vcombine.high %v9281_v19, %v9281_v19 }
 0x123   : > { %5537 = vmatprep.subr.bf16.mxu1 %v7758_v27 }
 0x125   : > { %5497 = vmatpush1.bf16.msra.mxu0 %v7753_v28 }
 0x126   : > { %5538 = vmatpush1.bf16.msra.mxu1 %v7756_v29  ;;  %5498 = vmatprep.subr.bf16.mxu0 %v7761_v31  ;;  %v7814_v29 = vld [vmem:[%s8893_s24 + $0x10c0] ss:$16 sps:$4 sm:$0xff]  }
 0x127   : > { %5539 = vmatprep.subr.bf16.mxu1 %v7764_v6  ;;  %v7817_v31 = vld [vmem:[%s8893_s24 + $0x12c0] ss:$16 sps:$4 sm:$0xff]  }
 0x129   : > { %5499 = vmatpush2.bf16.msra.mxu0 %v7759_v33 }
 0x12a   : > { %5540 = vmatpush2.bf16.msra.mxu1 %v7762_v34  ;;  %5500 = vmatprep.subr.bf16.mxu0 %v7767_v36  ;;  %v7822_v36 = vld [vmem:[%s8893_s24 + $0x10a4] ss:$16 sps:$4 sm:$0xff]  }
 0x12b   : > { %5541 = vmatprep.subr.bf16.mxu1 %v7770_v37  ;;  %v7825_v37 = vld [vmem:[%s8893_s24 + $0x12a4] ss:$16 sps:$4 sm:$0xff]  }
 0x12d   : > { %5501 = vmatpush2.bf16.msra.mxu0 %v7765_v38 }
 0x12e   : > { %5542 = vmatpush2.bf16.msra.mxu1 %v7768_v39  ;;  %5502 = vmatprep.subr.bf16.mxu0 %v7773_v32  ;;  %v7820_v39 = vld [vmem:[%s8893_s24 + $0x10a0] ss:$16 sps:$4 sm:$0xff]  }
 0x12f   : > { %5543 = vmatprep.subr.bf16.mxu1 %v7776_v44  ;;  %v7823_v32 = vld [vmem:[%s8893_s24 + $0x12a0] ss:$16 sps:$4 sm:$0xff]  }
 0x131   : > { %5503 = vmatpush2.bf16.msra.mxu0 %v7771_v45 }
 0x132   : > { %5544 = vmatpush2.bf16.msra.mxu1 %v7774_v46  ;;  %5504 = vmatprep.subr.bf16.mxu0 %v7779_v47 }
 0x133   : > { %5545 = vmatprep.subr.bf16.mxu1 %v7782_v50  ;;  %v7828_v50 = vld [vmem:[%s8893_s24 + $0x1084] ss:$16 sps:$4 sm:$0xff]  }
 0x135   : > { %5505 = vmatpush2.bf16.msra.mxu0 %v7777_v51  ;;  %v7831_v51 = vld [vmem:[%s8893_s24 + $0x1284] ss:$16 sps:$4 sm:$0xff]  }
 0x136   : > { %5546 = vmatpush2.bf16.msra.mxu1 %v7780_v52  ;;  %5506 = vmatprep.subr.bf16.mxu0 %v7785_v53  ;;  %v7826_v52 = vld [vmem:[%s8893_s24 + $0x1080] ss:$16 sps:$4 sm:$0xff]  }
 0x137   : > { %5547 = vmatprep.subr.bf16.mxu1 %v7788_v35  ;;  %v7829_v53 = vld [vmem:[%s8893_s24 + $0x1280] ss:$16 sps:$4 sm:$0xff]   ;;  %v7834_v35 = vld [vmem:[%s8893_s24 + $0x1064] ss:$16 sps:$4 sm:$0xff]  }
 0x139   : > { %5507 = vmatpush2.bf16.msra.mxu0 %v7783_v56  ;;  %v7837_v56 = vld [vmem:[%s8893_s24 + $0x1264] ss:$16 sps:$4 sm:$0xff]  }
 0x13a   : > { %5548 = vmatpush2.bf16.msra.mxu1 %v7786_v57  ;;  %5508 = vmatprep.subr.bf16.mxu0 %v7791_v58  ;;  %v7832_v57 = vld [vmem:[%s8893_s24 + $0x1060] ss:$16 sps:$4 sm:$0xff]  }
 0x13b   : > { %5549 = vmatprep.subr.bf16.mxu1 %v7794_v61  ;;  %v7835_v58 = vld [vmem:[%s8893_s24 + $0x1260] ss:$16 sps:$4 sm:$0xff]   ;;  %v7840_v61 = vld [vmem:[%s8893_s24 + $0x1044] ss:$16 sps:$4 sm:$0xff]  }
 0x13d   : > { %5509 = vmatpush2.bf16.msra.mxu0 %v7789_v62  ;;  %v7843_v62 = vld [vmem:[%s8893_s24 + $0x1244] ss:$16 sps:$4 sm:$0xff]  }
 0x13e   : > { %5550 = vmatpush2.bf16.msra.mxu1 %v7792_v1  ;;  %5510 = vmatprep.subr.bf16.mxu0 %v7797_v2  ;;  %v7838_v1 = vld [vmem:[%s8893_s24 + $0x1040] ss:$16 sps:$4 sm:$0xff]  }
 0x13f   : > { %5551 = vmatprep.subr.bf16.mxu1 %v7800_v3  ;;  %v7841_v2 = vld [vmem:[%s8893_s24 + $0x1240] ss:$16 sps:$4 sm:$0xff]   ;;  %v7846_v3 = vld [vmem:[%s8893_s24 + $0x1024] ss:$16 sps:$4 sm:$0xff]  }
 0x141   : > { %5511 = vmatpush2.bf16.msra.mxu0 %v7795_v5  ;;  %v7849_v5 = vld [vmem:[%s8893_s24 + $0x1224] ss:$16 sps:$4 sm:$0xff]  }
 0x142   : > { %5552 = vmatpush2.bf16.msra.mxu1 %v7798_v7  ;;  %5512 = vmatprep.subr.bf16.mxu0 %v7803_v8  ;;  %v7844_v7 = vld [vmem:[%s8893_s24 + $0x1020] ss:$16 sps:$4 sm:$0xff]  }
 0x143   : > { %5553 = vmatprep.subr.bf16.mxu1 %v7806_v9  ;;  %v7847_v8 = vld [vmem:[%s8893_s24 + $0x1220] ss:$16 sps:$4 sm:$0xff]   ;;  %v7852_v9 = vld [vmem:[%s8893_s24 + $0x1004] ss:$16 sps:$4 sm:$0xff]  }
 0x145   : > { %5513 = vmatpush2.bf16.msra.mxu0 %v7801_v11  ;;  %v7850_v11 = vld [vmem:[%s8893_s24 + $0x1000] ss:$16 sps:$4 sm:$0xff]  }
 0x146   : > { %5554 = vmatpush2.bf16.msra.mxu1 %v7804_v14  ;;  %5564 = vmatprep.subr.bf16.mxu0 %v7810_v15  ;;  %v7853_v14 = vld [vmem:[%s8893_s24 + $0x1200] ss:$16 sps:$4 sm:$0xff]   ;;  %v7858_v15 = vld [vmem:[%s8893_s24 + $0x11e4] ss:$16 sps:$4 sm:$0xff]  }
 0x147   : > { %5605 = vmatprep.subr.bf16.mxu1 %v7813_v16  ;;  %v7861_v16 = vld [vmem:[%s8893_s24 + $0x13e4] ss:$16 sps:$4 sm:$0xff]  }
 0x148   : > { %v5270_v27 = vpop.f32.mrf.mxu0  ;;  %5515 = vmatmul.mubr.bf16.vlgmr.msra.gmra.mxu0 %v9275_v12 }
 0x149   : > { %v5311_v28 = vpop.f32.mrf.mxu1  ;;  %5556 = vmatmul.mubr.bf16.vlgmr.msra.gmra.mxu1 %v9285_v20  ;;  %5565 = vmatpush1.bf16.msra.mxu0 %v7808_v21  ;;  %v7856_v21 = vld [vmem:[%s8893_s24 + $0x11e0] ss:$16 sps:$4 sm:$0xff]  }
 0x14a   : > { %v9299_v6 = vadd.f32 %v5311_v28, %v5270_v27  ;;  %5606 = vmatpush1.bf16.msra.mxu1 %v7811_v40  ;;  %v5272_v33 = vpop.f32.mrf.mxu0  ;;  %5566 = vmatprep.subr.bf16.mxu0 %v7816_v22  ;;  %v7859_v40 = vld [vmem:[%s8893_s24 + $0x13e0] ss:$16 sps:$4 sm:$0xff]   ;;  %v7864_v22 = vld [vmem:[%s8893_s24 + $0x11c4] ss:$16 sps:$4 sm:$0xff]  }
 0x14b   : > { %v5313_v34 = vpop.f32.mrf.mxu1  ;;  %5607 = vmatprep.subr.bf16.mxu1 %v7819_v24  ;;  %5596 = vmatprep.mubr.bf16.mxu0 %v9281_v19  ;;  %v7867_v24 = vld [vmem:[%s8893_s24 + $0x13c4] ss:$16 sps:$4 sm:$0xff]   ;;  %v7862_v27 = vld [vmem:[%s8893_s24 + $0x11c0] ss:$16 sps:$4 sm:$0xff]  }
 0x14c   : > { %v9303_v38 = vadd.f32 %v5313_v34, %v5272_v33  ;;  %5637 = vmatprep.mubr.bf16.mxu1 %v9293_v25  ;;  %v5274_v44 = vpop.f32.mrf.mxu0  ;;  %v7865_v28 = vld [vmem:[%s8893_s24 + $0x13c0] ss:$16 sps:$4 sm:$0xff]  }
 0x14d   : > { %v5315_v45 = vpop.f32.mrf.mxu1  ;;  %5567 = vmatpush1.bf16.msra.mxu0 %v7814_v29  ;;  %v7870_v29 = vld [vmem:[%s8893_s24 + $0x11a4] ss:$16 sps:$4 sm:$0xff]   ;;  %v7868_v33 = vld [vmem:[%s8893_s24 + $0x11a0] ss:$16 sps:$4 sm:$0xff]  }
 0x14e   : > { %5608 = vmatpush1.bf16.msra.mxu1 %v7817_v31  ;;  %v5275_v46 = vpop.f32.mrf.mxu0  ;;  %5568 = vmatprep.subr.bf16.mxu0 %v7822_v36  ;;  %v7873_v31 = vld [vmem:[%s8893_s24 + $0x13a4] ss:$16 sps:$4 sm:$0xff]   ;;  %v7871_v34 = vld [vmem:[%s8893_s24 + $0x13a0] ss:$16 sps:$4 sm:$0xff]  }
 0x14f   : > { %v5316_v47 = vpop.f32.mrf.mxu1  ;;  %5609 = vmatprep.subr.bf16.mxu1 %v7825_v37  ;;  %v7876_v36 = vld [vmem:[%s8893_s24 + $0x1184] ss:$16 sps:$4 sm:$0xff]   ;;  %v7880_v46 = vld [vmem:[%s8893_s24 + $0x1160] ss:$16 sps:$4 sm:$0xff]  }
 0x150   : > { %v7879_v37 = vld [vmem:[%s8893_s24 + $0x1384] ss:$16 sps:$4 sm:$0xff]   ;;  %v7883_v47 = vld [vmem:[%s8893_s24 + $0x1360] ss:$16 sps:$4 sm:$0xff]  }
 0x151   : > { %5569 = vmatpush1.bf16.msra.mxu0 %v7820_v39  ;;  %v7874_v39 = vld [vmem:[%s8893_s24 + $0x1180] ss:$16 sps:$4 sm:$0xff]   ;;  %v7882_v44 = vld [vmem:[%s8893_s24 + $0x1164] ss:$16 sps:$4 sm:$0xff]  }
 0x152   : > { %5610 = vmatpush1.bf16.msra.mxu1 %v7823_v32  ;;  %5570 = vmatprep.subr.bf16.mxu0 %v7828_v50  ;;  %v7877_v32 = vld [vmem:[%s8893_s24 + $0x1380] ss:$16 sps:$4 sm:$0xff]   ;;  %v7885_v45 = vld [vmem:[%s8893_s24 + $0x1364] ss:$16 sps:$4 sm:$0xff]  }
 0x153   : > { %5611 = vmatprep.subr.bf16.mxu1 %v7831_v51  ;;  %v7888_v50 = vld [vmem:[%s8893_s24 + $0x1144] ss:$16 sps:$4 sm:$0xff]  }
 0x154   : > { %v7891_v51 = vld [vmem:[%s8893_s24 + $0x1344] ss:$16 sps:$4 sm:$0xff]  }
 0x155   : > { %5571 = vmatpush1.bf16.msra.mxu0 %v7826_v52  ;;  %v1225_v52 = vcombine.high %v9257_v63, %v9257_v63  ;;  %v7892_v63 = vld [vmem:[%s8893_s24 + $0x1120] ss:$16 sps:$4 sm:$0xff]  }
 0x156   : > { %5612 = vmatpush1.bf16.msra.mxu1 %v7829_v53  ;;  %5572 = vmatprep.subr.bf16.mxu0 %v7834_v35  ;;  %v7886_v53 = vld [vmem:[%s8893_s24 + $0x1140] ss:$16 sps:$4 sm:$0xff]  }
 0x157   : > { %5613 = vmatprep.subr.bf16.mxu1 %v7837_v56  ;;  %v7889_v35 = vld [vmem:[%s8893_s24 + $0x1340] ss:$16 sps:$4 sm:$0xff]   ;;  %v7894_v56 = vld [vmem:[%s8893_s24 + $0x1124] ss:$16 sps:$4 sm:$0xff]  }
 0x159   : > { %5573 = vmatpush1.bf16.msra.mxu0 %v7832_v57  ;;  %v7897_v57 = vld [vmem:[%s8893_s24 + $0x1324] ss:$16 sps:$4 sm:$0xff]  }
 0x15a   : > { %5614 = vmatpush1.bf16.msra.mxu1 %v7835_v58  ;;  %5574 = vmatprep.subr.bf16.mxu0 %v7840_v61  ;;  %v9358_v58 = vrot.slane %v1225_v52, %v8957_v49  ;;  %v7895_v61 = vld [vmem:[%s8893_s24 + $0x1320] ss:$16 sps:$4 sm:$0xff]  }
 0x15b   : > { %5615 = vmatprep.subr.bf16.mxu1 %v7843_v62  ;;  %v7900_v62 = vld [vmem:[%s8893_s24 + $0x1104] ss:$16 sps:$4 sm:$0xff]   ;;  %v7925_v52 = vld [vmem:[%s8893_s24 + $0x1680] ss:$16 sps:$4 sm:$0xff]  }
 0x15d   : > { %5575 = vmatpush1.bf16.msra.mxu0 %v7838_v1  ;;  %v7903_v1 = vld [vmem:[%s8893_s24 + $0x1304] ss:$16 sps:$4 sm:$0xff]  }
 0x15e   : > { %5616 = vmatpush1.bf16.msra.mxu1 %v7841_v2  ;;  %5576 = vmatprep.subr.bf16.mxu0 %v7846_v3  ;;  %v1241_v2 = vcombine.high %v9358_v58, %v9358_v58  ;;  %v9368_v3 = vrot.slane %v9264_v4, %v8957_v49 }
 0x15f   : > { %5617 = vmatprep.subr.bf16.mxu1 %v7849_v5  ;;  %v7898_v5 = vld [vmem:[%s8893_s24 + $0x1100] ss:$16 sps:$4 sm:$0xff]  }
 0x160   : > { %v9381_v4 = vcombine.high %v9368_v3, %v9368_v3 }
 0x161   : > { %5577 = vmatpush1.bf16.msra.mxu0 %v7844_v7  ;;  %v7901_v7 = vld [vmem:[%s8893_s24 + $0x1300] ss:$16 sps:$4 sm:$0xff]  }
 0x162   : > { %5618 = vmatpush1.bf16.msra.mxu1 %v7847_v8  ;;  %5578 = vmatprep.subr.bf16.mxu0 %v7852_v9  ;;  %v7906_v8 = vld [vmem:[%s8893_s24 + $0x14e4] ss:$16 sps:$4 sm:$0xff]  }
 0x163   : > { %5619 = vmatprep.subr.bf16.mxu1 %v7855_v10  ;;  %v7909_v9 = vld [vmem:[%s8893_s24 + $0x16e4] ss:$16 sps:$4 sm:$0xff]   ;;  %v7904_v10 = vld [vmem:[%s8893_s24 + $0x14e0] ss:$16 sps:$4 sm:$0xff]  }
 0x165   : > { %5579 = vmatpush1.bf16.msra.mxu0 %v7850_v11  ;;  %v7907_v11 = vld [vmem:[%s8893_s24 + $0x16e0] ss:$16 sps:$4 sm:$0xff]  }
 0x166   : > { %5620 = vmatpush1.bf16.msra.mxu1 %v7853_v14  ;;  %5580 = vmatprep.subr.bf16.mxu0 %v7858_v15  ;;  %v9377_v14 = vrot.slane %v1241_v2, %v8957_v49  ;;  %v7912_v15 = vld [vmem:[%s8893_s24 + $0x14c4] ss:$16 sps:$4 sm:$0xff]  }
 0x167   : > { %5621 = vmatprep.subr.bf16.mxu1 %v7861_v16  ;;  %v7915_v16 = vld [vmem:[%s8893_s24 + $0x16c4] ss:$16 sps:$4 sm:$0xff]  }
 0x168   : > { %v7942_v2 = vld [vmem:[%s8893_s24 + $0x1424] ss:$16 sps:$4 sm:$0xff]  }
 0x169   : > { %5581 = vmatpush2.bf16.msra.mxu0 %v7856_v21  ;;  %v7910_v21 = vld [vmem:[%s8893_s24 + $0x14c0] ss:$16 sps:$4 sm:$0xff]  }
 0x16a   : > { %5622 = vmatpush2.bf16.msra.mxu1 %v7859_v40  ;;  %5582 = vmatprep.subr.bf16.mxu0 %v7864_v22  ;;  %v7913_v40 = vld [vmem:[%s8893_s24 + $0x16c0] ss:$16 sps:$4 sm:$0xff]   ;;  %v9389_v22 = vcombine.high %v9377_v14, %v9377_v14 }
 0x16b   : > { %5623 = vmatprep.subr.bf16.mxu1 %v7867_v24 }
 0x16d   : > { %5583 = vmatpush2.bf16.msra.mxu0 %v7862_v27 }
 0x16e   : > { %5624 = vmatpush2.bf16.msra.mxu1 %v7865_v28  ;;  %5584 = vmatprep.subr.bf16.mxu0 %v7870_v29 }
 0x16f   : > { %5625 = vmatprep.subr.bf16.mxu1 %v7873_v31 }
 0x171   : > { %5585 = vmatpush2.bf16.msra.mxu0 %v7868_v33  ;;  %v7918_v33 = vld [vmem:[%s8893_s24 + $0x14a4] ss:$16 sps:$4 sm:$0xff]  }
 0x172   : > { %5626 = vmatpush2.bf16.msra.mxu1 %v7871_v34  ;;  %5586 = vmatprep.subr.bf16.mxu0 %v7876_v36  ;;  %v7921_v34 = vld [vmem:[%s8893_s24 + $0x16a4] ss:$16 sps:$4 sm:$0xff]  }
 0x173   : > { %5627 = vmatprep.subr.bf16.mxu1 %v7879_v37 }
 0x175   : > { %5587 = vmatpush2.bf16.msra.mxu0 %v7874_v39  ;;  %v7916_v39 = vld [vmem:[%s8893_s24 + $0x14a0] ss:$16 sps:$4 sm:$0xff]  }
 0x176   : > { %5628 = vmatpush2.bf16.msra.mxu1 %v7877_v32  ;;  %5588 = vmatprep.subr.bf16.mxu0 %v7882_v44  ;;  %v7919_v32 = vld [vmem:[%s8893_s24 + $0x16a0] ss:$16 sps:$4 sm:$0xff]  }
 0x177   : > { %5629 = vmatprep.subr.bf16.mxu1 %v7885_v45 }
 0x179   : > { %5589 = vmatpush2.bf16.msra.mxu0 %v7880_v46 }
 0x17a   : > { %5630 = vmatpush2.bf16.msra.mxu1 %v7883_v47  ;;  %5590 = vmatprep.subr.bf16.mxu0 %v7888_v50  ;;  %v7924_v47 = vld [vmem:[%s8893_s24 + $0x1484] ss:$16 sps:$4 sm:$0xff]  }
 0x17b   : > { %5631 = vmatprep.subr.bf16.mxu1 %v7891_v51  ;;  %v7927_v50 = vld [vmem:[%s8893_s24 + $0x1684] ss:$16 sps:$4 sm:$0xff]   ;;  %v7922_v51 = vld [vmem:[%s8893_s24 + $0x1480] ss:$16 sps:$4 sm:$0xff]  }
 0x17d   : > { %5591 = vmatpush2.bf16.msra.mxu0 %v7886_v53  ;;  %v7930_v53 = vld [vmem:[%s8893_s24 + $0x1464] ss:$16 sps:$4 sm:$0xff]  }
 0x17e   : > { %5632 = vmatpush2.bf16.msra.mxu1 %v7889_v35  ;;  %5592 = vmatprep.subr.bf16.mxu0 %v7894_v56  ;;  %v7933_v35 = vld [vmem:[%s8893_s24 + $0x1664] ss:$16 sps:$4 sm:$0xff]   ;;  %v7928_v56 = vld [vmem:[%s8893_s24 + $0x1460] ss:$16 sps:$4 sm:$0xff]  }
 0x17f   : > { %5633 = vmatprep.subr.bf16.mxu1 %v7897_v57  ;;  %v7931_v57 = vld [vmem:[%s8893_s24 + $0x1660] ss:$16 sps:$4 sm:$0xff]  }
 0x181   : > { %5593 = vmatpush2.bf16.msra.mxu0 %v7892_v63  ;;  %v7936_v63 = vld [vmem:[%s8893_s24 + $0x1444] ss:$16 sps:$4 sm:$0xff]  }
 0x182   : > { %5634 = vmatpush2.bf16.msra.mxu1 %v7895_v61  ;;  %5594 = vmatprep.subr.bf16.mxu0 %v7900_v62  ;;  %v7939_v61 = vld [vmem:[%s8893_s24 + $0x1644] ss:$16 sps:$4 sm:$0xff]   ;;  %v7934_v62 = vld [vmem:[%s8893_s24 + $0x1440] ss:$16 sps:$4 sm:$0xff]  }
 0x183   : > { %5635 = vmatprep.subr.bf16.mxu1 %v7903_v1  ;;  %v7937_v1 = vld [vmem:[%s8893_s24 + $0x1640] ss:$16 sps:$4 sm:$0xff]  }
 0x185   : > { %5595 = vmatpush2.bf16.msra.mxu0 %v7898_v5  ;;  %v7945_v5 = vld [vmem:[%s8893_s24 + $0x1624] ss:$16 sps:$4 sm:$0xff]  }
 0x186   : > { %5636 = vmatpush2.bf16.msra.mxu1 %v7901_v7  ;;  %5646 = vmatprep.subr.bf16.mxu0 %v7906_v8  ;;  %v7940_v7 = vld [vmem:[%s8893_s24 + $0x1420] ss:$16 sps:$4 sm:$0xff]  }
 0x187   : > { %5687 = vmatprep.subr.bf16.mxu1 %v7909_v9  ;;  %v7943_v8 = vld [vmem:[%s8893_s24 + $0x1620] ss:$16 sps:$4 sm:$0xff]   ;;  %v7948_v9 = vld [vmem:[%s8893_s24 + $0x1404] ss:$16 sps:$4 sm:$0xff]  }
 0x188   : > { %v5352_v24 = vpop.f32.mrf.mxu0  ;;  %5597 = vmatmul.mubr.bf16.vlgmr.msra.gmra.mxu0 %v9368_v3 }
 0x189   : > { %v5393_v27 = vpop.f32.mrf.mxu1  ;;  %5638 = vmatmul.mubr.bf16.vlgmr.msra.gmra.mxu1 %v9381_v4  ;;  %v5353_v28 = vadd.f32 %v5352_v24, %v9299_v6  ;;  %5647 = vmatpush1.bf16.msra.mxu0 %v7904_v10  ;;  %v7951_v10 = vld [vmem:[%s8893_s24 + $0x1604] ss:$16 sps:$4 sm:$0xff]   ;;  %v7955_v24 = vld [vmem:[%s8893_s24 + $0x17e0] ss:$16 sps:$4 sm:$0xff]  }
 0x18a   : > { %5688 = vmatpush1.bf16.msra.mxu1 %v7907_v11  ;;  %v5354_v29 = vpop.f32.mrf.mxu0  ;;  %5648 = vmatprep.subr.bf16.mxu0 %v7912_v15  ;;  %v7946_v11 = vld [vmem:[%s8893_s24 + $0x1400] ss:$16 sps:$4 sm:$0xff]  }
 0x18b   : > { %v5395_v31 = vpop.f32.mrf.mxu1  ;;  %5689 = vmatprep.subr.bf16.mxu1 %v7915_v16  ;;  %v9396_v36 = vadd.f32 %v5393_v27, %v5353_v28  ;;  %v5355_v37 = vadd.f32 %v5354_v29, %v9303_v38  ;;  %5678 = vmatprep.mubr.bf16.mxu0 %v9377_v14  ;;  %v7949_v15 = vld [vmem:[%s8893_s24 + $0x1600] ss:$16 sps:$4 sm:$0xff]   ;;  %v7954_v16 = vld [vmem:[%s8893_s24 + $0x15e4] ss:$16 sps:$4 sm:$0xff]  }
 0x18c   : > { %5719 = vmatprep.mubr.bf16.mxu1 %v9389_v22  ;;  %v5356_v6 = vpop.f32.mrf.mxu0  ;;  %v7960_v27 = vld [vmem:[%s8893_s24 + $0x15c4] ss:$16 sps:$4 sm:$0xff]   ;;  %v7958_v29 = vld [vmem:[%s8893_s24 + $0x15c0] ss:$16 sps:$4 sm:$0xff]  }
 0x18d   : > { %v5397_v44 = vpop.f32.mrf.mxu1  ;;  %v9403_v45 = vadd.f32 %v5395_v31, %v5355_v37  ;;  %5649 = vmatpush1.bf16.msra.mxu0 %v7910_v21  ;;  %v7957_v21 = vld [vmem:[%s8893_s24 + $0x17e4] ss:$16 sps:$4 sm:$0xff]   ;;  %v7961_v31 = vld [vmem:[%s8893_s24 + $0x17c0] ss:$16 sps:$4 sm:$0xff]  }
 0x18e   : > { %5690 = vmatpush1.bf16.msra.mxu1 %v7913_v40  ;;  %v5357_v46 = vpop.f32.mrf.mxu0  ;;  %5650 = vmatprep.subr.bf16.mxu0 %v7918_v33  ;;  %v7952_v40 = vld [vmem:[%s8893_s24 + $0x15e0] ss:$16 sps:$4 sm:$0xff]   ;;  %v7963_v28 = vld [vmem:[%s8893_s24 + $0x17c4] ss:$16 sps:$4 sm:$0xff]  }
 0x18f   : > { %v5398_v38 = vpop.f32.mrf.mxu1  ;;  %5691 = vmatprep.subr.bf16.mxu1 %v7921_v34  ;;  %v7966_v33 = vld [vmem:[%s8893_s24 + $0x15a4] ss:$16 sps:$4 sm:$0xff]   ;;  %v7964_v37 = vld [vmem:[%s8893_s24 + $0x15a0] ss:$16 sps:$4 sm:$0xff]  }
 0x190   : > { %v7969_v34 = vld [vmem:[%s8893_s24 + $0x17a4] ss:$16 sps:$4 sm:$0xff]   ;;  %v7970_v44 = vld [vmem:[%s8893_s24 + $0x1580] ss:$16 sps:$4 sm:$0xff]  }
 0x191   : > { %5651 = vmatpush1.bf16.msra.mxu0 %v7916_v39  ;;  %v7967_v39 = vld [vmem:[%s8893_s24 + $0x17a0] ss:$16 sps:$4 sm:$0xff]   ;;  %v7975_v6 = vld [vmem:[%s8893_s24 + $0x1784] ss:$16 sps:$4 sm:$0xff]  }
 0x192   : > { %5692 = vmatpush1.bf16.msra.mxu1 %v7919_v32  ;;  %5652 = vmatprep.subr.bf16.mxu0 %v7924_v47  ;;  %v7972_v32 = vld [vmem:[%s8893_s24 + $0x1584] ss:$16 sps:$4 sm:$0xff]   ;;  %v7973_v46 = vld [vmem:[%s8893_s24 + $0x1780] ss:$16 sps:$4 sm:$0xff]  }
 0x193   : > { %5693 = vmatprep.subr.bf16.mxu1 %v7927_v50  ;;  %v7978_v38 = vld [vmem:[%s8893_s24 + $0x1564] ss:$16 sps:$4 sm:$0xff]   ;;  %v7976_v50 = vld [vmem:[%s8893_s24 + $0x1560] ss:$16 sps:$4 sm:$0xff]  }
 0x194   : > { %v7981_v47 = vld [vmem:[%s8893_s24 + $0x1764] ss:$16 sps:$4 sm:$0xff]  }
 0x195   : > { %5653 = vmatpush1.bf16.msra.mxu0 %v7922_v51  ;;  %v7979_v51 = vld [vmem:[%s8893_s24 + $0x1760] ss:$16 sps:$4 sm:$0xff]  }
 0x196   : > { %5694 = vmatpush1.bf16.msra.mxu1 %v7925_v52  ;;  %5654 = vmatprep.subr.bf16.mxu0 %v7930_v53  ;;  %v7984_v52 = vld [vmem:[%s8893_s24 + $0x1544] ss:$16 sps:$4 sm:$0xff]  }
 0x197   : > { %5695 = vmatprep.subr.bf16.mxu1 %v7933_v35  ;;  %v7987_v53 = vld [vmem:[%s8893_s24 + $0x1744] ss:$16 sps:$4 sm:$0xff]   ;;  %v7982_v35 = vld [vmem:[%s8893_s24 + $0x1540] ss:$16 sps:$4 sm:$0xff]  }
 0x199   : > { %5655 = vmatpush1.bf16.msra.mxu0 %v7928_v56  ;;  %v7985_v56 = vld [vmem:[%s8893_s24 + $0x1740] ss:$16 sps:$4 sm:$0xff]  }
 0x19a   : > { %5696 = vmatpush1.bf16.msra.mxu1 %v7931_v57  ;;  %5656 = vmatprep.subr.bf16.mxu0 %v7936_v63  ;;  %v7990_v57 = vld [vmem:[%s8893_s24 + $0x1524] ss:$16 sps:$4 sm:$0xff]  }
 0x19b   : > { %5697 = vmatprep.subr.bf16.mxu1 %v7939_v61  ;;  %v7993_v63 = vld [vmem:[%s8893_s24 + $0x1724] ss:$16 sps:$4 sm:$0xff]   ;;  %v7988_v61 = vld [vmem:[%s8893_s24 + $0x1520] ss:$16 sps:$4 sm:$0xff]  }
 0x19d   : > { %5657 = vmatpush1.bf16.msra.mxu0 %v7934_v62  ;;  %v7991_v62 = vld [vmem:[%s8893_s24 + $0x1720] ss:$16 sps:$4 sm:$0xff]  }
 0x19e   : > { %5698 = vmatpush1.bf16.msra.mxu1 %v7937_v1  ;;  %5658 = vmatprep.subr.bf16.mxu0 %v7942_v2  ;;  %v7996_v1 = vld [vmem:[%s8893_s24 + $0x1504] ss:$16 sps:$4 sm:$0xff]  }
 0x19f   : > { %5699 = vmatprep.subr.bf16.mxu1 %v7945_v5  ;;  %v7999_v2 = vld [vmem:[%s8893_s24 + $0x1704] ss:$16 sps:$4 sm:$0xff]   ;;  %v9457_v5 = vrot.slane %v9358_v58, %v8957_v49 }
 0x1a0   : > { %v8009_v58 = vld [vmem:[%s8893_s24 + $0x1844] ss:$16 sps:$4 sm:$0xff]  }
 0x1a1   : > { %5659 = vmatpush1.bf16.msra.mxu0 %v7940_v7  ;;  %v7994_v7 = vld [vmem:[%s8893_s24 + $0x1500] ss:$16 sps:$4 sm:$0xff]  }
 0x1a2   : > { %5700 = vmatpush1.bf16.msra.mxu1 %v7943_v8  ;;  %5660 = vmatprep.subr.bf16.mxu0 %v7948_v9  ;;  %v7997_v8 = vld [vmem:[%s8893_s24 + $0x1700] ss:$16 sps:$4 sm:$0xff]   ;;  %v8003_v9 = vld [vmem:[%s8893_s24 + $0x1864] ss:$16 sps:$4 sm:$0xff]  }
 0x1a3   : > { %5701 = vmatprep.subr.bf16.mxu1 %v7951_v10  ;;  %v8006_v10 = vld [vmem:[%s8893_s24 + $0xec] ss:$16 sps:$4 sm:$0xff]  }
 0x1a5   : > { %5661 = vmatpush1.bf16.msra.mxu0 %v7946_v11  ;;  %v8001_v11 = vld [vmem:[%s8893_s24 + $0x1860] ss:$16 sps:$4 sm:$0xff]  }
 0x1a6   : > { %5702 = vmatpush1.bf16.msra.mxu1 %v7949_v15  ;;  %5662 = vmatprep.subr.bf16.mxu0 %v7954_v16  ;;  %v8004_v15 = vld [vmem:[%s8893_s24 + $0xe8] ss:$16 sps:$4 sm:$0xff]   ;;  %v9467_v16 = vcombine.high %v9457_v5, %v9457_v5 }
 0x1a7   : > { %5703 = vmatprep.subr.bf16.mxu1 %v7957_v21  ;;  %v8012_v21 = vld [vmem:[%s8893_s24 + $0xcc] ss:$16 sps:$4 sm:$0xff]  }
 0x1a9   : > { %5663 = vmatpush2.bf16.msra.mxu0 %v7952_v40  ;;  %v8007_v40 = vld [vmem:[%s8893_s24 + $0x1840] ss:$16 sps:$4 sm:$0xff]  }
 0x1aa   : > { %5704 = vmatpush2.bf16.msra.mxu1 %v7955_v24  ;;  %5664 = vmatprep.subr.bf16.mxu0 %v7960_v27  ;;  %v8010_v24 = vld [vmem:[%s8893_s24 + $0xc8] ss:$16 sps:$4 sm:$0xff]  }
 0x1ab   : > { %5705 = vmatprep.subr.bf16.mxu1 %v7963_v28 }
 0x1ad   : > { %5665 = vmatpush2.bf16.msra.mxu0 %v7958_v29 }
 0x1ae   : > { %5706 = vmatpush2.bf16.msra.mxu1 %v7961_v31  ;;  %5666 = vmatprep.subr.bf16.mxu0 %v7966_v33 }
 0x1af   : > { %5707 = vmatprep.subr.bf16.mxu1 %v7969_v34  ;;  %v8015_v34 = vld [vmem:[%s8893_s24 + $0x1824] ss:$16 sps:$4 sm:$0xff]  }
 0x1b1   : > { %5667 = vmatpush2.bf16.msra.mxu0 %v7964_v37  ;;  %v8018_v37 = vld [vmem:[%s8893_s24 + $0xac] ss:$16 sps:$4 sm:$0xff]  }
 0x1b2   : > { %5708 = vmatpush2.bf16.msra.mxu1 %v7967_v39  ;;  %5668 = vmatprep.subr.bf16.mxu0 %v7972_v32 }
 0x1b3   : > { %5709 = vmatprep.subr.bf16.mxu1 %v7975_v6  ;;  %v8013_v6 = vld [vmem:[%s8893_s24 + $0x1820] ss:$16 sps:$4 sm:$0xff]  }
 0x1b5   : > { %5669 = vmatpush2.bf16.msra.mxu0 %v7970_v44  ;;  %v8016_v44 = vld [vmem:[%s8893_s24 + $0xa8] ss:$16 sps:$4 sm:$0xff]  }
 0x1b6   : > { %5710 = vmatpush2.bf16.msra.mxu1 %v7973_v46  ;;  %5670 = vmatprep.subr.bf16.mxu0 %v7978_v38  ;;  %v8748_v46 = vmov 0  }
 0x1b7   : > { %5711 = vmatprep.subr.bf16.mxu1 %v7981_v47 }
 0x1b9   : > { %5671 = vmatpush2.bf16.msra.mxu0 %v7976_v50 }
 0x1ba   : > { %5712 = vmatpush2.bf16.msra.mxu1 %v7979_v51  ;;  %5672 = vmatprep.subr.bf16.mxu0 %v7984_v52  ;;  %v8021_v51 = vld [vmem:[%s8893_s24 + $0x1804] ss:$16 sps:$4 sm:$0xff]   ;;  %v8024_v52 = vld [vmem:[%s8893_s24 + $0x8c] ss:$16 sps:$4 sm:$0xff]  }
 0x1bb   : > { %5713 = vmatprep.subr.bf16.mxu1 %v7987_v53  ;;  %v8019_v53 = vld [vmem:[%s8893_s24 + $0x1800] ss:$16 sps:$4 sm:$0xff]  }
 0x1bd   : > { %5673 = vmatpush2.bf16.msra.mxu0 %v7982_v35  ;;  %v8022_v35 = vld [vmem:[%s8893_s24 + $0x88] ss:$16 sps:$4 sm:$0xff]  }
 0x1be   : > { %5714 = vmatpush2.bf16.msra.mxu1 %v7985_v56  ;;  %5674 = vmatprep.subr.bf16.mxu0 %v7990_v57  ;;  %v8027_v56 = vld [vmem:[%s8893_s24 + $0x6c] ss:$16 sps:$4 sm:$0xff]  }
 0x1bf   : > { %5715 = vmatprep.subr.bf16.mxu1 %v7993_v63  ;;  %v8030_v57 = vld [vmem:[%s8893_s24 + $0x2ec] ss:$16 sps:$4 sm:$0xff]   ;;  %v8025_v63 = vld [vmem:[%s8893_s24 + $0x68] ss:$16 sps:$4 sm:$0xff]  }
 0x1c1   : > { %5675 = vmatpush2.bf16.msra.mxu0 %v7988_v61  ;;  %v8028_v61 = vld [vmem:[%s8893_s24 + $0x2e8] ss:$16 sps:$4 sm:$0xff]  }
 0x1c2   : > { %5716 = vmatpush2.bf16.msra.mxu1 %v7991_v62  ;;  %5676 = vmatprep.subr.bf16.mxu0 %v7996_v1  ;;  %v8033_v1 = vld [vmem:[%s8893_s24 + $0x4c] ss:$16 sps:$4 sm:$0xff]  }
 0x1c3   : > { %5717 = vmatprep.subr.bf16.mxu1 %v7999_v2  ;;  %v8036_v2 = vld [vmem:[%s8893_s24 + $0x2cc] ss:$16 sps:$4 sm:$0xff]  }
 0x1c5   : > { %5677 = vmatpush2.bf16.msra.mxu0 %v7994_v7  ;;  %v8031_v7 = vld [vmem:[%s8893_s24 + $0x48] ss:$16 sps:$4 sm:$0xff]  }
 0x1c6   : > { %5718 = vmatpush2.bf16.msra.mxu1 %v7997_v8  ;;  %5736 = vmatprep.subr.bf16.mxu0 %v8003_v9  ;;  %v8039_v8 = vld [vmem:[%s8893_s24 + $0x2c] ss:$16 sps:$4 sm:$0xff]  }
 0x1c7   : > { %5769 = vmatprep.subr.bf16.mxu1 %v8006_v10  ;;  %v8042_v9 = vld [vmem:[%s8893_s24 + $0x2ac] ss:$16 sps:$4 sm:$0xff]   ;;  %v8037_v10 = vld [vmem:[%s8893_s24 + $0x28] ss:$16 sps:$4 sm:$0xff]  }
 0x1c8   : > { %v5434_v27 = vpop.f32.mrf.mxu0  ;;  %5679 = vmatmul.mubr.bf16.vlgmr.msra.gmra.mxu0 %v9457_v5 }
 0x1c9   : > { %v5475_v28 = vpop.f32.mrf.mxu1  ;;  %5720 = vmatmul.mubr.bf16.vlgmr.msra.gmra.mxu1 %v9467_v16  ;;  %v5435_v29 = vadd.f32 %v5434_v27, %v9396_v36  ;;  %5737 = vmatpush1.bf16.msra.mxu0 %v8001_v11  ;;  %v8040_v11 = vld [vmem:[%s8893_s24 + $0x2a8] ss:$16 sps:$4 sm:$0xff]  }
 0x1ca   : > { %5770 = vmatpush1.bf16.msra.mxu1 %v8004_v15  ;;  %v5436_v31 = vpop.f32.mrf.mxu0  ;;  %5738 = vmatprep.subr.bf16.mxu0 %v8009_v58  ;;  %v8045_v15 = vld [vmem:[%s8893_s24 + $0xc] ss:$16 sps:$4 sm:$0xff]   ;;  %v8049_v27 = vld [vmem:[%s8893_s24 + $0x1e8] ss:$16 sps:$4 sm:$0xff]  }
 0x1cb   : > { %v5477_v33 = vpop.f32.mrf.mxu1  ;;  %5771 = vmatprep.subr.bf16.mxu1 %v8012_v21  ;;  %v9478_v39 = vadd.f32 %v5475_v28, %v5435_v29  ;;  %v5437_v32 = vadd.f32 %v5436_v31, %v9403_v45  ;;  %5760 = vmatprep.mubr.bf16.mxu0 %v8748_v46  ;;  %v8048_v58 = vld [vmem:[%s8893_s24 + $0x28c] ss:$16 sps:$4 sm:$0xff]   ;;  %v8043_v21 = vld [vmem:[%s8893_s24 + $0x8] ss:$16 sps:$4 sm:$0xff]  }
 0x1cc   : > { %5801 = vmatprep.mubr.bf16.mxu1 %v8971_v60  ;;  %v5438_v36 = vpop.f32.mrf.mxu0  ;;  %v6553_v60 = vld.sshfl [vmem:[%s9980_s0 + $0x18] sm:$0x1 pattern:$0x75316420]  ;;  %v8057_v29 = vld [vmem:[%s8893_s24 + $0x1cc] ss:$16 sps:$4 sm:$0xff]  }
 0x1cd   : > { %v5479_v38 = vpop.f32.mrf.mxu1  ;;  %v9485_v47 = vadd.f32 %v5477_v33, %v5437_v32  ;;  %5739 = vmatpush1.bf16.msra.mxu0 %v8007_v40  ;;  %v9499_v62 = vrot.slane %v6553_v60, %v8957_v49  ;;  %v8034_v49 = vld [vmem:[%s8893_s24 + $0x2c8] ss:$16 sps:$4 sm:$0xff]   ;;  %v8060_v31 = vld [vmem:[%s8893_s24 + $0x24c] ss:$16 sps:$4 sm:$0xff]  }
 0x1ce   : > { %5772 = vmatpush1.bf16.msra.mxu1 %v8010_v24  ;;  %v5439_v45 = vpop.f32.mrf.mxu0  ;;  %5740 = vmatprep.subr.bf16.mxu0 %v8015_v34  ;;  %v8046_v40 = vld [vmem:[%s8893_s24 + $0x288] ss:$16 sps:$4 sm:$0xff]   ;;  %v8054_v24 = vld [vmem:[%s8893_s24 + $0x26c] ss:$16 sps:$4 sm:$0xff]  }
 0x1cf   : > { %v5480_v50 = vpop.f32.mrf.mxu1  ;;  %5773 = vmatprep.subr.bf16.mxu1 %v8018_v37  ;;  %v8052_v28 = vld [vmem:[%s8893_s24 + $0x268] ss:$16 sps:$4 sm:$0xff]   ;;  %v8063_v37 = vld [vmem:[%s8893_s24 + $0x1ac] ss:$16 sps:$4 sm:$0xff]  }
 0x1d0   : > { %v8055_v33 = vld [vmem:[%s8893_s24 + $0x1c8] ss:$16 sps:$4 sm:$0xff]   ;;  %v8066_v32 = vld [vmem:[%s8893_s24 + $0x22c] ss:$16 sps:$4 sm:$0xff]  }
 0x1d1   : > { %5741 = vmatpush1.bf16.msra.mxu0 %v8013_v6  ;;  %v8058_v34 = vld [vmem:[%s8893_s24 + $0x248] ss:$16 sps:$4 sm:$0xff]   ;;  %v8069_v36 = vld [vmem:[%s8893_s24 + $0x18c] ss:$16 sps:$4 sm:$0xff]  }
 0x1d2   : > { %5774 = vmatpush1.bf16.msra.mxu1 %v8016_v44  ;;  %5742 = vmatprep.subr.bf16.mxu0 %v8021_v51  ;;  %v8061_v6 = vld [vmem:[%s8893_s24 + $0x1a8] ss:$16 sps:$4 sm:$0xff]   ;;  %v8072_v38 = vld [vmem:[%s8893_s24 + $0x20c] ss:$16 sps:$4 sm:$0xff]  }
 0x1d3   : > { %5775 = vmatprep.subr.bf16.mxu1 %v8024_v52  ;;  %v8064_v44 = vld [vmem:[%s8893_s24 + $0x228] ss:$16 sps:$4 sm:$0xff]   ;;  %v8075_v51 = vld [vmem:[%s8893_s24 + $0x16c] ss:$16 sps:$4 sm:$0xff]  }
 0x1d4   : > { %v8067_v45 = vld [vmem:[%s8893_s24 + $0x188] ss:$16 sps:$4 sm:$0xff]   ;;  %v8078_v52 = vld [vmem:[%s8893_s24 + $0x3ec] ss:$16 sps:$4 sm:$0xff]  }
 0x1d5   : > { %5743 = vmatpush1.bf16.msra.mxu0 %v8019_v53  ;;  %v8070_v50 = vld [vmem:[%s8893_s24 + $0x208] ss:$16 sps:$4 sm:$0xff]   ;;  %v8081_v60 = vld [vmem:[%s8893_s24 + $0x14c] ss:$16 sps:$4 sm:$0xff]  }
 0x1d6   : > { %5776 = vmatpush1.bf16.msra.mxu1 %v8022_v35  ;;  %5810 = vmatprep.subr.bf16.mxu0 %v8030_v57  ;;  %v8073_v53 = vld [vmem:[%s8893_s24 + $0x168] ss:$16 sps:$4 sm:$0xff]  }
 0x1d7   : > { %5777 = vmatprep.subr.bf16.mxu1 %v8027_v56  ;;  %v8076_v35 = vld [vmem:[%s8893_s24 + $0x3e8] ss:$16 sps:$4 sm:$0xff]   ;;  %v8084_v56 = vld [vmem:[%s8893_s24 + $0x3cc] ss:$16 sps:$4 sm:$0xff]  }
 0x1d8   : > { %7338 = vmatmul.mubr.msk.bf16.vlgmr.msra.gmra.mxu0 %vm5232_vm0, %v9499_v62  ;;  %v8079_v57 = vld [vmem:[%s8893_s24 + $0x148] ss:$16 sps:$4 sm:$0xff]  }
 0x1d9   : > { %5811 = vmatpush1.bf16.msra.mxu0 %v8028_v61  ;;  %5842 = vmatprep.mubr.bf16.mxu0 %v8978_v0  ;;  %v8051_v0 = vld [vmem:[%s8893_s24 + $0x1ec] ss:$16 sps:$4 sm:$0xff]  }
 0x1da   : > { %5778 = vmatpush1.bf16.msra.mxu1 %v8025_v63  ;;  %5812 = vmatprep.subr.bf16.mxu0 %v8036_v2  ;;  %v8082_v63 = vld [vmem:[%s8893_s24 + $0x3c8] ss:$16 sps:$4 sm:$0xff]   ;;  %v8087_v61 = vld [vmem:[%s8893_s24 + $0x12c] ss:$16 sps:$4 sm:$0xff]  }
 0x1db   : > { %5779 = vmatprep.subr.bf16.mxu1 %v8033_v1  ;;  %v8090_v1 = vld [vmem:[%s8893_s24 + $0x3ac] ss:$16 sps:$4 sm:$0xff]   ;;  %v8085_v2 = vld [vmem:[%s8893_s24 + $0x128] ss:$16 sps:$4 sm:$0xff]  }
 0x1dd   : > { %5813 = vmatpush1.bf16.msra.mxu0 %v8034_v49  ;;  %v8093_v49 = vld [vmem:[%s8893_s24 + $0x10c] ss:$16 sps:$4 sm:$0xff]  }
 0x1de   : > { %5780 = vmatpush1.bf16.msra.mxu1 %v8031_v7  ;;  %5814 = vmatprep.subr.bf16.mxu0 %v8042_v9  ;;  %v8088_v7 = vld [vmem:[%s8893_s24 + $0x3a8] ss:$16 sps:$4 sm:$0xff]  }
 0x1df   : > { %5781 = vmatprep.subr.bf16.mxu1 %v8039_v8  ;;  %v8096_v8 = vld [vmem:[%s8893_s24 + $0x38c] ss:$16 sps:$4 sm:$0xff]   ;;  %v8091_v9 = vld [vmem:[%s8893_s24 + $0x108] ss:$16 sps:$4 sm:$0xff]  }
 0x1e1   : > { %5815 = vmatpush1.bf16.msra.mxu0 %v8040_v11  ;;  %v8099_v11 = vld [vmem:[%s8893_s24 + $0x36c] ss:$16 sps:$4 sm:$0xff]  }
 0x1e2   : > { %5782 = vmatpush1.bf16.msra.mxu1 %v8037_v10  ;;  %5816 = vmatprep.subr.bf16.mxu0 %v8048_v58  ;;  %v8094_v10 = vld [vmem:[%s8893_s24 + $0x388] ss:$16 sps:$4 sm:$0xff]  }
 0x1e3   : > { %5783 = vmatprep.subr.bf16.mxu1 %v8045_v15  ;;  %v8102_v15 = vld [vmem:[%s8893_s24 + $0x4ec] ss:$16 sps:$4 sm:$0xff]   ;;  %v8097_v58 = vld [vmem:[%s8893_s24 + $0x368] ss:$16 sps:$4 sm:$0xff]  }
 0x1e5   : > { %5817 = vmatpush1.bf16.msra.mxu0 %v8046_v40  ;;  %v8105_v40 = vld [vmem:[%s8893_s24 + $0x34c] ss:$16 sps:$4 sm:$0xff]  }
 0x1e6   : > { %5784 = vmatpush1.bf16.msra.mxu1 %v8043_v21  ;;  %5818 = vmatprep.subr.bf16.mxu0 %v8054_v24  ;;  %v8100_v21 = vld [vmem:[%s8893_s24 + $0x4e8] ss:$16 sps:$4 sm:$0xff]  }
 0x1e7   : > { %5785 = vmatprep.subr.bf16.mxu1 %v8051_v0  ;;  %v8108_v0 = vld [vmem:[%s8893_s24 + $0x4cc] ss:$16 sps:$4 sm:$0xff]   ;;  %v8103_v24 = vld [vmem:[%s8893_s24 + $0x348] ss:$16 sps:$4 sm:$0xff]  }
 0x1e9   : > { %5819 = vmatpush1.bf16.msra.mxu0 %v8052_v28 }
 0x1ea   : > { %5786 = vmatpush2.bf16.msra.mxu1 %v8049_v27  ;;  %5820 = vmatprep.subr.bf16.mxu0 %v8060_v31  ;;  %v8106_v27 = vld [vmem:[%s8893_s24 + $0x4c8] ss:$16 sps:$4 sm:$0xff]  }
 0x1eb   : > { %5787 = vmatprep.subr.bf16.mxu1 %v8057_v29 }
 0x1ed   : > { %5821 = vmatpush1.bf16.msra.mxu0 %v8058_v34 }
 0x1ee   : > { %5788 = vmatpush2.bf16.msra.mxu1 %v8055_v33  ;;  %5822 = vmatprep.subr.bf16.mxu0 %v8066_v32  ;;  %v8114_v32 = vld [vmem:[%s8893_s24 + $0x4ac] ss:$16 sps:$4 sm:$0xff]  }
 0x1ef   : > { %5789 = vmatprep.subr.bf16.mxu1 %v8063_v37  ;;  %v8111_v37 = vld [vmem:[%s8893_s24 + $0x32c] ss:$16 sps:$4 sm:$0xff]  }
 0x1f1   : > { %5823 = vmatpush1.bf16.msra.mxu0 %v8064_v44 }
 0x1f2   : > { %5790 = vmatpush2.bf16.msra.mxu1 %v8061_v6  ;;  %5824 = vmatprep.subr.bf16.mxu0 %v8072_v38  ;;  %v8112_v38 = vld [vmem:[%s8893_s24 + $0x4a8] ss:$16 sps:$4 sm:$0xff]  }
 0x1f3   : > { %5791 = vmatprep.subr.bf16.mxu1 %v8069_v36  ;;  %v8109_v36 = vld [vmem:[%s8893_s24 + $0x328] ss:$16 sps:$4 sm:$0xff]  }
 0x1f5   : > { %5825 = vmatpush1.bf16.msra.mxu0 %v8070_v50 }
 0x1f6   : > { %5792 = vmatpush2.bf16.msra.mxu1 %v8067_v45  ;;  %5826 = vmatprep.subr.bf16.mxu0 %v8078_v52  ;;  %v8120_v52 = vld [vmem:[%s8893_s24 + $0x48c] ss:$16 sps:$4 sm:$0xff]  }
 0x1f7   : > { %5793 = vmatprep.subr.bf16.mxu1 %v8075_v51 }
 0x1f9   : > { %5827 = vmatpush2.bf16.msra.mxu0 %v8076_v35  ;;  %v8123_v35 = vld [vmem:[%s8893_s24 + $0x46c] ss:$16 sps:$4 sm:$0xff]  }
 0x1fa   : > { %5794 = vmatpush2.bf16.msra.mxu1 %v8073_v53  ;;  %5828 = vmatprep.subr.bf16.mxu0 %v8084_v56  ;;  %v8118_v53 = vld [vmem:[%s8893_s24 + $0x488] ss:$16 sps:$4 sm:$0xff]  }
 0x1fb   : > { %5795 = vmatprep.subr.bf16.mxu1 %v8081_v60  ;;  %v8126_v60 = vld [vmem:[%s8893_s24 + $0x6ec] ss:$16 sps:$4 sm:$0xff]   ;;  %v8121_v56 = vld [vmem:[%s8893_s24 + $0x468] ss:$16 sps:$4 sm:$0xff]  }
 0x1fd   : > { %5829 = vmatpush2.bf16.msra.mxu0 %v8082_v63  ;;  %v8129_v63 = vld [vmem:[%s8893_s24 + $0x44c] ss:$16 sps:$4 sm:$0xff]  }
 0x1fe   : > { %5796 = vmatpush2.bf16.msra.mxu1 %v8079_v57  ;;  %5830 = vmatprep.subr.bf16.mxu0 %v8090_v1  ;;  %v8124_v57 = vld [vmem:[%s8893_s24 + $0x6e8] ss:$16 sps:$4 sm:$0xff]  }
 0x1ff   : > { %5797 = vmatprep.subr.bf16.mxu1 %v8087_v61  ;;  %v8132_v61 = vld [vmem:[%s8893_s24 + $0x6cc] ss:$16 sps:$4 sm:$0xff]   ;;  %v8127_v1 = vld [vmem:[%s8893_s24 + $0x448] ss:$16 sps:$4 sm:$0xff]  }
 0x201   : > { %5831 = vmatpush2.bf16.msra.mxu0 %v8088_v7  ;;  %v8135_v7 = vld [vmem:[%s8893_s24 + $0x42c] ss:$16 sps:$4 sm:$0xff]  }
 0x202   : > { %5798 = vmatpush2.bf16.msra.mxu1 %v8085_v2  ;;  %5832 = vmatprep.subr.bf16.mxu0 %v8096_v8  ;;  %v8130_v2 = vld [vmem:[%s8893_s24 + $0x6c8] ss:$16 sps:$4 sm:$0xff]  }
 0x203   : > { %5799 = vmatprep.subr.bf16.mxu1 %v8093_v49  ;;  %v8138_v49 = vld [vmem:[%s8893_s24 + $0x6ac] ss:$16 sps:$4 sm:$0xff]   ;;  %v8133_v8 = vld [vmem:[%s8893_s24 + $0x428] ss:$16 sps:$4 sm:$0xff]  }
 0x205   : > { %5833 = vmatpush2.bf16.msra.mxu0 %v8094_v10  ;;  %v8144_v10 = vld [vmem:[%s8893_s24 + $0x68c] ss:$16 sps:$4 sm:$0xff]  }
 0x206   : > { %5800 = vmatpush2.bf16.msra.mxu1 %v8091_v9  ;;  %5834 = vmatprep.subr.bf16.mxu0 %v8099_v11  ;;  %v8141_v9 = vld [vmem:[%s8893_s24 + $0x40c] ss:$16 sps:$4 sm:$0xff]   ;;  %v8139_v11 = vld [vmem:[%s8893_s24 + $0x408] ss:$16 sps:$4 sm:$0xff]  }
 0x207   : > { %5851 = vmatprep.subr.bf16.mxu1 %v8102_v15  ;;  %v8142_v15 = vld [vmem:[%s8893_s24 + $0x688] ss:$16 sps:$4 sm:$0xff]  }
 0x208   : > { %v5516_v28 = vpop.f32.mrf.mxu0 }
 0x209   : > { %v5557_v29 = vpop.f32.mrf.mxu1  ;;  %5802 = vmatmul.mubr.bf16.vlgmr.msra.gmra.mxu1 %v8997_v13  ;;  %v5517_v31 = vadd.f32 %v5516_v28, %v9478_v39  ;;  %5835 = vmatpush2.bf16.msra.mxu0 %v8097_v58  ;;  %v8150_v58 = vld [vmem:[%s8893_s24 + $0x66c] ss:$16 sps:$4 sm:$0xff]   ;;  %v8154_v28 = vld [vmem:[%s8893_s24 + $0x648] ss:$16 sps:$4 sm:$0xff]  }
 0x20a   : > { %5852 = vmatpush1.bf16.msra.mxu1 %v8100_v21  ;;  %v5518_v33 = vpop.f32.mrf.mxu0  ;;  %5836 = vmatprep.subr.bf16.mxu0 %v8105_v40  ;;  %v8145_v21 = vld [vmem:[%s8893_s24 + $0x5e8] ss:$16 sps:$4 sm:$0xff]  }
 0x20b   : > { %v5559_v34 = vpop.f32.mrf.mxu1  ;;  %5853 = vmatprep.subr.bf16.mxu1 %v8108_v0  ;;  %v9560_v6 = vadd.f32 %v5557_v29, %v5517_v31  ;;  %v5519_v44 = vadd.f32 %v5518_v33, %v9485_v47  ;;  %5883 = vmatprep.mubr.bf16.mxu1 %v9003_v17  ;;  %v8117_v47 = vld [vmem:[%s8893_s24 + $0x30c] ss:$16 sps:$4 sm:$0xff]   ;;  %v8115_v17 = vld [vmem:[%s8893_s24 + $0x308] ss:$16 sps:$4 sm:$0xff]  }
 0x20c   : > { %v5520_v13 = vpop.f32.mrf.mxu0  ;;  %v8148_v40 = vld [vmem:[%s8893_s24 + $0x668] ss:$16 sps:$4 sm:$0xff]   ;;  %v8153_v0 = vld [vmem:[%s8893_s24 + $0x5cc] ss:$16 sps:$4 sm:$0xff]  }
 0x20d   : > { %v5561_v39 = vpop.f32.mrf.mxu1  ;;  %v9566_v45 = vadd.f32 %v5559_v34, %v5519_v44  ;;  %5837 = vmatpush2.bf16.msra.mxu0 %v8103_v24  ;;  %v8156_v24 = vld [vmem:[%s8893_s24 + $0x64c] ss:$16 sps:$4 sm:$0xff]   ;;  %v8157_v33 = vld [vmem:[%s8893_s24 + $0x5a8] ss:$16 sps:$4 sm:$0xff]  }
 0x20e   : > { %5854 = vmatpush1.bf16.msra.mxu1 %v8106_v27  ;;  %v5521_v50 = vpop.f32.mrf.mxu0  ;;  %5838 = vmatprep.subr.bf16.mxu0 %v8111_v37  ;;  %v8151_v27 = vld [vmem:[%s8893_s24 + $0x5c8] ss:$16 sps:$4 sm:$0xff]   ;;  %v8159_v29 = vld [vmem:[%s8893_s24 + $0x5ac] ss:$16 sps:$4 sm:$0xff]  }
 0x20f   : > { %v5562_v51 = vpop.f32.mrf.mxu1  ;;  %5855 = vmatprep.subr.bf16.mxu1 %v8114_v32  ;;  %v8162_v31 = vld [vmem:[%s8893_s24 + $0x62c] ss:$16 sps:$4 sm:$0xff]   ;;  %v8160_v34 = vld [vmem:[%s8893_s24 + $0x628] ss:$16 sps:$4 sm:$0xff]  }
 0x210   : > { %v8165_v37 = vld [vmem:[%s8893_s24 + $0x58c] ss:$16 sps:$4 sm:$0xff]   ;;  %v8163_v44 = vld [vmem:[%s8893_s24 + $0x588] ss:$16 sps:$4 sm:$0xff]  }
 0x211   : > { %5839 = vmatpush2.bf16.msra.mxu0 %v8109_v36  ;;  %v8168_v32 = vld [vmem:[%s8893_s24 + $0x60c] ss:$16 sps:$4 sm:$0xff]   ;;  %v8166_v36 = vld [vmem:[%s8893_s24 + $0x608] ss:$16 sps:$4 sm:$0xff]  }
 0x212   : > { %5856 = vmatpush1.bf16.msra.mxu1 %v8112_v38  ;;  %5840 = vmatprep.subr.bf16.mxu0 %v8117_v47  ;;  %v8171_v38 = vld [vmem:[%s8893_s24 + $0x56c] ss:$16 sps:$4 sm:$0xff]   ;;  %v8169_v39 = vld [vmem:[%s8893_s24 + $0x568] ss:$16 sps:$4 sm:$0xff]  }
 0x213   : > { %5857 = vmatprep.subr.bf16.mxu1 %v8120_v52  ;;  %v8174_v13 = vld [vmem:[%s8893_s24 + $0x7ec] ss:$16 sps:$4 sm:$0xff]   ;;  %v8172_v50 = vld [vmem:[%s8893_s24 + $0x7e8] ss:$16 sps:$4 sm:$0xff]  }
 0x214   : > { %v8177_v51 = vld [vmem:[%s8893_s24 + $0x54c] ss:$16 sps:$4 sm:$0xff]   ;;  %v8175_v52 = vld [vmem:[%s8893_s24 + $0x548] ss:$16 sps:$4 sm:$0xff]  }
 0x215   : > { %5841 = vmatpush2.bf16.msra.mxu0 %v8115_v17  ;;  %v8180_v47 = vld [vmem:[%s8893_s24 + $0x7cc] ss:$16 sps:$4 sm:$0xff]   ;;  %v8178_v17 = vld [vmem:[%s8893_s24 + $0x7c8] ss:$16 sps:$4 sm:$0xff]  }
 0x216   : > { %5858 = vmatpush1.bf16.msra.mxu1 %v8118_v53  ;;  %5892 = vmatprep.subr.bf16.mxu0 %v8126_v60  ;;  %v8183_v53 = vld [vmem:[%s8893_s24 + $0x52c] ss:$16 sps:$4 sm:$0xff]   ;;  %v8181_v60 = vld [vmem:[%s8893_s24 + $0x528] ss:$16 sps:$4 sm:$0xff]  }
 0x217   : > { %5859 = vmatprep.subr.bf16.mxu1 %v8123_v35  ;;  %v8186_v35 = vld [vmem:[%s8893_s24 + $0x7ac] ss:$16 sps:$4 sm:$0xff]  }
 0x218   : > { %5843 = vmatmul.mubr.bf16.vlgmr.msra.gmra.mxu0 %v9007_v18  ;;  %v8136_v18 = vld [vmem:[%s8893_s24 + $0x6a8] ss:$16 sps:$4 sm:$0xff]  }
 0x219   : > { %5893 = vmatpush1.bf16.msra.mxu0 %v8124_v57  ;;  %5924 = vmatprep.mubr.bf16.mxu0 %v9015_v23  ;;  %v8147_v23 = vld [vmem:[%s8893_s24 + $0x5ec] ss:$16 sps:$4 sm:$0xff]  }
 0x21a   : > { %5860 = vmatpush1.bf16.msra.mxu1 %v8121_v56  ;;  %5894 = vmatprep.subr.bf16.mxu0 %v8132_v61  ;;  %v8184_v56 = vld [vmem:[%s8893_s24 + $0x7a8] ss:$16 sps:$4 sm:$0xff]   ;;  %v8189_v57 = vld [vmem:[%s8893_s24 + $0x50c] ss:$16 sps:$4 sm:$0xff]  }
 0x21b   : > { %5861 = vmatprep.subr.bf16.mxu1 %v8129_v63  ;;  %v8192_v63 = vld [vmem:[%s8893_s24 + $0x78c] ss:$16 sps:$4 sm:$0xff]   ;;  %v8187_v61 = vld [vmem:[%s8893_s24 + $0x508] ss:$16 sps:$4 sm:$0xff]  }
 0x21d   : > { %5895 = vmatpush1.bf16.msra.mxu0 %v8130_v2  ;;  %v8195_v2 = vld [vmem:[%s8893_s24 + $0x76c] ss:$16 sps:$4 sm:$0xff]  }
 0x21e   : > { %5862 = vmatpush1.bf16.msra.mxu1 %v8127_v1  ;;  %5896 = vmatprep.subr.bf16.mxu0 %v8138_v49  ;;  %v8190_v1 = vld [vmem:[%s8893_s24 + $0x788] ss:$16 sps:$4 sm:$0xff]  }
 0x21f   : > { %5863 = vmatprep.subr.bf16.mxu1 %v8135_v7  ;;  %v8198_v7 = vld [vmem:[%s8893_s24 + $0x8ec] ss:$16 sps:$4 sm:$0xff]   ;;  %v8193_v49 = vld [vmem:[%s8893_s24 + $0x768] ss:$16 sps:$4 sm:$0xff]  }
 0x221   : > { %5897 = vmatpush1.bf16.msra.mxu0 %v8136_v18  ;;  %v8201_v18 = vld [vmem:[%s8893_s24 + $0x74c] ss:$16 sps:$4 sm:$0xff]  }
 0x222   : > { %5864 = vmatpush1.bf16.msra.mxu1 %v8133_v8  ;;  %5898 = vmatprep.subr.bf16.mxu0 %v8144_v10  ;;  %v8196_v8 = vld [vmem:[%s8893_s24 + $0x8e8] ss:$16 sps:$4 sm:$0xff]  }
 0x223   : > { %5865 = vmatprep.subr.bf16.mxu1 %v8141_v9  ;;  %v8204_v9 = vld [vmem:[%s8893_s24 + $0x8cc] ss:$16 sps:$4 sm:$0xff]  }
 0x225   : > { %5899 = vmatpush1.bf16.msra.mxu0 %v8142_v15 }
 0x226   : > { %5866 = vmatpush1.bf16.msra.mxu1 %v8139_v11  ;;  %5900 = vmatprep.subr.bf16.mxu0 %v8150_v58  ;;  %v8202_v58 = vld [vmem:[%s8893_s24 + $0x8c8] ss:$16 sps:$4 sm:$0xff]  }
 0x227   : > { %5867 = vmatprep.subr.bf16.mxu1 %v8147_v23  ;;  %v8199_v23 = vld [vmem:[%s8893_s24 + $0x748] ss:$16 sps:$4 sm:$0xff]  }
 0x229   : > { %5901 = vmatpush1.bf16.msra.mxu0 %v8148_v40 }
 0x22a   : > { %5868 = vmatpush2.bf16.msra.mxu1 %v8145_v21  ;;  %5902 = vmatprep.subr.bf16.mxu0 %v8156_v24  ;;  %v8210_v24 = vld [vmem:[%s8893_s24 + $0x8ac] ss:$16 sps:$4 sm:$0xff]  }
 0x22b   : > { %5869 = vmatprep.subr.bf16.mxu1 %v8153_v0  ;;  %v8207_v0 = vld [vmem:[%s8893_s24 + $0x72c] ss:$16 sps:$4 sm:$0xff]  }
 0x22d   : > { %5903 = vmatpush1.bf16.msra.mxu0 %v8154_v28 }
 0x22e   : > { %5870 = vmatpush2.bf16.msra.mxu1 %v8151_v27  ;;  %5904 = vmatprep.subr.bf16.mxu0 %v8162_v31  ;;  %v8205_v31 = vld [vmem:[%s8893_s24 + $0x728] ss:$16 sps:$4 sm:$0xff]  }
 0x22f   : > { %5871 = vmatprep.subr.bf16.mxu1 %v8159_v29 }
 0x231   : > { %5905 = vmatpush1.bf16.msra.mxu0 %v8160_v34 }
 0x232   : > { %5872 = vmatpush2.bf16.msra.mxu1 %v8157_v33  ;;  %5906 = vmatprep.subr.bf16.mxu0 %v8168_v32  ;;  %v8208_v33 = vld [vmem:[%s8893_s24 + $0x8a8] ss:$16 sps:$4 sm:$0xff]  }
 0x233   : > { %5873 = vmatprep.subr.bf16.mxu1 %v8165_v37  ;;  %v8211_v32 = vld [vmem:[%s8893_s24 + $0x708] ss:$16 sps:$4 sm:$0xff]  }
 0x235   : > { %5907 = vmatpush1.bf16.msra.mxu0 %v8166_v36  ;;  %v8219_v36 = vld [vmem:[%s8893_s24 + $0x86c] ss:$16 sps:$4 sm:$0xff]  }
 0x236   : > { %5874 = vmatpush2.bf16.msra.mxu1 %v8163_v44  ;;  %5908 = vmatprep.subr.bf16.mxu0 %v8174_v13  ;;  %v8214_v44 = vld [vmem:[%s8893_s24 + $0x888] ss:$16 sps:$4 sm:$0xff]  }
 0x237   : > { %5875 = vmatprep.subr.bf16.mxu1 %v8171_v38  ;;  %v8222_v38 = vld [vmem:[%s8893_s24 + $0xaec] ss:$16 sps:$4 sm:$0xff]   ;;  %v8217_v13 = vld [vmem:[%s8893_s24 + $0x868] ss:$16 sps:$4 sm:$0xff]  }
 0x239   : > { %5909 = vmatpush2.bf16.msra.mxu0 %v8172_v50  ;;  %v8225_v50 = vld [vmem:[%s8893_s24 + $0x84c] ss:$16 sps:$4 sm:$0xff]  }
 0x23a   : > { %5876 = vmatpush2.bf16.msra.mxu1 %v8169_v39  ;;  %5910 = vmatprep.subr.bf16.mxu0 %v8180_v47  ;;  %v8220_v39 = vld [vmem:[%s8893_s24 + $0xae8] ss:$16 sps:$4 sm:$0xff]  }
 0x23b   : > { %5877 = vmatprep.subr.bf16.mxu1 %v8177_v51  ;;  %v8228_v51 = vld [vmem:[%s8893_s24 + $0xacc] ss:$16 sps:$4 sm:$0xff]   ;;  %v8223_v47 = vld [vmem:[%s8893_s24 + $0x848] ss:$16 sps:$4 sm:$0xff]  }
 0x23d   : > { %5911 = vmatpush2.bf16.msra.mxu0 %v8178_v17  ;;  %v8231_v17 = vld [vmem:[%s8893_s24 + $0x82c] ss:$16 sps:$4 sm:$0xff]  }
 0x23e   : > { %5878 = vmatpush2.bf16.msra.mxu1 %v8175_v52  ;;  %5912 = vmatprep.subr.bf16.mxu0 %v8186_v35  ;;  %v8226_v52 = vld [vmem:[%s8893_s24 + $0xac8] ss:$16 sps:$4 sm:$0xff]  }
 0x23f   : > { %5879 = vmatprep.subr.bf16.mxu1 %v8183_v53  ;;  %v8234_v53 = vld [vmem:[%s8893_s24 + $0xaac] ss:$16 sps:$4 sm:$0xff]   ;;  %v8229_v35 = vld [vmem:[%s8893_s24 + $0x828] ss:$16 sps:$4 sm:$0xff]  }
 0x241   : > { %5913 = vmatpush2.bf16.msra.mxu0 %v8184_v56  ;;  %v8240_v56 = vld [vmem:[%s8893_s24 + $0xa8c] ss:$16 sps:$4 sm:$0xff]  }
 0x242   : > { %5880 = vmatpush2.bf16.msra.mxu1 %v8181_v60  ;;  %5914 = vmatprep.subr.bf16.mxu0 %v8192_v63  ;;  %v8237_v60 = vld [vmem:[%s8893_s24 + $0x80c] ss:$16 sps:$4 sm:$0xff]   ;;  %v8238_v63 = vld [vmem:[%s8893_s24 + $0xa88] ss:$16 sps:$4 sm:$0xff]  }
 0x243   : > { %5881 = vmatprep.subr.bf16.mxu1 %v8189_v57  ;;  %v8235_v57 = vld [vmem:[%s8893_s24 + $0x808] ss:$16 sps:$4 sm:$0xff]  }
 0x245   : > { %5915 = vmatpush2.bf16.msra.mxu0 %v8190_v1  ;;  %v8241_v1 = vld [vmem:[%s8893_s24 + $0x9e8] ss:$16 sps:$4 sm:$0xff]  }
 0x246   : > { %5882 = vmatpush2.bf16.msra.mxu1 %v8187_v61  ;;  %5916 = vmatprep.subr.bf16.mxu0 %v8195_v2  ;;  %v8246_v61 = vld [vmem:[%s8893_s24 + $0xa6c] ss:$16 sps:$4 sm:$0xff]   ;;  %v8244_v2 = vld [vmem:[%s8893_s24 + $0xa68] ss:$16 sps:$4 sm:$0xff]  }
 0x247   : > { %5933 = vmatprep.subr.bf16.mxu1 %v8198_v7  ;;  %v8249_v7 = vld [vmem:[%s8893_s24 + $0x9cc] ss:$16 sps:$4 sm:$0xff]  }
 0x248   : > { %v5598_v10 = vpop.f32.mrf.mxu0 }
 0x249   : > { %v5639_v11 = vpop.f32.mrf.mxu1  ;;  %5884 = vmatmul.mubr.bf16.vlgmr.msra.gmra.mxu1 %v9080_v26  ;;  %v5599_v15 = vadd.f32 %v5598_v10, %v9560_v6  ;;  %5917 = vmatpush2.bf16.msra.mxu0 %v8193_v49  ;;  %v8252_v49 = vld [vmem:[%s8893_s24 + $0xa4c] ss:$16 sps:$4 sm:$0xff]  }
 0x24a   : > { %5934 = vmatpush1.bf16.msra.mxu1 %v8196_v8  ;;  %v5600_v21 = vpop.f32.mrf.mxu0  ;;  %5918 = vmatprep.subr.bf16.mxu0 %v8201_v18  ;;  %v8247_v8 = vld [vmem:[%s8893_s24 + $0x9c8] ss:$16 sps:$4 sm:$0xff]   ;;  %v8258_v10 = vld [vmem:[%s8893_s24 + $0xa2c] ss:$16 sps:$4 sm:$0xff]  }
 0x24b   : > { %v5641_v40 = vpop.f32.mrf.mxu1  ;;  %5935 = vmatprep.subr.bf16.mxu1 %v8204_v9  ;;  %v9634_v27 = vadd.f32 %v5639_v11, %v5599_v15  ;;  %v5601_v26 = vadd.f32 %v5600_v21, %v9566_v45  ;;  %5965 = vmatprep.mubr.bf16.mxu1 %v9111_v41  ;;  %v8213_v45 = vld [vmem:[%s8893_s24 + $0x70c] ss:$16 sps:$4 sm:$0xff]   ;;  %v8250_v18 = vld [vmem:[%s8893_s24 + $0xa48] ss:$16 sps:$4 sm:$0xff]  }
 0x24c   : > { %v5602_v6 = vpop.f32.mrf.mxu0  ;;  %v8216_v41 = vld [vmem:[%s8893_s24 + $0x88c] ss:$16 sps:$4 sm:$0xff]   ;;  %v8253_v11 = vld [vmem:[%s8893_s24 + $0x9a8] ss:$16 sps:$4 sm:$0xff]  }
 0x24d   : > { %v5643_v28 = vpop.f32.mrf.mxu1  ;;  %v9638_v29 = vadd.f32 %v5641_v40, %v5601_v26  ;;  %5919 = vmatpush2.bf16.msra.mxu0 %v8199_v23  ;;  %v8255_v9 = vld [vmem:[%s8893_s24 + $0x9ac] ss:$16 sps:$4 sm:$0xff]   ;;  %v8256_v15 = vld [vmem:[%s8893_s24 + $0xa28] ss:$16 sps:$4 sm:$0xff]  }
 0x24e   : > { %5936 = vmatpush1.bf16.msra.mxu1 %v8202_v58  ;;  %v5603_v34 = vpop.f32.mrf.mxu0  ;;  %5920 = vmatprep.subr.bf16.mxu0 %v8207_v0  ;;  %v8261_v23 = vld [vmem:[%s8893_s24 + $0x98c] ss:$16 sps:$4 sm:$0xff]   ;;  %v8259_v21 = vld [vmem:[%s8893_s24 + $0x988] ss:$16 sps:$4 sm:$0xff]  }
 0x24f   : > { %v5644_v37 = vpop.f32.mrf.mxu1  ;;  %5937 = vmatprep.subr.bf16.mxu1 %v8210_v24  ;;  %v8264_v58 = vld [vmem:[%s8893_s24 + $0xa0c] ss:$16 sps:$4 sm:$0xff]   ;;  %v8262_v40 = vld [vmem:[%s8893_s24 + $0xa08] ss:$16 sps:$4 sm:$0xff]  }
 0x250   : > { %v8267_v0 = vld [vmem:[%s8893_s24 + $0x96c] ss:$16 sps:$4 sm:$0xff]   ;;  %v8265_v26 = vld [vmem:[%s8893_s24 + $0x968] ss:$16 sps:$4 sm:$0xff]  }
 0x251   : > { %5921 = vmatpush2.bf16.msra.mxu0 %v8205_v31  ;;  %v8270_v24 = vld [vmem:[%s8893_s24 + $0xbec] ss:$16 sps:$4 sm:$0xff]   ;;  %v8268_v6 = vld [vmem:[%s8893_s24 + $0xbe8] ss:$16 sps:$4 sm:$0xff]  }
 0x252   : > { %5938 = vmatpush1.bf16.msra.mxu1 %v8208_v33  ;;  %5922 = vmatprep.subr.bf16.mxu0 %v8213_v45  ;;  %v8273_v28 = vld [vmem:[%s8893_s24 + $0x94c] ss:$16 sps:$4 sm:$0xff]   ;;  %v8271_v33 = vld [vmem:[%s8893_s24 + $0x948] ss:$16 sps:$4 sm:$0xff]  }
 0x253   : > { %5939 = vmatprep.subr.bf16.mxu1 %v8216_v41  ;;  %v8276_v31 = vld [vmem:[%s8893_s24 + $0xbcc] ss:$16 sps:$4 sm:$0xff]   ;;  %v8274_v34 = vld [vmem:[%s8893_s24 + $0xbc8] ss:$16 sps:$4 sm:$0xff]  }
 0x254   : > { %v8279_v37 = vld [vmem:[%s8893_s24 + $0x92c] ss:$16 sps:$4 sm:$0xff]   ;;  %v8277_v41 = vld [vmem:[%s8893_s24 + $0x928] ss:$16 sps:$4 sm:$0xff]  }
 0x255   : > { %5923 = vmatpush2.bf16.msra.mxu0 %v8211_v32  ;;  %v8282_v45 = vld [vmem:[%s8893_s24 + $0xbac] ss:$16 sps:$4 sm:$0xff]   ;;  %v8280_v32 = vld [vmem:[%s8893_s24 + $0xba8] ss:$16 sps:$4 sm:$0xff]  }
 0x256   : > { %5940 = vmatpush1.bf16.msra.mxu1 %v8214_v44  ;;  %5974 = vmatprep.subr.bf16.mxu0 %v8222_v38  ;;  %v8285_v44 = vld [vmem:[%s8893_s24 + $0x90c] ss:$16 sps:$4 sm:$0xff]   ;;  %v8283_v38 = vld [vmem:[%s8893_s24 + $0x908] ss:$16 sps:$4 sm:$0xff]  }
 0x257   : > { %5941 = vmatprep.subr.bf16.mxu1 %v8219_v36  ;;  %v8288_v36 = vld [vmem:[%s8893_s24 + $0xb8c] ss:$16 sps:$4 sm:$0xff]  }
 0x258   : > { %5925 = vmatmul.mubr.bf16.vlgmr.msra.gmra.mxu0 %v9087_v30  ;;  %v8232_v30 = vld [vmem:[%s8893_s24 + $0xaa8] ss:$16 sps:$4 sm:$0xff]  }
 0x259   : > { %5975 = vmatpush1.bf16.msra.mxu0 %v8220_v39  ;;  %6006 = vmatprep.mubr.bf16.mxu0 %v9116_v42  ;;  %v8243_v42 = vld [vmem:[%s8893_s24 + $0x9ec] ss:$16 sps:$4 sm:$0xff]  }
 0x25a   : > { %5942 = vmatpush1.bf16.msra.mxu1 %v8217_v13  ;;  %5976 = vmatprep.subr.bf16.mxu0 %v8228_v51  ;;  %v8286_v13 = vld [vmem:[%s8893_s24 + $0xb88] ss:$16 sps:$4 sm:$0xff]   ;;  %v8291_v39 = vld [vmem:[%s8893_s24 + $0xb6c] ss:$16 sps:$4 sm:$0xff]  }
 0x25b   : > { %5943 = vmatprep.subr.bf16.mxu1 %v8225_v50  ;;  %v8294_v50 = vld [vmem:[%s8893_s24 + $0xcec] ss:$16 sps:$4 sm:$0xff]   ;;  %v8289_v51 = vld [vmem:[%s8893_s24 + $0xb68] ss:$16 sps:$4 sm:$0xff]  }
 0x25d   : > { %5977 = vmatpush1.bf16.msra.mxu0 %v8226_v52  ;;  %v8297_v52 = vld [vmem:[%s8893_s24 + $0xb4c] ss:$16 sps:$4 sm:$0xff]  }
 0x25e   : > { %5944 = vmatpush1.bf16.msra.mxu1 %v8223_v47  ;;  %5978 = vmatprep.subr.bf16.mxu0 %v8234_v53  ;;  %v8292_v47 = vld [vmem:[%s8893_s24 + $0xce8] ss:$16 sps:$4 sm:$0xff]  }
 0x25f   : > { %5945 = vmatprep.subr.bf16.mxu1 %v8231_v17  ;;  %v8300_v17 = vld [vmem:[%s8893_s24 + $0xccc] ss:$16 sps:$4 sm:$0xff]  }
 0x261   : > { %5979 = vmatpush1.bf16.msra.mxu0 %v8232_v30 }
 0x262   : > { %5946 = vmatpush1.bf16.msra.mxu1 %v8229_v35  ;;  %5980 = vmatprep.subr.bf16.mxu0 %v8240_v56  ;;  %v8298_v56 = vld [vmem:[%s8893_s24 + $0xcc8] ss:$16 sps:$4 sm:$0xff]  }
 0x263   : > { %5947 = vmatprep.subr.bf16.mxu1 %v8237_v60  ;;  %v8295_v60 = vld [vmem:[%s8893_s24 + $0xb48] ss:$16 sps:$4 sm:$0xff]  }
 0x265   : > { %5981 = vmatpush1.bf16.msra.mxu0 %v8238_v63 }
 0x266   : > { %5948 = vmatpush1.bf16.msra.mxu1 %v8235_v57  ;;  %5982 = vmatprep.subr.bf16.mxu0 %v8246_v61  ;;  %v8306_v61 = vld [vmem:[%s8893_s24 + $0xcac] ss:$16 sps:$4 sm:$0xff]  }
 0x267   : > { %5949 = vmatprep.subr.bf16.mxu1 %v8243_v42  ;;  %v8303_v42 = vld [vmem:[%s8893_s24 + $0xb2c] ss:$16 sps:$4 sm:$0xff]  }
 0x269   : > { %5983 = vmatpush1.bf16.msra.mxu0 %v8244_v2 }
 0x26a   : > { %5950 = vmatpush2.bf16.msra.mxu1 %v8241_v1  ;;  %5984 = vmatprep.subr.bf16.mxu0 %v8252_v49  ;;  %v8301_v49 = vld [vmem:[%s8893_s24 + $0xb28] ss:$16 sps:$4 sm:$0xff]  }
 0x26b   : > { %5951 = vmatprep.subr.bf16.mxu1 %v8249_v7 }
 0x26d   : > { %5985 = vmatpush1.bf16.msra.mxu0 %v8250_v18 }
 0x26e   : > { %5952 = vmatpush2.bf16.msra.mxu1 %v8247_v8  ;;  %5986 = vmatprep.subr.bf16.mxu0 %v8258_v10  ;;  %v8304_v8 = vld [vmem:[%s8893_s24 + $0xca8] ss:$16 sps:$4 sm:$0xff]  }
 0x26f   : > { %5953 = vmatprep.subr.bf16.mxu1 %v8255_v9  ;;  %v8307_v10 = vld [vmem:[%s8893_s24 + $0xb08] ss:$16 sps:$4 sm:$0xff]  }
 0x271   : > { %5987 = vmatpush1.bf16.msra.mxu0 %v8256_v15  ;;  %v8315_v15 = vld [vmem:[%s8893_s24 + $0xc6c] ss:$16 sps:$4 sm:$0xff]  }
 0x272   : > { %5954 = vmatpush2.bf16.msra.mxu1 %v8253_v11  ;;  %5988 = vmatprep.subr.bf16.mxu0 %v8264_v58  ;;  %v8310_v11 = vld [vmem:[%s8893_s24 + $0xc88] ss:$16 sps:$4 sm:$0xff]   ;;  %v6306_v58 = vsub.s32 0, %v8949_v43 }
 0x273   : > { %5955 = vmatprep.subr.bf16.mxu1 %v8261_v23  ;;  %v8318_v23 = vld [vmem:[%s8893_s24 + $0xeec] ss:$16 sps:$4 sm:$0xff]  }
 0x275   : > { %5989 = vmatpush1.bf16.msra.mxu0 %v8262_v40  ;;  %v8313_v40 = vld [vmem:[%s8893_s24 + $0xc68] ss:$16 sps:$4 sm:$0xff]  }
 0x276   : > { %5956 = vmatpush2.bf16.msra.mxu1 %v8259_v21  ;;  %5990 = vmatprep.subr.bf16.mxu0 %v8270_v24  ;;  %v9720_v21 = vld [vmem:[%s8904_s29] sm:$0xf]  ;;  %v6310_v24 = vsub.s32 1, %v8949_v43 }
 0x277   : > { %5957 = vmatprep.subr.bf16.mxu1 %v8267_v0  ;;  %v8316_v0 = vld [vmem:[%s8893_s24 + $0xee8] ss:$16 sps:$4 sm:$0xff]  }
 0x279   : > { %5991 = vmatpush2.bf16.msra.mxu0 %v8268_v6  ;;  %v8321_v6 = vld [vmem:[%s8893_s24 + $0xc4c] ss:$16 sps:$4 sm:$0xff]  }
 0x27a   : > { %5958 = vmatpush2.bf16.msra.mxu1 %v8265_v26  ;;  %5992 = vmatprep.subr.bf16.mxu0 %v8276_v31  ;;  %v9727_v26 = vld [vmem:[%s274_s10] sm:$0xf]  ;;  %v6307_v31 = vrot.slane %v9720_v21, %v6306_v58 }
 0x27b   : > { %5959 = vmatprep.subr.bf16.mxu1 %v8273_v28  ;;  %v8324_v28 = vld [vmem:[%s8893_s24 + $0xecc] ss:$16 sps:$4 sm:$0xff]  }
 0x27d   : > { %5993 = vmatpush2.bf16.msra.mxu0 %v8274_v34 }
 0x27e   : > { %5960 = vmatpush2.bf16.msra.mxu1 %v8271_v33  ;;  %5994 = vmatprep.subr.bf16.mxu0 %v8282_v45  ;;  %v6311_v45 = vrot.slane %v9720_v21, %v6310_v24 }
 0x27f   : > { %5961 = vmatprep.subr.bf16.mxu1 %v8279_v37  ;;  %v6333_v37 = vrot.slane %v9727_v26, %v6306_v58  ;;  %v8363_v58 = vld [vmem:[%s8893_s24 + $0xd6c] ss:$16 sps:$4 sm:$0xff]  }
 0x281   : > { %5995 = vmatpush2.bf16.msra.mxu0 %v8280_v32  ;;  %v8322_v32 = vld [vmem:[%s8893_s24 + $0xec8] ss:$16 sps:$4 sm:$0xff]  }
 0x282   : > { %5962 = vmatpush2.bf16.msra.mxu1 %v8277_v41  ;;  %5996 = vmatprep.subr.bf16.mxu0 %v8288_v36  ;;  %v8319_v41 = vld [vmem:[%s8893_s24 + $0xc48] ss:$16 sps:$4 sm:$0xff]   ;;  %v8327_v36 = vld [vmem:[%s8893_s24 + $0xc2c] ss:$16 sps:$4 sm:$0xff]  }
 0x283   : > { %5963 = vmatprep.subr.bf16.mxu1 %v8285_v44 }
 0x285   : > { %5997 = vmatpush2.bf16.msra.mxu0 %v8286_v13 }
 0x286   : > { %5964 = vmatpush2.bf16.msra.mxu1 %v8283_v38  ;;  %5998 = vmatprep.subr.bf16.mxu0 %v8291_v39  ;;  %v8330_v38 = vld [vmem:[%s8893_s24 + $0xeac] ss:$16 sps:$4 sm:$0xff]   ;;  %v6337_v39 = vrot.slane %v9727_v26, %v6310_v24  ;;  %v8364_v24 = vld [vmem:[%s8893_s24 + $0xfe8] ss:$16 sps:$4 sm:$0xff]  }
 0x287   : > { %6015 = vmatprep.subr.bf16.mxu1 %v8294_v50 }
 0x288   : > { %v5680_v53 = vpop.f32.mrf.mxu0 }
 0x289   : > { %v5721_v35 = vpop.f32.mrf.mxu1  ;;  %5966 = vmatmul.mubr.bf16.vlgmr.msra.gmra.mxu1 %v9180_v48  ;;  %v5681_v30 = vadd.f32 %v5680_v53, %v9634_v27  ;;  %5999 = vmatpush2.bf16.msra.mxu0 %v8289_v51 }
 0x28a   : > { %6016 = vmatpush1.bf16.msra.mxu1 %v8292_v47  ;;  %v5682_v57 = vpop.f32.mrf.mxu0  ;;  %6000 = vmatprep.subr.bf16.mxu0 %v8297_v52  ;;  %v8325_v52 = vld [vmem:[%s8893_s24 + $0xc28] ss:$16 sps:$4 sm:$0xff]  }
 0x28b   : > { %v5723_v63 = vpop.f32.mrf.mxu1  ;;  %6017 = vmatprep.subr.bf16.mxu1 %v8300_v17  ;;  %v5722_v1 = vadd.f32 %v5721_v35, %v5681_v30  ;;  %v5683_v2 = vadd.f32 %v5682_v57, %v9638_v29  ;;  %6047 = vmatprep.mubr.bf16.mxu1 %v9187_v54  ;;  %v8309_v29 = vld [vmem:[%s8893_s24 + $0xb0c] ss:$16 sps:$4 sm:$0xff]   ;;  %v8328_v17 = vld [vmem:[%s8893_s24 + $0xea8] ss:$16 sps:$4 sm:$0xff]  }
 0x28c   : > { %v5684_v48 = vpop.f32.mrf.mxu0  ;;  %v8312_v54 = vld [vmem:[%s8893_s24 + $0xc8c] ss:$16 sps:$4 sm:$0xff]   ;;  %v8331_v57 = vld [vmem:[%s8893_s24 + $0xc08] ss:$16 sps:$4 sm:$0xff]  }
 0x28d   : > { %v5725_v27 = vpop.f32.mrf.mxu1  ;;  %v5724_v7 = vadd.f32 %v5723_v63, %v5683_v2  ;;  %6001 = vmatpush2.bf16.msra.mxu0 %v8295_v60  ;;  %v8333_v35 = vld [vmem:[%s8893_s24 + $0xc0c] ss:$16 sps:$4 sm:$0xff]   ;;  %v8334_v63 = vld [vmem:[%s8893_s24 + $0xe88] ss:$16 sps:$4 sm:$0xff]  }
 0x28e   : > { %6018 = vmatpush1.bf16.msra.mxu1 %v8298_v56  ;;  %v5685_v18 = vpop.f32.mrf.mxu0  ;;  %6002 = vmatprep.subr.bf16.mxu0 %v8303_v42  ;;  %v8336_v30 = vld [vmem:[%s8893_s24 + $0xe8c] ss:$16 sps:$4 sm:$0xff]   ;;  %v8337_v2 = vld [vmem:[%s8893_s24 + $0xde8] ss:$16 sps:$4 sm:$0xff]  }
 0x28f   : > { %v5726_v9 = vpop.f32.mrf.mxu1  ;;  %6019 = vmatprep.subr.bf16.mxu1 %v8306_v61  ;;  %v8339_v42 = vld [vmem:[%s8893_s24 + $0xdec] ss:$16 sps:$4 sm:$0xff]   ;;  %v8340_v48 = vld [vmem:[%s8893_s24 + $0xe68] ss:$16 sps:$4 sm:$0xff]  }
 0x290   : > { %v8342_v61 = vld [vmem:[%s8893_s24 + $0xe6c] ss:$16 sps:$4 sm:$0xff]  }
 0x291   : > { %6003 = vmatpush2.bf16.msra.mxu0 %v8301_v49  ;;  %v8345_v27 = vld [vmem:[%s8893_s24 + $0xdcc] ss:$16 sps:$4 sm:$0xff]   ;;  %v8343_v49 = vld [vmem:[%s8893_s24 + $0xdc8] ss:$16 sps:$4 sm:$0xff]  }
 0x292   : > { %6020 = vmatpush1.bf16.msra.mxu1 %v8304_v8  ;;  %6004 = vmatprep.subr.bf16.mxu0 %v8309_v29  ;;  %v8346_v8 = vld [vmem:[%s8893_s24 + $0xe48] ss:$16 sps:$4 sm:$0xff]   ;;  %v8351_v18 = vld [vmem:[%s8893_s24 + $0xdac] ss:$16 sps:$4 sm:$0xff]  }
 0x293   : > { %6021 = vmatprep.subr.bf16.mxu1 %v8312_v54  ;;  %v8354_v9 = vld [vmem:[%s8893_s24 + $0xe2c] ss:$16 sps:$4 sm:$0xff]   ;;  %v8349_v29 = vld [vmem:[%s8893_s24 + $0xda8] ss:$16 sps:$4 sm:$0xff]  }
 0x294   : > { %v8352_v54 = vld [vmem:[%s8893_s24 + $0xe28] ss:$16 sps:$4 sm:$0xff]  }
 0x295   : > { %6005 = vmatpush2.bf16.msra.mxu0 %v8307_v10  ;;  %v8357_v10 = vld [vmem:[%s8893_s24 + $0xd8c] ss:$16 sps:$4 sm:$0xff]  }
 0x296   : > { %6022 = vmatpush1.bf16.msra.mxu1 %v8310_v11  ;;  %6056 = vmatprep.subr.bf16.mxu0 %v8318_v23  ;;  %v8360_v11 = vld [vmem:[%s8893_s24 + $0xe0c] ss:$16 sps:$4 sm:$0xff]   ;;  %v8358_v23 = vld [vmem:[%s8893_s24 + $0xe08] ss:$16 sps:$4 sm:$0xff]  }
 0x297   : > { %6023 = vmatprep.subr.bf16.mxu1 %v8315_v15  ;;  %v8355_v15 = vld [vmem:[%s8893_s24 + $0xd88] ss:$16 sps:$4 sm:$0xff]  }
 0x298   : > { %v5762_v33 = vpop.f32.mrf.mxu0  ;;  %6007 = vmatmul.mubr.bf16.vlgmr.msra.gmra.mxu0 %v9191_v55 }
 0x299   : > { %v5763_v34 = vadd.f32 %v5762_v33, %v5722_v1  ;;  %6057 = vmatpush1.bf16.msra.mxu0 %v8316_v0  ;;  %6088 = vmatprep.mubr.bf16.mxu0 %v9199_v59  ;;  %v8361_v0 = vld [vmem:[%s8893_s24 + $0xd68] ss:$16 sps:$4 sm:$0xff]  }
 0x29a   : > { %6024 = vmatpush1.bf16.msra.mxu1 %v8313_v40  ;;  %v5764_v44 = vpop.f32.mrf.mxu0  ;;  %6058 = vmatprep.subr.bf16.mxu0 %v8324_v28  ;;  %v8366_v40 = vld [vmem:[%s8893_s24 + $0xfec] ss:$16 sps:$4 sm:$0xff]   ;;  %v8370_v33 = vld [vmem:[%s8893_s24 + $0xfc8] ss:$16 sps:$4 sm:$0xff]  }
 0x29b   : > { %6025 = vmatprep.subr.bf16.mxu1 %v8321_v6  ;;  %v6324_v13 = vmul.f32 %v6307_v31, %v5763_v34  ;;  %v5765_v55 = vadd.f32 %v5764_v44, %v5724_v7  ;;  %v8348_v7 = vld [vmem:[%s8893_s24 + $0xe4c] ss:$16 sps:$4 sm:$0xff]   ;;  %v8367_v31 = vld [vmem:[%s8893_s24 + $0xd48] ss:$16 sps:$4 sm:$0xff]  }
 0x29c   : > { %v5766_v50 = vpop.f32.mrf.mxu0  ;;  %v8369_v6 = vld [vmem:[%s8893_s24 + $0xd4c] ss:$16 sps:$4 sm:$0xff]  }
 0x29d   : > { %v6350_v51 = vadd.f32 %v6333_v37, %v6324_v13  ;;  %v6325_v47 = vmul.f32 %v6311_v45, %v5765_v55  ;;  %6059 = vmatpush1.bf16.msra.mxu0 %v8322_v32  ;;  %v8372_v28 = vld [vmem:[%s8893_s24 + $0xfcc] ss:$16 sps:$4 sm:$0xff]   ;;  %v8373_v45 = vld [vmem:[%s8893_s24 + $0xd28] ss:$16 sps:$4 sm:$0xff]  }
 0x29e   : > { %6026 = vmatpush1.bf16.msra.mxu1 %v8319_v41  ;;  %v5767_v53 = vpop.f32.mrf.mxu0  ;;  %6060 = vmatprep.subr.bf16.mxu0 %v8330_v38  ;;  %v8375_v34 = vld [vmem:[%s8893_s24 + $0xd2c] ss:$16 sps:$4 sm:$0xff]   ;;  %v8376_v41 = vld [vmem:[%s8893_s24 + $0xfa8] ss:$16 sps:$4 sm:$0xff]  }
 0x29f   : > { %6027 = vmatprep.subr.bf16.mxu1 %v8327_v36  ;;  %v6351_v60 = vadd.f32 %v6337_v39, %v6325_v47  ;;  %v7340_v59 = vclamps-f32 %v6350_v51, 1.0  ;;  %v8378_v37 = vld [vmem:[%s8893_s24 + $0xfac] ss:$16 sps:$4 sm:$0xff]   ;;  %v8379_v36 = vld [vmem:[%s8893_s24 + $0xd08] ss:$16 sps:$4 sm:$0xff]  }
 0x2a0   : > { %v8381_v32 = vld [vmem:[%s8893_s24 + $0xd0c] ss:$16 sps:$4 sm:$0xff]   ;;  %v8382_v38 = vld [vmem:[%s8893_s24 + $0xf88] ss:$16 sps:$4 sm:$0xff]  }
 0x2a1   : > { %v7341_v56 = vclamps-f32 %v6351_v60, 1.0  ;;  %6061 = vmatpush1.bf16.msra.mxu0 %v8328_v17  ;;  %v8384_v44 = vld [vmem:[%s8893_s24 + $0xf8c] ss:$16 sps:$4 sm:$0xff]   ;;  %v8385_v39 = vld [vmem:[%s8893_s24 + $0xf68] ss:$16 sps:$4 sm:$0xff]  }
 0x2a2   : > { %6028 = vmatpush1.bf16.msra.mxu1 %v8325_v52  ;;  %6062 = vmatprep.subr.bf16.mxu0 %v8336_v30  ;;  %v8387_v13 = vld [vmem:[%s8893_s24 + $0xf6c] ss:$16 sps:$4 sm:$0xff]   ;;  %v8388_v50 = vld [vmem:[%s8893_s24 + $0x10e8] ss:$16 sps:$4 sm:$0xff]  }
 0x2a3   : > { %6029 = vmatprep.subr.bf16.mxu1 %v8333_v35  ;;  %v9749_v1 = vcombine.low %v7340_v59, %v7341_v56  ;;  %v8390_v55 = vld [vmem:[%s8893_s24 + $0x10ec] ss:$16 sps:$4 sm:$0xff]   ;;  %v8391_v17 = vld [vmem:[%s8893_s24 + $0xf48] ss:$16 sps:$4 sm:$0xff]  }
 0x2a4   : > { %v8393_v51 = vld [vmem:[%s8893_s24 + $0xf4c] ss:$16 sps:$4 sm:$0xff]   ;;  %v8394_v53 = vld [vmem:[%s8893_s24 + $0x10c8] ss:$16 sps:$4 sm:$0xff]  }
 0x2a5   : > { %6063 = vmatpush1.bf16.msra.mxu0 %v8334_v63  ;;  %v8396_v47 = vld [vmem:[%s8893_s24 + $0x10cc] ss:$16 sps:$4 sm:$0xff]   ;;  %v8400_v56 = vld [vmem:[%s8893_s24 + $0x10a8] ss:$16 sps:$4 sm:$0xff]  }
 0x2a6   : > { %6030 = vmatpush1.bf16.msra.mxu1 %v8331_v57  ;;  %6064 = vmatprep.subr.bf16.mxu0 %v8342_v61  ;;  %v8399_v30 = vld [vmem:[%s8893_s24 + $0xf2c] ss:$16 sps:$4 sm:$0xff]   ;;  %v8403_v61 = vld [vmem:[%s8893_s24 + $0xf08] ss:$16 sps:$4 sm:$0xff]  }
 0x2a7   : > { %6031 = vmatprep.subr.bf16.mxu1 %v8339_v42  ;;  %v8402_v60 = vld [vmem:[%s8893_s24 + $0x10ac] ss:$16 sps:$4 sm:$0xff]  }
 0x2a8   : > { %v8405_v63 = vld [vmem:[%s8893_s24 + $0xf0c] ss:$16 sps:$4 sm:$0xff]  }
 0x2a9   : > { %6065 = vmatpush1.bf16.msra.mxu0 %v8340_v48  ;;  %v8408_v42 = vld [vmem:[%s8893_s24 + $0x108c] ss:$16 sps:$4 sm:$0xff]  }
 0x2aa   : > { %6032 = vmatpush2.bf16.msra.mxu1 %v8337_v2  ;;  %6066 = vmatprep.subr.bf16.mxu0 %v8348_v7  ;;  %v8411_v2 = vld [vmem:[%s8893_s24 + $0x106c] ss:$16 sps:$4 sm:$0xff]   ;;  %v8412_v7 = vld [vmem:[%s8893_s24 + $0x12e8] ss:$16 sps:$4 sm:$0xff]  }
 0x2ab   : > { %6033 = vmatprep.subr.bf16.mxu1 %v8345_v27  ;;  %v8414_v48 = vld [vmem:[%s8893_s24 + $0x12ec] ss:$16 sps:$4 sm:$0xff]   ;;  %v8409_v27 = vld [vmem:[%s8893_s24 + $0x1068] ss:$16 sps:$4 sm:$0xff]  }
 0x2ad   : > { %6067 = vmatpush1.bf16.msra.mxu0 %v8346_v8  ;;  %v8420_v8 = vld [vmem:[%s8893_s24 + $0x12cc] ss:$16 sps:$4 sm:$0xff]  }
 0x2ae   : > { %6034 = vmatpush2.bf16.msra.mxu1 %v8343_v49  ;;  %6068 = vmatprep.subr.bf16.mxu0 %v8354_v9  ;;  %v8417_v49 = vld [vmem:[%s8893_s24 + $0x104c] ss:$16 sps:$4 sm:$0xff]  }
 0x2af   : > { %6035 = vmatprep.subr.bf16.mxu1 %v8351_v18 }
 0x2b1   : > { %6069 = vmatpush1.bf16.msra.mxu0 %v8352_v54  ;;  %v8418_v54 = vld [vmem:[%s8893_s24 + $0x12c8] ss:$16 sps:$4 sm:$0xff]  }
 0x2b2   : > { %6036 = vmatpush2.bf16.msra.mxu1 %v8349_v29  ;;  %6070 = vmatprep.subr.bf16.mxu0 %v8360_v11  ;;  %v8415_v29 = vld [vmem:[%s8893_s24 + $0x1048] ss:$16 sps:$4 sm:$0xff]   ;;  %v8423_v11 = vld [vmem:[%s8893_s24 + $0x102c] ss:$16 sps:$4 sm:$0xff]  }
 0x2b3   : > { %6037 = vmatprep.subr.bf16.mxu1 %v8357_v10 }
 0x2b5   : > { %6071 = vmatpush1.bf16.msra.mxu0 %v8358_v23 }
 0x2b6   : > { %6038 = vmatpush2.bf16.msra.mxu1 %v8355_v15  ;;  %6072 = vmatprep.subr.bf16.mxu0 %v8366_v40  ;;  %v8426_v15 = vld [vmem:[%s8893_s24 + $0x12ac] ss:$16 sps:$4 sm:$0xff]   ;;  %v8424_v40 = vld [vmem:[%s8893_s24 + $0x12a8] ss:$16 sps:$4 sm:$0xff]  }
 0x2b7   : > { %6039 = vmatprep.subr.bf16.mxu1 %v8363_v58  ;;  %v8421_v58 = vld [vmem:[%s8893_s24 + $0x1028] ss:$16 sps:$4 sm:$0xff]  }
 0x2b9   : > { %6073 = vmatpush2.bf16.msra.mxu0 %v8364_v24  ;;  %v8429_v24 = vld [vmem:[%s8893_s24 + $0x100c] ss:$16 sps:$4 sm:$0xff]  }
 0x2ba   : > { %6040 = vmatpush2.bf16.msra.mxu1 %v8361_v0  ;;  %6074 = vmatprep.subr.bf16.mxu0 %v8372_v28  ;;  %v8427_v28 = vld [vmem:[%s8893_s24 + $0x1008] ss:$16 sps:$4 sm:$0xff]  }
 0x2bb   : > { %6041 = vmatprep.subr.bf16.mxu1 %v8369_v6  ;;  %v8432_v6 = vld [vmem:[%s8893_s24 + $0x128c] ss:$16 sps:$4 sm:$0xff]  }
 0x2bd   : > { %6075 = vmatpush2.bf16.msra.mxu0 %v8370_v33  ;;  %v8438_v33 = vld [vmem:[%s8893_s24 + $0x126c] ss:$16 sps:$4 sm:$0xff]  }
 0x2be   : > { %6042 = vmatpush2.bf16.msra.mxu1 %v8367_v31  ;;  %6076 = vmatprep.subr.bf16.mxu0 %v8378_v37  ;;  %v8435_v31 = vld [vmem:[%s8893_s24 + $0x11ec] ss:$16 sps:$4 sm:$0xff]   ;;  %v8436_v37 = vld [vmem:[%s8893_s24 + $0x1268] ss:$16 sps:$4 sm:$0xff]  }
 0x2bf   : > { %6043 = vmatprep.subr.bf16.mxu1 %v8375_v34  ;;  %v8433_v34 = vld [vmem:[%s8893_s24 + $0x11e8] ss:$16 sps:$4 sm:$0xff]  }
 0x2c1   : > { %6077 = vmatpush2.bf16.msra.mxu0 %v8376_v41  ;;  %v8444_v41 = vld [vmem:[%s8893_s24 + $0x124c] ss:$16 sps:$4 sm:$0xff]  }
 0x2c2   : > { %6044 = vmatpush2.bf16.msra.mxu1 %v8373_v45  ;;  %6078 = vmatprep.subr.bf16.mxu0 %v8384_v44  ;;  %v8441_v45 = vld [vmem:[%s8893_s24 + $0x11cc] ss:$16 sps:$4 sm:$0xff]   ;;  %v8442_v44 = vld [vmem:[%s8893_s24 + $0x1248] ss:$16 sps:$4 sm:$0xff]  }
 0x2c3   : > { %6045 = vmatprep.subr.bf16.mxu1 %v8381_v32  ;;  %v8439_v32 = vld [vmem:[%s8893_s24 + $0x11c8] ss:$16 sps:$4 sm:$0xff]  }
 0x2c5   : > { %6079 = vmatpush2.bf16.msra.mxu0 %v8382_v38  ;;  %v8450_v38 = vld [vmem:[%s8893_s24 + $0x122c] ss:$16 sps:$4 sm:$0xff]  }
 0x2c6   : > { %6046 = vmatpush2.bf16.msra.mxu1 %v8379_v36  ;;  %6080 = vmatprep.subr.bf16.mxu0 %v8387_v13  ;;  %v8447_v36 = vld [vmem:[%s8893_s24 + $0x11ac] ss:$16 sps:$4 sm:$0xff]   ;;  %v8445_v13 = vld [vmem:[%s8893_s24 + $0x11a8] ss:$16 sps:$4 sm:$0xff]  }
 0x2c7   : > { %6097 = vmatprep.subr.bf16.mxu1 %v8390_v55  ;;  %v8448_v55 = vld [vmem:[%s8893_s24 + $0x1228] ss:$16 sps:$4 sm:$0xff]  }
 0x2c9   : > { %v5803_v52 = vpop.f32.mrf.mxu1  ;;  %6048 = vmatmul.mubr.bf16.vlgmr.msra.gmra.mxu1 %v9275_v12  ;;  %6081 = vmatpush2.bf16.msra.mxu0 %v8385_v39  ;;  %v8397_v12 = vld [vmem:[%s8893_s24 + $0xf28] ss:$16 sps:$4 sm:$0xff]   ;;  %v8453_v39 = vld [vmem:[%s8893_s24 + $0x118c] ss:$16 sps:$4 sm:$0xff]  }
 0x2ca   : > { %6098 = vmatpush1.bf16.msra.mxu1 %v8388_v50  ;;  %6082 = vmatprep.subr.bf16.mxu0 %v8393_v51  ;;  %v8456_v50 = vld [vmem:[%s8893_s24 + $0x120c] ss:$16 sps:$4 sm:$0xff]   ;;  %v8451_v51 = vld [vmem:[%s8893_s24 + $0x1188] ss:$16 sps:$4 sm:$0xff]  }
 0x2cb   : > { %v5805_v35 = vpop.f32.mrf.mxu1  ;;  %6099 = vmatprep.subr.bf16.mxu1 %v8396_v47  ;;  %6129 = vmatprep.mubr.bf16.mxu1 %v9281_v19  ;;  %v8406_v19 = vld [vmem:[%s8893_s24 + $0x1088] ss:$16 sps:$4 sm:$0xff]  }
 0x2cc   : > { %v8454_v47 = vld [vmem:[%s8893_s24 + $0x1208] ss:$16 sps:$4 sm:$0xff]  }
 0x2cd   : > { %v5807_v59 = vpop.f32.mrf.mxu1  ;;  %6083 = vmatpush2.bf16.msra.mxu0 %v8391_v17  ;;  %v8462_v17 = vld [vmem:[%s8893_s24 + $0x13ec] ss:$16 sps:$4 sm:$0xff]  }
 0x2ce   : > { %6100 = vmatpush1.bf16.msra.mxu1 %v8394_v53  ;;  %6084 = vmatprep.subr.bf16.mxu0 %v8399_v30  ;;  %v8457_v53 = vld [vmem:[%s8893_s24 + $0x1168] ss:$16 sps:$4 sm:$0xff]   ;;  %v8465_v30 = vld [vmem:[%s8893_s24 + $0x114c] ss:$16 sps:$4 sm:$0xff]  }
 0x2cf   : > { %v5808_v57 = vpop.f32.mrf.mxu1  ;;  %6101 = vmatprep.subr.bf16.mxu1 %v8402_v60  ;;  %v8468_v60 = vld [vmem:[%s8893_s24 + $0x13cc] ss:$16 sps:$4 sm:$0xff]   ;;  %v8463_v59 = vld [vmem:[%s8893_s24 + $0x1148] ss:$16 sps:$4 sm:$0xff]  }
 0x2d0   : > { %v8474_v57 = vld [vmem:[%s8893_s24 + $0x13ac] ss:$16 sps:$4 sm:$0xff]  }
 0x2d1   : > { %6085 = vmatpush2.bf16.msra.mxu0 %v8397_v12  ;;  %v8466_v12 = vld [vmem:[%s8893_s24 + $0x13c8] ss:$16 sps:$4 sm:$0xff]  }
 0x2d2   : > { %6102 = vmatpush1.bf16.msra.mxu1 %v8400_v56  ;;  %6086 = vmatprep.subr.bf16.mxu0 %v8405_v63  ;;  %v8471_v56 = vld [vmem:[%s8893_s24 + $0x112c] ss:$16 sps:$4 sm:$0xff]   ;;  %v8469_v63 = vld [vmem:[%s8893_s24 + $0x1128] ss:$16 sps:$4 sm:$0xff]  }
 0x2d3   : > { %6103 = vmatprep.subr.bf16.mxu1 %v8408_v42  ;;  %v8472_v42 = vld [vmem:[%s8893_s24 + $0x13a8] ss:$16 sps:$4 sm:$0xff]  }
 0x2d5   : > { %6087 = vmatpush2.bf16.msra.mxu0 %v8403_v61  ;;  %v8477_v61 = vld [vmem:[%s8893_s24 + $0x110c] ss:$16 sps:$4 sm:$0xff]  }
 0x2d6   : > { %6104 = vmatpush1.bf16.msra.mxu1 %v8406_v19  ;;  %6138 = vmatprep.subr.bf16.mxu0 %v8414_v48  ;;  %v8480_v19 = vld [vmem:[%s8893_s24 + $0x138c] ss:$16 sps:$4 sm:$0xff]   ;;  %v8478_v48 = vld [vmem:[%s8893_s24 + $0x1388] ss:$16 sps:$4 sm:$0xff]  }
 0x2d7   : > { %6105 = vmatprep.subr.bf16.mxu1 %v8411_v2  ;;  %v8475_v2 = vld [vmem:[%s8893_s24 + $0x1108] ss:$16 sps:$4 sm:$0xff]  }
 0x2d8   : > { %v5844_v18 = vpop.f32.mrf.mxu0  ;;  %6089 = vmatmul.mubr.bf16.vlgmr.msra.gmra.mxu0 %v9285_v20 }
 0x2d9   : > { %v9806_v9 = vadd.f32 %v5844_v18, %v5803_v52  ;;  %6139 = vmatpush1.bf16.msra.mxu0 %v8412_v7  ;;  %6170 = vmatprep.mubr.bf16.mxu0 %v9293_v25  ;;  %v8430_v25 = vld [vmem:[%s8893_s24 + $0x1288] ss:$16 sps:$4 sm:$0xff]   ;;  %v8459_v52 = vld [vmem:[%s8893_s24 + $0x116c] ss:$16 sps:$4 sm:$0xff]  }
 0x2da   : > { %6106 = vmatpush1.bf16.msra.mxu1 %v8409_v27  ;;  %v5846_v10 = vpop.f32.mrf.mxu0  ;;  %6140 = vmatprep.subr.bf16.mxu0 %v8420_v8  ;;  %v8483_v27 = vld [vmem:[%s8893_s24 + $0x136c] ss:$16 sps:$4 sm:$0xff]   ;;  %v8484_v8 = vld [vmem:[%s8893_s24 + $0x14e8] ss:$16 sps:$4 sm:$0xff]  }
 0x2db   : > { %6107 = vmatprep.subr.bf16.mxu1 %v8417_v49  ;;  %v9812_v23 = vadd.f32 %v5846_v10, %v5805_v35  ;;  %v8460_v35 = vld [vmem:[%s8893_s24 + $0x13e8] ss:$16 sps:$4 sm:$0xff]   ;;  %v8486_v7 = vld [vmem:[%s8893_s24 + $0x14ec] ss:$16 sps:$4 sm:$0xff]  }
 0x2dc   : > { %v5848_v20 = vpop.f32.mrf.mxu0  ;;  %v8481_v49 = vld [vmem:[%s8893_s24 + $0x1368] ss:$16 sps:$4 sm:$0xff]   ;;  %v8489_v18 = vld [vmem:[%s8893_s24 + $0x134c] ss:$16 sps:$4 sm:$0xff]  }
 0x2dd   : > { %6141 = vmatpush1.bf16.msra.mxu0 %v8418_v54 }
 0x2de   : > { %6108 = vmatpush1.bf16.msra.mxu1 %v8415_v29  ;;  %v5849_v0 = vpop.f32.mrf.mxu0  ;;  %6142 = vmatprep.subr.bf16.mxu0 %v8426_v15  ;;  %v8492_v29 = vld [vmem:[%s8893_s24 + $0x14cc] ss:$16 sps:$4 sm:$0xff]   ;;  %v8490_v15 = vld [vmem:[%s8893_s24 + $0x14c8] ss:$16 sps:$4 sm:$0xff]  }
 0x2df   : > { %6109 = vmatprep.subr.bf16.mxu1 %v8423_v11  ;;  %v8487_v11 = vld [vmem:[%s8893_s24 + $0x1348] ss:$16 sps:$4 sm:$0xff]  }
 0x2e1   : > { %6143 = vmatpush1.bf16.msra.mxu0 %v8424_v40  ;;  %v8498_v40 = vld [vmem:[%s8893_s24 + $0x14ac] ss:$16 sps:$4 sm:$0xff]  }
 0x2e2   : > { %6110 = vmatpush1.bf16.msra.mxu1 %v8421_v58  ;;  %6144 = vmatprep.subr.bf16.mxu0 %v8432_v6  ;;  %v8495_v58 = vld [vmem:[%s8893_s24 + $0x132c] ss:$16 sps:$4 sm:$0xff]  }
 0x2e3   : > { %6111 = vmatprep.subr.bf16.mxu1 %v8429_v24  ;;  %v8496_v24 = vld [vmem:[%s8893_s24 + $0x14a8] ss:$16 sps:$4 sm:$0xff]  }
 0x2e5   : > { %6145 = vmatpush1.bf16.msra.mxu0 %v8430_v25  ;;  %v8504_v25 = vld [vmem:[%s8893_s24 + $0x148c] ss:$16 sps:$4 sm:$0xff]  }
 0x2e6   : > { %6112 = vmatpush1.bf16.msra.mxu1 %v8427_v28  ;;  %6146 = vmatprep.subr.bf16.mxu0 %v8438_v33  ;;  %v8501_v28 = vld [vmem:[%s8893_s24 + $0x130c] ss:$16 sps:$4 sm:$0xff]  }
 0x2e7   : > { %6113 = vmatprep.subr.bf16.mxu1 %v8435_v31  ;;  %v8507_v31 = vld [vmem:[%s8893_s24 + $0x146c] ss:$16 sps:$4 sm:$0xff]  }
 0x2e8   : > { %v8510_v33 = vld [vmem:[%s8893_s24 + $0x16ec] ss:$16 sps:$4 sm:$0xff]  }
 0x2e9   : > { %6147 = vmatpush1.bf16.msra.mxu0 %v8436_v37  ;;  %v8508_v37 = vld [vmem:[%s8893_s24 + $0x16e8] ss:$16 sps:$4 sm:$0xff]  }
 0x2ea   : > { %6114 = vmatpush2.bf16.msra.mxu1 %v8433_v34  ;;  %6148 = vmatprep.subr.bf16.mxu0 %v8444_v41  ;;  %v8505_v34 = vld [vmem:[%s8893_s24 + $0x1468] ss:$16 sps:$4 sm:$0xff]   ;;  %v8516_v41 = vld [vmem:[%s8893_s24 + $0x16cc] ss:$16 sps:$4 sm:$0xff]  }
 0x2eb   : > { %6115 = vmatprep.subr.bf16.mxu1 %v8441_v45  ;;  %v8513_v45 = vld [vmem:[%s8893_s24 + $0x144c] ss:$16 sps:$4 sm:$0xff]  }
 0x2ed   : > { %6149 = vmatpush1.bf16.msra.mxu0 %v8442_v44 }
 0x2ee   : > { %6116 = vmatpush2.bf16.msra.mxu1 %v8439_v32  ;;  %6150 = vmatprep.subr.bf16.mxu0 %v8450_v38  ;;  %v8514_v38 = vld [vmem:[%s8893_s24 + $0x16c8] ss:$16 sps:$4 sm:$0xff]  }
 0x2ef   : > { %6117 = vmatprep.subr.bf16.mxu1 %v8447_v36  ;;  %v8511_v36 = vld [vmem:[%s8893_s24 + $0x1448] ss:$16 sps:$4 sm:$0xff]  }
 0x2f1   : > { %6151 = vmatpush1.bf16.msra.mxu0 %v8448_v55  ;;  %v8519_v55 = vld [vmem:[%s8893_s24 + $0x142c] ss:$16 sps:$4 sm:$0xff]  }
 0x2f2   : > { %6118 = vmatpush2.bf16.msra.mxu1 %v8445_v13  ;;  %6152 = vmatprep.subr.bf16.mxu0 %v8456_v50 }
 0x2f3   : > { %6119 = vmatprep.subr.bf16.mxu1 %v8453_v39  ;;  %v8522_v39 = vld [vmem:[%s8893_s24 + $0x16ac] ss:$16 sps:$4 sm:$0xff]  }
 0x2f5   : > { %6153 = vmatpush1.bf16.msra.mxu0 %v8454_v47  ;;  %v8520_v47 = vld [vmem:[%s8893_s24 + $0x16a8] ss:$16 sps:$4 sm:$0xff]  }
 0x2f6   : > { %6120 = vmatpush2.bf16.msra.mxu1 %v8451_v51  ;;  %6154 = vmatprep.subr.bf16.mxu0 %v8462_v17  ;;  %v8517_v51 = vld [vmem:[%s8893_s24 + $0x1428] ss:$16 sps:$4 sm:$0xff]   ;;  %v8525_v17 = vld [vmem:[%s8893_s24 + $0x140c] ss:$16 sps:$4 sm:$0xff]  }
 0x2f7   : > { %6121 = vmatprep.subr.bf16.mxu1 %v8459_v52 }
 0x2f9   : > { %6155 = vmatpush2.bf16.msra.mxu0 %v8460_v35  ;;  %v8523_v35 = vld [vmem:[%s8893_s24 + $0x1408] ss:$16 sps:$4 sm:$0xff]  }
 0x2fa   : > { %6122 = vmatpush2.bf16.msra.mxu1 %v8457_v53  ;;  %6156 = vmatprep.subr.bf16.mxu0 %v8468_v60  ;;  %v8528_v53 = vld [vmem:[%s8893_s24 + $0x168c] ss:$16 sps:$4 sm:$0xff]  }
 0x2fb   : > { %6123 = vmatprep.subr.bf16.mxu1 %v8465_v30  ;;  %v8531_v30 = vld [vmem:[%s8893_s24 + $0x15ec] ss:$16 sps:$4 sm:$0xff]  }
 0x2fc   : > { %v8534_v60 = vld [vmem:[%s8893_s24 + $0x166c] ss:$16 sps:$4 sm:$0xff]  }
 0x2fd   : > { %6157 = vmatpush2.bf16.msra.mxu0 %v8466_v12  ;;  %v8532_v12 = vld [vmem:[%s8893_s24 + $0x1668] ss:$16 sps:$4 sm:$0xff]  }
 0x2fe   : > { %6124 = vmatpush2.bf16.msra.mxu1 %v8463_v59  ;;  %6158 = vmatprep.subr.bf16.mxu0 %v8474_v57  ;;  %v8529_v59 = vld [vmem:[%s8893_s24 + $0x15e8] ss:$16 sps:$4 sm:$0xff]   ;;  %v8540_v57 = vld [vmem:[%s8893_s24 + $0x164c] ss:$16 sps:$4 sm:$0xff]  }
 0x2ff   : > { %6125 = vmatprep.subr.bf16.mxu1 %v8471_v56  ;;  %v8537_v56 = vld [vmem:[%s8893_s24 + $0x15cc] ss:$16 sps:$4 sm:$0xff]  }
 0x301   : > { %6159 = vmatpush2.bf16.msra.mxu0 %v8472_v42  ;;  %v8538_v42 = vld [vmem:[%s8893_s24 + $0x1648] ss:$16 sps:$4 sm:$0xff]  }
 0x302   : > { %6126 = vmatpush2.bf16.msra.mxu1 %v8469_v63  ;;  %6160 = vmatprep.subr.bf16.mxu0 %v8480_v19  ;;  %v8535_v63 = vld [vmem:[%s8893_s24 + $0x15c8] ss:$16 sps:$4 sm:$0xff]   ;;  %v8546_v19 = vld [vmem:[%s8893_s24 + $0x162c] ss:$16 sps:$4 sm:$0xff]  }
 0x303   : > { %6127 = vmatprep.subr.bf16.mxu1 %v8477_v61  ;;  %v8543_v61 = vld [vmem:[%s8893_s24 + $0x15ac] ss:$16 sps:$4 sm:$0xff]  }
 0x305   : > { %6161 = vmatpush2.bf16.msra.mxu0 %v8478_v48  ;;  %v8544_v48 = vld [vmem:[%s8893_s24 + $0x1628] ss:$16 sps:$4 sm:$0xff]  }
 0x306   : > { %6128 = vmatpush2.bf16.msra.mxu1 %v8475_v2  ;;  %6162 = vmatprep.subr.bf16.mxu0 %v8483_v27  ;;  %v8541_v2 = vld [vmem:[%s8893_s24 + $0x15a8] ss:$16 sps:$4 sm:$0xff]   ;;  %v8549_v27 = vld [vmem:[%s8893_s24 + $0x158c] ss:$16 sps:$4 sm:$0xff]  }
 0x307   : > { %6179 = vmatprep.subr.bf16.mxu1 %v8486_v7  ;;  %v8552_v7 = vld [vmem:[%s8893_s24 + $0x160c] ss:$16 sps:$4 sm:$0xff]  }
 0x309   : > { %v5885_v54 = vpop.f32.mrf.mxu1  ;;  %6130 = vmatmul.mubr.bf16.vlgmr.msra.gmra.mxu1 %v9368_v3  ;;  %6163 = vmatpush2.bf16.msra.mxu0 %v8481_v49  ;;  %v8547_v49 = vld [vmem:[%s8893_s24 + $0x1588] ss:$16 sps:$4 sm:$0xff]  }
 0x30a   : > { %v5886_v10 = vadd.f32 %v5885_v54, %v9806_v9  ;;  %6180 = vmatpush1.bf16.msra.mxu1 %v8484_v8  ;;  %6164 = vmatprep.subr.bf16.mxu0 %v8489_v18  ;;  %v8493_v9 = vld [vmem:[%s8893_s24 + $0x1328] ss:$16 sps:$4 sm:$0xff]   ;;  %v8555_v18 = vld [vmem:[%s8893_s24 + $0x156c] ss:$16 sps:$4 sm:$0xff]  }
 0x30b   : > { %v5887_v20 = vpop.f32.mrf.mxu1  ;;  %6181 = vmatprep.subr.bf16.mxu1 %v8492_v29  ;;  %6211 = vmatprep.mubr.bf16.mxu1 %v9377_v14  ;;  %v8502_v14 = vld [vmem:[%s8893_s24 + $0x1488] ss:$16 sps:$4 sm:$0xff]   ;;  %v8558_v29 = vld [vmem:[%s8893_s24 + $0x17ec] ss:$16 sps:$4 sm:$0xff]  }
 0x30c   : > { %v5888_v0 = vadd.f32 %v5887_v20, %v9812_v23  ;;  %v8499_v23 = vld [vmem:[%s8893_s24 + $0x1308] ss:$16 sps:$4 sm:$0xff]  }
 0x30d   : > { %v5889_v3 = vpop.f32.mrf.mxu1  ;;  %6165 = vmatpush2.bf16.msra.mxu0 %v8487_v11  ;;  %v8550_v8 = vld [vmem:[%s8893_s24 + $0x1608] ss:$16 sps:$4 sm:$0xff]   ;;  %v8561_v11 = vld [vmem:[%s8893_s24 + $0x154c] ss:$16 sps:$4 sm:$0xff]  }
 0x30e   : > { %6182 = vmatpush1.bf16.msra.mxu1 %v8490_v15  ;;  %6166 = vmatprep.subr.bf16.mxu0 %v8495_v58  ;;  %v8553_v54 = vld [vmem:[%s8893_s24 + $0x1568] ss:$16 sps:$4 sm:$0xff]   ;;  %v8564_v15 = vld [vmem:[%s8893_s24 + $0x17cc] ss:$16 sps:$4 sm:$0xff]  }
 0x30f   : > { %v5890_v6 = vpop.f32.mrf.mxu1  ;;  %6183 = vmatprep.subr.bf16.mxu1 %v8498_v40  ;;  %v8559_v20 = vld [vmem:[%s8893_s24 + $0x1548] ss:$16 sps:$4 sm:$0xff]   ;;  %v8567_v40 = vld [vmem:[%s8893_s24 + $0x152c] ss:$16 sps:$4 sm:$0xff]  }
 0x310   : > { %v8562_v58 = vld [vmem:[%s8893_s24 + $0x17c8] ss:$16 sps:$4 sm:$0xff]   ;;  %v8576_v6 = vld [vmem:[%s8893_s24 + $0x178c] ss:$16 sps:$4 sm:$0xff]  }
 0x311   : > { %6167 = vmatpush2.bf16.msra.mxu0 %v8493_v9  ;;  %v8565_v3 = vld [vmem:[%s8893_s24 + $0x1528] ss:$16 sps:$4 sm:$0xff]  }
 0x312   : > { %6184 = vmatpush1.bf16.msra.mxu1 %v8496_v24  ;;  %6168 = vmatprep.subr.bf16.mxu0 %v8501_v28  ;;  %v8568_v9 = vld [vmem:[%s8893_s24 + $0x17a8] ss:$16 sps:$4 sm:$0xff]   ;;  %v8573_v24 = vld [vmem:[%s8893_s24 + $0x150c] ss:$16 sps:$4 sm:$0xff]  }
 0x313   : > { %6185 = vmatprep.subr.bf16.mxu1 %v8504_v25  ;;  %v8571_v28 = vld [vmem:[%s8893_s24 + $0x1508] ss:$16 sps:$4 sm:$0xff]  }
 0x314   : > { %v8574_v25 = vld [vmem:[%s8893_s24 + $0x1788] ss:$16 sps:$4 sm:$0xff]  }
 0x315   : > { %6169 = vmatpush2.bf16.msra.mxu0 %v8499_v23  ;;  %v8579_v23 = vld [vmem:[%s8893_s24 + $0x176c] ss:$16 sps:$4 sm:$0xff]  }
 0x316   : > { %6186 = vmatpush1.bf16.msra.mxu1 %v8502_v14  ;;  %6220 = vmatprep.subr.bf16.mxu0 %v8510_v33  ;;  %v8582_v14 = vld [vmem:[%s8893_s24 + $0x186c] ss:$16 sps:$4 sm:$0xff]   ;;  %v8580_v33 = vld [vmem:[%s8893_s24 + $0x1868] ss:$16 sps:$4 sm:$0xff]  }
 0x317   : > { %6187 = vmatprep.subr.bf16.mxu1 %v8507_v31  ;;  %v8577_v31 = vld [vmem:[%s8893_s24 + $0x1768] ss:$16 sps:$4 sm:$0xff]  }
 0x318   : > { %v5926_v32 = vpop.f32.mrf.mxu0  ;;  %6171 = vmatmul.mubr.bf16.vlgmr.msra.gmra.mxu0 %v9381_v4 }
 0x319   : > { %v9880_v44 = vadd.f32 %v5926_v32, %v5886_v10  ;;  %6221 = vmatpush1.bf16.msra.mxu0 %v8508_v37  ;;  %6252 = vmatprep.mubr.bf16.mxu0 %v9389_v22  ;;  %v8526_v22 = vld [vmem:[%s8893_s24 + $0x1688] ss:$16 sps:$4 sm:$0xff]   ;;  %v8588_v37 = vld [vmem:[%s8893_s24 + $0x184c] ss:$16 sps:$4 sm:$0xff]  }
 0x31a   : > { %6188 = vmatpush1.bf16.msra.mxu1 %v8505_v34  ;;  %v5928_v13 = vpop.f32.mrf.mxu0  ;;  %6222 = vmatprep.subr.bf16.mxu0 %v8516_v41  ;;  %v8556_v10 = vld [vmem:[%s8893_s24 + $0x17e8] ss:$16 sps:$4 sm:$0xff]   ;;  %v8585_v34 = vld [vmem:[%s8893_s24 + $0x174c] ss:$16 sps:$4 sm:$0xff]  }
 0x31b   : > { %6189 = vmatprep.subr.bf16.mxu1 %v8513_v45  ;;  %v9886_v50 = vadd.f32 %v5928_v13, %v5888_v0  ;;  %v8570_v0 = vld [vmem:[%s8893_s24 + $0x17ac] ss:$16 sps:$4 sm:$0xff]   ;;  %v8583_v32 = vld [vmem:[%s8893_s24 + $0x1748] ss:$16 sps:$4 sm:$0xff]  }
 0x31c   : > { %v5930_v4 = vpop.f32.mrf.mxu0  ;;  %v8591_v13 = vld [vmem:[%s8893_s24 + $0x172c] ss:$16 sps:$4 sm:$0xff]  }
 0x31d   : > { %6223 = vmatpush1.bf16.msra.mxu0 %v8514_v38  ;;  %v8592_v4 = vld [vmem:[%s8893_s24 + $0x1828] ss:$16 sps:$4 sm:$0xff]  }
 0x31e   : > { %6190 = vmatpush1.bf16.msra.mxu1 %v8511_v36  ;;  %v5931_v52 = vpop.f32.mrf.mxu0  ;;  %6224 = vmatprep.subr.bf16.mxu0 %v8522_v39  ;;  %v8586_v36 = vld [vmem:[%s8893_s24 + $0x1848] ss:$16 sps:$4 sm:$0xff]  }
 0x31f   : > { %6191 = vmatprep.subr.bf16.mxu1 %v8519_v55  ;;  %v8594_v55 = vld [vmem:[%s8893_s24 + $0x182c] ss:$16 sps:$4 sm:$0xff]  }
 0x320   : > { %v8600_v52 = vld [vmem:[%s8893_s24 + $0x180c] ss:$16 sps:$4 sm:$0xff]  }
 0x321   : > { %6225 = vmatpush1.bf16.msra.mxu0 %v8520_v47  ;;  %v8597_v47 = vld [vmem:[%s8893_s24 + $0x170c] ss:$16 sps:$4 sm:$0xff]  }
 0x322   : > { %6192 = vmatpush1.bf16.msra.mxu1 %v8517_v51  ;;  %6226 = vmatprep.subr.bf16.mxu0 %v8528_v53  ;;  %v8598_v53 = vld [vmem:[%s8893_s24 + $0x1808] ss:$16 sps:$4 sm:$0xff]  }
 0x323   : > { %6193 = vmatprep.subr.bf16.mxu1 %v8525_v17  ;;  %v8595_v17 = vld [vmem:[%s8893_s24 + $0x1708] ss:$16 sps:$4 sm:$0xff]  }
 0x325   : > { %6227 = vmatpush1.bf16.msra.mxu0 %v8526_v22 }
 0x326   : > { %6194 = vmatpush1.bf16.msra.mxu1 %v8523_v35  ;;  %6228 = vmatprep.subr.bf16.mxu0 %v8534_v60 }
 0x327   : > { %6195 = vmatprep.subr.bf16.mxu1 %v8531_v30 }
 0x329   : > { %6229 = vmatpush1.bf16.msra.mxu0 %v8532_v12 }
 0x32a   : > { %6196 = vmatpush2.bf16.msra.mxu1 %v8529_v59  ;;  %6230 = vmatprep.subr.bf16.mxu0 %v8540_v57 }
 0x32b   : > { %6197 = vmatprep.subr.bf16.mxu1 %v8537_v56 }
 0x32d   : > { %6231 = vmatpush1.bf16.msra.mxu0 %v8538_v42 }
 0x32e   : > { %6198 = vmatpush2.bf16.msra.mxu1 %v8535_v63  ;;  %6232 = vmatprep.subr.bf16.mxu0 %v8546_v19 }
 0x32f   : > { %6199 = vmatprep.subr.bf16.mxu1 %v8543_v61 }
 0x331   : > { %6233 = vmatpush1.bf16.msra.mxu0 %v8544_v48 }
 0x332   : > { %6200 = vmatpush2.bf16.msra.mxu1 %v8541_v2  ;;  %6234 = vmatprep.subr.bf16.mxu0 %v8552_v7 }
 0x333   : > { %6201 = vmatprep.subr.bf16.mxu1 %v8549_v27 }
 0x335   : > { %6235 = vmatpush1.bf16.msra.mxu0 %v8550_v8 }
 0x336   : > { %6202 = vmatpush2.bf16.msra.mxu1 %v8547_v49  ;;  %6236 = vmatprep.subr.bf16.mxu0 %v8558_v29 }
 0x337   : > { %6203 = vmatprep.subr.bf16.mxu1 %v8555_v18 }
 0x339   : > { %6237 = vmatpush2.bf16.msra.mxu0 %v8556_v10 }
 0x33a   : > { %6204 = vmatpush2.bf16.msra.mxu1 %v8553_v54  ;;  %6238 = vmatprep.subr.bf16.mxu0 %v8564_v15 }
 0x33b   : > { %6205 = vmatprep.subr.bf16.mxu1 %v8561_v11 }
 0x33d   : > { %6239 = vmatpush2.bf16.msra.mxu0 %v8562_v58 }
 0x33e   : > { %6206 = vmatpush2.bf16.msra.mxu1 %v8559_v20  ;;  %6240 = vmatprep.subr.bf16.mxu0 %v8570_v0 }
 0x33f   : > { %6207 = vmatprep.subr.bf16.mxu1 %v8567_v40 }
 0x341   : > { %6241 = vmatpush2.bf16.msra.mxu0 %v8568_v9  ;;  %v6314_v9 = vsub.s32 2, %v8949_v43 }
 0x342   : > { %6208 = vmatpush2.bf16.msra.mxu1 %v8565_v3  ;;  %6242 = vmatprep.subr.bf16.mxu0 %v8576_v6 }
 0x343   : > { %6209 = vmatprep.subr.bf16.mxu1 %v8573_v24 }
 0x345   : > { %6243 = vmatpush2.bf16.msra.mxu0 %v8574_v25 }
 0x346   : > { %6210 = vmatpush2.bf16.msra.mxu1 %v8571_v28  ;;  %6244 = vmatprep.subr.bf16.mxu0 %v8579_v23  ;;  %v6318_v28 = vsub.s32 3, %v8949_v43 }
 0x347   : > { %6269 = vmatprep.subr.bf16.mxu1 %v8582_v14 }
 0x349   : > { %v5967_v45 = vpop.f32.mrf.mxu1  ;;  %6212 = vmatmul.mubr.bf16.vlgmr.msra.gmra.mxu1 %v9457_v5  ;;  %6245 = vmatpush2.bf16.msra.mxu0 %v8577_v31 }
 0x34a   : > { %v5968_v41 = vadd.f32 %v5967_v45, %v9880_v44  ;;  %6270 = vmatpush1.bf16.msra.mxu1 %v8580_v33  ;;  %6246 = vmatprep.subr.bf16.mxu0 %v8585_v34  ;;  %v8589_v44 = vld [vmem:[%s8893_s24 + $0x1728] ss:$16 sps:$4 sm:$0xff]   ;;  %v6315_v33 = vrot.slane %v9720_v21, %v6314_v9  ;;  %v8749_v34 = vmov 1983009808  }
 0x34b   : > { %v5969_v38 = vpop.f32.mrf.mxu1  ;;  %6271 = vmatprep.subr.bf16.mxu1 %v8588_v37  ;;  %6293 = vmatprep.mubr.bf16.mxu1 %v8748_v46  ;;  %v6369_v37 = vunpack.c.l.s4 %v8749_v34 }
 0x34c   : > { %v5970_v39 = vadd.f32 %v5969_v38, %v9886_v50 }
 0x34d   : > { %v5971_v5 = vpop.f32.mrf.mxu1  ;;  %6247 = vmatpush2.bf16.msra.mxu0 %v8583_v32 }
 0x34e   : > { %6272 = vmatpush1.bf16.msra.mxu1 %v8586_v36  ;;  %6248 = vmatprep.subr.bf16.mxu0 %v8591_v13  ;;  %v6341_v36 = vrot.slane %v9727_v26, %v6314_v9  ;;  %v6319_v13 = vrot.slane %v9720_v21, %v6318_v28 }
 0x34f   : > { %v5972_v51 = vpop.f32.mrf.mxu1  ;;  %6273 = vmatprep.subr.bf16.mxu1 %v8594_v55 }
 0x351   : > { %6249 = vmatpush2.bf16.msra.mxu0 %v8589_v44 }
 0x352   : > { %6274 = vmatpush1.bf16.msra.mxu1 %v8592_v4  ;;  %6250 = vmatprep.subr.bf16.mxu0 %v8597_v47  ;;  %v6345_v4 = vrot.slane %v9727_v26, %v6318_v28 }
 0x353   : > { %6275 = vmatprep.subr.bf16.mxu1 %v8600_v52  ;;  %v6370_v52 = vunpack.c.0.s8 %v6369_v37 }
 0x355   : > { %6251 = vmatpush2.bf16.msra.mxu0 %v8595_v17 }
 0x356   : > { %6276 = vmatpush1.bf16.msra.mxu1 %v8598_v53 }
 0x358   : > { %v6008_v50 = vpop.f32.mrf.mxu0  ;;  %6253 = vmatmul.mubr.bf16.vlgmr.msra.gmra.mxu0 %v9467_v16 }
 0x359   : > { %7339 = vmatmul.mubr.msk.bf16.vlgmr.msra.gmra.mxu1 %vm5232_vm0, %v9499_v62  ;;  %v6009_v46 = vadd.f32 %v6008_v50, %v5968_v41 }
 0x35a   : > { %v6010_v35 = vpop.f32.mrf.mxu0 }
 0x35b   : > { %v6011_v22 = vadd.f32 %v6010_v35, %v5970_v39 }
 0x35c   : > { %v6012_v30 = vpop.f32.mrf.mxu0 }
 0x35e   : > { %v6013_v60 = vpop.f32.mrf.mxu0 }
 0x389   : > { %v6049_v59 = vpop.f32.mrf.mxu1 }
 0x38a   : > { %v6050_v12 = vadd.f32 %v6049_v59, %v6009_v46  ;;  %v6373_v46 = vsub.s32 %v6370_v52, %v8949_v43 }
 0x38b   : > { %v6051_v56 = vpop.f32.mrf.mxu1 }
 0x38c   : > { %v6052_v57 = vadd.f32 %v6051_v56, %v6011_v22  ;;  %v6374_v30 = vrot.slane %v9749_v1, %v6373_v46 }
 0x38d   : > { %v6053_v63 = vpop.f32.mrf.mxu1 }
 0x38f   : > { %v6054_v42 = vpop.f32.mrf.mxu1 }
 0x398   : > { %v6090_v61 = vpop.f32.mrf.mxu0 }
 0x399   : > { %v6091_v19 = vadd.f32 %v6090_v61, %v6050_v12 }
 0x39a   : > { %v6092_v2 = vpop.f32.mrf.mxu0 }
 0x39b   : > { %v6093_v48 = vadd.f32 %v6092_v2, %v6052_v57 }
 0x39c   : > { %v6094_v27 = vpop.f32.mrf.mxu0 }
 0x39e   : > { %v6095_v16 = vpop.f32.mrf.mxu0 }
 0x3c9   : > { %v6131_v7 = vpop.f32.mrf.mxu1 }
 0x3ca   : > { %v6132_v49 = vadd.f32 %v6131_v7, %v6091_v19 }
 0x3cb   : > { %v6133_v62 = vpop.f32.mrf.mxu1 }
 0x3cc   : > { %v6134_v8 = vadd.f32 %v6133_v62, %v6093_v48 }
 0x3cd   : > { %v6135_v18 = vpop.f32.mrf.mxu1 }
 0x3cf   : > { %v6136_v29 = vpop.f32.mrf.mxu1 }
 0x3d8   : > { %v6172_v54 = vpop.f32.mrf.mxu0 }
 0x3d9   : > { %v6173_v3 = vadd.f32 %v6172_v54, %v6132_v49 }
 0x3da   : > { %v6174_v10 = vpop.f32.mrf.mxu0 }
 0x3db   : > { %v6175_v24 = vadd.f32 %v6174_v10, %v6134_v8 }
 0x3dc   : > { %v6176_v11 = vpop.f32.mrf.mxu0 }
 0x3de   : > { %v6177_v15 = vpop.f32.mrf.mxu0 }
 0x409   : > { %v6213_v20 = vpop.f32.mrf.mxu1 }
 0x40a   : > { %v6214_v6 = vadd.f32 %v6213_v20, %v6173_v3 }
 0x40b   : > { %v6215_v58 = vpop.f32.mrf.mxu1 }
 0x40c   : > { %v6216_v14 = vadd.f32 %v6215_v58, %v6175_v24 }
 0x40d   : > { %v6217_v40 = vpop.f32.mrf.mxu1 }
 0x40f   : > { %v6218_v0 = vpop.f32.mrf.mxu1 }
 0x418   : > { %v6254_v25 = vpop.f32.mrf.mxu0 }
 0x419   : > { %v6295_v23 = vpop.f32.mrf.mxu1  ;;  %v6255_v31 = vadd.f32 %v6254_v25, %v6214_v6 }
 0x41a   : > { %v6256_v45 = vpop.f32.mrf.mxu0 }
 0x41b   : > { %v6297_v41 = vpop.f32.mrf.mxu1  ;;  %v6296_v32 = vadd.f32 %v6295_v23, %v6255_v31  ;;  %v6257_v38 = vadd.f32 %v6256_v45, %v6216_v14 }
 0x41c   : > { %v6258_v55 = vpop.f32.mrf.mxu0 }
 0x41d   : > { %v6299_v39 = vpop.f32.mrf.mxu1  ;;  %v6326_v5 = vmul.f32 %v6315_v33, %v6296_v32  ;;  %v6298_v44 = vadd.f32 %v6297_v41, %v6257_v38 }
 0x41e   : > { %v6259_v51 = vpop.f32.mrf.mxu0 }
 0x41f   : > { %v6300_v47 = vpop.f32.mrf.mxu1  ;;  %v6352_v17 = vadd.f32 %v6341_v36, %v6326_v5  ;;  %v6327_v53 = vmul.f32 %v6319_v13, %v6298_v44 }
 0x421   : > { %v6353_v50 = vadd.f32 %v6345_v4, %v6327_v53  ;;  %v7342_v35 = vclamps-f32 %v6352_v17, 1.0 }
 0x423   : > { %v7343_v22 = vclamps-f32 %v6353_v50, 1.0 }
 0x425   : > { %v6367_v21 = vcombine.low %v7342_v35, %v7343_v22 }
 0x427   : > { %v6381_v60 = vrot.slane %v6367_v21, %v6373_v46 }
 0x429   : > { %v6382_v26 = vcombine.low %v6374_v30, %v6381_v60 }
 0x42b   : > { %6384 = vst [vmem:[%s332_s7] sm:$0xff] %v6382_v26 }
 0x42c PF: > { %s20_s20 = sadd.s32 1, %s8739_s20   ;;  %s9990_s15 = smov %s8723_s16 }
 0x42d   : > { %p17_p9 = scmp.ge.s32.totalorder %s20_s20, 6   ;;  %s9991_s16 = smov %s8727_s17 }
 0x42e   : > { %s9992_s17 = smov %s8822_s26  ;;  %s9993_s18 = smov %s8735_s19 }
 0x42f   : > { %s9994_s19 = smov %s9996_s22  ;;  %19 = sbr.rel (!%p17_p9) target bundleno = 6 (0x6), region = 103 }
 0x434   :  { %6415 = vsyncpa [#allocation3], 1 }
 0x435   :  { %6417 = vsyncpa [#allocation3 + $0x1], 1 }
 0x436   :  { %6418 = vsyncpa [#allocation5], 1 }
 0x437   :  { %6420 = vsyncpa [#allocation5 + $0x1], 1 }

</bundles_post_ra>
